<compile_context>
chip_gen: v6e
topology: v6e:2x2x1
jax: 0.10.0
libtpu: 0.0.40
codegen_flags: <defaults>
</compile_context>

<pallas_src>
import functools
import numpy as np
import jax
import jax.numpy as jnp
from jax import lax
from jax.experimental import pallas as pl
from jax.experimental.pallas import tpu as pltpu


# ---------------------------------------------------------------------------
# chip-aware sizing helpers
# ---------------------------------------------------------------------------
def _vmem_capacity_bytes():
    try:
        info = pltpu.get_tpu_info()
        cap = getattr(info, "vmem_capacity_bytes", None)
        if cap:
            return int(cap)
    except Exception:
        pass
    return 64 * 1024 * 1024          # conservative fallback (v7x per-TC VMEM)


_VMEM_CAP = _vmem_capacity_bytes()
_VMEM_LIMIT = min(max(32 * 1024 * 1024, int(0.7 * _VMEM_CAP)), 96 * 1024 * 1024)


def _gauss1d(win_size, win_sigma):
    coords = np.arange(win_size, dtype=np.float64) - win_size // 2
    g = np.exp(-(coords ** 2) / (2.0 * win_sigma ** 2))
    return g / g.sum()


def _largest_divisor_leq(n, cap):
    cap = max(1, min(n, int(cap)))
    best = 1
    for d in range(1, cap + 1):
        if n % d == 0:
            best = d
    return best


# ---------------------------------------------------------------------------
# Kernel 1: fused image L1 + SSIM (plane groups, VPU separable Gaussian)
# ---------------------------------------------------------------------------
def _image_loss_kernel(x_ref, y_ref, l1_ref, ss_ref, *, gtaps, hout, wout, c1, c2):
    x = x_ref[...]                    # (P, H, W) f32
    y = y_ref[...]
    win = len(gtaps)

    l1 = jnp.sum(jnp.abs(x - y))

    def filt(z):                      # valid separable Gaussian, shifted MACs on VPU
        t = gtaps[0] * z[:, :, 0:wout]
        for k in range(1, win):
            t = t + gtaps[k] * z[:, :, k:k + wout]
        r = gtaps[0] * t[:, 0:hout, :]
        for k in range(1, win):
            r = r + gtaps[k] * t[:, k:k + hout, :]
        return r

    mu1 = filt(x)
    mu2 = filt(y)
    mu1_sq = mu1 * mu1
    mu2_sq = mu2 * mu2
    mu12 = mu1 * mu2
    s1 = filt(x * x) - mu1_sq
    s2 = filt(y * y) - mu2_sq
    s12 = filt(x * y) - mu12

    num = (2.0 * mu12 + c1) * (2.0 * s12 + c2)
    den = (mu1_sq + mu2_sq + c1) * (s1 + s2 + c2)
    r = pl.reciprocal(den, approx=True)      # EUP slot
    r = r * (2.0 - den * r)                  # one Newton step -> ~f32 accuracy
    ssum = jnp.sum(num * r)

    ones = jnp.ones((1, 8, 128), jnp.float32)   # lane-dense scalar broadcast
    l1_ref[...] = l1 * ones
    ss_ref[...] = ssum * ones


def _image_l1_ssim_sums(x, y, win_size, win_sigma, data_range=1.0):
    N, C, H, W = x.shape
    NC = N * C
    Hout, Wout = H - win_size + 1, W - win_size + 1
    gtaps = tuple(float(v) for v in _gauss1d(win_size, win_sigma))
    c1 = (0.01 * data_range) ** 2
    c2 = (0.03 * data_range) ** 2

    # plane-group size: biggest divisor of N*C whose per-step working set
    # (double-buffered x/y blocks + ~14 f32 map temporaries) fits the budget.
    budget = max(int(0.35 * _VMEM_CAP), 4 * 1024 * 1024)
    per_plane = H * W * 4 * 18
    P = _largest_divisor_leq(NC, budget // max(per_plane, 1))
    # TODO(synk): for very large planes (P==1 still over budget) add row tiling
    # with a (win_size-1) halo instead of whole-plane blocks.
    n_groups = NC // P

    xs = x.astype(jnp.float32).reshape(NC, H, W)    # reshape only, no transpose
    ys = y.astype(jnp.float32).reshape(NC, H, W)

    kernel = functools.partial(_image_loss_kernel, gtaps=gtaps,
                               hout=Hout, wout=Wout, c1=c1, c2=c2)
    l1p, ssp = pl.pallas_call(
        kernel,
        out_shape=(jax.ShapeDtypeStruct((n_groups, 8, 128), jnp.float32),
                   jax.ShapeDtypeStruct((n_groups, 8, 128), jnp.float32)),
        grid=(n_groups,),
        in_specs=[pl.BlockSpec((P, H, W), lambda i: (i, 0, 0)),
                  pl.BlockSpec((P, H, W), lambda i: (i, 0, 0))],
        out_specs=(pl.BlockSpec((1, 8, 128), lambda i: (i, 0, 0)),
                   pl.BlockSpec((1, 8, 128), lambda i: (i, 0, 0))),
        compiler_params=pltpu.CompilerParams(
            dimension_semantics=("parallel",),
            vmem_limit_bytes=_VMEM_LIMIT),
    )(xs, ys)

    return jnp.sum(l1p[:, 0, 0]), jnp.sum(ssp[:, 0, 0]), Hout, Wout


# ---------------------------------------------------------------------------
# Kernel 2: fused VGG(conv1+relu, conv2+relu) for both branches + perceptual L1
# ---------------------------------------------------------------------------
def _conv_percep_kernel(w1_ref, b1_ref, w2_ref, b2_ref, cx_ref, cy_ref,
                        out_ref, fpad_ref, *, TR, W, CO1, CO2, G):
    g = pl.program_id(1)
    M1 = (TR + 2) * W          # conv1 rows per block (incl. 2 halo rows)
    M2 = TR * W                # conv2 rows per block

    # branch-free mask: conv1 halo rows that coincide with conv2's zero padding
    # (top row of block 0, bottom row of block G-1) are forced to zero.
    mi = lax.broadcasted_iota(jnp.int32, (M1, 1), 0)
    top_ok = jnp.logical_or(mi >= W, g != 0)
    bot_ok = jnp.logical_or(mi < M1 - W, g != G - 1)
    rowmask = jnp.where(jnp.logical_and(top_ok, bot_ok), 1.0, 0.0)

    def conv1(col_ref):
        colT = col_ref[0, 0]                                    # (32, M1) bf16, K in sublanes
        f = lax.dot_general(colT, w1_ref[...],
                            dimension_numbers=(((0,), (0,)), ((), ())),
                            preferred_element_type=jnp.float32)  # (M1, CO1) f32
        f = jnp.maximum(f + b1_ref[...], 0.0) * rowmask
        return f.reshape(TR + 2, W, CO1).astype(fpad_ref.dtype)

    # conv1 features live only in VMEM; zero just the 2 halo columns (conv2's
    # horizontal zero padding) instead of zero-filling the whole scratch.
    zcol = jnp.zeros((2, TR + 2, 1, CO1), fpad_ref.dtype)
    fpad_ref[:, :, 0:1, :] = zcol
    fpad_ref[:, :, W + 1:W + 2, :] = zcol
    fpad_ref[0, :, 1:W + 1, :] = conv1(cx_ref)
    fpad_ref[1, :, 1:W + 1, :] = conv1(cy_ref)

    # hoist the 3 kx shifts out of the tap loop and K-concatenate them so conv2
    # runs as 3 matmuls with K = 3*CO1 = 192 (one MXU pass each) instead of
    # 9 K=64 dots; both branches are stacked along rows.
    c = jnp.concatenate([fpad_ref[:, :, 0:W, :],
                         fpad_ref[:, :, 1:W + 1, :],
                         fpad_ref[:, :, 2:W + 2, :]], axis=-1)   # (2, TR+2, W, 3*CO1)

    acc = jnp.zeros((2 * M2, CO2), jnp.float32)
    for ky in range(3):
        lhs = c[:, ky:ky + TR].reshape(2 * M2, 3 * CO1)
        acc = acc + jnp.dot(lhs, w2_ref[ky], preferred_element_type=jnp.float32)
    f2 = jnp.maximum(acc + b2_ref[...], 0.0)

    diff = jnp.abs(f2[:M2, :] - f2[M2:, :])
    out_ref[...] = jnp.sum(diff) * jnp.ones((1, 1, 8, 128), jnp.float32)


def _conv1_colT_blocks(xn, TR):
    """Single-pass, lane-dense, K-in-sublane conv1 im2col over row blocks
    (each block carries a 2-row halo).  Returns (N, G, 32, (TR+2)*W) bf16 with
    K = ci*9 + dy*3 + dx (padded 27->32) and m = local_row*W + x."""
    N, C, H, W = xn.shape
    G = H // TR
    xpp = jnp.pad(xn, ((0, 0), (0, 0), (2, 2), (1, 1)))
    taps = [xpp[:, :, dy:dy + H + 2, dx:dx + W]
            for dy in range(3) for dx in range(3)]
    colT = jnp.stack(taps, axis=2).reshape(N, C * 9, H + 2, W)
    colT = jnp.pad(colT, ((0, 0), (0, 32 - C * 9), (0, 0), (0, 0)))
    rows = np.arange(G)[:, None] * TR + np.arange(TR + 2)[None, :]
    colB = colT[:, :, rows, :]                               # (N, 32, G, TR+2, W)
    colB = colB.transpose(0, 2, 1, 3, 4).reshape(N, G, 32, (TR + 2) * W)
    return colB.astype(jnp.bfloat16)


def _perceptual_l1_sum(inputs, targets, params):
    N, C, H, W = inputs.shape
    assert C == 3
    CO1 = params["w1"].shape[0]
    CO2 = params["w2"].shape[0]

    # chip-aware row tile: bound the per-step VMEM working set (~4 KB / output px)
    budget = max(int(0.45 * _VMEM_CAP), 8 * 1024 * 1024)
    TR = _largest_divisor_leq(H, min(64, budget // (4200 * max(W, 1))))
    # TODO(synk): prime H degenerates to TR=1 (G=H tiny steps); pad H or add a
    # remainder block for such shapes.
    G = H // TR
    M1 = (TR + 2) * W
    M2 = TR * W

    mean = jnp.array([0.485, 0.456, 0.406], jnp.float32).reshape(1, 3, 1, 1)
    std = jnp.array([0.229, 0.224, 0.225], jnp.float32).reshape(1, 3, 1, 1)
    xn = ((inputs.astype(jnp.float32) + 1.0) * 0.5 - mean) / std
    yn = ((targets.astype(jnp.float32) + 1.0) * 0.5 - mean) / std

    # TODO(synk): the remaining wrapper-side work is this one-pass im2col of the
    # cheap 3-channel input; moving it fully in-kernel needs a manual (TR+4)-row
    # NCHW slab DMA (pl.ANY) plus an in-kernel sublane->lane repack.
    cx = _conv1_colT_blocks(xn, TR)
    cy = _conv1_colT_blocks(yn, TR)

    w1m = params["w1"].astype(jnp.float32).transpose(1, 2, 3, 0).reshape(27, CO1)
    w1m = jnp.pad(w1m, ((0, 5), (0, 0))).astype(jnp.bfloat16)            # (32, CO1)
    # conv2 weights grouped over kx: index (ky, kx*CO1 + ci, co)
    w2g = params["w2"].astype(jnp.float32).transpose(2, 3, 1, 0)
    w2g = w2g.reshape(3, 3 * CO1, CO2).astype(jnp.bfloat16)
    b1 = params["b1"].astype(jnp.float32).reshape(1, CO1)
    b2 = params["b2"].astype(jnp.float32).reshape(1, CO2)

    flops = N * G * (2 * (2 * M1 * 32 * CO1) + 3 * 2 * (2 * M2) * (3 * CO1) * CO2)
    bytes_accessed = (2 * N * G * 32 * M1 * 2 + w1m.size * 2 + w2g.size * 2
                      + b1.size * 4 + b2.size * 4 + N * G * 8 * 128 * 4)

    kernel = functools.partial(_conv_percep_kernel,
                               TR=TR, W=W, CO1=CO1, CO2=CO2, G=G)
    part = pl.pallas_call(
        kernel,
        out_shape=jax.ShapeDtypeStruct((N, G, 8, 128), jnp.float32),
        grid=(N, G),
        in_specs=[pl.BlockSpec((32, CO1), lambda n, g: (0, 0)),
                  pl.BlockSpec((1, CO1), lambda n, g: (0, 0)),
                  pl.BlockSpec((3, 3 * CO1, CO2), lambda n, g: (0, 0, 0)),
                  pl.BlockSpec((1, CO2), lambda n, g: (0, 0)),
                  pl.BlockSpec((1, 1, 32, M1), lambda n, g: (n, g, 0, 0)),
                  pl.BlockSpec((1, 1, 32, M1), lambda n, g: (n, g, 0, 0))],
        out_specs=pl.BlockSpec((1, 1, 8, 128), lambda n, g: (n, g, 0, 0)),
        scratch_shapes=[pltpu.VMEM((2, TR + 2, W + 2, CO1), jnp.bfloat16)],
        compiler_params=pltpu.CompilerParams(
            dimension_semantics=("parallel", "parallel"),
            vmem_limit_bytes=_VMEM_LIMIT),
        cost_estimate=pl.CostEstimate(flops=flops, transcendentals=0,
                                      bytes_accessed=bytes_accessed),
    )(w1m, b1, w2g, b2, cx, cy)

    return jnp.sum(part[:, :, 0, 0]), CO2


# ---------------------------------------------------------------------------
# Full forward (percep_type == 1)
# ---------------------------------------------------------------------------
def perceptual_ssim_loss(inputs, targets, params, *, lambda_L1, lambda_perceptual,
                         lambda_ssim, win_size, win_sigma):
    N, C, H, W = inputs.shape

    l1_sum, ssim_sum, Hout, Wout = _image_l1_ssim_sums(inputs, targets,
                                                       win_size, win_sigma, 1.0)
    loss_l1_img = (l1_sum / (N * C * H * W)) * lambda_L1
    ssim_val = ssim_sum / (N * C * Hout * Wout)
    loss_ssim_img = (1.0 - ssim_val) * lambda_ssim

    psum, cout = _perceptual_l1_sum(inputs, targets, params)
    loss_perceptual_l1 = (psum / (N * cout * H * W)) * lambda_perceptual

    loss = loss_l1_img + loss_ssim_img + loss_perceptual_l1
    return loss, loss_l1_img, loss_ssim_img, loss_perceptual_l1


# ---------------------------------------------------------------------------
# Pure-JAX f32 reference (independent check: XLA conv + explicit SSIM)
# ---------------------------------------------------------------------------
def _ref_ssim(x, y, win_size, win_sigma, data_range=1.0):
    g = jnp.asarray(_gauss1d(win_size, win_sigma), jnp.float32)
    c1 = (0.01 * data_range) ** 2
    c2 = (0.03 * data_range) ** 2
    N, C, H, W = x.shape
    Wout, Hout = W - win_size + 1, H - win_size + 1

    def filt(z):
        t = sum(g[k] * z[:, :, :, k:k + Wout] for k in range(win_size))
        return sum(g[k] * t[:, :, k:k + Hout, :] for k in range(win_size))

    mu1, mu2 = filt(x), filt(y)
    s1 = filt(x * x) - mu1 * mu1
    s2 = filt(y * y) - mu2 * mu2
    s12 = filt(x * y) - mu1 * mu2
    cs = (2 * s12 + c2) / (s1 + s2 + c2)
    ssim_map = ((2 * mu1 * mu2 + c1) / (mu1 * mu1 + mu2 * mu2 + c1)) * cs
    return jnp.mean(ssim_map)


def _ref_conv_relu(x_nchw, w, b):
    out = lax.conv_general_dilated(x_nchw.astype(jnp.float32), w.astype(jnp.float32),
                                   (1, 1), ((1, 1), (1, 1)),
                                   dimension_numbers=("NCHW", "OIHW", "NCHW"))
    return jnp.maximum(out + b.reshape(1, -1, 1, 1), 0.0)


def _ref_loss(inputs, targets, params, *, lambda_L1, lambda_perceptual,
              lambda_ssim, win_size, win_sigma):
    l1 = jnp.mean(jnp.abs(inputs - targets)) * lambda_L1
    ls = (1.0 - _ref_ssim(inputs, targets, win_size, win_sigma)) * lambda_ssim
    mean = jnp.array([0.485, 0.456, 0.406], jnp.float32).reshape(1, 3, 1, 1)
    std = jnp.array([0.229, 0.224, 0.225], jnp.float32).reshape(1, 3, 1, 1)
    fa = ((inputs + 1.0) / 2.0 - mean) / std
    re = ((targets + 1.0) / 2.0 - mean) / std
    ff = _ref_conv_relu(_ref_conv_relu(fa, params["w1"], params["b1"]),
                        params["w2"], params["b2"])
    fr = _ref_conv_relu(_ref_conv_relu(re, params["w1"], params["b1"]),
                        params["w2"], params["b2"])
    lp = jnp.mean(jnp.abs(ff - fr)) * lambda_perceptual
    return l1 + ls + lp, l1, ls, lp


# ---------------------------------------------------------------------------
if __name__ == "__main__":
    # Module hyper-params (percep_type=1, perceptual_layers=3)
    lambda_L1, lambda_perceptual, lambda_ssim = 10.0, 1.0, 0.5
    win_size, win_sigma = 5, 1.5

    key = jax.random.PRNGKey(0)
    k_in, k_tg, k_w1, k_w2 = jax.random.split(key, 4)

    B, C, H, W = 2, 3, 16, 16
    inputs = jax.random.uniform(k_in, (B, C, H, W), jnp.float32, -1.0, 1.0)
    targets = jax.random.uniform(k_tg, (B, C, H, W), jnp.float32, -1.0, 1.0)

    # Synthetic deterministic VGG19.features[0..3] weights
    # TODO(synk): real module loads pretrained VGG19 weights; synthetic weights used here.
    params = {
        "w1": jax.random.normal(k_w1, (64, 3, 3, 3), jnp.float32) * 0.10,
        "b1": jnp.linspace(-0.05, 0.05, 64, dtype=jnp.float32),
        "w2": jax.random.normal(k_w2, (64, 64, 3, 3), jnp.float32) * 0.05,
        "b2": jnp.linspace(0.05, -0.05, 64, dtype=jnp.float32),
    }

    loss_fn = jax.jit(functools.partial(
        perceptual_ssim_loss,
        lambda_L1=lambda_L1, lambda_perceptual=lambda_perceptual,
        lambda_ssim=lambda_ssim, win_size=win_size, win_sigma=win_sigma))

    out = jax.block_until_ready(loss_fn(inputs, targets, params))
    loss, l1, lssim, lperc = [np.asarray(v) for v in out]

    ref = _ref_loss(inputs, targets, params,
                    lambda_L1=lambda_L1, lambda_perceptual=lambda_perceptual,
                    lambda_ssim=lambda_ssim, win_size=win_size, win_sigma=win_sigma)
    ref = [np.asarray(v) for v in jax.block_until_ready(ref)]

    # conv1/conv2 run with bf16 operands (f32 accumulate), hence the loose rtol.
    np.testing.assert_allclose(loss, ref[0], rtol=3e-2, atol=3e-3)
    np.testing.assert_allclose(l1, ref[1], rtol=3e-2, atol=3e-3)
    np.testing.assert_allclose(lssim, ref[2], rtol=3e-2, atol=3e-3)
    np.testing.assert_allclose(lperc, ref[3], rtol=3e-2, atol=3e-3)

    print("KERNEL_OK")
</pallas_src>

<mosaic_0001>
module attributes {stable_mosaic.version = 11 : i64} {
  func.func @_image_loss_kernel(%arg0: i32, %arg1: memref<6x16x16xf32, #tpu.memory_space<vmem>>, %arg2: memref<6x16x16xf32, #tpu.memory_space<vmem>>, %arg3: memref<1x8x128xf32, #tpu.memory_space<vmem>>, %arg4: memref<1x8x128xf32, #tpu.memory_space<vmem>>) attributes {dimension_semantics = [#tpu.dimension_semantics<parallel>], iteration_bounds = array<i64: 1>, scalar_prefetch = 0 : i64, scratch_operands = 0 : i64, tpu.core_type = #tpu.core_type<tc>, window_params = [{transform_indices = @transform_0, window_bounds = array<i64: 6, 16, 16>}, {transform_indices = @transform_1, window_bounds = array<i64: 6, 16, 16>}, {transform_indices = @transform_2, window_bounds = array<i64: 1, 8, 128>}, {transform_indices = @transform_3, window_bounds = array<i64: 1, 8, 128>}]} {
    %c0 = arith.constant 0 : index
    %c0_0 = arith.constant 0 : index
    %c0_1 = arith.constant 0 : index
    %0 = vector.load %arg1[%c0, %c0_0, %c0_1] : memref<6x16x16xf32, #tpu.memory_space<vmem>>, vector<6x16x16xf32>
    %c0_2 = arith.constant 0 : index
    %c0_3 = arith.constant 0 : index
    %c0_4 = arith.constant 0 : index
    %1 = vector.load %arg2[%c0_2, %c0_3, %c0_4] : memref<6x16x16xf32, #tpu.memory_space<vmem>>, vector<6x16x16xf32>
    %2 = arith.subf %0, %1 : vector<6x16x16xf32>
    %3 = math.absf %2 : vector<6x16x16xf32>
    %4 = vector.shape_cast %3 : vector<6x16x16xf32> to vector<1x6x16x16xf32>
    %cst = arith.constant dense<0.000000e+00> : vector<1xf32>
    %5 = vector.multi_reduction <add>, %4, %cst [1, 2, 3] : vector<1x6x16x16xf32> to vector<1xf32>
    %6 = vector.shape_cast %5 : vector<1xf32> to vector<1x1x1x1xf32>
    %7 = vector.extract %6[0, 0, 0, 0] : f32 from vector<1x1x1x1xf32>
    %8 = vector.extract_strided_slice %0 {offsets = [0, 0, 0], sizes = [6, 16, 12], strides = [1, 1, 1]} : vector<6x16x16xf32> to vector<6x16x12xf32>
    %cst_5 = arith.constant 0.120078385 : f32
    %9 = vector.broadcast %cst_5 : f32 to vector<6x16x12xf32>
    %10 = arith.mulf %9, %8 : vector<6x16x12xf32>
    %11 = vector.extract_strided_slice %0 {offsets = [0, 0, 1], sizes = [6, 16, 12], strides = [1, 1, 1]} : vector<6x16x16xf32> to vector<6x16x12xf32>
    %cst_6 = arith.constant 0.233880758 : f32
    %12 = vector.broadcast %cst_6 : f32 to vector<6x16x12xf32>
    %13 = arith.mulf %12, %11 : vector<6x16x12xf32>
    %14 = arith.addf %10, %13 : vector<6x16x12xf32>
    %15 = vector.extract_strided_slice %0 {offsets = [0, 0, 2], sizes = [6, 16, 12], strides = [1, 1, 1]} : vector<6x16x16xf32> to vector<6x16x12xf32>
    %cst_7 = arith.constant 0.292081714 : f32
    %16 = vector.broadcast %cst_7 : f32 to vector<6x16x12xf32>
    %17 = arith.mulf %16, %15 : vector<6x16x12xf32>
    %18 = arith.addf %14, %17 : vector<6x16x12xf32>
    %19 = vector.extract_strided_slice %0 {offsets = [0, 0, 3], sizes = [6, 16, 12], strides = [1, 1, 1]} : vector<6x16x16xf32> to vector<6x16x12xf32>
    %cst_8 = arith.constant 0.233880758 : f32
    %20 = vector.broadcast %cst_8 : f32 to vector<6x16x12xf32>
    %21 = arith.mulf %20, %19 : vector<6x16x12xf32>
    %22 = arith.addf %18, %21 : vector<6x16x12xf32>
    %23 = vector.extract_strided_slice %0 {offsets = [0, 0, 4], sizes = [6, 16, 12], strides = [1, 1, 1]} : vector<6x16x16xf32> to vector<6x16x12xf32>
    %cst_9 = arith.constant 0.120078385 : f32
    %24 = vector.broadcast %cst_9 : f32 to vector<6x16x12xf32>
    %25 = arith.mulf %24, %23 : vector<6x16x12xf32>
    %26 = arith.addf %22, %25 : vector<6x16x12xf32>
    %27 = vector.extract_strided_slice %26 {offsets = [0, 0, 0], sizes = [6, 12, 12], strides = [1, 1, 1]} : vector<6x16x12xf32> to vector<6x12x12xf32>
    %cst_10 = arith.constant 0.120078385 : f32
    %28 = vector.broadcast %cst_10 : f32 to vector<6x12x12xf32>
    %29 = arith.mulf %28, %27 : vector<6x12x12xf32>
    %30 = vector.extract_strided_slice %26 {offsets = [0, 1, 0], sizes = [6, 12, 12], strides = [1, 1, 1]} : vector<6x16x12xf32> to vector<6x12x12xf32>
    %cst_11 = arith.constant 0.233880758 : f32
    %31 = vector.broadcast %cst_11 : f32 to vector<6x12x12xf32>
    %32 = arith.mulf %31, %30 : vector<6x12x12xf32>
    %33 = arith.addf %29, %32 : vector<6x12x12xf32>
    %34 = vector.extract_strided_slice %26 {offsets = [0, 2, 0], sizes = [6, 12, 12], strides = [1, 1, 1]} : vector<6x16x12xf32> to vector<6x12x12xf32>
    %cst_12 = arith.constant 0.292081714 : f32
    %35 = vector.broadcast %cst_12 : f32 to vector<6x12x12xf32>
    %36 = arith.mulf %35, %34 : vector<6x12x12xf32>
    %37 = arith.addf %33, %36 : vector<6x12x12xf32>
    %38 = vector.extract_strided_slice %26 {offsets = [0, 3, 0], sizes = [6, 12, 12], strides = [1, 1, 1]} : vector<6x16x12xf32> to vector<6x12x12xf32>
    %cst_13 = arith.constant 0.233880758 : f32
    %39 = vector.broadcast %cst_13 : f32 to vector<6x12x12xf32>
    %40 = arith.mulf %39, %38 : vector<6x12x12xf32>
    %41 = arith.addf %37, %40 : vector<6x12x12xf32>
    %42 = vector.extract_strided_slice %26 {offsets = [0, 4, 0], sizes = [6, 12, 12], strides = [1, 1, 1]} : vector<6x16x12xf32> to vector<6x12x12xf32>
    %cst_14 = arith.constant 0.120078385 : f32
    %43 = vector.broadcast %cst_14 : f32 to vector<6x12x12xf32>
    %44 = arith.mulf %43, %42 : vector<6x12x12xf32>
    %45 = arith.addf %41, %44 : vector<6x12x12xf32>
    %46 = vector.extract_strided_slice %1 {offsets = [0, 0, 0], sizes = [6, 16, 12], strides = [1, 1, 1]} : vector<6x16x16xf32> to vector<6x16x12xf32>
    %cst_15 = arith.constant 0.120078385 : f32
    %47 = vector.broadcast %cst_15 : f32 to vector<6x16x12xf32>
    %48 = arith.mulf %47, %46 : vector<6x16x12xf32>
    %49 = vector.extract_strided_slice %1 {offsets = [0, 0, 1], sizes = [6, 16, 12], strides = [1, 1, 1]} : vector<6x16x16xf32> to vector<6x16x12xf32>
    %cst_16 = arith.constant 0.233880758 : f32
    %50 = vector.broadcast %cst_16 : f32 to vector<6x16x12xf32>
    %51 = arith.mulf %50, %49 : vector<6x16x12xf32>
    %52 = arith.addf %48, %51 : vector<6x16x12xf32>
    %53 = vector.extract_strided_slice %1 {offsets = [0, 0, 2], sizes = [6, 16, 12], strides = [1, 1, 1]} : vector<6x16x16xf32> to vector<6x16x12xf32>
    %cst_17 = arith.constant 0.292081714 : f32
    %54 = vector.broadcast %cst_17 : f32 to vector<6x16x12xf32>
    %55 = arith.mulf %54, %53 : vector<6x16x12xf32>
    %56 = arith.addf %52, %55 : vector<6x16x12xf32>
    %57 = vector.extract_strided_slice %1 {offsets = [0, 0, 3], sizes = [6, 16, 12], strides = [1, 1, 1]} : vector<6x16x16xf32> to vector<6x16x12xf32>
    %cst_18 = arith.constant 0.233880758 : f32
    %58 = vector.broadcast %cst_18 : f32 to vector<6x16x12xf32>
    %59 = arith.mulf %58, %57 : vector<6x16x12xf32>
    %60 = arith.addf %56, %59 : vector<6x16x12xf32>
    %61 = vector.extract_strided_slice %1 {offsets = [0, 0, 4], sizes = [6, 16, 12], strides = [1, 1, 1]} : vector<6x16x16xf32> to vector<6x16x12xf32>
    %cst_19 = arith.constant 0.120078385 : f32
    %62 = vector.broadcast %cst_19 : f32 to vector<6x16x12xf32>
    %63 = arith.mulf %62, %61 : vector<6x16x12xf32>
    %64 = arith.addf %60, %63 : vector<6x16x12xf32>
    %65 = vector.extract_strided_slice %64 {offsets = [0, 0, 0], sizes = [6, 12, 12], strides = [1, 1, 1]} : vector<6x16x12xf32> to vector<6x12x12xf32>
    %cst_20 = arith.constant 0.120078385 : f32
    %66 = vector.broadcast %cst_20 : f32 to vector<6x12x12xf32>
    %67 = arith.mulf %66, %65 : vector<6x12x12xf32>
    %68 = vector.extract_strided_slice %64 {offsets = [0, 1, 0], sizes = [6, 12, 12], strides = [1, 1, 1]} : vector<6x16x12xf32> to vector<6x12x12xf32>
    %cst_21 = arith.constant 0.233880758 : f32
    %69 = vector.broadcast %cst_21 : f32 to vector<6x12x12xf32>
    %70 = arith.mulf %69, %68 : vector<6x12x12xf32>
    %71 = arith.addf %67, %70 : vector<6x12x12xf32>
    %72 = vector.extract_strided_slice %64 {offsets = [0, 2, 0], sizes = [6, 12, 12], strides = [1, 1, 1]} : vector<6x16x12xf32> to vector<6x12x12xf32>
    %cst_22 = arith.constant 0.292081714 : f32
    %73 = vector.broadcast %cst_22 : f32 to vector<6x12x12xf32>
    %74 = arith.mulf %73, %72 : vector<6x12x12xf32>
    %75 = arith.addf %71, %74 : vector<6x12x12xf32>
    %76 = vector.extract_strided_slice %64 {offsets = [0, 3, 0], sizes = [6, 12, 12], strides = [1, 1, 1]} : vector<6x16x12xf32> to vector<6x12x12xf32>
    %cst_23 = arith.constant 0.233880758 : f32
    %77 = vector.broadcast %cst_23 : f32 to vector<6x12x12xf32>
    %78 = arith.mulf %77, %76 : vector<6x12x12xf32>
    %79 = arith.addf %75, %78 : vector<6x12x12xf32>
    %80 = vector.extract_strided_slice %64 {offsets = [0, 4, 0], sizes = [6, 12, 12], strides = [1, 1, 1]} : vector<6x16x12xf32> to vector<6x12x12xf32>
    %cst_24 = arith.constant 0.120078385 : f32
    %81 = vector.broadcast %cst_24 : f32 to vector<6x12x12xf32>
    %82 = arith.mulf %81, %80 : vector<6x12x12xf32>
    %83 = arith.addf %79, %82 : vector<6x12x12xf32>
    %84 = arith.mulf %45, %45 : vector<6x12x12xf32>
    %85 = arith.mulf %83, %83 : vector<6x12x12xf32>
    %86 = arith.mulf %45, %83 : vector<6x12x12xf32>
    %87 = arith.mulf %0, %0 : vector<6x16x16xf32>
    %88 = vector.extract_strided_slice %87 {offsets = [0, 0, 0], sizes = [6, 16, 12], strides = [1, 1, 1]} : vector<6x16x16xf32> to vector<6x16x12xf32>
    %cst_25 = arith.constant 0.120078385 : f32
    %89 = vector.broadcast %cst_25 : f32 to vector<6x16x12xf32>
    %90 = arith.mulf %89, %88 : vector<6x16x12xf32>
    %91 = vector.extract_strided_slice %87 {offsets = [0, 0, 1], sizes = [6, 16, 12], strides = [1, 1, 1]} : vector<6x16x16xf32> to vector<6x16x12xf32>
    %cst_26 = arith.constant 0.233880758 : f32
    %92 = vector.broadcast %cst_26 : f32 to vector<6x16x12xf32>
    %93 = arith.mulf %92, %91 : vector<6x16x12xf32>
    %94 = arith.addf %90, %93 : vector<6x16x12xf32>
    %95 = vector.extract_strided_slice %87 {offsets = [0, 0, 2], sizes = [6, 16, 12], strides = [1, 1, 1]} : vector<6x16x16xf32> to vector<6x16x12xf32>
    %cst_27 = arith.constant 0.292081714 : f32
    %96 = vector.broadcast %cst_27 : f32 to vector<6x16x12xf32>
    %97 = arith.mulf %96, %95 : vector<6x16x12xf32>
    %98 = arith.addf %94, %97 : vector<6x16x12xf32>
    %99 = vector.extract_strided_slice %87 {offsets = [0, 0, 3], sizes = [6, 16, 12], strides = [1, 1, 1]} : vector<6x16x16xf32> to vector<6x16x12xf32>
    %cst_28 = arith.constant 0.233880758 : f32
    %100 = vector.broadcast %cst_28 : f32 to vector<6x16x12xf32>
    %101 = arith.mulf %100, %99 : vector<6x16x12xf32>
    %102 = arith.addf %98, %101 : vector<6x16x12xf32>
    %103 = vector.extract_strided_slice %87 {offsets = [0, 0, 4], sizes = [6, 16, 12], strides = [1, 1, 1]} : vector<6x16x16xf32> to vector<6x16x12xf32>
    %cst_29 = arith.constant 0.120078385 : f32
    %104 = vector.broadcast %cst_29 : f32 to vector<6x16x12xf32>
    %105 = arith.mulf %104, %103 : vector<6x16x12xf32>
    %106 = arith.addf %102, %105 : vector<6x16x12xf32>
    %107 = vector.extract_strided_slice %106 {offsets = [0, 0, 0], sizes = [6, 12, 12], strides = [1, 1, 1]} : vector<6x16x12xf32> to vector<6x12x12xf32>
    %cst_30 = arith.constant 0.120078385 : f32
    %108 = vector.broadcast %cst_30 : f32 to vector<6x12x12xf32>
    %109 = arith.mulf %108, %107 : vector<6x12x12xf32>
    %110 = vector.extract_strided_slice %106 {offsets = [0, 1, 0], sizes = [6, 12, 12], strides = [1, 1, 1]} : vector<6x16x12xf32> to vector<6x12x12xf32>
    %cst_31 = arith.constant 0.233880758 : f32
    %111 = vector.broadcast %cst_31 : f32 to vector<6x12x12xf32>
    %112 = arith.mulf %111, %110 : vector<6x12x12xf32>
    %113 = arith.addf %109, %112 : vector<6x12x12xf32>
    %114 = vector.extract_strided_slice %106 {offsets = [0, 2, 0], sizes = [6, 12, 12], strides = [1, 1, 1]} : vector<6x16x12xf32> to vector<6x12x12xf32>
    %cst_32 = arith.constant 0.292081714 : f32
    %115 = vector.broadcast %cst_32 : f32 to vector<6x12x12xf32>
    %116 = arith.mulf %115, %114 : vector<6x12x12xf32>
    %117 = arith.addf %113, %116 : vector<6x12x12xf32>
    %118 = vector.extract_strided_slice %106 {offsets = [0, 3, 0], sizes = [6, 12, 12], strides = [1, 1, 1]} : vector<6x16x12xf32> to vector<6x12x12xf32>
    %cst_33 = arith.constant 0.233880758 : f32
    %119 = vector.broadcast %cst_33 : f32 to vector<6x12x12xf32>
    %120 = arith.mulf %119, %118 : vector<6x12x12xf32>
    %121 = arith.addf %117, %120 : vector<6x12x12xf32>
    %122 = vector.extract_strided_slice %106 {offsets = [0, 4, 0], sizes = [6, 12, 12], strides = [1, 1, 1]} : vector<6x16x12xf32> to vector<6x12x12xf32>
    %cst_34 = arith.constant 0.120078385 : f32
    %123 = vector.broadcast %cst_34 : f32 to vector<6x12x12xf32>
    %124 = arith.mulf %123, %122 : vector<6x12x12xf32>
    %125 = arith.addf %121, %124 : vector<6x12x12xf32>
    %126 = arith.subf %125, %84 : vector<6x12x12xf32>
    %127 = arith.mulf %1, %1 : vector<6x16x16xf32>
    %128 = vector.extract_strided_slice %127 {offsets = [0, 0, 0], sizes = [6, 16, 12], strides = [1, 1, 1]} : vector<6x16x16xf32> to vector<6x16x12xf32>
    %cst_35 = arith.constant 0.120078385 : f32
    %129 = vector.broadcast %cst_35 : f32 to vector<6x16x12xf32>
    %130 = arith.mulf %129, %128 : vector<6x16x12xf32>
    %131 = vector.extract_strided_slice %127 {offsets = [0, 0, 1], sizes = [6, 16, 12], strides = [1, 1, 1]} : vector<6x16x16xf32> to vector<6x16x12xf32>
    %cst_36 = arith.constant 0.233880758 : f32
    %132 = vector.broadcast %cst_36 : f32 to vector<6x16x12xf32>
    %133 = arith.mulf %132, %131 : vector<6x16x12xf32>
    %134 = arith.addf %130, %133 : vector<6x16x12xf32>
    %135 = vector.extract_strided_slice %127 {offsets = [0, 0, 2], sizes = [6, 16, 12], strides = [1, 1, 1]} : vector<6x16x16xf32> to vector<6x16x12xf32>
    %cst_37 = arith.constant 0.292081714 : f32
    %136 = vector.broadcast %cst_37 : f32 to vector<6x16x12xf32>
    %137 = arith.mulf %136, %135 : vector<6x16x12xf32>
    %138 = arith.addf %134, %137 : vector<6x16x12xf32>
    %139 = vector.extract_strided_slice %127 {offsets = [0, 0, 3], sizes = [6, 16, 12], strides = [1, 1, 1]} : vector<6x16x16xf32> to vector<6x16x12xf32>
    %cst_38 = arith.constant 0.233880758 : f32
    %140 = vector.broadcast %cst_38 : f32 to vector<6x16x12xf32>
    %141 = arith.mulf %140, %139 : vector<6x16x12xf32>
    %142 = arith.addf %138, %141 : vector<6x16x12xf32>
    %143 = vector.extract_strided_slice %127 {offsets = [0, 0, 4], sizes = [6, 16, 12], strides = [1, 1, 1]} : vector<6x16x16xf32> to vector<6x16x12xf32>
    %cst_39 = arith.constant 0.120078385 : f32
    %144 = vector.broadcast %cst_39 : f32 to vector<6x16x12xf32>
    %145 = arith.mulf %144, %143 : vector<6x16x12xf32>
    %146 = arith.addf %142, %145 : vector<6x16x12xf32>
    %147 = vector.extract_strided_slice %146 {offsets = [0, 0, 0], sizes = [6, 12, 12], strides = [1, 1, 1]} : vector<6x16x12xf32> to vector<6x12x12xf32>
    %cst_40 = arith.constant 0.120078385 : f32
    %148 = vector.broadcast %cst_40 : f32 to vector<6x12x12xf32>
    %149 = arith.mulf %148, %147 : vector<6x12x12xf32>
    %150 = vector.extract_strided_slice %146 {offsets = [0, 1, 0], sizes = [6, 12, 12], strides = [1, 1, 1]} : vector<6x16x12xf32> to vector<6x12x12xf32>
    %cst_41 = arith.constant 0.233880758 : f32
    %151 = vector.broadcast %cst_41 : f32 to vector<6x12x12xf32>
    %152 = arith.mulf %151, %150 : vector<6x12x12xf32>
    %153 = arith.addf %149, %152 : vector<6x12x12xf32>
    %154 = vector.extract_strided_slice %146 {offsets = [0, 2, 0], sizes = [6, 12, 12], strides = [1, 1, 1]} : vector<6x16x12xf32> to vector<6x12x12xf32>
    %cst_42 = arith.constant 0.292081714 : f32
    %155 = vector.broadcast %cst_42 : f32 to vector<6x12x12xf32>
    %156 = arith.mulf %155, %154 : vector<6x12x12xf32>
    %157 = arith.addf %153, %156 : vector<6x12x12xf32>
    %158 = vector.extract_strided_slice %146 {offsets = [0, 3, 0], sizes = [6, 12, 12], strides = [1, 1, 1]} : vector<6x16x12xf32> to vector<6x12x12xf32>
    %cst_43 = arith.constant 0.233880758 : f32
    %159 = vector.broadcast %cst_43 : f32 to vector<6x12x12xf32>
    %160 = arith.mulf %159, %158 : vector<6x12x12xf32>
    %161 = arith.addf %157, %160 : vector<6x12x12xf32>
    %162 = vector.extract_strided_slice %146 {offsets = [0, 4, 0], sizes = [6, 12, 12], strides = [1, 1, 1]} : vector<6x16x12xf32> to vector<6x12x12xf32>
    %cst_44 = arith.constant 0.120078385 : f32
    %163 = vector.broadcast %cst_44 : f32 to vector<6x12x12xf32>
    %164 = arith.mulf %163, %162 : vector<6x12x12xf32>
    %165 = arith.addf %161, %164 : vector<6x12x12xf32>
    %166 = arith.subf %165, %85 : vector<6x12x12xf32>
    %167 = arith.mulf %0, %1 : vector<6x16x16xf32>
    %168 = vector.extract_strided_slice %167 {offsets = [0, 0, 0], sizes = [6, 16, 12], strides = [1, 1, 1]} : vector<6x16x16xf32> to vector<6x16x12xf32>
    %cst_45 = arith.constant 0.120078385 : f32
    %169 = vector.broadcast %cst_45 : f32 to vector<6x16x12xf32>
    %170 = arith.mulf %169, %168 : vector<6x16x12xf32>
    %171 = vector.extract_strided_slice %167 {offsets = [0, 0, 1], sizes = [6, 16, 12], strides = [1, 1, 1]} : vector<6x16x16xf32> to vector<6x16x12xf32>
    %cst_46 = arith.constant 0.233880758 : f32
    %172 = vector.broadcast %cst_46 : f32 to vector<6x16x12xf32>
    %173 = arith.mulf %172, %171 : vector<6x16x12xf32>
    %174 = arith.addf %170, %173 : vector<6x16x12xf32>
    %175 = vector.extract_strided_slice %167 {offsets = [0, 0, 2], sizes = [6, 16, 12], strides = [1, 1, 1]} : vector<6x16x16xf32> to vector<6x16x12xf32>
    %cst_47 = arith.constant 0.292081714 : f32
    %176 = vector.broadcast %cst_47 : f32 to vector<6x16x12xf32>
    %177 = arith.mulf %176, %175 : vector<6x16x12xf32>
    %178 = arith.addf %174, %177 : vector<6x16x12xf32>
    %179 = vector.extract_strided_slice %167 {offsets = [0, 0, 3], sizes = [6, 16, 12], strides = [1, 1, 1]} : vector<6x16x16xf32> to vector<6x16x12xf32>
    %cst_48 = arith.constant 0.233880758 : f32
    %180 = vector.broadcast %cst_48 : f32 to vector<6x16x12xf32>
    %181 = arith.mulf %180, %179 : vector<6x16x12xf32>
    %182 = arith.addf %178, %181 : vector<6x16x12xf32>
    %183 = vector.extract_strided_slice %167 {offsets = [0, 0, 4], sizes = [6, 16, 12], strides = [1, 1, 1]} : vector<6x16x16xf32> to vector<6x16x12xf32>
    %cst_49 = arith.constant 0.120078385 : f32
    %184 = vector.broadcast %cst_49 : f32 to vector<6x16x12xf32>
    %185 = arith.mulf %184, %183 : vector<6x16x12xf32>
    %186 = arith.addf %182, %185 : vector<6x16x12xf32>
    %187 = vector.extract_strided_slice %186 {offsets = [0, 0, 0], sizes = [6, 12, 12], strides = [1, 1, 1]} : vector<6x16x12xf32> to vector<6x12x12xf32>
    %cst_50 = arith.constant 0.120078385 : f32
    %188 = vector.broadcast %cst_50 : f32 to vector<6x12x12xf32>
    %189 = arith.mulf %188, %187 : vector<6x12x12xf32>
    %190 = vector.extract_strided_slice %186 {offsets = [0, 1, 0], sizes = [6, 12, 12], strides = [1, 1, 1]} : vector<6x16x12xf32> to vector<6x12x12xf32>
    %cst_51 = arith.constant 0.233880758 : f32
    %191 = vector.broadcast %cst_51 : f32 to vector<6x12x12xf32>
    %192 = arith.mulf %191, %190 : vector<6x12x12xf32>
    %193 = arith.addf %189, %192 : vector<6x12x12xf32>
    %194 = vector.extract_strided_slice %186 {offsets = [0, 2, 0], sizes = [6, 12, 12], strides = [1, 1, 1]} : vector<6x16x12xf32> to vector<6x12x12xf32>
    %cst_52 = arith.constant 0.292081714 : f32
    %195 = vector.broadcast %cst_52 : f32 to vector<6x12x12xf32>
    %196 = arith.mulf %195, %194 : vector<6x12x12xf32>
    %197 = arith.addf %193, %196 : vector<6x12x12xf32>
    %198 = vector.extract_strided_slice %186 {offsets = [0, 3, 0], sizes = [6, 12, 12], strides = [1, 1, 1]} : vector<6x16x12xf32> to vector<6x12x12xf32>
    %cst_53 = arith.constant 0.233880758 : f32
    %199 = vector.broadcast %cst_53 : f32 to vector<6x12x12xf32>
    %200 = arith.mulf %199, %198 : vector<6x12x12xf32>
    %201 = arith.addf %197, %200 : vector<6x12x12xf32>
    %202 = vector.extract_strided_slice %186 {offsets = [0, 4, 0], sizes = [6, 12, 12], strides = [1, 1, 1]} : vector<6x16x12xf32> to vector<6x12x12xf32>
    %cst_54 = arith.constant 0.120078385 : f32
    %203 = vector.broadcast %cst_54 : f32 to vector<6x12x12xf32>
    %204 = arith.mulf %203, %202 : vector<6x12x12xf32>
    %205 = arith.addf %201, %204 : vector<6x12x12xf32>
    %206 = arith.subf %205, %86 : vector<6x12x12xf32>
    %cst_55 = arith.constant 2.000000e+00 : f32
    %207 = vector.broadcast %cst_55 : f32 to vector<6x12x12xf32>
    %208 = arith.mulf %207, %86 : vector<6x12x12xf32>
    %cst_56 = arith.constant 9.99999974E-5 : f32
    %209 = vector.broadcast %cst_56 : f32 to vector<6x12x12xf32>
    %210 = arith.addf %208, %209 : vector<6x12x12xf32>
    %cst_57 = arith.constant 2.000000e+00 : f32
    %211 = vector.broadcast %cst_57 : f32 to vector<6x12x12xf32>
    %212 = arith.mulf %211, %206 : vector<6x12x12xf32>
    %cst_58 = arith.constant 8.99999984E-4 : f32
    %213 = vector.broadcast %cst_58 : f32 to vector<6x12x12xf32>
    %214 = arith.addf %212, %213 : vector<6x12x12xf32>
    %215 = arith.mulf %210, %214 : vector<6x12x12xf32>
    %216 = arith.addf %84, %85 : vector<6x12x12xf32>
    %cst_59 = arith.constant 9.99999974E-5 : f32
    %217 = vector.broadcast %cst_59 : f32 to vector<6x12x12xf32>
    %218 = arith.addf %216, %217 : vector<6x12x12xf32>
    %219 = arith.addf %126, %166 : vector<6x12x12xf32>
    %cst_60 = arith.constant 8.99999984E-4 : f32
    %220 = vector.broadcast %cst_60 : f32 to vector<6x12x12xf32>
    %221 = arith.addf %219, %220 : vector<6x12x12xf32>
    %222 = arith.mulf %218, %221 : vector<6x12x12xf32>
    %223 = tpu.reciprocal %222 {approx = true} : vector<6x12x12xf32> -> vector<6x12x12xf32>
    %224 = arith.mulf %222, %223 : vector<6x12x12xf32>
    %cst_61 = arith.constant 2.000000e+00 : f32
    %225 = vector.broadcast %cst_61 : f32 to vector<6x12x12xf32>
    %226 = arith.subf %225, %224 : vector<6x12x12xf32>
    %227 = arith.mulf %223, %226 : vector<6x12x12xf32>
    %228 = arith.mulf %215, %227 : vector<6x12x12xf32>
    %229 = vector.shape_cast %228 : vector<6x12x12xf32> to vector<1x6x12x12xf32>
    %cst_62 = arith.constant dense<0.000000e+00> : vector<1xf32>
    %230 = vector.multi_reduction <add>, %229, %cst_62 [1, 2, 3] : vector<1x6x12x12xf32> to vector<1xf32>
    %231 = vector.shape_cast %230 : vector<1xf32> to vector<1x1x1x1xf32>
    %232 = vector.extract %231[0, 0, 0, 0] : f32 from vector<1x1x1x1xf32>
    %cst_63 = arith.constant 1.000000e+00 : f32
    %233 = vector.broadcast %cst_63 : f32 to vector<1x8x128xf32>
    %234 = vector.broadcast %7 : f32 to vector<1x8x128xf32>
    %235 = arith.mulf %234, %233 : vector<1x8x128xf32>
    %c0_64 = arith.constant 0 : index
    %c0_65 = arith.constant 0 : index
    %c0_66 = arith.constant 0 : index
    %236 = vector.load %arg3[%c0_64, %c0_65, %c0_66] : memref<1x8x128xf32, #tpu.memory_space<vmem>>, vector<1x8x128xf32>
    tpu.vector_store %arg3[%c0_64, %c0_65, %c0_66], %235 {strides = array<i32>} : memref<1x8x128xf32, #tpu.memory_space<vmem>>, vector<1x8x128xf32>,
    %237 = vector.broadcast %232 : f32 to vector<1x8x128xf32>
    %238 = arith.mulf %237, %233 : vector<1x8x128xf32>
    %c0_67 = arith.constant 0 : index
    %c0_68 = arith.constant 0 : index
    %c0_69 = arith.constant 0 : index
    %239 = vector.load %arg4[%c0_67, %c0_68, %c0_69] : memref<1x8x128xf32, #tpu.memory_space<vmem>>, vector<1x8x128xf32>
    tpu.vector_store %arg4[%c0_67, %c0_68, %c0_69], %238 {strides = array<i32>} : memref<1x8x128xf32, #tpu.memory_space<vmem>>, vector<1x8x128xf32>,
    return
  }
  func.func @transform_0(%arg0: i32) -> (i32, i32, i32) {
    %c0_i32 = arith.constant 0 : i32
    %c0_i32_0 = arith.constant 0 : i32
    %c0_i32_1 = arith.constant 0 : i32
    return %arg0, %c0_i32, %c0_i32_0 : i32, i32, i32
  }
  func.func @transform_1(%arg0: i32) -> (i32, i32, i32) {
    %c0_i32 = arith.constant 0 : i32
    %c0_i32_0 = arith.constant 0 : i32
    %c0_i32_1 = arith.constant 0 : i32
    return %arg0, %c0_i32, %c0_i32_0 : i32, i32, i32
  }
  func.func @transform_2(%arg0: i32) -> (i32, i32, i32) {
    %c0_i32 = arith.constant 0 : i32
    %c0_i32_0 = arith.constant 0 : i32
    %c0_i32_1 = arith.constant 0 : i32
    return %arg0, %c0_i32, %c0_i32_0 : i32, i32, i32
  }
  func.func @transform_3(%arg0: i32) -> (i32, i32, i32) {
    %c0_i32 = arith.constant 0 : i32
    %c0_i32_0 = arith.constant 0 : i32
    %c0_i32_1 = arith.constant 0 : i32
    return %arg0, %c0_i32, %c0_i32_0 : i32, i32, i32
  }
}

module attributes {stable_mosaic.version = 11 : i64} {
  func.func @_conv_percep_kernel(%arg0: i32, %arg1: i32, %arg2: memref<32x64xbf16, #tpu.memory_space<vmem>>, %arg3: memref<1x64xf32, #tpu.memory_space<vmem>>, %arg4: memref<3x192x64xbf16, #tpu.memory_space<vmem>>, %arg5: memref<1x64xf32, #tpu.memory_space<vmem>>, %arg6: memref<1x1x32x288xbf16, #tpu.memory_space<vmem>>, %arg7: memref<1x1x32x288xbf16, #tpu.memory_space<vmem>>, %arg8: memref<1x1x8x128xf32, #tpu.memory_space<vmem>>, %arg9: memref<2x18x18x64xbf16, #tpu.memory_space<vmem>>) attributes {dimension_semantics = [#tpu.dimension_semantics<parallel>, #tpu.dimension_semantics<parallel>], iteration_bounds = array<i64: 2, 1>, scalar_prefetch = 0 : i64, scratch_operands = 1 : i64, tpu.core_type = #tpu.core_type<tc>, window_params = [{pipeline_mode = #tpu.pipeline_mode<synchronous>, transform_indices = @transform_0, window_bounds = array<i64: 32, 64>}, {pipeline_mode = #tpu.pipeline_mode<synchronous>, transform_indices = @transform_1, window_bounds = array<i64: 1, 64>}, {pipeline_mode = #tpu.pipeline_mode<synchronous>, transform_indices = @transform_2, window_bounds = array<i64: 3, 192, 64>}, {pipeline_mode = #tpu.pipeline_mode<synchronous>, transform_indices = @transform_3, window_bounds = array<i64: 1, 64>}, {transform_indices = @transform_4, window_bounds = array<i64: 1, 1, 32, 288>}, {transform_indices = @transform_5, window_bounds = array<i64: 1, 1, 32, 288>}, {transform_indices = @transform_6, window_bounds = array<i64: 1, 1, 8, 128>}]} {
    %0 = tpu.iota {dimensions = array<i32: 0>} : vector<288x1xi32>
    %c16_i32 = arith.constant 16 : i32
    %1 = vector.broadcast %c16_i32 : i32 to vector<288x1xi32>
    %2 = arith.cmpi sge, %0, %1 : vector<288x1xi32>
    %c0_i32 = arith.constant 0 : i32
    %3 = arith.cmpi ne, %arg1, %c0_i32 : i32
    %4 = vector.broadcast %3 : i1 to vector<288x1xi1>
    %5 = arith.ori %2, %4 : vector<288x1xi1>
    %c272_i32 = arith.constant 272 : i32
    %6 = vector.broadcast %c272_i32 : i32 to vector<288x1xi32>
    %7 = arith.cmpi slt, %0, %6 : vector<288x1xi32>
    %c0_i32_0 = arith.constant 0 : i32
    %8 = arith.cmpi ne, %arg1, %c0_i32_0 : i32
    %9 = vector.broadcast %8 : i1 to vector<288x1xi1>
    %10 = arith.ori %7, %9 : vector<288x1xi1>
    %11 = arith.andi %5, %10 : vector<288x1xi1>
    %cst = arith.constant 1.000000e+00 : f32
    %cst_1 = arith.constant 0.000000e+00 : f32
    %12 = vector.broadcast %cst : f32 to vector<288x1xf32>
    %13 = vector.broadcast %cst_1 : f32 to vector<288x1xf32>
    %14 = arith.select %11, %12, %13 : vector<288x1xi1>, vector<288x1xf32>
    %cst_2 = arith.constant 0.000000e+00 : bf16
    %15 = vector.broadcast %cst_2 : bf16 to vector<2x18x1x64xbf16>
    %c0 = arith.constant 0 : index
    %c0_3 = arith.constant 0 : index
    %c0_4 = arith.constant 0 : index
    %c0_5 = arith.constant 0 : index
    %16 = vector.load %arg9[%c0, %c0_3, %c0_4, %c0_5] : memref<2x18x18x64xbf16, #tpu.memory_space<vmem>>, vector<2x18x1x64xbf16>
    tpu.vector_store %arg9[%c0, %c0_3, %c0_4, %c0_5], %15 {strides = array<i32>} : memref<2x18x18x64xbf16, #tpu.memory_space<vmem>>, vector<2x18x1x64xbf16>,
    %c0_6 = arith.constant 0 : index
    %c0_7 = arith.constant 0 : index
    %c17 = arith.constant 17 : index
    %c0_8 = arith.constant 0 : index
    %17 = vector.load %arg9[%c0_6, %c0_7, %c17, %c0_8] : memref<2x18x18x64xbf16, #tpu.memory_space<vmem>>, vector<2x18x1x64xbf16>
    tpu.vector_store %arg9[%c0_6, %c0_7, %c17, %c0_8], %15 {strides = array<i32>} : memref<2x18x18x64xbf16, #tpu.memory_space<vmem>>, vector<2x18x1x64xbf16>,
    %c0_9 = arith.constant 0 : index
    %c0_10 = arith.constant 0 : index
    %c0_11 = arith.constant 0 : index
    %c0_12 = arith.constant 0 : index
    %18 = vector.load %arg6[%c0_9, %c0_10, %c0_11, %c0_12] : memref<1x1x32x288xbf16, #tpu.memory_space<vmem>>, vector<1x1x32x288xbf16>
    %19 = vector.shape_cast %18 : vector<1x1x32x288xbf16> to vector<32x288xbf16>
    %c0_13 = arith.constant 0 : index
    %c0_14 = arith.constant 0 : index
    %20 = vector.load %arg2[%c0_13, %c0_14] : memref<32x64xbf16, #tpu.memory_space<vmem>>, vector<32x64xbf16>
    %cst_15 = arith.constant dense<0.000000e+00> : vector<288x64xf32>
    %21 = tpu.matmul %19, %20, %cst_15 {dimension_numbers = #tpu.dot_dimension_numbers<[0], [0], [1], [1], [0, 1, 1, 1], [], []>} : vector<32x288xbf16>, vector<32x64xbf16>, vector<288x64xf32> -> vector<288x64xf32>
    %c0_16 = arith.constant 0 : index
    %c0_17 = arith.constant 0 : index
    %22 = vector.load %arg3[%c0_16, %c0_17] : memref<1x64xf32, #tpu.memory_space<vmem>>, vector<1x64xf32>
    %23 = vector.broadcast %22 : vector<1x64xf32> to vector<288x64xf32>
    %24 = arith.addf %21, %23 : vector<288x64xf32>
    %cst_18 = arith.constant 0.000000e+00 : f32
    %25 = vector.broadcast %cst_18 : f32 to vector<288x64xf32>
    %26 = arith.maximumf %24, %25 : vector<288x64xf32>
    %27 = vector.broadcast %14 : vector<288x1xf32> to vector<288x64xf32>
    %28 = arith.mulf %26, %27 : vector<288x64xf32>
    %29 = vector.shape_cast %28 : vector<288x64xf32> to vector<18x16x64xf32>
    %30 = arith.truncf %29 : vector<18x16x64xf32> to vector<18x16x64xbf16>
    %c0_19 = arith.constant 0 : index
    %c0_20 = arith.constant 0 : index
    %c1 = arith.constant 1 : index
    %c0_21 = arith.constant 0 : index
    %31 = vector.load %arg9[%c0_19, %c0_20, %c1, %c0_21] : memref<2x18x18x64xbf16, #tpu.memory_space<vmem>>, vector<1x18x16x64xbf16>
    %32 = vector.shape_cast %31 : vector<1x18x16x64xbf16> to vector<18x16x64xbf16>
    %33 = vector.shape_cast %30 : vector<18x16x64xbf16> to vector<1x18x16x64xbf16>
    tpu.vector_store %arg9[%c0_19, %c0_20, %c1, %c0_21], %33 {strides = array<i32>} : memref<2x18x18x64xbf16, #tpu.memory_space<vmem>>, vector<1x18x16x64xbf16>,
    %c0_22 = arith.constant 0 : index
    %c0_23 = arith.constant 0 : index
    %c0_24 = arith.constant 0 : index
    %c0_25 = arith.constant 0 : index
    %34 = vector.load %arg7[%c0_22, %c0_23, %c0_24, %c0_25] : memref<1x1x32x288xbf16, #tpu.memory_space<vmem>>, vector<1x1x32x288xbf16>
    %35 = vector.shape_cast %34 : vector<1x1x32x288xbf16> to vector<32x288xbf16>
    %c0_26 = arith.constant 0 : index
    %c0_27 = arith.constant 0 : index
    %36 = vector.load %arg2[%c0_26, %c0_27] : memref<32x64xbf16, #tpu.memory_space<vmem>>, vector<32x64xbf16>
    %cst_28 = arith.constant dense<0.000000e+00> : vector<288x64xf32>
    %37 = tpu.matmul %35, %36, %cst_28 {dimension_numbers = #tpu.dot_dimension_numbers<[0], [0], [1], [1], [0, 1, 1, 1], [], []>} : vector<32x288xbf16>, vector<32x64xbf16>, vector<288x64xf32> -> vector<288x64xf32>
    %c0_29 = arith.constant 0 : index
    %c0_30 = arith.constant 0 : index
    %38 = vector.load %arg3[%c0_29, %c0_30] : memref<1x64xf32, #tpu.memory_space<vmem>>, vector<1x64xf32>
    %39 = vector.broadcast %38 : vector<1x64xf32> to vector<288x64xf32>
    %40 = arith.addf %37, %39 : vector<288x64xf32>
    %cst_31 = arith.constant 0.000000e+00 : f32
    %41 = vector.broadcast %cst_31 : f32 to vector<288x64xf32>
    %42 = arith.maximumf %40, %41 : vector<288x64xf32>
    %43 = vector.broadcast %14 : vector<288x1xf32> to vector<288x64xf32>
    %44 = arith.mulf %42, %43 : vector<288x64xf32>
    %45 = vector.shape_cast %44 : vector<288x64xf32> to vector<18x16x64xf32>
    %46 = arith.truncf %45 : vector<18x16x64xf32> to vector<18x16x64xbf16>
    %c1_32 = arith.constant 1 : index
    %c0_33 = arith.constant 0 : index
    %c1_34 = arith.constant 1 : index
    %c0_35 = arith.constant 0 : index
    %47 = vector.load %arg9[%c1_32, %c0_33, %c1_34, %c0_35] : memref<2x18x18x64xbf16, #tpu.memory_space<vmem>>, vector<1x18x16x64xbf16>
    %48 = vector.shape_cast %47 : vector<1x18x16x64xbf16> to vector<18x16x64xbf16>
    %49 = vector.shape_cast %46 : vector<18x16x64xbf16> to vector<1x18x16x64xbf16>
    tpu.vector_store %arg9[%c1_32, %c0_33, %c1_34, %c0_35], %49 {strides = array<i32>} : memref<2x18x18x64xbf16, #tpu.memory_space<vmem>>, vector<1x18x16x64xbf16>,
    %c0_36 = arith.constant 0 : index
    %c0_37 = arith.constant 0 : index
    %c0_38 = arith.constant 0 : index
    %c0_39 = arith.constant 0 : index
    %50 = vector.load %arg9[%c0_36, %c0_37, %c0_38, %c0_39] : memref<2x18x18x64xbf16, #tpu.memory_space<vmem>>, vector<2x18x16x64xbf16>
    %c0_40 = arith.constant 0 : index
    %c0_41 = arith.constant 0 : index
    %c1_42 = arith.constant 1 : index
    %c0_43 = arith.constant 0 : index
    %51 = vector.load %arg9[%c0_40, %c0_41, %c1_42, %c0_43] : memref<2x18x18x64xbf16, #tpu.memory_space<vmem>>, vector<2x18x16x64xbf16>
    %c0_44 = arith.constant 0 : index
    %c0_45 = arith.constant 0 : index
    %c2 = arith.constant 2 : index
    %c0_46 = arith.constant 0 : index
    %52 = vector.load %arg9[%c0_44, %c0_45, %c2, %c0_46] : memref<2x18x18x64xbf16, #tpu.memory_space<vmem>>, vector<2x18x16x64xbf16>
    %53 = tpu.concatenate %50, %51, %52 in 3 : vector<2x18x16x64xbf16>, vector<2x18x16x64xbf16>, vector<2x18x16x64xbf16> -> vector<2x18x16x192xbf16>
    %cst_47 = arith.constant 0.000000e+00 : f32
    %54 = vector.broadcast %cst_47 : f32 to vector<512x64xf32>
    %55 = vector.extract_strided_slice %53 {offsets = [0, 0, 0, 0], sizes = [2, 16, 16, 192], strides = [1, 1, 1, 1]} : vector<2x18x16x192xbf16> to vector<2x16x16x192xbf16>
    %56 = vector.shape_cast %55 : vector<2x16x16x192xbf16> to vector<512x192xbf16>
    %c0_48 = arith.constant 0 : index
    %c0_49 = arith.constant 0 : index
    %c0_50 = arith.constant 0 : index
    %57 = vector.load %arg4[%c0_48, %c0_49, %c0_50] : memref<3x192x64xbf16, #tpu.memory_space<vmem>>, vector<1x192x64xbf16>
    %58 = vector.shape_cast %57 : vector<1x192x64xbf16> to vector<192x64xbf16>
    %cst_51 = arith.constant dense<0.000000e+00> : vector<512x64xf32>
    %59 = tpu.matmul %56, %58, %cst_51 {dimension_numbers = #tpu.dot_dimension_numbers<[1], [0], [0], [1], [0, 0, 1, 1], [], []>} : vector<512x192xbf16>, vector<192x64xbf16>, vector<512x64xf32> -> vector<512x64xf32>
    %60 = arith.addf %54, %59 : vector<512x64xf32>
    %61 = vector.extract_strided_slice %53 {offsets = [0, 1, 0, 0], sizes = [2, 16, 16, 192], strides = [1, 1, 1, 1]} : vector<2x18x16x192xbf16> to vector<2x16x16x192xbf16>
    %62 = vector.shape_cast %61 : vector<2x16x16x192xbf16> to vector<512x192xbf16>
    %c1_52 = arith.constant 1 : index
    %c0_53 = arith.constant 0 : index
    %c0_54 = arith.constant 0 : index
    %63 = vector.load %arg4[%c1_52, %c0_53, %c0_54] : memref<3x192x64xbf16, #tpu.memory_space<vmem>>, vector<1x192x64xbf16>
    %64 = vector.shape_cast %63 : vector<1x192x64xbf16> to vector<192x64xbf16>
    %cst_55 = arith.constant dense<0.000000e+00> : vector<512x64xf32>
    %65 = tpu.matmul %62, %64, %cst_55 {dimension_numbers = #tpu.dot_dimension_numbers<[1], [0], [0], [1], [0, 0, 1, 1], [], []>} : vector<512x192xbf16>, vector<192x64xbf16>, vector<512x64xf32> -> vector<512x64xf32>
    %66 = arith.addf %60, %65 : vector<512x64xf32>
    %67 = vector.extract_strided_slice %53 {offsets = [0, 2, 0, 0], sizes = [2, 16, 16, 192], strides = [1, 1, 1, 1]} : vector<2x18x16x192xbf16> to vector<2x16x16x192xbf16>
    %68 = vector.shape_cast %67 : vector<2x16x16x192xbf16> to vector<512x192xbf16>
    %c2_56 = arith.constant 2 : index
    %c0_57 = arith.constant 0 : index
    %c0_58 = arith.constant 0 : index
    %69 = vector.load %arg4[%c2_56, %c0_57, %c0_58] : memref<3x192x64xbf16, #tpu.memory_space<vmem>>, vector<1x192x64xbf16>
    %70 = vector.shape_cast %69 : vector<1x192x64xbf16> to vector<192x64xbf16>
    %cst_59 = arith.constant dense<0.000000e+00> : vector<512x64xf32>
    %71 = tpu.matmul %68, %70, %cst_59 {dimension_numbers = #tpu.dot_dimension_numbers<[1], [0], [0], [1], [0, 0, 1, 1], [], []>} : vector<512x192xbf16>, vector<192x64xbf16>, vector<512x64xf32> -> vector<512x64xf32>
    %72 = arith.addf %66, %71 : vector<512x64xf32>
    %c0_60 = arith.constant 0 : index
    %c0_61 = arith.constant 0 : index
    %73 = vector.load %arg5[%c0_60, %c0_61] : memref<1x64xf32, #tpu.memory_space<vmem>>, vector<1x64xf32>
    %74 = vector.broadcast %73 : vector<1x64xf32> to vector<512x64xf32>
    %75 = arith.addf %72, %74 : vector<512x64xf32>
    %cst_62 = arith.constant 0.000000e+00 : f32
    %76 = vector.broadcast %cst_62 : f32 to vector<512x64xf32>
    %77 = arith.maximumf %75, %76 : vector<512x64xf32>
    %78 = vector.extract_strided_slice %77 {offsets = [0, 0], sizes = [256, 64], strides = [1, 1]} : vector<512x64xf32> to vector<256x64xf32>
    %79 = vector.extract_strided_slice %77 {offsets = [256, 0], sizes = [256, 64], strides = [1, 1]} : vector<512x64xf32> to vector<256x64xf32>
    %80 = arith.subf %78, %79 : vector<256x64xf32>
    %81 = math.absf %80 : vector<256x64xf32>
    %82 = vector.shape_cast %81 : vector<256x64xf32> to vector<1x256x64xf32>
    %cst_63 = arith.constant dense<0.000000e+00> : vector<1xf32>
    %83 = vector.multi_reduction <add>, %82, %cst_63 [1, 2] : vector<1x256x64xf32> to vector<1xf32>
    %84 = vector.shape_cast %83 : vector<1xf32> to vector<1x1x1xf32>
    %85 = vector.extract %84[0, 0, 0] : f32 from vector<1x1x1xf32>
    %cst_64 = arith.constant 1.000000e+00 : f32
    %86 = vector.broadcast %cst_64 : f32 to vector<1x1x8x128xf32>
    %87 = vector.broadcast %85 : f32 to vector<1x1x8x128xf32>
    %88 = arith.mulf %87, %86 : vector<1x1x8x128xf32>
    %c0_65 = arith.constant 0 : index
    %c0_66 = arith.constant 0 : index
    %c0_67 = arith.constant 0 : index
    %c0_68 = arith.constant 0 : index
    %89 = vector.load %arg8[%c0_65, %c0_66, %c0_67, %c0_68] : memref<1x1x8x128xf32, #tpu.memory_space<vmem>>, vector<1x1x8x128xf32>
    tpu.vector_store %arg8[%c0_65, %c0_66, %c0_67, %c0_68], %88 {strides = array<i32>} : memref<1x1x8x128xf32, #tpu.memory_space<vmem>>, vector<1x1x8x128xf32>,
    return
  }
  func.func @transform_0(%arg0: i32, %arg1: i32) -> (i32, i32) {
    %c0_i32 = arith.constant 0 : i32
    %c0_i32_0 = arith.constant 0 : i32
    %c0_i32_1 = arith.constant 0 : i32
    return %c0_i32, %c0_i32_0 : i32, i32
  }
  func.func @transform_1(%arg0: i32, %arg1: i32) -> (i32, i32) {
    %c0_i32 = arith.constant 0 : i32
    %c0_i32_0 = arith.constant 0 : i32
    %c0_i32_1 = arith.constant 0 : i32
    return %c0_i32, %c0_i32_0 : i32, i32
  }
  func.func @transform_2(%arg0: i32, %arg1: i32) -> (i32, i32, i32) {
    %c0_i32 = arith.constant 0 : i32
    %c0_i32_0 = arith.constant 0 : i32
    %c0_i32_1 = arith.constant 0 : i32
    %c0_i32_2 = arith.constant 0 : i32
    return %c0_i32, %c0_i32_0, %c0_i32_1 : i32, i32, i32
  }
  func.func @transform_3(%arg0: i32, %arg1: i32) -> (i32, i32) {
    %c0_i32 = arith.constant 0 : i32
    %c0_i32_0 = arith.constant 0 : i32
    %c0_i32_1 = arith.constant 0 : i32
    return %c0_i32, %c0_i32_0 : i32, i32
  }
  func.func @transform_4(%arg0: i32, %arg1: i32) -> (i32, i32, i32, i32) {
    %c0_i32 = arith.constant 0 : i32
    %c0_i32_0 = arith.constant 0 : i32
    %c0_i32_1 = arith.constant 0 : i32
    return %arg0, %arg1, %c0_i32, %c0_i32_0 : i32, i32, i32, i32
  }
  func.func @transform_5(%arg0: i32, %arg1: i32) -> (i32, i32, i32, i32) {
    %c0_i32 = arith.constant 0 : i32
    %c0_i32_0 = arith.constant 0 : i32
    %c0_i32_1 = arith.constant 0 : i32
    return %arg0, %arg1, %c0_i32, %c0_i32_0 : i32, i32, i32, i32
  }
  func.func @transform_6(%arg0: i32, %arg1: i32) -> (i32, i32, i32, i32) {
    %c0_i32 = arith.constant 0 : i32
    %c0_i32_0 = arith.constant 0 : i32
    %c0_i32_1 = arith.constant 0 : i32
    return %arg0, %arg1, %c0_i32, %c0_i32_0 : i32, i32, i32, i32
  }
}

</mosaic_0001>

<bundles_post_ra>
// kernel: perceptual_ssim_loss.2
= control target key start
LH: loop header
LB: loop body
LE: loop exit
PB: predicated region body
PF: predicated region fallthrough
CT: control target
= control target key end

     0   :  { %vm61_vm0 = vcmask 130048   ;;  %s3014_s26 = smov 127   ;;  %s3015_s8 = smov 126   ;;  %vm394_vm1 = vcmask 1046528   ;;  %vm461_vm2 = vcmask 1045504   ;;  %vm504_vm3 = vcmask 1044480   ;;  %s6046_s0 = inlined_call_operand.vmem [shape: f32[6,16,16], index: 0, kind: input, shape index: {}]   ;;  %s6047_s1 = inlined_call_operand.vmem [shape: f32[6,16,16], index: 1, kind: input, shape index: {}]   ;;  %s6048_s2 = inlined_call_operand.vmem [shape: f32[1,8,128], index: 2, kind: output, shape index: {0}]   ;;  %s6049_s3 = inlined_call_operand.vmem [shape: f32[1,8,128], index: 3, kind: output, shape index: {1}]  }
   0x1   :  { %v3041_v0 = vld [vmem:[%s6046_s0 + $0x8] sm:$0xff]  ;;  %v3051_v2 = vld [vmem:[%s6046_s0] sm:$0xff]  ;;  %v3069_v7 = vld [vmem:[%s6046_s0 + $0x10] sm:$0xff]  ;;  %s3016_s9 = smov 125   ;;  %s3017_s10 = smov 124   ;;  %vm559_vm4 = vcmask 1043456  }
   0x2   :  { %v3046_v1 = vld [vmem:[%s6047_s1 + $0x8] sm:$0xff]  ;;  %v3054_v3 = vmul.f32 0.23388076, %v3041_v0  ;;  %v3061_v5 = vld [vmem:[%s6047_s1] sm:$0xff]  ;;  %v3064_v6 = vmul.f32 0.23388076, %v3051_v2 }
   0x3   :  { %v38_v4 = vsub.f32 %v3041_v0, %v3046_v1  ;;  %v37_v8 = vsub.f32 %v3051_v2, %v3061_v5  ;;  %v3076_v9 = vld [vmem:[%s6047_s1 + $0x10] sm:$0xff]  ;;  %v3081_v10 = vld [vmem:[%s6046_s0 + $0x40] sm:$0xff]  ;;  %v3090_v13 = vmul.f32 0.23388076, %v3069_v7  ;;  %v3098_v16 = vld [vmem:[%s6046_s0 + $0x18] sm:$0xff]  ;;  %vm2908_vm5 = vcmask 93184  }
   0x4   :  { %132 = vrot.lane.b32.xlu1 %v3054_v3, %s3014_s26  ;;  %130 = vrot.lane.b32.xlu0 %v3064_v6, %s3014_s26  ;;  %v39_v12 = vsub.f32 %v3069_v7, %v3076_v9  ;;  %v3093_v14 = vmul.f32 0.23388076, %v3081_v10  ;;  %v3105_v19 = vld [vmem:[%s6046_s0 + $0x20] sm:$0xff]  ;;  %v3112_v20 = vmul.f32 0.23388076, %v3098_v16  ;;  %v3117_v21 = vld [vmem:[%s6046_s0 + $0x28] sm:$0xff] }
   0x5   :  { %v50_v11 = vand.u32 2147483647, %v38_v4  ;;  %v49_v15 = vand.u32 2147483647, %v37_v8  ;;  %v3122_v22 = vld [vmem:[%s6046_s0 + $0x30] sm:$0xff]  ;;  %v3127_v25 = vld [vmem:[%s6047_s1 + $0x18] sm:$0xff] }
   0x6   :  { %v51_v23 = vand.u32 2147483647, %v39_v12  ;;  %v3132_v26 = vld [vmem:[%s6047_s1 + $0x20] sm:$0xff]  ;;  %v3137_v27 = vld [vmem:[%s6047_s1 + $0x28] sm:$0xff]  ;;  %v3142_v28 = vld [vmem:[%s6046_s0 + $0x38] sm:$0xff]  ;;  %v40_v31 = vsub.f32 %v3098_v16, %v3127_v25  ;;  %vm2906_vm6 = vcmask 97280  }
   0x7   :  { %v63_v17 = vsel %vm61_vm0, %v50_v11, 0.0  ;;  %v62_v18 = vsel %vm61_vm0, %v49_v15, 0.0  ;;  %v3147_v29 = vld [vmem:[%s6047_s1 + $0x30] sm:$0xff]  ;;  %v3152_v30 = vld [vmem:[%s6047_s1 + $0x38] sm:$0xff]  ;;  %v41_v32 = vsub.f32 %v3105_v19, %v3132_v26  ;;  %v42_v33 = vsub.f32 %v3117_v21, %v3137_v27  ;;  %v3171_v37 = vld [vmem:[%s6047_s1 + $0x40] sm:$0xff] }
   0x8   :  { %134 = vrot.lane.b32.xlu1 %v3090_v13, %s3014_s26  ;;  %146 = vrot.lane.b32.xlu0 %v3093_v14, %s3014_s26  ;;  %v64_v24 = vadd.f32 %v63_v17, %v62_v18  ;;  %v65_v34 = vsel %vm61_vm0, %v51_v23, 0.0  ;;  %v43_v35 = vsub.f32 %v3122_v22, %v3147_v29  ;;  %v3166_v36 = vmul.f32 0.23388076, %v3105_v19  ;;  %v3178_v43 = vld [vmem:[%s6046_s0 + $0x48] sm:$0xff]  ;;  %v3195_v51 = vld [vmem:[%s6046_s0 + $0x50] sm:$0xff] }
   0x9   :  { %v52_v38 = vand.u32 2147483647, %v40_v31  ;;  %v44_v40 = vsub.f32 %v3142_v28, %v3152_v30  ;;  %v53_v41 = vand.u32 2147483647, %v41_v32  ;;  %v54_v42 = vand.u32 2147483647, %v42_v33 }
   0xa   :  { %v66_v39 = vadd.f32 %v65_v34, %v64_v24  ;;  %v3183_v44 = vld [vmem:[%s6047_s1 + $0x48] sm:$0xff]  ;;  %v45_v45 = vsub.f32 %v3081_v10, %v3171_v37  ;;  %v55_v46 = vand.u32 2147483647, %v43_v35  ;;  %v111_v49 = vmul.f32 0.23388076, %v3117_v21  ;;  %v3200_v52 = vld [vmem:[%s6047_s1 + $0x50] sm:$0xff] }
   0xb   :  { %v67_v47 = vsel %vm61_vm0, %v52_v38, 0.0  ;;  %v69_v48 = vsel %vm61_vm0, %v53_v41, 0.0  ;;  %v46_v53 = vsub.f32 %v3178_v43, %v3183_v44  ;;  %v56_v54 = vand.u32 2147483647, %v44_v40  ;;  %v3215_v62 = vld [vmem:[%s6046_s0 + $0x58] sm:$0xff] }
   0xc   :  { %136 = vrot.lane.b32.xlu1 %v3112_v20, %s3014_s26  ;;  %v68_v50 = vadd.f32 %v67_v47, %v66_v39  ;;  %v71_v55 = vsel %vm61_vm0, %v54_v42, 0.0  ;;  %v57_v57 = vand.u32 2147483647, %v45_v45  ;;  %v73_v58 = vsel %vm61_vm0, %v55_v46, 0.0  ;;  %v3220_v63 = vld [vmem:[%s6047_s1 + $0x58] sm:$0xff] }
   0xd   :  { %v3208_v59 = vmul.f32 0.23388076, %v3122_v22  ;;  %v47_v60 = vsub.f32 %v3195_v51, %v3200_v52  ;;  %v58_v4 = vand.u32 2147483647, %v46_v53  ;;  %v75_v8 = vsel %vm61_vm0, %v56_v54, 0.0 }
   0xe   :  { %v70_v56 = vadd.f32 %v69_v48, %v68_v50  ;;  %v77_v12 = vsel %vm61_vm0, %v57_v57, 0.0  ;;  %v113_v15 = vmul.f32 0.23388076, %v3142_v28  ;;  %v48_v17 = vsub.f32 %v3215_v62, %v3220_v63 }
   0xf   :  { %v59_v18 = vand.u32 2147483647, %v47_v60  ;;  %v79_v24 = vsel %vm61_vm0, %v58_v4, 0.0  ;;  %v115_v32 = vmul.f32 0.23388076, %v3178_v43 }
  0x10   :  { %138 = vrot.lane.b32.xlu1 %v3166_v36, %s3014_s26  ;;  %v72_v61 = vadd.f32 %v71_v55, %v70_v56  ;;  %v60_v33 = vand.u32 2147483647, %v48_v17  ;;  %v117_v39 = vmul.f32 0.23388076, %v3215_v62  ;;  %v179_v42 = vmul.f32 0.2920817, %v3041_v0 }
  0x11   :  { %v81_v35 = vsel %vm61_vm0, %v59_v18, 0.0  ;;  %v181_v45 = vmul.f32 0.2920817, %v3098_v16  ;;  %v183_v46 = vmul.f32 0.2920817, %v3117_v21 }
  0x12   :  { %v74_v11 = vadd.f32 %v73_v58, %v72_v61  ;;  %v83_v40 = vsel %vm61_vm0, %v60_v33, 0.0  ;;  %v185_v47 = vmul.f32 0.2920817, %v3142_v28  ;;  %v187_v48 = vmul.f32 0.2920817, %v3178_v43 }
  0x13   :  { %v189_v50 = vmul.f32 0.2920817, %v3215_v62  ;;  %v116_v53 = vmul.f32 0.23388076, %v3195_v51  ;;  %v178_v54 = vmul.f32 0.2920817, %v3051_v2 }
  0x14   :  { %140 = vrot.lane.b32.xlu1 %v111_v49, %s3014_s26  ;;  %v76_v23 = vadd.f32 %v75_v8, %v74_v11  ;;  %v180_v55 = vmul.f32 0.2920817, %v3069_v7  ;;  %v182_v56 = vmul.f32 0.2920817, %v3105_v19  ;;  %v184_v57 = vmul.f32 0.2920817, %v3122_v22 }
  0x15   :  { %v3277_v58 = vmul.f32 0.120078385, %v3098_v16  ;;  %v3284_v60 = vmul.f32 0.120078385, %v3117_v21  ;;  %v3291_v61 = vmul.f32 0.120078385, %v3142_v28 }
  0x16   :  { %v78_v31 = vadd.f32 %v77_v12, %v76_v23  ;;  %v3314_v4 = vmul.f32 0.120078385, %v3051_v2  ;;  %v3321_v8 = vmul.f32 0.120078385, %v3069_v7  ;;  %v3328_v11 = vmul.f32 0.120078385, %v3105_v19 }
  0x17   :  { %v3337_v17 = vmul.f32 0.120078385, %v3122_v22  ;;  %v623_v23 = vmul.f32 0.23388076, %v3183_v44  ;;  %v3357_v33 = vmul.f32 0.120078385, %v3195_v51 }
  0x18   :  { %142 = vrot.lane.b32.xlu1 %v3208_v59, %s3014_s26  ;;  %v80_v34 = vadd.f32 %v79_v24, %v78_v31  ;;  %v3348_v31 = vmul.f32 0.120078385, %v3081_v10 }
  0x19   :  { %6211 = vst [vmem:[#allocation2_spill] sm:$0xff] %v3337_v17  ;;  %6212 = vst [vmem:[#allocation3_spill] sm:$0xff] %v3357_v33 }
  0x1a   :  { %v82_v38 = vadd.f32 %v81_v35, %v80_v34  ;;  %v687_v35 = vmul.f32 0.2920817, %v3046_v1 }
  0x1c   :  { %144 = vrot.lane.b32.xlu1 %v113_v15, %s3014_s26  ;;  %v84_v41 = vadd.f32 %v83_v40, %v82_v38  ;;  %v3367_v38 = vmul.f32 0.23388076, %v3061_v5  ;;  %v689_v40 = vmul.f32 0.2920817, %v3127_v25 }
  0x20   :  { %148 = vrot.lane.b32.xlu1 %v115_v32, %s3014_s26 }
  0x24   :  { %152 = vrot.lane.b32.xlu1 %v117_v39, %s3014_s26 }
  0x27   :  { %85 = vadd.xlane.f32.xlu0 %v84_v41  ;;  %v3376_v41 = vmul.f32 0.23388076, %v3076_v9 }
  0x28   :  { %204 = vrot.lane.b32.xlu1 %v179_v42, %s3015_s8 }
  0x2c   :  { %208 = vrot.lane.b32.xlu1 %v181_v45, %s3015_s8  ;;  %v691_v45 = vmul.f32 0.2920817, %v3137_v27 }
  0x30   :  { %212 = vrot.lane.b32.xlu1 %v183_v46, %s3015_s8  ;;  %v3385_v46 = vmul.f32 0.23388076, %v3132_v26 }
  0x34   :  { %216 = vrot.lane.b32.xlu1 %v185_v47, %s3015_s8 }
  0x38   :  { %220 = vrot.lane.b32.xlu1 %v187_v48, %s3015_s8  ;;  %v693_v48 = vmul.f32 0.2920817, %v3152_v30 }
  0x3c   :  { %224 = vrot.lane.b32.xlu1 %v189_v50, %s3015_s8  ;;  %v3394_v50 = vmul.f32 0.23388076, %v3147_v29 }
  0x3d   :  { %150 = vrot.lane.b32.xlu0 %v116_v53, %s3014_s26 }
  0x40   :  { %252 = vrot.lane.b32.xlu1 %v3054_v3, %s3016_s9  ;;  %v186_v3 = vmul.f32 0.2920817, %v3081_v10 }
  0x41   :  { %202 = vrot.lane.b32.xlu0 %v178_v54, %s3015_s8  ;;  %v695_v54 = vmul.f32 0.2920817, %v3183_v44 }
  0x44   :  { %256 = vrot.lane.b32.xlu1 %v3112_v20, %s3016_s9  ;;  %v188_v20 = vmul.f32 0.2920817, %v3195_v51 }
  0x45   :  { %206 = vrot.lane.b32.xlu0 %v180_v55, %s3015_s8  ;;  %v3403_v55 = vmul.f32 0.23388076, %v3171_v37 }
  0x48   :  { %260 = vrot.lane.b32.xlu1 %v111_v49, %s3016_s9  ;;  %v3271_v49 = vmul.f32 0.120078385, %v3041_v0 }
  0x49   :  { %210 = vrot.lane.b32.xlu0 %v182_v56, %s3015_s8 }
  0x4c   :  { %264 = vrot.lane.b32.xlu1 %v113_v15, %s3016_s9  ;;  %v621_v15 = vmul.f32 0.23388076, %v3152_v30 }
  0x4d   :  { %214 = vrot.lane.b32.xlu0 %v184_v57, %s3015_s8  ;;  %v697_v57 = vmul.f32 0.2920817, %v3220_v63 }
  0x50   :  { %268 = vrot.lane.b32.xlu1 %v115_v32, %s3016_s9  ;;  %v3352_v32 = vmul.f32 0.23388076, %v3220_v63 }
  0x51   :  { %218 = vrot.lane.b32.xlu0 %v186_v3, %s3015_s8  ;;  %v3412_v3 = vmul.f32 0.23388076, %v3200_v52 }
  0x54   :  { %272 = vrot.lane.b32.xlu1 %v117_v39, %s3016_s9 }
  0x55   :  { %222 = vrot.lane.b32.xlu0 %v188_v20, %s3015_s8 }
  0x58   :  { %312 = vrot.lane.b32.xlu1 %v3271_v49, %s3017_s10 }
  0x59   :  { %250 = vrot.lane.b32.xlu0 %v3064_v6, %s3016_s9  ;;  %v3298_v6 = vmul.f32 0.120078385, %v3178_v43 }
  0x5c   :  { %316 = vrot.lane.b32.xlu1 %v3277_v58, %s3017_s10 }
  0x5d   :  { %254 = vrot.lane.b32.xlu0 %v3090_v13, %s3016_s9  ;;  %v3305_v13 = vmul.f32 0.120078385, %v3215_v62 }
  0x60   :  { %320 = vrot.lane.b32.xlu1 %v3284_v60, %s3017_s10 }
  0x61   :  { %258 = vrot.lane.b32.xlu0 %v3166_v36, %s3016_s9  ;;  %v615_v36 = vmul.f32 0.23388076, %v3046_v1 }
  0x64   :  { %324 = vrot.lane.b32.xlu1 %v3291_v61, %s3017_s10 }
  0x65   :  { %262 = vrot.lane.b32.xlu0 %v3208_v59, %s3016_s9  ;;  %v617_v59 = vmul.f32 0.23388076, %v3127_v25 }
  0x68   :  { %328 = vrot.lane.b32.xlu1 %v3298_v6, %s3017_s10 }
  0x69   :  { %266 = vrot.lane.b32.xlu0 %v3093_v14, %s3016_s9  ;;  %v619_v14 = vmul.f32 0.23388076, %v3137_v27 }
  0x6c   :  { %332 = vrot.lane.b32.xlu1 %v3305_v13, %s3017_s10 }
  0x6d   :  { %270 = vrot.lane.b32.xlu0 %v116_v53, %s3016_s9 }
  0x70   :  { %640 = vrot.lane.b32.xlu1 %v615_v36, %s3014_s26 }
  0x71   :  { %310 = vrot.lane.b32.xlu0 %v3314_v4, %s3017_s10 }
  0x74   :  { %644 = vrot.lane.b32.xlu1 %v617_v59, %s3014_s26 }
  0x75   :  { %314 = vrot.lane.b32.xlu0 %v3321_v8, %s3017_s10 }
  0x76   :  { %v3330_v12 = vpop.permute.xlu1 %132 }
  0x78   :  { %648 = vrot.lane.b32.xlu1 %v619_v14, %s3014_s26 }
  0x79   :  { %318 = vrot.lane.b32.xlu0 %v3328_v11, %s3017_s10 }
  0x7a   :  { %v3339_v18 = vpop.permute.xlu1 %134 }
  0x7c   :  { %652 = vrot.lane.b32.xlu1 %v621_v15, %s3014_s26 }
  0x7d   :  { %322 = vrot.lane.b32.xlu0 %v3337_v17, %s3017_s10 }
  0x7e   :  { %v3345_v24 = vpop.permute.xlu1 %136 }
  0x80   :  { %656 = vrot.lane.b32.xlu1 %v623_v23, %s3014_s26 }
  0x81   :  { %326 = vrot.lane.b32.xlu0 %v3348_v31, %s3017_s10 }
  0x82   :  { %v3359_v34 = vpop.permute.xlu1 %138 }
  0x84   :  { %660 = vrot.lane.b32.xlu1 %v3352_v32, %s3014_s26 }
  0x85   :  { %330 = vrot.lane.b32.xlu0 %v3357_v33, %s3017_s10 }
  0x86   :  { %v3369_v39 = vpop.permute.xlu1 %140 }
  0x88   :  { %712 = vrot.lane.b32.xlu1 %v687_v35, %s3015_s8  ;;  %v686_v35 = vmul.f32 0.2920817, %v3061_v5 }
  0x89   :  { %638 = vrot.lane.b32.xlu0 %v3367_v38, %s3014_s26 }
  0x8a   :  { %v3378_v42 = vpop.permute.xlu1 %142 }
  0x8b   :  { %6213 = vst [vmem:[#allocation4_spill] sm:$0xff] %v3378_v42 }
  0x8c   :  { %716 = vrot.lane.b32.xlu1 %v689_v40, %s3015_s8 }
  0x8d   :  { %642 = vrot.lane.b32.xlu0 %v3376_v41, %s3014_s26 }
  0x8e   :  { %v3387_v47 = vpop.permute.xlu1 %144 }
  0x90   :  { %720 = vrot.lane.b32.xlu1 %v691_v45, %s3015_s8  ;;  %v688_v45 = vmul.f32 0.2920817, %v3076_v9 }
  0x91   :  { %646 = vrot.lane.b32.xlu0 %v3385_v46, %s3014_s26 }
  0x92   :  { %v3396_v53 = vpop.permute.xlu1 %148 }
  0x94   :  { %724 = vrot.lane.b32.xlu1 %v693_v48, %s3015_s8 }
  0x95   :  { %650 = vrot.lane.b32.xlu0 %v3394_v50, %s3014_s26 }
  0x96   :  { %v3405_v56 = vpop.permute.xlu1 %152 }
  0x98   :  { %728 = vrot.lane.b32.xlu1 %v695_v54, %s3015_s8  ;;  %v690_v54 = vmul.f32 0.2920817, %v3132_v26 }
  0x99   :  { %654 = vrot.lane.b32.xlu0 %v3403_v55, %s3014_s26 }
  0x9a   :  { %v3414_v20 = vpop.permute.xlu1 %204 }
  0x9c   :  { %732 = vrot.lane.b32.xlu1 %v697_v57, %s3015_s8  ;;  %v3430_v57 = vpop.permute.xlu0 %130 }
  0x9d   :  { %658 = vrot.lane.b32.xlu0 %v3412_v3, %s3014_s26 }
  0x9e   :  { %v3420_v40 = vpop.permute.xlu1 %208 }
  0xa0   :  { %760 = vrot.lane.b32.xlu1 %v615_v36, %s3016_s9  ;;  %v692_v36 = vmul.f32 0.2920817, %v3147_v29  ;;  %v3439_v42 = vpop.permute.xlu0 %146 }
  0xa1   :  { %710 = vrot.lane.b32.xlu0 %v686_v35, %s3015_s8 }
  0xa2   :  { %v3425_v48 = vpop.permute.xlu1 %212 }
  0xa3   :  { %6214 = vst [vmem:[#allocation5_spill] sm:$0xff] %v3425_v48 }
  0xa4   :  { %764 = vrot.lane.b32.xlu1 %v617_v59, %s3016_s9  ;;  %v694_v59 = vmul.f32 0.2920817, %v3171_v37 }
  0xa5   :  { %714 = vrot.lane.b32.xlu0 %v688_v45, %s3015_s8 }
  0xa6   :  { %v3432_v33 = vpop.permute.xlu1 %216 }
  0xa7   :  { %6215 = vst [vmem:[#allocation6_spill] sm:$0xff] %v3432_v33 }
  0xa8   :  { %768 = vrot.lane.b32.xlu1 %v619_v14, %s3016_s9 }
  0xa9   :  { %718 = vrot.lane.b32.xlu0 %v690_v54, %s3015_s8  ;;  %v696_v54 = vmul.f32 0.2920817, %v3200_v52 }
  0xaa   :  { %v3437_v35 = vpop.permute.xlu1 %220 }
  0xab   :  { %6216 = vst [vmem:[#allocation7_spill] sm:$0xff] %v3437_v35 }
  0xac   :  { %772 = vrot.lane.b32.xlu1 %v621_v15, %s3016_s9 }
  0xad   :  { %722 = vrot.lane.b32.xlu0 %v692_v36, %s3015_s8  ;;  %v3456_v36 = vmul.f32 0.120078385, %v3046_v1 }
  0xae   :  { %v3444_v45 = vpop.permute.xlu1 %224 }
  0xaf   :  { %6217 = vst [vmem:[#allocation8_spill] sm:$0xff] %v3444_v45  ;;  %6219 = vst [vmem:[#allocation10_spill] sm:$0xff] %v3456_v36 }
  0xb0   :  { %776 = vrot.lane.b32.xlu1 %v623_v23, %s3016_s9  ;;  %v86_v17 = vpop.xlane.xlu0 %85 }
  0xb1   :  { %v87_v14 = vrot.slane %v86_v17, 4  ;;  %726 = vrot.lane.b32.xlu0 %v694_v59, %s3015_s8 }
  0xb2   :  { %v3449_v33 = vpop.permute.xlu1 %252 }
  0xb3   :  { %v88_v35 = vadd.f32 %v87_v14, %v86_v17  ;;  %v3466_v17 = vmul.f32 0.120078385, %v3127_v25 }
  0xb4   :  { %780 = vrot.lane.b32.xlu1 %v3352_v32, %s3016_s9  ;;  %v3453_v15 = vpop.permute.xlu0 %150 }
  0xb5   :  { %6218 = vst [vmem:[#allocation9_spill] sm:$0xff] %v3453_v15  ;;  %730 = vrot.lane.b32.xlu0 %v696_v54, %s3015_s8  ;;  %v89_v23 = vrot.slane %v88_v35, 2  ;;  %6220 = vst [vmem:[#allocation11_spill] sm:$0xff] %v3466_v17 }
  0xb6   :  { %v3459_v45 = vpop.permute.xlu1 %256 }
  0xb7   :  { %v90_v48 = vadd.f32 %v89_v23, %v88_v35  ;;  %v3477_v35 = vmul.f32 0.120078385, %v3137_v27 }
  0xb8   :  { %820 = vrot.lane.b32.xlu1 %v3456_v36, %s3017_s10  ;;  %v3463_v59 = vpop.permute.xlu0 %202  ;;  %v3573_v36 = vmul.f32 %v3051_v2, %v3051_v2 }
  0xb9   :  { %v91_v32 = vrot.slane %v90_v48, 1  ;;  %758 = vrot.lane.b32.xlu0 %v3367_v38, %s3016_s9  ;;  %6221 = vst [vmem:[#allocation12_spill] sm:$0xff] %v3477_v35 }
  0xba   :  { %v3470_v14 = vpop.permute.xlu1 %260  ;;  %6238 = vst [vmem:[#allocation29_spill] sm:$0xff] %v3573_v36 }
  0xbb   :  { %v92_v15 = vadd.f32 %v91_v32, %v90_v48  ;;  %v3488_v48 = vmul.f32 0.120078385, %v3152_v30 }
  0xbc   :  { %824 = vrot.lane.b32.xlu1 %v3466_v17, %s3017_s10  ;;  %v3474_v54 = vpop.permute.xlu0 %206 }
  0xbd   :  { %2952 = vpush %v92_v15  ;;  %762 = vrot.lane.b32.xlu0 %v3376_v41, %s3016_s9  ;;  %6222 = vst [vmem:[#allocation13_spill] sm:$0xff] %v3488_v48  ;;  %v3499_v41 = vmul.f32 0.120078385, %v3183_v44 }
  0xbe   :  { %v3481_v23 = vpop.permute.xlu1 %264 }
  0xbf   :  { %6223 = vst [vmem:[#allocation14_spill] sm:$0xff] %v3499_v41 }
  0xc0   :  { %828 = vrot.lane.b32.xlu1 %v3477_v35, %s3017_s10  ;;  %v3485_v38 = vpop.permute.xlu0 %210  ;;  %v3544_v35 = vmul.f32 %v3142_v28, %v3142_v28  ;;  %v3564_v28 = vmul.f32 0.120078385, %v3076_v9 }
  0xc1   :  { %766 = vrot.lane.b32.xlu0 %v3385_v46, %s3016_s9  ;;  %v3510_v46 = vmul.f32 0.120078385, %v3220_v63  ;;  %v3529_v63 = vmul.f32 %v3098_v16, %v3098_v16  ;;  %v3548_v16 = vmul.f32 %v3178_v43, %v3178_v43 }
  0xc2   :  { %v3492_v32 = vpop.permute.xlu1 %268  ;;  %6231 = vst [vmem:[#allocation22_spill] sm:$0xff] %v3544_v35  ;;  %6236 = vst [vmem:[#allocation27_spill] sm:$0xff] %v3564_v28 }
  0xc3   :  { %6224 = vst [vmem:[#allocation15_spill] sm:$0xff] %v3510_v46  ;;  %6228 = vst [vmem:[#allocation19_spill] sm:$0xff] %v3529_v63 }
  0xc4   :  { %832 = vrot.lane.b32.xlu1 %v3488_v48, %s3017_s10  ;;  %v3496_v27 = vpop.permute.xlu0 %214  ;;  %v3514_v48 = vmul.f32 %v3041_v0, %v3041_v0  ;;  %v3534_v0 = vmul.f32 0.120078385, %v3061_v5  ;;  %6232 = vst [vmem:[#allocation23_spill] sm:$0xff] %v3548_v16  ;;  %v3555_v5 = vmul.f32 0.23388076, %v3529_v63 }
  0xc5   :  { %770 = vrot.lane.b32.xlu0 %v3394_v50, %s3016_s9 }
  0xc6   :  { %v3503_v15 = vpop.permute.xlu1 %272  ;;  %6225 = vst [vmem:[#allocation16_spill] sm:$0xff] %v3514_v48  ;;  %6229 = vst [vmem:[#allocation20_spill] sm:$0xff] %v3534_v0 }
  0xc7   :  { %6234 = vst [vmem:[#allocation25_spill] sm:$0xff] %v3555_v5 }
  0xc8   :  { %836 = vrot.lane.b32.xlu1 %v3499_v41, %s3017_s10  ;;  %v3507_v30 = vpop.permute.xlu0 %218  ;;  %v3525_v41 = vmul.f32 0.23388076, %v3514_v48 }
  0xc9   :  { %774 = vrot.lane.b32.xlu0 %v3403_v55, %s3016_s9 }
  0xca   :  { %v3518_v44 = vpop.permute.xlu1 %312  ;;  %6227 = vst [vmem:[#allocation18_spill] sm:$0xff] %v3525_v41 }
  0xcc   :  { %840 = vrot.lane.b32.xlu1 %v3510_v46, %s3017_s10  ;;  %v3522_v50 = vpop.permute.xlu0 %222  ;;  %v3540_v46 = vmul.f32 %v3117_v21, %v3117_v21  ;;  %v3559_v21 = vmul.f32 %v3215_v62, %v3215_v62  ;;  %v3579_v62 = vmul.f32 0.120078385, %v3132_v26  ;;  %v3599_v26 = vmul.f32 %v3069_v7, %v3069_v7 }
  0xcd   :  { %6226 = vst [vmem:[#allocation17_spill] sm:$0xff] %v3522_v50  ;;  %778 = vrot.lane.b32.xlu0 %v3412_v3, %s3016_s9  ;;  %v3595_v50 = vmul.f32 0.120078385, %v3171_v37  ;;  %v3615_v37 = vmul.f32 %v3046_v1, %v3046_v1  ;;  %v3618_v7 = vmul.f32 0.2920817, %v3529_v63  ;;  %v3632_v1 = vmul.f32 %v3122_v22, %v3122_v22 }
  0xce   :  { %v3536_v55 = vpop.permute.xlu1 %316  ;;  %6230 = vst [vmem:[#allocation21_spill] sm:$0xff] %v3540_v46  ;;  %6235 = vst [vmem:[#allocation26_spill] sm:$0xff] %v3559_v21  ;;  %v3569_v17 = vmul.f32 0.23388076, %v3540_v46  ;;  %v3592_v2 = vmul.f32 0.23388076, %v3559_v21  ;;  %v3636_v63 = vmul.f32 %v3127_v25, %v3127_v25  ;;  %v3652_v22 = vmul.f32 %v3081_v10, %v3081_v10 }
  0xcf   :  { %6240 = vst [vmem:[#allocation31_spill] sm:$0xff] %v3579_v62  ;;  %6244 = vst [vmem:[#allocation35_spill] sm:$0xff] %v3595_v50  ;;  %v171_v25 = vadd.f32 %v3369_v39, %v3284_v60  ;;  %v174_v10 = vadd.f32 %v3439_v42, %v3348_v31  ;;  %v173_v60 = vadd.f32 %v3387_v47, %v3291_v61  ;;  %v6253_v47 = vld [vmem:[#allocation5_spill] sm:$0xff] }
  0xd0   :  { %1192 = vrot.lane.b32.xlu1 %v3525_v41, %s3014_s26  ;;  %v3552_v3 = vpop.permute.xlu0 %250  ;;  %6237 = vst [vmem:[#allocation28_spill] sm:$0xff] %v3569_v17  ;;  %v3576_v41 = vmul.f32 0.23388076, %v3544_v35  ;;  %6243 = vst [vmem:[#allocation34_spill] sm:$0xff] %v3592_v2  ;;  %v177_v61 = vadd.f32 %v3405_v56, %v3305_v13  ;;  %v3694_v31 = vmul.f32 0.23388076, %v3652_v22  ;;  %v170_v42 = vadd.f32 %v3359_v34, %v3328_v11 }
  0xd1   :  { %6233 = vst [vmem:[#allocation24_spill] sm:$0xff] %v3552_v3  ;;  %818 = vrot.lane.b32.xlu0 %v3534_v0, %s3017_s10  ;;  %v3582_v0 = vmul.f32 0.23388076, %v3548_v16  ;;  %v3589_v3 = vmul.f32 0.120078385, %v3147_v29  ;;  %v3611_v29 = vmul.f32 %v3105_v19, %v3105_v19  ;;  %6246 = vst [vmem:[#allocation37_spill] sm:$0xff] %v3618_v7  ;;  %v169_v19 = vadd.f32 %v3345_v24, %v3277_v58 }
  0xd2   :  { %v3566_v43 = vpop.permute.xlu1 %320  ;;  %6239 = vst [vmem:[#allocation30_spill] sm:$0xff] %v3576_v41  ;;  %v3604_v16 = vmul.f32 0.2920817, %v3514_v48  ;;  %v3624_v48 = vmul.f32 0.2920817, %v3540_v46  ;;  %6247 = vst [vmem:[#allocation38_spill] sm:$0xff] %v3632_v1  ;;  %v166_v7 = vadd.f32 %v3430_v57, %v3314_v4  ;;  %v168_v57 = vadd.f32 %v3339_v18, %v3321_v8 }
  0xd3   :  { %6241 = vst [vmem:[#allocation32_spill] sm:$0xff] %v3582_v0  ;;  %6242 = vst [vmem:[#allocation33_spill] sm:$0xff] %v3589_v3  ;;  %v3648_v58 = vmul.f32 0.2920817, %v3544_v35  ;;  %v3663_v24 = vmul.f32 0.23388076, %v3615_v37  ;;  %v175_v18 = vadd.f32 %v3396_v53, %v3298_v6 }
  0xd4   :  { %1196 = vrot.lane.b32.xlu1 %v3555_v5, %s3014_s26  ;;  %v3586_v9 = vpop.permute.xlu0 %254  ;;  %v3607_v5 = vmul.f32 0.120078385, %v3200_v52  ;;  %v167_v52 = vadd.f32 %v3330_v12, %v3271_v49  ;;  %v3645_v49 = vmul.f32 0.23388076, %v3599_v26  ;;  %6248 = vst [vmem:[#allocation39_spill] sm:$0xff] %v3652_v22  ;;  %6252 = vst [vmem:[#allocation43_spill] sm:$0xff] %v3694_v31 }
  0xd5   :  { %822 = vrot.lane.b32.xlu0 %v3564_v28, %s3017_s10  ;;  %v3621_v28 = vmul.f32 0.23388076, %v3573_v36  ;;  %v3660_v12 = vmul.f32 0.23388076, %v3611_v29  ;;  %v3683_v8 = vmul.f32 0.23388076, %v3636_v63 }
  0xd6   :  { %6245 = vst [vmem:[#allocation36_spill] sm:$0xff] %v3607_v5  ;;  %v325_v21 = vpop.permute.xlu1 %324  ;;  %v239_v4 = vadd.f32 %v3414_v20, %v167_v52  ;;  %v3675_v20 = vmul.f32 %v3195_v51, %v3195_v51  ;;  %v241_v52 = vadd.f32 %v3420_v40, %v169_v19  ;;  %v243_v40 = vadd.f32 %v6253_v47, %v171_v25  ;;  %v6254_v53 = vld [vmem:[#allocation6_spill] sm:$0xff] }
  0xd7   :  { %6249 = vst [vmem:[#allocation40_spill] sm:$0xff] %v3660_v12  ;;  %v245_v56 = vadd.f32 %v6254_v53, %v173_v60  ;;  %v3713_v22 = vmul.f32 0.2920817, %v3573_v36  ;;  %v3716_v11 = vmul.f32 0.2920817, %v3636_v63  ;;  %v6256_v34 = vld [vmem:[#allocation2_spill] sm:$0xff] }
  0xd8   :  { %1200 = vrot.lane.b32.xlu1 %v3569_v17, %s3014_s26  ;;  %v3642_v46 = vpop.permute.xlu0 %258  ;;  %6250 = vst [vmem:[#allocation41_spill] sm:$0xff] %v3675_v20  ;;  %v3680_v17 = vmul.f32 0.23388076, %v3632_v1  ;;  %v289_v6 = vadd.f32 %v3459_v45, %v241_v52  ;;  %v6257_v45 = vld [vmem:[#allocation4_spill] sm:$0xff]  ;;  %v3723_v60 = vmul.f32 0.2920817, %v3599_v26 }
  0xd9   :  { %826 = vrot.lane.b32.xlu0 %v3579_v62, %s3017_s10  ;;  %v287_v62 = vadd.f32 %v3449_v33, %v239_v4  ;;  %v3697_v33 = vmul.f32 0.2920817, %v3615_v37  ;;  %v3710_v4 = vmul.f32 0.23388076, %v3675_v20  ;;  %v172_v25 = vadd.f32 %v6257_v45, %v6256_v34  ;;  %v6258_v52 = vld [vmem:[#allocation7_spill] sm:$0xff]  ;;  %v6259_v53 = vld [vmem:[#allocation8_spill] sm:$0xff] }
  0xda   :  { %v3671_v39 = vpop.permute.xlu1 %328  ;;  %6251 = vst [vmem:[#allocation42_spill] sm:$0xff] %v3680_v17  ;;  %v247_v47 = vadd.f32 %v6258_v52, %v175_v18  ;;  %v249_v20 = vadd.f32 %v6259_v53, %v177_v61  ;;  %v293_v36 = vadd.f32 %v3481_v23, %v245_v56  ;;  %v242_v23 = vadd.f32 %v3485_v38, %v170_v42  ;;  %v6262_v38 = vld [vmem:[#allocation17_spill] sm:$0xff]  ;;  %v6263_v52 = vld [vmem:[#allocation24_spill] sm:$0xff] }
  0xdb   :  { %v347_v13 = vadd.f32 %v3518_v44, %v287_v62  ;;  %6255 = vst [vmem:[#allocation5_spill] sm:$0xff] %v3710_v4  ;;  %v291_v44 = vadd.f32 %v3470_v14, %v243_v40  ;;  %v349_v62 = vadd.f32 %v3536_v55, %v289_v6  ;;  %v238_v14 = vadd.f32 %v3463_v59, %v166_v7 }
  0xdc   :  { %1204 = vrot.lane.b32.xlu1 %v3576_v41, %s3014_s26  ;;  %v3691_v51 = vpop.permute.xlu0 %262  ;;  %v6260_v41 = vld [vmem:[#allocation3_spill] sm:$0xff]  ;;  %v353_v61 = vadd.f32 %v325_v21, %v293_v36  ;;  %v244_v59 = vadd.f32 %v3496_v27, %v172_v25 }
  0xdd   :  { %830 = vrot.lane.b32.xlu0 %v3589_v3, %s3017_s10  ;;  %v6261_v3 = vld [vmem:[#allocation9_spill] sm:$0xff]  ;;  %v3735_v55 = vmul.f32 0.23388076, %v347_v13  ;;  %v3737_v40 = vmul.f32 0.2920817, %v347_v13  ;;  %v351_v18 = vadd.f32 %v3566_v43, %v291_v44  ;;  %v3755_v43 = vadd.f32 %v3503_v15, %v249_v20 }
  0xde   :  { %v3707_v19 = vpop.permute.xlu1 %332  ;;  %v176_v35 = vadd.f32 %v6261_v3, %v6260_v41  ;;  %v240_v41 = vadd.f32 %v3474_v54, %v168_v57  ;;  %v295_v3 = vadd.f32 %v3492_v32, %v247_v47  ;;  %v3748_v7 = vmul.f32 0.120078385, %v347_v13 }
  0xdf   :  { %v3750_v56 = vmul.f32 0.23388076, %v349_v62  ;;  %v3752_v45 = vmul.f32 0.2920817, %v349_v62  ;;  %v3758_v54 = vadd.f32 %v3507_v30, %v174_v10  ;;  %v3763_v36 = vmul.f32 0.120078385, %v349_v62 }
  0xe0   :  { %1208 = vrot.lane.b32.xlu1 %v3582_v0, %s3014_s26  ;;  %v3732_v34 = vpop.permute.xlu0 %266  ;;  %v3761_v57 = vadd.f32 %v6262_v38, %v176_v35  ;;  %v3771_v30 = vmul.f32 0.23388076, %v351_v18  ;;  %v3773_v21 = vmul.f32 0.2920817, %v351_v18  ;;  %v3778_v10 = vmul.f32 0.120078385, %v351_v18 }
  0xe1   :  { %834 = vrot.lane.b32.xlu0 %v3595_v50, %s3017_s10  ;;  %v3780_v20 = vmul.f32 0.23388076, %v353_v61  ;;  %v355_v42 = vadd.f32 %v3671_v39, %v295_v3  ;;  %v286_v47 = vadd.f32 %v6263_v52, %v238_v14  ;;  %v3791_v18 = vmul.f32 0.120078385, %v353_v61  ;;  %v6264_v52 = vld [vmem:[#allocation37_spill] sm:$0xff] }
  0xe2   :  { %v3745_v6 = vpop.permute.xlu1 %640  ;;  %v3793_v35 = vmul.f32 0.2920817, %v353_v61  ;;  %v288_v62 = vadd.f32 %v3586_v9, %v240_v41  ;;  %v290_v3 = vadd.f32 %v3642_v46, %v242_v23 }
  0xe3   :  { %v3805_v38 = vmul.f32 0.23388076, %v355_v42  ;;  %v3820_v23 = vmul.f32 0.2920817, %v355_v42 }
  0xe4   :  { %1212 = vrot.lane.b32.xlu1 %v3592_v2, %s3014_s26  ;;  %v3767_v32 = vpop.permute.xlu0 %270 }
  0xe5   :  { %838 = vrot.lane.b32.xlu0 %v3607_v5, %s3017_s10  ;;  %v6268_v5 = vrot.slane %v3735_v55, 3 }
  0xe6   :  { %v3783_v13 = vpop.permute.xlu1 %644 }
  0xe8   :  { %1264 = vrot.lane.b32.xlu1 %v3604_v16, %s3015_s8  ;;  %v311_v39 = vpop.permute.xlu0 %310 }
  0xe9   :  { %v346_v25 = vadd.f32 %v311_v39, %v286_v47  ;;  %1190 = vrot.lane.b32.xlu0 %v3621_v28, %s3014_s26  ;;  %v3813_v39 = vmul.f32 0.120078385, %v355_v42  ;;  %v6269_v42 = vrot.slane %v3748_v7, 4 }
  0xea   :  { %v3807_v16 = vpop.permute.xlu1 %648 }
  0xeb   :  { %v358_v53 = vmul.f32 0.120078385, %v346_v25  ;;  %v370_v44 = vmul.f32 0.23388076, %v346_v25  ;;  %v437_v15 = vmul.f32 0.2920817, %v346_v25  ;;  %v292_v25 = vadd.f32 %v3691_v51, %v244_v59 }
  0xec   :  { %1268 = vrot.lane.b32.xlu1 %v6264_v52, %s3015_s8  ;;  %v315_v61 = vpop.permute.xlu0 %314  ;;  %v6266_v52 = vrot.slane %v3735_v55, 1 }
  0xed   :  { %v395_v14 = vrot.slane %v370_v44, 1  ;;  %v462_v27 = vrot.slane %v437_v15, 2  ;;  %v505_v2 = vrot.slane %v370_v44, 3  ;;  %v560_v0 = vrot.slane %v358_v53, 4  ;;  %1194 = vrot.lane.b32.xlu0 %v3645_v49, %s3014_s26 }
  0xee   :  { %v348_v9 = vadd.f32 %v315_v61, %v288_v62  ;;  %v3823_v47 = vpop.permute.xlu1 %652  ;;  %s2953_s11 = spop %2952  ;;  %v6267_v15 = vrot.slane %v3737_v40, 2 }
  0xef   :  { %6265 = vst [vmem:[#allocation6_spill] sm:$0xff] %v3823_v47  ;;  %v397_v41 = vsel %vm394_vm1, %v395_v14, %v6266_v52  ;;  %v507_v46 = vsel %vm504_vm3, %v505_v2, %v6268_v5  ;;  %v562_v51 = vsel %vm559_vm4, %v560_v0, %v6269_v42  ;;  %v6273_v52 = vrot.slane %v3763_v36, 4 }
  0xf0   :  { %v464_v44 = vsel %vm461_vm2, %v462_v27, %v6267_v15  ;;  %v425_v59 = vadd.f32 %v397_v41, %v358_v53  ;;  %v360_v62 = vmul.f32 0.120078385, %v348_v9  ;;  %v372_v61 = vmul.f32 0.23388076, %v348_v9  ;;  %1272 = vrot.lane.b32.xlu1 %v3624_v48, %s3015_s8  ;;  %v319_v14 = vpop.permute.xlu0 %318 }
  0xf1   :  { %v439_v50 = vmul.f32 0.2920817, %v348_v9  ;;  %v2940_v15 = vstv %s2953_s11  ;;  %v350_v47 = vadd.f32 %v319_v14, %v290_v3  ;;  %1198 = vrot.lane.b32.xlu0 %v3660_v12, %s3014_s26  ;;  %v3850_v48 = vadd.f32 %v3707_v19, %v3755_v43 }
  0xf2   :  { %v492_v5 = vadd.f32 %v464_v44, %v425_v59  ;;  %v398_v2 = vrot.slane %v372_v61, 1  ;;  %v508_v53 = vrot.slane %v372_v61, 3  ;;  %2941 = vst [vmem:[%s6048_s2] sm:$0xff] %v2940_v15  ;;  %v3846_v9 = vpop.permute.xlu1 %656  ;;  %v563_v41 = vrot.slane %v360_v62, 4 }
  0xf3   :  { %v465_v0 = vrot.slane %v439_v50, 2  ;;  %v362_v42 = vmul.f32 0.120078385, %v350_v47  ;;  %v374_v3 = vmul.f32 0.23388076, %v350_v47  ;;  %v6270_v27 = vrot.slane %v3750_v56, 1 }
  0xf4   :  { %v535_v14 = vadd.f32 %v507_v46, %v492_v5  ;;  %v6271_v50 = vrot.slane %v3752_v45, 2  ;;  %v6272_v61 = vrot.slane %v3750_v56, 3  ;;  %1276 = vrot.lane.b32.xlu1 %v3648_v58, %s3015_s8  ;;  %v323_v19 = vpop.permute.xlu0 %322  ;;  %v565_v46 = vsel %vm559_vm4, %v563_v41, %v6273_v52 }
  0xf5   :  { %v400_v44 = vsel %vm394_vm1, %v398_v2, %v6270_v27  ;;  %v401_v5 = vrot.slane %v374_v3, 1  ;;  %v441_v12 = vmul.f32 0.2920817, %v350_v47  ;;  %1202 = vrot.lane.b32.xlu0 %v3680_v17, %s3014_s26  ;;  %v511_v2 = vrot.slane %v374_v3, 3 }
  0xf6   :  { %v467_v59 = vsel %vm461_vm2, %v465_v0, %v6271_v50  ;;  %v510_v15 = vsel %vm504_vm3, %v508_v53, %v6272_v61  ;;  %v427_v43 = vadd.f32 %v400_v44, %v360_v62  ;;  %v3868_v27 = vadd.f32 %v562_v51, %v535_v14  ;;  %v3870_v53 = vpop.permute.xlu1 %660 }
  0xf7   :  { %v566_v0 = vrot.slane %v362_v42, 4  ;;  %v352_v50 = vadd.f32 %v323_v19, %v292_v25  ;;  %v6274_v62 = vrot.slane %v3771_v30, 1  ;;  %v468_v52 = vrot.slane %v441_v12, 2 }
  0xf8   :  { %v494_v61 = vadd.f32 %v467_v59, %v427_v43  ;;  %v294_v47 = vadd.f32 %v3732_v34, %v3758_v54  ;;  %v6275_v51 = vrot.slane %v3771_v30, 3  ;;  %v6276_v25 = vrot.slane %v3778_v10, 4  ;;  %1720 = vrot.lane.b32.xlu1 %v3663_v24, %s3014_s26  ;;  %v327_v59 = vpop.permute.xlu0 %326 }
  0xf9   :  { %v403_v44 = vsel %vm394_vm1, %v401_v5, %v6274_v62  ;;  %v6277_v43 = vrot.slane %v3773_v21, 2  ;;  %v364_v5 = vmul.f32 0.120078385, %v352_v50  ;;  %v376_v34 = vmul.f32 0.23388076, %v352_v50  ;;  %1206 = vrot.lane.b32.xlu0 %v3694_v31, %s3014_s26 }
  0xfa   :  { %v429_v41 = vadd.f32 %v403_v44, %v362_v42  ;;  %v513_v3 = vsel %vm504_vm3, %v511_v2, %v6275_v51  ;;  %v568_v14 = vsel %vm559_vm4, %v566_v0, %v6276_v25  ;;  %v537_v19 = vadd.f32 %v510_v15, %v494_v61  ;;  %v3894_v62 = vpop.permute.xlu1 %712 }
  0xfb   :  { %v470_v12 = vsel %vm461_vm2, %v468_v52, %v6277_v43  ;;  %v3892_v54 = vmul.f32 0.23388076, %v3850_v48  ;;  %v443_v2 = vmul.f32 0.2920817, %v352_v50  ;;  %v354_v0 = vadd.f32 %v327_v59, %v294_v47 }
  0xfc   :  { %v496_v42 = vadd.f32 %v470_v12, %v429_v41  ;;  %v3896_v44 = vadd.f32 %v565_v46, %v537_v19  ;;  %v404_v15 = vrot.slane %v376_v34, 1  ;;  %v514_v61 = vrot.slane %v376_v34, 3  ;;  %1724 = vrot.lane.b32.xlu1 %v3683_v8, %s3014_s26  ;;  %v331_v31 = vpop.permute.xlu0 %330 }
  0xfd   :  { %v569_v51 = vrot.slane %v364_v5, 4  ;;  %v471_v52 = vrot.slane %v443_v2, 2  ;;  %v366_v43 = vmul.f32 0.120078385, %v354_v0  ;;  %v378_v58 = vmul.f32 0.23388076, %v354_v0  ;;  %1210 = vrot.lane.b32.xlu0 %v3710_v4, %s3014_s26 }
  0xfe   :  { %6278 = vst [vmem:[#allocation2_spill] sm:$0xff] %v3896_v44  ;;  %v539_v25 = vadd.f32 %v513_v3, %v496_v42  ;;  %v296_v41 = vadd.f32 %v3767_v32, %v3761_v57  ;;  %v6279_v50 = vrot.slane %v3780_v20, 1  ;;  %v6280_v46 = vrot.slane %v3780_v20, 3  ;;  %v3918_v2 = vpop.permute.xlu1 %716 }
  0xff   :  { %v6281_v3 = vrot.slane %v3791_v18, 4  ;;  %v6283_v57 = vrot.slane %v3793_v35, 2  ;;  %v407_v42 = vrot.slane %v378_v58, 1 }
 0x100   :  { %v406_v47 = vsel %vm394_vm1, %v404_v15, %v6279_v50  ;;  %v516_v59 = vsel %vm504_vm3, %v514_v61, %v6280_v46  ;;  %v3913_v12 = vadd.f32 %v568_v14, %v539_v25  ;;  %v3921_v15 = vmul.f32 0.2920817, %v3850_v48  ;;  %1792 = vrot.lane.b32.xlu1 %v3697_v33, %s3015_s8 }
 0x101   :  { %v571_v19 = vsel %vm559_vm4, %v569_v51, %v6281_v3  ;;  %v431_v34 = vadd.f32 %v406_v47, %v364_v5  ;;  %v473_v32 = vsel %vm461_vm2, %v471_v52, %v6283_v57  ;;  %v445_v61 = vmul.f32 0.2920817, %v354_v0  ;;  %v3931_v52 = vpop.permute.xlu0 %638  ;;  %1262 = vrot.lane.b32.xlu0 %v3713_v22, %s3015_s8 }
 0x102   :  { %6282 = vst [vmem:[#allocation4_spill] sm:$0xff] %v3913_v12  ;;  %v517_v50 = vrot.slane %v378_v58, 3  ;;  %v572_v46 = vrot.slane %v366_v43, 4  ;;  %v3924_v51 = vmul.f32 0.120078385, %v3850_v48  ;;  %v6284_v14 = vrot.slane %v3805_v38, 1  ;;  %v3941_v33 = vpop.permute.xlu1 %720 }
 0x103   :  { %v498_v3 = vadd.f32 %v473_v32, %v431_v34  ;;  %v356_v25 = vadd.f32 %v331_v31, %v296_v41  ;;  %v474_v57 = vrot.slane %v445_v61, 2  ;;  %v6285_v0 = vrot.slane %v3805_v38, 3 }
 0x104   :  { %v409_v5 = vsel %vm394_vm1, %v407_v42, %v6284_v14  ;;  %v6286_v48 = vrot.slane %v3813_v39, 4  ;;  %v6287_v14 = vrot.slane %v3820_v23, 2  ;;  %v6086_v61 = vrot.slane %v3924_v51, 4 }
 0x105   :  { %v433_v47 = vadd.f32 %v409_v5, %v366_v43  ;;  %v519_v58 = vsel %vm504_vm3, %v517_v50, %v6285_v0  ;;  %v541_v32 = vadd.f32 %v516_v59, %v498_v3  ;;  %v368_v31 = vmul.f32 0.120078385, %v356_v25  ;;  %v6289_v3 = vld [vmem:[#allocation18_spill] sm:$0xff]  ;;  %1266 = vrot.lane.b32.xlu0 %v3723_v60, %s3015_s8 }
 0x106   :  { %v574_v34 = vsel %vm559_vm4, %v572_v46, %v6286_v48  ;;  %v380_v41 = vmul.f32 0.23388076, %v356_v25  ;;  %v447_v42 = vmul.f32 0.2920817, %v356_v25  ;;  %v476_v50 = vsel %vm461_vm2, %v474_v57, %v6287_v14  ;;  %1312 = vrot.lane.b32.xlu1 %v6289_v3, %s3016_s9  ;;  %v3953_v25 = vpop.permute.xlu0 %642  ;;  %v3965_v14 = vpop.permute.xlu1 %724 }
 0x107   :  { %v1242_v5 = vmul.f32 0.2920817, %v3611_v29  ;;  %v3949_v46 = vadd.f32 %v571_v19, %v541_v32  ;;  %v500_v0 = vadd.f32 %v476_v50, %v433_v47  ;;  %v6087_v48 = vrot.slane %v3892_v54, 3 }
 0x108   :  { %v410_v22 = vrot.slane %v380_v41, 1  ;;  %v477_v59 = vrot.slane %v447_v42, 2  ;;  %v520_v43 = vrot.slane %v380_v41, 3  ;;  %v575_v4 = vrot.slane %v368_v31, 4 }
 0x109   :  { %6288 = vst [vmem:[#allocation7_spill] sm:$0xff] %v3949_v46  ;;  %v543_v57 = vadd.f32 %v519_v58, %v500_v0  ;;  %v6290_v19 = vrot.slane %v3892_v54, 1  ;;  %v6291_v32 = vrot.slane %v3921_v15, 2  ;;  %1270 = vrot.lane.b32.xlu0 %v1242_v5, %s3015_s8 }
 0x10a   :  { %v522_v41 = vsel %vm504_vm3, %v520_v43, %v6087_v48  ;;  %v577_v60 = vsel %vm559_vm4, %v575_v4, %v6086_v61  ;;  %1796 = vrot.lane.b32.xlu1 %v3716_v11, %s3015_s8  ;;  %v3977_v0 = vpop.permute.xlu0 %646  ;;  %v3984_v43 = vld [vmem:[%s6047_s1] sm:$0xff] }
 0x10b   :  { %v412_v47 = vsel %vm394_vm1, %v410_v22, %v6290_v19  ;;  %v479_v42 = vsel %vm461_vm2, %v477_v59, %v6291_v32  ;;  %v3973_v58 = vadd.f32 %v574_v34, %v543_v57  ;;  %6293 = vst [vmem:[#allocation3_spill] sm:$0xff] %v3977_v0  ;;  %6294 = vst [vmem:[#allocation9_spill] sm:$0xff] %v3984_v43  ;;  %v3990_v34 = vpop.permute.xlu1 %728  ;;  %v2985_v57 = vld [vmem:[%s6047_s1 + $0x10] sm:$0xff]  ;;  %v6297_v32 = vld [vmem:[#allocation25_spill] sm:$0xff] }
 0x10c   :  { %v435_v50 = vadd.f32 %v412_v47, %v368_v31  ;;  %v1244_v31 = vmul.f32 0.2920817, %v3632_v1  ;;  %v3988_v4 = vmul.f32 %v3984_v43, %v3984_v43  ;;  %v4003_v19 = vmul.f32 %v2985_v57, %v2985_v57 }
 0x10d   :  { %6292 = vst [vmem:[#allocation8_spill] sm:$0xff] %v3973_v58  ;;  %v6306_v1 = vrot.slane %v3750_v56, 1 }
 0x10e   :  { %v502_v22 = vadd.f32 %v479_v42, %v435_v50  ;;  %1840 = vrot.lane.b32.xlu1 %v3663_v24, %s3016_s9  ;;  %v3994_v11 = vpop.permute.xlu0 %650  ;;  %1274 = vrot.lane.b32.xlu0 %v1244_v31, %s3015_s8  ;;  %v1694_v3 = vmul.f32 0.23388076, %v3988_v4  ;;  %v6299_v42 = vld [vmem:[#allocation16_spill] sm:$0xff] }
 0x10f   :  { %6295 = vst [vmem:[#allocation17_spill] sm:$0xff] %v3994_v11  ;;  %v4005_v47 = vpop.permute.xlu1 %732  ;;  %v4012_v50 = vmul.f32 0.120078385, %v6299_v42  ;;  %v428_v58 = vadd.f32 %v6306_v1, %v3763_v36  ;;  %v6310_v1 = vld [vmem:[#allocation19_spill] sm:$0xff] }
 0x110   :  { %v545_v59 = vadd.f32 %v522_v41, %v502_v22  ;;  %v4017_v41 = vld [vmem:[%s6047_s1 + $0x28] sm:$0xff]  ;;  %v4025_v22 = vmul.f32 0.23388076, %v4003_v19  ;;  %v4074_v44 = vmul.f32 0.120078385, %v6310_v1  ;;  %v2988_v1 = vld [vmem:[%s6047_s1 + $0x20] sm:$0xff] }
 0x111   :  { %6300 = vst [vmem:[#allocation18_spill] sm:$0xff] %v4012_v50  ;;  %6301 = vst [vmem:[#allocation25_spill] sm:$0xff] %v4017_v41 }
 0x112   :  { %v3996_v5 = vadd.f32 %v577_v60, %v545_v59  ;;  %1316 = vrot.lane.b32.xlu1 %v6297_v32, %s3016_s9  ;;  %v4009_v24 = vpop.permute.xlu0 %654  ;;  %v4021_v60 = vmul.f32 %v4017_v41, %v4017_v41  ;;  %1718 = vrot.lane.b32.xlu0 %v1694_v3, %s3014_s26  ;;  %v1766_v32 = vmul.f32 0.2920817, %v3988_v4  ;;  %v6303_v41 = vrot.slane %v3735_v55, 1  ;;  %6311 = vst [vmem:[#allocation19_spill] sm:$0xff] %v4074_v44 }
 0x113   :  { %6298 = vst [vmem:[#allocation37_spill] sm:$0xff] %v4009_v24  ;;  %v761_v31 = vpop.permute.xlu1 %760  ;;  %v6328_v24 = vrot.slane %v3748_v7, 4 }
 0x114   :  { %6296 = vst [vmem:[#allocation24_spill] sm:$0xff] %v3996_v5  ;;  %v4032_v57 = vmul.f32 0.23388076, %v4021_v60  ;;  %v426_v43 = vadd.f32 %v6303_v41, %v3748_v7  ;;  %v4054_v5 = vmul.f32 0.120078385, %v3615_v37  ;;  %v6307_v41 = vrot.slane %v3771_v30, 1 }
 0x115   :  { %v6333_v7 = vrot.slane %v3793_v35, 2 }
 0x116   :  { %1372 = vrot.lane.b32.xlu1 %v4012_v50, %s3017_s10  ;;  %v4029_v59 = vpop.permute.xlu0 %658  ;;  %1722 = vrot.lane.b32.xlu0 %v4025_v22, %s3014_s26  ;;  %6305 = vst [vmem:[#allocation45_spill] sm:$0xff] %v4054_v5  ;;  %v430_v46 = vadd.f32 %v6307_v41, %v3778_v10  ;;  %v2987_v41 = vld [vmem:[%s6047_s1 + $0x38] sm:$0xff] }
 0x117   :  { %6302 = vst [vmem:[#allocation16_spill] sm:$0xff] %v4029_v59  ;;  %v4037_v42 = vpop.permute.xlu1 %764  ;;  %v4082_v59 = vmul.f32 %v2987_v41, %v2987_v41 }
 0x119   :  { %6313 = vst [vmem:[#allocation47_spill] sm:$0xff] %v4082_v59 }
 0x11a   :  { %1728 = vrot.lane.b32.xlu1 %v4032_v57, %s3014_s26  ;;  %v4041_v61 = vpop.permute.xlu0 %710  ;;  %1790 = vrot.lane.b32.xlu0 %v1766_v32, %s3015_s8  ;;  %v1768_v32 = vmul.f32 0.2920817, %v4003_v19 }
 0x11b   :  { %v4044_v48 = vpop.permute.xlu1 %768 }
 0x11e   :  { %1844 = vrot.lane.b32.xlu1 %v3683_v8, %s3016_s9  ;;  %v4051_v50 = vpop.permute.xlu0 %714  ;;  %1310 = vrot.lane.b32.xlu0 %v3621_v28, %s3016_s9  ;;  %v6308_v8 = vrot.slane %v3737_v40, 2  ;;  %v6312_v28 = vrot.slane %v3752_v45, 2  ;;  %v6314_v40 = vrot.slane %v3773_v21, 2  ;;  %v6315_v45 = vld [vmem:[#allocation10_spill] sm:$0xff]  ;;  %v1771_v21 = vmul.f32 0.2920817, %v4021_v60 }
 0x11f   :  { %6304 = vst [vmem:[#allocation44_spill] sm:$0xff] %v4051_v50  ;;  %v4065_v12 = vpop.permute.xlu1 %772 }
 0x120   :  { %v493_v17 = vadd.f32 %v6308_v8, %v426_v43  ;;  %v495_v50 = vadd.f32 %v6312_v28, %v428_v58  ;;  %v497_v43 = vadd.f32 %v6314_v40, %v430_v46  ;;  %v675_v58 = vadd.f32 %v3745_v6, %v6315_v45 }
 0x121   :  { %v4103_v46 = vmul.f32 0.120078385, %v3636_v63  ;;  %v6319_v40 = vrot.slane %v3750_v56, 3  ;;  %v4115_v45 = vmul.f32 0.23388076, %v4082_v59 }
 0x122   :  { %1900 = vrot.lane.b32.xlu1 %v4054_v5, %s3017_s10  ;;  %v4071_v37 = vpop.permute.xlu0 %718  ;;  %1794 = vrot.lane.b32.xlu0 %v1768_v32, %s3015_s8  ;;  %v4091_v5 = vmul.f32 %v2988_v1, %v2988_v1  ;;  %v6316_v32 = vrot.slane %v3735_v55, 3 }
 0x123   :  { %6309 = vst [vmem:[#allocation46_spill] sm:$0xff] %v4071_v37  ;;  %v4086_v8 = vpop.permute.xlu1 %776  ;;  %6318 = vst [vmem:[#allocation48_spill] sm:$0xff] %v4103_v46  ;;  %v538_v1 = vadd.f32 %v6319_v40, %v495_v50  ;;  %v6320_v37 = vrot.slane %v3780_v20, 1  ;;  %v6324_v50 = vld [vmem:[#allocation21_spill] sm:$0xff] }
 0x124   :  { %v536_v28 = vadd.f32 %v6316_v32, %v493_v17  ;;  %v6321_v17 = vld [vmem:[#allocation29_spill] sm:$0xff]  ;;  %v6323_v32 = vrot.slane %v3771_v30, 3  ;;  %v4122_v56 = vmul.f32 0.23388076, %v4091_v5  ;;  %v4125_v40 = vmul.f32 0.120078385, %v6324_v50 }
 0x125   :  { %v432_v6 = vadd.f32 %v6320_v37, %v3791_v18  ;;  %v4112_v55 = vmul.f32 0.120078385, %v6321_v17  ;;  %v6326_v17 = vrot.slane %v3805_v38, 1  ;;  %v747_v30 = vadd.f32 %v3894_v62, %v675_v58 }
 0x126   :  { %1376 = vrot.lane.b32.xlu1 %v4074_v44, %s3017_s10  ;;  %v4099_v41 = vpop.permute.xlu0 %722  ;;  %1838 = vrot.lane.b32.xlu0 %v1694_v3, %s3016_s9  ;;  %v540_v44 = vadd.f32 %v6323_v32, %v497_v43  ;;  %6325 = vst [vmem:[#allocation21_spill] sm:$0xff] %v4125_v40  ;;  %v2989_v3 = vld [vmem:[%s6047_s1 + $0x48] sm:$0xff]  ;;  %v4137_v43 = vmul.f32 0.120078385, %v3988_v4  ;;  %v2990_v32 = vld [vmem:[%s6047_s1 + $0x30] sm:$0xff]  ;;  %v4146_v11 = vadd.f32 %v6328_v24, %v536_v28  ;;  %v6332_v58 = vrot.slane %v3763_v36, 4 }
 0x127   :  { %6317 = vst [vmem:[#allocation10_spill] sm:$0xff] %v4099_v41  ;;  %6322 = vst [vmem:[#allocation29_spill] sm:$0xff] %v4112_v55  ;;  %v4119_v63 = vpop.permute.xlu1 %780  ;;  %v4130_v37 = vmul.f32 %v2989_v3, %v2989_v3  ;;  %v434_v41 = vadd.f32 %v6326_v17, %v3813_v39  ;;  %v4142_v50 = vmul.f32 %v2990_v32, %v2990_v32  ;;  %v6329_v3 = vld [vmem:[#allocation11_spill] sm:$0xff]  ;;  %v4154_v62 = vmul.f32 0.2920817, %v4082_v59 }
 0x128   :  { %6327 = vst [vmem:[#allocation49_spill] sm:$0xff] %v4137_v43  ;;  %v677_v0 = vadd.f32 %v3783_v13, %v6329_v3  ;;  %v4157_v4 = vmul.f32 0.120078385, %v3599_v26  ;;  %v4161_v32 = vadd.f32 %v6332_v58, %v538_v1  ;;  %v499_v24 = vadd.f32 %v6333_v7, %v432_v6  ;;  %v6338_v1 = vld [vmem:[#allocation12_spill] sm:$0xff] }
 0x129   :  { %v795_v28 = vadd.f32 %v761_v31, %v747_v30  ;;  %v4168_v13 = vmul.f32 0.120078385, %v4021_v60  ;;  %v4175_v59 = vmul.f32 0.2920817, %v4091_v5  ;;  %v4178_v36 = vmul.f32 0.120078385, %v4003_v19 }
 0x12a   :  { %1800 = vrot.lane.b32.xlu1 %v1771_v21, %s3015_s8  ;;  %v4151_v17 = vpop.permute.xlu0 %726  ;;  %6331 = vst [vmem:[#allocation50_spill] sm:$0xff] %v4157_v4  ;;  %1314 = vrot.lane.b32.xlu0 %v3645_v49, %s3016_s9  ;;  %v6335_v21 = vrot.slane %v3778_v10, 4  ;;  %v4181_v35 = vmul.f32 0.23388076, %v4130_v37  ;;  %v6337_v31 = vrot.slane %v3820_v23, 2  ;;  %v679_v60 = vadd.f32 %v3807_v16, %v6338_v1  ;;  %v6343_v16 = vld [vmem:[#allocation23_spill] sm:$0xff] }
 0x12b   :  { %6330 = vst [vmem:[#allocation11_spill] sm:$0xff] %v4151_v17  ;;  %6334 = vst [vmem:[#allocation51_spill] sm:$0xff] %v4168_v13  ;;  %v821_v26 = vpop.permute.xlu1 %820  ;;  %v4188_v10 = vmul.f32 0.23388076, %v4142_v50  ;;  %v6341_v19 = vrot.slane %v3892_v54, 1  ;;  %v749_v58 = vadd.f32 %v3918_v2, %v677_v0  ;;  %v4207_v7 = vmul.f32 %v4161_v32, %v4161_v32 }
 0x12c   :  { %v4172_v3 = vadd.f32 %v6335_v21, %v540_v44  ;;  %6336 = vst [vmem:[#allocation52_spill] sm:$0xff] %v4178_v36  ;;  %v501_v49 = vadd.f32 %v6337_v31, %v434_v41  ;;  %v855_v6 = vadd.f32 %v821_v26, %v795_v28  ;;  %v4192_v44 = vmul.f32 %v4146_v11, %v4146_v11 }
 0x12d   :  { %6339 = vst [vmem:[#allocation12_spill] sm:$0xff] %v4188_v10  ;;  %v436_v30 = vadd.f32 %v6341_v19, %v3924_v51  ;;  %v4203_v41 = vmul.f32 0.2920817, %v6343_v16  ;;  %6345 = vst [vmem:[#allocation56_spill] sm:$0xff] %v4207_v7  ;;  %v6346_v28 = vrot.slane %v3780_v20, 3  ;;  %v797_v0 = vadd.f32 %v4037_v42, %v749_v58  ;;  %v6348_v19 = vld [vmem:[#allocation22_spill] sm:$0xff] }
 0x12e   :  { %6340 = vst [vmem:[#allocation53_spill] sm:$0xff] %v4192_v44  ;;  %1904 = vrot.lane.b32.xlu1 %v4103_v46, %s3017_s10  ;;  %v4200_v23 = vpop.permute.xlu0 %730  ;;  %v4211_v26 = vmul.f32 0.23388076, %v855_v6  ;;  %v4213_v31 = vmul.f32 0.2920817, %v855_v6  ;;  %1370 = vrot.lane.b32.xlu0 %v4112_v55, %s3017_s10  ;;  %v4219_v2 = vmul.f32 %v4172_v3, %v4172_v3  ;;  %v751_v16 = vadd.f32 %v3941_v33, %v679_v60  ;;  %v6352_v42 = vld [vmem:[#allocation13_spill] sm:$0xff] }
 0x12f   :  { %6342 = vst [vmem:[#allocation54_spill] sm:$0xff] %v4200_v23  ;;  %6344 = vst [vmem:[#allocation55_spill] sm:$0xff] %v4203_v41  ;;  %v542_v21 = vadd.f32 %v6346_v28, %v499_v24  ;;  %v825_v1 = vpop.permute.xlu1 %824  ;;  %v4223_v46 = vmul.f32 0.120078385, %v6348_v19  ;;  %v4226_v20 = vmul.f32 0.120078385, %v3611_v29 }
 0x130   :  { %6347 = vst [vmem:[#allocation57_spill] sm:$0xff] %v4219_v2  ;;  %v6350_v24 = vrot.slane %v3805_v38, 3  ;;  %v4231_v23 = vmul.f32 0.120078385, %v855_v6  ;;  %v6105_v55 = vrot.slane %v4211_v26, 1  ;;  %v6351_v41 = vrot.slane %v3921_v15, 2 }
 0x131   :  { %6349 = vst [vmem:[#allocation22_spill] sm:$0xff] %v4223_v46  ;;  %v6353_v58 = vld [vmem:[#allocation6_spill] sm:$0xff]  ;;  %v857_v19 = vadd.f32 %v825_v1, %v797_v0  ;;  %v6354_v46 = vld [vmem:[#allocation28_spill] sm:$0xff]  ;;  %v4243_v38 = vmul.f32 0.2920817, %v4130_v37  ;;  %v6355_v33 = vrot.slane %v3791_v18, 4  ;;  %v799_v60 = vadd.f32 %v4044_v48, %v751_v16 }
 0x132   :  { %v544_v28 = vadd.f32 %v6350_v24, %v501_v49  ;;  %v503_v17 = vadd.f32 %v6351_v41, %v436_v30  ;;  %v681_v10 = vadd.f32 %v6353_v58, %v6352_v42  ;;  %1320 = vrot.lane.b32.xlu1 %v6354_v46, %s3016_s9  ;;  %v4240_v29 = vpop.permute.xlu0 %758  ;;  %v933_v15 = vadd.f32 %v6105_v55, %v4231_v23  ;;  %v6356_v46 = vld [vmem:[#allocation14_spill] sm:$0xff] }
 0x133   :  { %v4247_v49 = vadd.f32 %v6355_v33, %v542_v21  ;;  %v6106_v6 = vrot.slane %v4213_v31, 2  ;;  %1726 = vrot.lane.b32.xlu0 %v4122_v56, %s3014_s26  ;;  %v683_v30 = vadd.f32 %v3846_v9, %v6356_v46  ;;  %v4258_v41 = vmul.f32 0.23388076, %v857_v19  ;;  %v829_v18 = vpop.permute.xlu1 %828 }
 0x134   :  { %v4260_v0 = vmul.f32 0.2920817, %v857_v19  ;;  %v4263_v21 = vmul.f32 0.2920817, %v4142_v50  ;;  %v6357_v48 = vrot.slane %v3813_v39, 4  ;;  %v6112_v24 = vrot.slane %v4211_v26, 3 }
 0x135   :  { %v999_v1 = vadd.f32 %v6106_v6, %v933_v15  ;;  %v859_v42 = vadd.f32 %v829_v18, %v799_v60  ;;  %v6358_v9 = vrot.slane %v3892_v54, 3  ;;  %v753_v33 = vadd.f32 %v3965_v14, %v681_v10 }
 0x136   :  { %v4267_v16 = vadd.f32 %v6357_v48, %v544_v28  ;;  %v4275_v46 = vmul.f32 0.120078385, %v857_v19  ;;  %v6107_v55 = vrot.slane %v4258_v41, 1  ;;  %1732 = vrot.lane.b32.xlu1 %v4115_v45, %s3014_s26  ;;  %v4280_v39 = vpop.permute.xlu0 %762  ;;  %v6111_v15 = vrot.slane %v4231_v23, 4  ;;  %v6359_v48 = vld [vmem:[#allocation15_spill] sm:$0xff] }
 0x137   :  { %v546_v58 = vadd.f32 %v6358_v9, %v503_v17  ;;  %v1041_v28 = vadd.f32 %v6112_v24, %v999_v1  ;;  %v4285_v60 = vmul.f32 0.23388076, %v859_v42  ;;  %v4287_v54 = vmul.f32 0.2920817, %v859_v42  ;;  %1842 = vrot.lane.b32.xlu0 %v4025_v22, %s3016_s9  ;;  %v833_v18 = vpop.permute.xlu1 %832 }
 0x138   :  { %v755_v14 = vadd.f32 %v3990_v34, %v683_v30  ;;  %v801_v17 = vadd.f32 %v4065_v12, %v753_v33  ;;  %v935_v10 = vadd.f32 %v6107_v55, %v4275_v46  ;;  %v6110_v19 = vrot.slane %v4260_v0, 2 }
 0x139   :  { %v685_v1 = vadd.f32 %v3870_v53, %v6359_v48  ;;  %v1095_v9 = vadd.f32 %v6111_v15, %v1041_v28  ;;  %v4301_v6 = vmul.f32 0.120078385, %v859_v42  ;;  %v6108_v22 = vrot.slane %v4285_v60, 1 }
 0x13a   :  { %v803_v34 = vadd.f32 %v4086_v8, %v755_v14  ;;  %v1001_v12 = vadd.f32 %v6110_v19, %v935_v10  ;;  %v6109_v30 = vrot.slane %v4258_v41, 3  ;;  %v861_v33 = vadd.f32 %v833_v18, %v801_v17  ;;  %1848 = vrot.lane.b32.xlu1 %v4032_v57, %s3016_s9  ;;  %v4310_v55 = vpop.permute.xlu0 %766 }
 0x13b   :  { %v4312_v53 = vmul.f32 %v1095_v9, %v1095_v9  ;;  %v4315_v42 = vmul.f32 %v1095_v9, %v4146_v11  ;;  %v937_v8 = vadd.f32 %v6108_v22, %v4301_v6  ;;  %v6113_v28 = vrot.slane %v4287_v54, 2  ;;  %1898 = vrot.lane.b32.xlu0 %v4137_v43, %s3017_s10  ;;  %v837_v11 = vpop.permute.xlu1 %836 }
 0x13c   :  { %v1043_v14 = vadd.f32 %v6109_v30, %v1001_v12  ;;  %v6114_v57 = vrot.slane %v4275_v46, 4  ;;  %v4326_v17 = vmul.f32 0.23388076, %v861_v33  ;;  %v4328_v10 = vmul.f32 0.2920817, %v861_v33 }
 0x13d   :  { %6360 = vst [vmem:[#allocation13_spill] sm:$0xff] %v4312_v53  ;;  %6361 = vst [vmem:[#allocation6_spill] sm:$0xff] %v4315_v42  ;;  %v4332_v18 = vadd.f32 %v4312_v53, %v4192_v44  ;;  %v1003_v48 = vadd.f32 %v6113_v28, %v937_v8  ;;  %v6116_v9 = vrot.slane %v4285_v60, 3  ;;  %v863_v22 = vadd.f32 %v837_v11, %v803_v34 }
 0x13e   :  { %v4339_v12 = vmul.f32 %v4247_v49, %v4247_v49  ;;  %v1097_v30 = vadd.f32 %v6114_v57, %v1043_v14  ;;  %v4343_v19 = vmul.f32 0.120078385, %v861_v33  ;;  %v6119_v15 = vrot.slane %v4326_v17, 1  ;;  %1380 = vrot.lane.b32.xlu1 %v4125_v40, %s3017_s10  ;;  %v4348_v24 = vpop.permute.xlu0 %770 }
 0x13f   :  { %6362 = vst [vmem:[#allocation28_spill] sm:$0xff] %v4332_v18  ;;  %v4352_v8 = vmul.f32 %v4267_v16, %v4267_v16  ;;  %v757_v34 = vadd.f32 %v4005_v47, %v685_v1  ;;  %v1045_v11 = vadd.f32 %v6116_v9, %v1003_v48  ;;  %v6121_v14 = vrot.slane %v4301_v6, 4  ;;  %1374 = vrot.lane.b32.xlu0 %v4157_v4, %s3017_s10  ;;  %v841_v47 = vpop.permute.xlu1 %840 }
 0x140   :  { %6363 = vst [vmem:[#allocation14_spill] sm:$0xff] %v4339_v12  ;;  %v4360_v33 = vmul.f32 %v1097_v30, %v1097_v30  ;;  %v4363_v28 = vmul.f32 %v1097_v30, %v4161_v32  ;;  %v939_v57 = vadd.f32 %v6119_v15, %v4343_v19  ;;  %v6120_v42 = vrot.slane %v4328_v10, 2 }
 0x141   :  { %6364 = vst [vmem:[#allocation15_spill] sm:$0xff] %v4352_v8  ;;  %v6367_v1 = vrot.slane %v3924_v51, 4  ;;  %v1099_v9 = vadd.f32 %v6121_v14, %v1045_v11  ;;  %v4375_v43 = vmul.f32 0.23388076, %v863_v22  ;;  %v4377_v4 = vmul.f32 0.2920817, %v863_v22 }
 0x142   :  { %6365 = vst [vmem:[#allocation58_spill] sm:$0xff] %v4360_v33  ;;  %6366 = vst [vmem:[#allocation59_spill] sm:$0xff] %v4363_v28  ;;  %v805_v32 = vadd.f32 %v4119_v63, %v757_v34  ;;  %v4382_v30 = vadd.f32 %v4360_v33, %v4207_v7  ;;  %v1005_v15 = vadd.f32 %v6120_v42, %v939_v57  ;;  %v6123_v51 = vrot.slane %v4326_v17, 3  ;;  %v6371_v57 = vld [vmem:[#allocation20_spill] sm:$0xff]  ;;  %v6382_v7 = vld [vmem:[#allocation17_spill] sm:$0xff] }
 0x143   :  { %v4371_v48 = vadd.f32 %v6367_v1, %v546_v58  ;;  %1804 = vrot.lane.b32.xlu1 %v4154_v62, %s3015_s8  ;;  %v4389_v58 = vpop.permute.xlu0 %774  ;;  %v4391_v11 = vmul.f32 %v1099_v9, %v1099_v9  ;;  %v4394_v1 = vmul.f32 %v1099_v9, %v4172_v3  ;;  %v4396_v63 = vmul.f32 0.120078385, %v863_v22  ;;  %1798 = vrot.lane.b32.xlu0 %v4175_v59, %s3015_s8  ;;  %v4406_v28 = vpop.permute.xlu1 %1192  ;;  %v6388_v33 = vld [vmem:[#allocation16_spill] sm:$0xff] }
 0x144   :  { %6368 = vst [vmem:[#allocation60_spill] sm:$0xff] %v4382_v30  ;;  %v6125_v34 = vrot.slane %v4375_v43, 1  ;;  %v674_v42 = vadd.f32 %v3931_v52, %v6371_v57  ;;  %v1047_v62 = vadd.f32 %v6123_v51, %v1005_v15  ;;  %v6126_v14 = vrot.slane %v4343_v19, 4 }
 0x145   :  { %6369 = vst [vmem:[#allocation61_spill] sm:$0xff] %v4391_v11  ;;  %6370 = vst [vmem:[#allocation62_spill] sm:$0xff] %v4394_v1  ;;  %v4409_v3 = vmul.f32 0.120078385, %v4091_v5  ;;  %v4413_v22 = vadd.f32 %v4391_v11, %v4219_v2  ;;  %v6127_v52 = vrot.slane %v4377_v4, 2  ;;  %v865_v9 = vadd.f32 %v841_v47, %v805_v32  ;;  %v6375_v5 = vld [vmem:[#allocation27_spill] sm:$0xff] }
 0x146   :  { %v941_v59 = vadd.f32 %v6125_v34, %v4396_v63  ;;  %v4421_v15 = vmul.f32 %v4371_v48, %v4371_v48  ;;  %v4425_v57 = vmul.f32 %v3868_v27, %v3868_v27  ;;  %v676_v51 = vadd.f32 %v3953_v25, %v6375_v5  ;;  %v2991_v25 = vld [vmem:[%s6047_s1 + $0x40] sm:$0xff] }
 0x147   :  { %6372 = vst [vmem:[#allocation20_spill] sm:$0xff] %v4409_v3  ;;  %6373 = vst [vmem:[#allocation63_spill] sm:$0xff] %v4413_v22  ;;  %v1101_v1 = vadd.f32 %v6126_v14, %v1047_v62  ;;  %1908 = vrot.lane.b32.xlu1 %v4168_v13, %s3017_s10  ;;  %v4433_v34 = vpop.permute.xlu0 %778  ;;  %v746_v47 = vadd.f32 %v4041_v61, %v674_v42  ;;  %1902 = vrot.lane.b32.xlu0 %v4178_v36, %s3017_s10  ;;  %v4451_v61 = vmul.f32 0.23388076, %v865_v9  ;;  %v6379_v22 = vld [vmem:[#allocation3_spill] sm:$0xff]  ;;  %v6381_v13 = vld [vmem:[#allocation33_spill] sm:$0xff] }
 0x148   :  { %6374 = vst [vmem:[#allocation64_spill] sm:$0xff] %v4421_v15  ;;  %v1007_v32 = vadd.f32 %v6127_v52, %v941_v59  ;;  %v4444_v62 = vmul.f32 %v2991_v25, %v2991_v25  ;;  %v4453_v42 = vmul.f32 0.2920817, %v865_v9  ;;  %v4455_v59 = vpop.permute.xlu1 %1196  ;;  %v6378_v52 = vld [vmem:[#allocation31_spill] sm:$0xff]  ;;  %v6380_v36 = vrot.slane %v4375_v43, 3 }
 0x149   :  { %v4446_v5 = vmul.f32 %v1101_v1, %v1101_v1  ;;  %v4449_v14 = vmul.f32 %v1101_v1, %v4247_v49  ;;  %v678_v11 = vadd.f32 %v6379_v22, %v6378_v52  ;;  %v794_v2 = vadd.f32 %v4240_v29, %v746_v47  ;;  %v6384_v22 = vld [vmem:[#allocation30_spill] sm:$0xff]  ;;  %v6385_v52 = vld [vmem:[#allocation35_spill] sm:$0xff]  ;;  %v6386_v47 = vld [vmem:[#allocation37_spill] sm:$0xff] }
 0x14a   :  { %v1049_v25 = vadd.f32 %v6380_v36, %v1007_v32  ;;  %v680_v49 = vadd.f32 %v6382_v7, %v6381_v13  ;;  %v682_v36 = vadd.f32 %v6386_v47, %v6385_v52  ;;  %v6387_v32 = vld [vmem:[#allocation36_spill] sm:$0xff]  ;;  %v6389_v13 = vrot.slane %v4396_v63, 4 }
 0x14b   :  { %6376 = vst [vmem:[#allocation27_spill] sm:$0xff] %v4446_v5  ;;  %6377 = vst [vmem:[#allocation65_spill] sm:$0xff] %v4449_v14  ;;  %v4467_v1 = vadd.f32 %v4446_v5, %v4339_v12  ;;  %v4469_v14 = vmul.f32 0.120078385, %v865_v9  ;;  %1324 = vrot.lane.b32.xlu1 %v6384_v22, %s3016_s9  ;;  %v819_v29 = vpop.permute.xlu0 %818  ;;  %v4478_v18 = vadd.f32 %v6388_v33, %v6387_v32  ;;  %v6390_v9 = vld [vmem:[#allocation40_spill] sm:$0xff]  ;;  %v6392_v12 = vld [vmem:[#allocation46_spill] sm:$0xff] }
 0x14c   :  { %v1103_v7 = vadd.f32 %v6389_v13, %v1049_v25  ;;  %v854_v5 = vadd.f32 %v819_v29, %v794_v2  ;;  %1318 = vrot.lane.b32.xlu0 %v6390_v9, %s3016_s9  ;;  %v750_v53 = vadd.f32 %v6392_v12, %v678_v11  ;;  %v6393_v22 = vrot.slane %v4451_v61, 1  ;;  %v4490_v47 = vpop.permute.xlu1 %1200 }
 0x14d   :  { %6383 = vst [vmem:[#allocation31_spill] sm:$0xff] %v4467_v1  ;;  %v6391_v1 = vld [vmem:[#allocation44_spill] sm:$0xff]  ;;  %v6140_v52 = vrot.slane %v4453_v42, 2  ;;  %6394 = vst [vmem:[#allocation3_spill] sm:$0xff] %v4490_v47  ;;  %v6402_v44 = vrot.slane %v4469_v14, 4 }
 0x14e   :  { %v748_v30 = vadd.f32 %v6391_v1, %v676_v51  ;;  %v943_v40 = vadd.f32 %v6393_v22, %v4469_v14  ;;  %v4492_v33 = vmul.f32 %v1103_v7, %v1103_v7  ;;  %v4495_v25 = vmul.f32 %v1103_v7, %v4267_v16 }
 0x14f   :  { %v866_v2 = vmul.f32 0.120078385, %v854_v5  ;;  %v878_v29 = vmul.f32 0.23388076, %v854_v5  ;;  %v6145_v51 = vrot.slane %v4451_v61, 3  ;;  %1736 = vrot.lane.b32.xlu1 %v4181_v35, %s3014_s26  ;;  %v823_v1 = vpop.permute.xlu0 %822 }
 0x150   :  { %6395 = vst [vmem:[#allocation33_spill] sm:$0xff] %v4492_v33  ;;  %6396 = vst [vmem:[#allocation17_spill] sm:$0xff] %v4495_v25  ;;  %v796_v32 = vadd.f32 %v4280_v39, %v748_v30  ;;  %v1009_v12 = vadd.f32 %v6140_v52, %v943_v40  ;;  %v944_v11 = vmul.f32 0.2920817, %v854_v5  ;;  %v4505_v13 = vadd.f32 %v4492_v33, %v4352_v8  ;;  %v6398_v39 = vld [vmem:[#allocation12_spill] sm:$0xff]  ;;  %v4512_v52 = vpop.permute.xlu1 %1204  ;;  %v6399_v25 = vld [vmem:[#allocation10_spill] sm:$0xff] }
 0x151   :  { %v902_v7 = vrot.slane %v878_v29, 1  ;;  %v1010_v9 = vrot.slane %v878_v29, 3  ;;  %1730 = vrot.lane.b32.xlu0 %v6398_v39, %s3014_s26  ;;  %v1064_v5 = vrot.slane %v866_v2, 4  ;;  %v752_v47 = vadd.f32 %v6399_v25, %v680_v49  ;;  %v6405_v25 = vld [vmem:[#allocation11_spill] sm:$0xff] }
 0x152   :  { %6397 = vst [vmem:[#allocation30_spill] sm:$0xff] %v4505_v13  ;;  %v1051_v40 = vadd.f32 %v6145_v51, %v1009_v12  ;;  %v968_v30 = vrot.slane %v944_v11, 2  ;;  %v856_v22 = vadd.f32 %v823_v1, %v796_v32  ;;  %v798_v33 = vadd.f32 %v4310_v55, %v750_v53 }
 0x153   :  { %v6400_v13 = vrot.slane %v4211_v26, 1  ;;  %v6401_v29 = vrot.slane %v4211_v26, 3  ;;  %v6403_v32 = vrot.slane %v4213_v31, 2  ;;  %v6404_v49 = vrot.slane %v4231_v23, 4  ;;  %1852 = vrot.lane.b32.xlu1 %v4115_v45, %s3016_s9  ;;  %v827_v53 = vpop.permute.xlu0 %826 }
 0x154   :  { %v1105_v12 = vadd.f32 %v6402_v44, %v1051_v40  ;;  %v754_v26 = vadd.f32 %v6405_v25, %v682_v36 }
 0x155   :  { %v904_v16 = vsel %vm394_vm1, %v902_v7, %v6400_v13  ;;  %v1012_v8 = vsel %vm504_vm3, %v1010_v9, %v6401_v29  ;;  %v970_v1 = vsel %vm461_vm2, %v968_v30, %v6403_v32  ;;  %v1066_v55 = vsel %vm559_vm4, %v1064_v5, %v6404_v49  ;;  %1846 = vrot.lane.b32.xlu0 %v4122_v56, %s3016_s9  ;;  %v6410_v32 = vld [vmem:[#allocation55_spill] sm:$0xff] }
 0x156   :  { %v932_v11 = vadd.f32 %v904_v16, %v866_v2  ;;  %v868_v13 = vmul.f32 0.120078385, %v856_v22  ;;  %v880_v7 = vmul.f32 0.23388076, %v856_v22  ;;  %v946_v9 = vmul.f32 0.2920817, %v856_v22  ;;  %v4540_v16 = vpop.permute.xlu1 %1208 }
 0x157   :  { %v4535_v44 = vmul.f32 %v1105_v12, %v1105_v12  ;;  %v4538_v31 = vmul.f32 %v1105_v12, %v4371_v48  ;;  %v858_v2 = vadd.f32 %v827_v53, %v798_v33  ;;  %6408 = vst [vmem:[#allocation36_spill] sm:$0xff] %v4540_v16  ;;  %1280 = vrot.lane.b32.xlu1 %v6410_v32, %s3015_s8  ;;  %v831_v48 = vpop.permute.xlu0 %830  ;;  %v6411_v12 = vrot.slane %v4258_v41, 1  ;;  %v6501_v16 = vld [vmem:[#allocation28_spill] sm:$0xff] }
 0x158   :  { %v998_v23 = vadd.f32 %v970_v1, %v932_v11  ;;  %v905_v40 = vrot.slane %v880_v7, 1  ;;  %v971_v45 = vrot.slane %v946_v9, 2  ;;  %v1013_v30 = vrot.slane %v880_v7, 3  ;;  %v6415_v7 = vld [vmem:[#allocation54_spill] sm:$0xff] }
 0x159   :  { %6406 = vst [vmem:[#allocation35_spill] sm:$0xff] %v4535_v44  ;;  %6407 = vst [vmem:[#allocation37_spill] sm:$0xff] %v4538_v31  ;;  %v1067_v5 = vrot.slane %v868_v13, 4  ;;  %v4544_v36 = vadd.f32 %v4535_v44, %v4421_v15  ;;  %v870_v29 = vmul.f32 0.120078385, %v858_v2  ;;  %v6412_v11 = vrot.slane %v4260_v0, 2  ;;  %1378 = vrot.lane.b32.xlu0 %v4226_v20, %s3017_s10 }
 0x15a   :  { %v1040_v22 = vadd.f32 %v1012_v8, %v998_v23  ;;  %v882_v56 = vmul.f32 0.23388076, %v858_v2  ;;  %v907_v33 = vsel %vm394_vm1, %v905_v40, %v6411_v12  ;;  %v6413_v49 = vrot.slane %v4258_v41, 3  ;;  %v4564_v0 = vpop.permute.xlu1 %1212 }
 0x15b   :  { %6409 = vst [vmem:[#allocation16_spill] sm:$0xff] %v4544_v36  ;;  %v973_v1 = vsel %vm461_vm2, %v971_v45, %v6412_v11  ;;  %v6414_v8 = vrot.slane %v4275_v46, 4  ;;  %v756_v9 = vadd.f32 %v6415_v7, %v4478_v18  ;;  %v934_v40 = vadd.f32 %v907_v33, %v868_v13  ;;  %6416 = vst [vmem:[#allocation40_spill] sm:$0xff] %v4564_v0  ;;  %v835_v13 = vpop.permute.xlu0 %834 }
 0x15c   :  { %v1015_v53 = vsel %vm504_vm3, %v1013_v30, %v6413_v49  ;;  %v1094_v23 = vadd.f32 %v1066_v55, %v1040_v22  ;;  %v908_v32 = vrot.slane %v882_v56, 1  ;;  %v800_v45 = vadd.f32 %v4348_v24, %v752_v47  ;;  %v6420_v55 = vld [vmem:[#allocation22_spill] sm:$0xff] }
 0x15d   :  { %v1069_v25 = vsel %vm559_vm4, %v1067_v5, %v6414_v8  ;;  %v948_v41 = vmul.f32 0.2920817, %v858_v2  ;;  %v1016_v12 = vrot.slane %v882_v56, 3  ;;  %v1070_v30 = vrot.slane %v870_v29, 4  ;;  %1384 = vrot.lane.b32.xlu1 %v6420_v55, %s3017_s10  ;;  %1802 = vrot.lane.b32.xlu0 %v4263_v21, %s3015_s8  ;;  %v4601_v21 = vld [vmem:[%s6047_s1 + $0x58] sm:$0xff] }
 0x15e   :  { %v4567_v11 = vmul.f32 %v1094_v23, %v1094_v23  ;;  %v4570_v46 = vmul.f32 %v1094_v23, %v3868_v27  ;;  %v1000_v5 = vadd.f32 %v973_v1, %v934_v40  ;;  %v6419_v49 = vrot.slane %v4285_v60, 1  ;;  %v4590_v7 = vpop.permute.xlu1 %1264  ;;  %6426 = vst [vmem:[#allocation10_spill] sm:$0xff] %v4601_v21 }
 0x15f   :  { %v974_v33 = vrot.slane %v948_v41, 2  ;;  %v6421_v24 = vrot.slane %v4285_v60, 3  ;;  %v6422_v2 = vrot.slane %v4301_v6, 4  ;;  %v802_v56 = vadd.f32 %v4389_v58, %v754_v26  ;;  %v6425_v6 = vld [vmem:[#allocation47_spill] sm:$0xff]  ;;  %v6427_v41 = vld [vmem:[#allocation2_spill] sm:$0xff] }
 0x160   :  { %6417 = vst [vmem:[#allocation44_spill] sm:$0xff] %v4567_v11  ;;  %6418 = vst [vmem:[#allocation46_spill] sm:$0xff] %v4570_v46  ;;  %v910_v18 = vsel %vm394_vm1, %v908_v32, %v6419_v49  ;;  %v4588_v1 = vadd.f32 %v4567_v11, %v4425_v57  ;;  %v1042_v8 = vadd.f32 %v1015_v53, %v1000_v5  ;;  %v6424_v60 = vrot.slane %v4287_v54, 2 }
 0x161   :  { %v936_v22 = vadd.f32 %v910_v18, %v870_v29  ;;  %v1018_v47 = vsel %vm504_vm3, %v1016_v12, %v6421_v24  ;;  %v1072_v27 = vsel %vm559_vm4, %v1070_v30, %v6422_v2  ;;  %v860_v29 = vadd.f32 %v831_v48, %v800_v45  ;;  %1808 = vrot.lane.b32.xlu1 %v4243_v38, %s3015_s8  ;;  %v839_v45 = vpop.permute.xlu0 %838 }
 0x162   :  { %6423 = vst [vmem:[#allocation12_spill] sm:$0xff] %v4588_v1  ;;  %v976_v23 = vsel %vm461_vm2, %v974_v33, %v6424_v60  ;;  %v4596_v40 = vmul.f32 0.120078385, %v6425_v6  ;;  %v4605_v58 = vmul.f32 %v4601_v21, %v4601_v21  ;;  %v4608_v26 = vmul.f32 0.23388076, %v4444_v62  ;;  %1906 = vrot.lane.b32.xlu0 %v4409_v3, %s3017_s10 }
 0x163   :  { %v804_v48 = vadd.f32 %v4433_v34, %v756_v9  ;;  %v1096_v54 = vadd.f32 %v1069_v25, %v1042_v8  ;;  %v1002_v53 = vadd.f32 %v976_v23, %v936_v22  ;;  %v862_v32 = vadd.f32 %v835_v13, %v802_v56  ;;  %v4624_v13 = vpop.permute.xlu1 %1268 }
 0x164   :  { %v4615_v12 = vmul.f32 %v6427_v41, %v6427_v41  ;;  %v872_v30 = vmul.f32 0.120078385, %v860_v29  ;;  %v884_v5 = vmul.f32 0.23388076, %v860_v29  ;;  %v950_v49 = vmul.f32 0.2920817, %v860_v29 }
 0x165   :  { %v4619_v18 = vmul.f32 %v1096_v54, %v1096_v54  ;;  %v4622_v34 = vmul.f32 %v1096_v54, %v6427_v41  ;;  %v1044_v25 = vadd.f32 %v1018_v47, %v1002_v53  ;;  %v864_v9 = vadd.f32 %v839_v45, %v804_v48  ;;  %1912 = vrot.lane.b32.xlu1 %v4596_v40, %s3017_s10  ;;  %v4632_v60 = vpop.permute.xlu0 %1190  ;;  %v6436_v41 = vld [vmem:[#allocation42_spill] sm:$0xff] }
 0x166   :  { %6428 = vst [vmem:[#allocation11_spill] sm:$0xff] %v4615_v12  ;;  %v911_v38 = vrot.slane %v884_v5, 1  ;;  %v977_v22 = vrot.slane %v950_v49, 2  ;;  %v1019_v33 = vrot.slane %v884_v5, 3  ;;  %v1073_v24 = vrot.slane %v872_v30, 4  ;;  %1322 = vrot.lane.b32.xlu0 %v6436_v41, %s3016_s9  ;;  %v6437_v5 = vld [vmem:[#allocation4_spill] sm:$0xff] }
 0x167   :  { %6429 = vst [vmem:[#allocation55_spill] sm:$0xff] %v4619_v18  ;;  %6430 = vst [vmem:[#allocation54_spill] sm:$0xff] %v4622_v34  ;;  %v4628_v2 = vadd.f32 %v4619_v18, %v4615_v12  ;;  %v1098_v56 = vadd.f32 %v1072_v27, %v1044_v25  ;;  %v874_v8 = vmul.f32 0.120078385, %v862_v32  ;;  %v886_v29 = vmul.f32 0.23388076, %v862_v32 }
 0x168   :  { %v6432_v47 = vrot.slane %v4326_v17, 1  ;;  %v6433_v6 = vrot.slane %v4328_v10, 2  ;;  %v6434_v54 = vrot.slane %v4326_v17, 3  ;;  %v6435_v27 = vrot.slane %v4343_v19, 4 }
 0x169   :  { %6431 = vst [vmem:[#allocation22_spill] sm:$0xff] %v4628_v2  ;;  %v4650_v49 = vmul.f32 %v6437_v5, %v6437_v5  ;;  %v4652_v25 = vmul.f32 %v1098_v56, %v1098_v56  ;;  %v4655_v10 = vmul.f32 %v1098_v56, %v6437_v5  ;;  %v1022_v19 = vrot.slane %v886_v29, 3 }
 0x16a   :  { %v913_v23 = vsel %vm394_vm1, %v911_v38, %v6432_v47  ;;  %v979_v48 = vsel %vm461_vm2, %v977_v22, %v6433_v6  ;;  %v1021_v53 = vsel %vm504_vm3, %v1019_v33, %v6434_v54  ;;  %v1075_v45 = vsel %vm559_vm4, %v1073_v24, %v6435_v27  ;;  %v4657_v38 = vpop.permute.xlu1 %1272  ;;  %v6442_v54 = vld [vmem:[#allocation32_spill] sm:$0xff]  ;;  %v4665_v27 = vpop.permute.xlu0 %1194  ;;  %1734 = vrot.lane.b32.xlu0 %v4608_v26, %s3014_s26 }
 0x16b   :  { %6438 = vst [vmem:[#allocation47_spill] sm:$0xff] %v4650_v49  ;;  %6439 = vst [vmem:[#allocation2_spill] sm:$0xff] %v4652_v25  ;;  %v938_v17 = vadd.f32 %v913_v23, %v872_v30  ;;  %v914_v22 = vrot.slane %v886_v29, 1  ;;  %v952_v33 = vmul.f32 0.2920817, %v862_v32  ;;  %v4661_v24 = vadd.f32 %v4652_v25, %v4650_v49  ;;  %1328 = vrot.lane.b32.xlu1 %v6442_v54, %s3016_s9 }
 0x16c   :  { %6440 = vst [vmem:[#allocation42_spill] sm:$0xff] %v4655_v10  ;;  %v1076_v47 = vrot.slane %v874_v8, 4  ;;  %v876_v6 = vmul.f32 0.120078385, %v864_v9  ;;  %v4668_v56 = vmul.f32 0.23388076, %v4605_v58  ;;  %v1233_v1 = vadd.f32 %v4512_v52, %v6420_v55 }
 0x16d   :  { %6441 = vst [vmem:[#allocation4_spill] sm:$0xff] %v4661_v24  ;;  %v1004_v41 = vadd.f32 %v979_v48, %v938_v17  ;;  %v6443_v30 = vrot.slane %v4375_v43, 1  ;;  %v980_v29 = vrot.slane %v952_v33, 2  ;;  %v6444_v23 = vrot.slane %v4375_v43, 3  ;;  %v6506_v52 = vld [vmem:[#allocation50_spill] sm:$0xff] }
 0x16e   :  { %v6445_v54 = vrot.slane %v4396_v63, 4  ;;  %v4681_v10 = vpop.permute.xlu1 %1276  ;;  %v6446_v17 = vrot.slane %v4377_v4, 2  ;;  %v888_v33 = vmul.f32 0.23388076, %v864_v9  ;;  %v1079_v34 = vrot.slane %v876_v6, 4  ;;  %1850 = vrot.lane.b32.xlu0 %v6398_v39, %s3016_s9  ;;  %v6448_v4 = vld [vmem:[#allocation7_spill] sm:$0xff] }
 0x16f   :  { %v916_v32 = vsel %vm394_vm1, %v914_v22, %v6443_v30  ;;  %v1024_v5 = vsel %vm504_vm3, %v1022_v19, %v6444_v23  ;;  %v1046_v48 = vadd.f32 %v1021_v53, %v1004_v41  ;;  %v954_v30 = vmul.f32 0.2920817, %v864_v9  ;;  %1740 = vrot.lane.b32.xlu1 %v4668_v56, %s3014_s26  ;;  %v4688_v19 = vpop.permute.xlu0 %1198 }
 0x170   :  { %v940_v51 = vadd.f32 %v916_v32, %v874_v8  ;;  %v1078_v31 = vsel %vm559_vm4, %v1076_v47, %v6445_v54  ;;  %v982_v22 = vsel %vm461_vm2, %v980_v29, %v6446_v17  ;;  %v6447_v8 = vld [vmem:[#allocation39_spill] sm:$0xff]  ;;  %v917_v47 = vrot.slane %v888_v33, 1 }
 0x171   :  { %v1246_v63 = vmul.f32 0.2920817, %v6447_v8  ;;  %v1100_v32 = vadd.f32 %v1075_v45, %v1046_v48  ;;  %v983_v23 = vrot.slane %v954_v30, 2  ;;  %v1025_v54 = vrot.slane %v888_v33, 3 }
 0x172   :  { %v1006_v43 = vadd.f32 %v982_v22, %v940_v51  ;;  %v4695_v53 = vmul.f32 %v6448_v4, %v6448_v4  ;;  %v6450_v9 = vrot.slane %v4469_v14, 4  ;;  %v4700_v29 = vpop.permute.xlu1 %1720  ;;  %v6453_v48 = vrot.slane %v4451_v61, 1 }
 0x173   :  { %v4702_v17 = vmul.f32 %v1100_v32, %v1100_v32  ;;  %v4705_v45 = vmul.f32 %v1100_v32, %v6448_v4  ;;  %v6454_v22 = vrot.slane %v4453_v42, 2  ;;  %v6455_v14 = vrot.slane %v4451_v61, 3  ;;  %1856 = vrot.lane.b32.xlu1 %v4181_v35, %s3016_s9  ;;  %v6457_v32 = vld [vmem:[#allocation26_spill] sm:$0xff]  ;;  %1278 = vrot.lane.b32.xlu0 %v1246_v63, %s3015_s8  ;;  %v6459_v42 = vld [vmem:[#allocation8_spill] sm:$0xff] }
 0x174   :  { %6449 = vst [vmem:[#allocation32_spill] sm:$0xff] %v4695_v53  ;;  %v1048_v51 = vadd.f32 %v1024_v5, %v1006_v43  ;;  %v1081_v41 = vsel %vm559_vm4, %v1079_v34, %v6450_v9  ;;  %v919_v39 = vsel %vm394_vm1, %v917_v47, %v6453_v48  ;;  %v4718_v43 = vpop.permute.xlu0 %1202  ;;  %v1249_v4 = vmul.f32 0.2920817, %v6457_v32 }
 0x175   :  { %6451 = vst [vmem:[#allocation39_spill] sm:$0xff] %v4702_v17  ;;  %6452 = vst [vmem:[#allocation7_spill] sm:$0xff] %v4705_v45  ;;  %v985_v33 = vsel %vm461_vm2, %v983_v23, %v6454_v22  ;;  %v942_v30 = vadd.f32 %v919_v39, %v876_v6  ;;  %v1027_v34 = vsel %vm504_vm3, %v1025_v54, %v6455_v14  ;;  %v6463_v54 = vld [vmem:[#allocation38_spill] sm:$0xff]  ;;  %v1774_v39 = vmul.f32 0.2920817, %v4444_v62  ;;  %v6467_v22 = vld [vmem:[#allocation23_spill] sm:$0xff] }
 0x176   :  { %v1102_v5 = vadd.f32 %v1078_v31, %v1048_v51  ;;  %6456 = vst [vmem:[#allocation66_spill] sm:$0xff] %v4718_v43  ;;  %v4723_v47 = vadd.f32 %v4702_v17, %v4695_v53  ;;  %v4728_v31 = vmul.f32 %v6459_v42, %v6459_v42  ;;  %v4735_v23 = vpop.permute.xlu1 %1724  ;;  %v4738_v51 = vmul.f32 0.120078385, %v6463_v54  ;;  %v6469_v14 = vld [vmem:[#allocation24_spill] sm:$0xff]  ;;  %v2993_v45 = vld [vmem:[%s6046_s0 + $0x8] sm:$0xff]  ;;  %v6483_v53 = vld [vmem:[#allocation45_spill] sm:$0xff] }
 0x177   :  { %v1008_v35 = vadd.f32 %v985_v33, %v942_v30  ;;  %1284 = vrot.lane.b32.xlu1 %v1249_v4, %s3015_s8  ;;  %v4751_v33 = vmul.f32 0.120078385, %v6467_v22  ;;  %v1777_v4 = vmul.f32 0.2920817, %v4605_v58  ;;  %v1228_v55 = vadd.f32 %v4665_v27, %v6506_v52 }
 0x178   :  { %6458 = vst [vmem:[#allocation26_spill] sm:$0xff] %v4723_v47  ;;  %6460 = vst [vmem:[#allocation8_spill] sm:$0xff] %v4728_v31  ;;  %v4730_v61 = vmul.f32 %v1102_v5, %v1102_v5  ;;  %v4733_v6 = vmul.f32 %v1102_v5, %v6459_v42  ;;  %v4745_v48 = vpop.permute.xlu0 %1206  ;;  %1382 = vrot.lane.b32.xlu0 %v4738_v51, %s3017_s10  ;;  %v4755_v42 = vmul.f32 %v6469_v14, %v6469_v14 }
 0x179   :  { %6464 = vst [vmem:[#allocation38_spill] sm:$0xff] %v4738_v51  ;;  %v1050_v63 = vadd.f32 %v1027_v34, %v1008_v35  ;;  %6466 = vst [vmem:[#allocation70_spill] sm:$0xff] %v4745_v48  ;;  %v4766_v35 = vmul.f32 0.120078385, %v4142_v50  ;;  %v2994_v50 = vld [vmem:[%s6047_s1 + $0x8] sm:$0xff] }
 0x17a   :  { %6461 = vst [vmem:[#allocation67_spill] sm:$0xff] %v4730_v61  ;;  %6462 = vst [vmem:[#allocation68_spill] sm:$0xff] %v4733_v6  ;;  %v4742_v9 = vadd.f32 %v4730_v61, %v4728_v31  ;;  %v1793_v30 = vpop.permute.xlu1 %1792  ;;  %v4776_v6 = vmul.f32 0.120078385, %v4130_v37  ;;  %v4794_v37 = vld [vmem:[%s6047_s1 + $0x50] sm:$0xff]  ;;  %v6485_v48 = vld [vmem:[#allocation19_spill] sm:$0xff] }
 0x17b   :  { %6468 = vst [vmem:[#allocation23_spill] sm:$0xff] %v4751_v33  ;;  %v1104_v5 = vadd.f32 %v1081_v41, %v1050_v63  ;;  %6470 = vst [vmem:[#allocation24_spill] sm:$0xff] %v4755_v42  ;;  %1388 = vrot.lane.b32.xlu1 %v4751_v33, %s3017_s10 }
 0x17c   :  { %6465 = vst [vmem:[#allocation69_spill] sm:$0xff] %v4742_v9  ;;  %v4761_v34 = vpop.permute.xlu0 %1210  ;;  %1806 = vrot.lane.b32.xlu0 %v1774_v39, %s3015_s8  ;;  %6473 = vst [vmem:[#allocation73_spill] sm:$0xff] %v4766_v35  ;;  %v4784_v39 = vmul.f32 %v2994_v50, %v2993_v45 }
 0x17d   :  { %v4757_v54 = vmul.f32 %v1104_v5, %v1104_v5  ;;  %6472 = vst [vmem:[#allocation72_spill] sm:$0xff] %v4761_v34  ;;  %6475 = vst [vmem:[#allocation75_spill] sm:$0xff] %v4776_v6  ;;  %v4787_v46 = vmul.f32 %v1104_v5, %v6469_v14  ;;  %v6478_v14 = vld [vmem:[#allocation43_spill] sm:$0xff] }
 0x17e   :  { %v1313_v63 = vpop.permute.xlu1 %1312  ;;  %6477 = vst [vmem:[#allocation77_spill] sm:$0xff] %v4794_v37  ;;  %v4807_v5 = vmul.f32 0.23388076, %v4784_v39  ;;  %v4997_v12 = vmul.f32 0.120078385, %v4784_v39 }
 0x17f   :  { %6471 = vst [vmem:[#allocation71_spill] sm:$0xff] %v4757_v54  ;;  %v4770_v41 = vadd.f32 %v4757_v54, %v4755_v42  ;;  %1812 = vrot.lane.b32.xlu1 %v1777_v4, %s3015_s8  ;;  %6476 = vst [vmem:[#allocation76_spill] sm:$0xff] %v4787_v46  ;;  %v4798_v4 = vmul.f32 %v4794_v37, %v4794_v37 }
 0x180   :  { %v4773_v22 = vpop.permute.xlu0 %1262  ;;  %1910 = vrot.lane.b32.xlu0 %v4766_v35, %s3017_s10 }
 0x181   :  { %6474 = vst [vmem:[#allocation74_spill] sm:$0xff] %v4770_v41  ;;  %v4812_v50 = vmul.f32 0.23388076, %v4798_v4  ;;  %v6479_v41 = vld [vmem:[#allocation18_spill] sm:$0xff] }
 0x182   :  { %v4800_v54 = vpop.permute.xlu1 %1796  ;;  %v1227_v42 = vadd.f32 %v4406_v28, %v6479_v41  ;;  %v2996_v28 = vld [vmem:[%s6046_s0 + $0x18] sm:$0xff] }
 0x183   :  { %1916 = vrot.lane.b32.xlu1 %v4776_v6, %s3017_s10  ;;  %v2997_v41 = vld [vmem:[%s6047_s1 + $0x18] sm:$0xff] }
 0x184   :  { %v4804_v45 = vpop.permute.xlu0 %1266  ;;  %1326 = vrot.lane.b32.xlu0 %v6478_v14, %s3016_s9  ;;  %v1299_v61 = vadd.f32 %v4590_v7, %v1227_v42  ;;  %v6480_v14 = vld [vmem:[#allocation34_spill] sm:$0xff]  ;;  %v4833_v15 = vmul.f32 %v2997_v41, %v2996_v28  ;;  %v6482_v7 = vld [vmem:[#allocation41_spill] sm:$0xff]  ;;  %v1755_v28 = vadd.f32 %v4700_v29, %v6483_v53  ;;  %v2295_v53 = vmul.f32 0.2920817, %v4784_v39 }
 0x185   :  { %v1248_v42 = vmul.f32 0.2920817, %v6482_v7 }
 0x186   :  { %v1841_v46 = vpop.permute.xlu1 %1840  ;;  %v1347_v31 = vadd.f32 %v1313_v63, %v1299_v61  ;;  %v4843_v34 = vmul.f32 0.23388076, %v4833_v15  ;;  %v1827_v29 = vadd.f32 %v1793_v30, %v1755_v28  ;;  %v1229_v30 = vadd.f32 %v4455_v59, %v6485_v48 }
 0x187   :  { %2248 = vrot.lane.b32.xlu1 %v4807_v5, %s3014_s26  ;;  %v4891_v59 = vmul.f32 0.120078385, %v4444_v62  ;;  %v4894_v48 = vmul.f32 0.120078385, %v6457_v32  ;;  %v6490_v32 = vld [vmem:[#allocation48_spill] sm:$0xff] }
 0x188   :  { %v4818_v9 = vpop.permute.xlu0 %1270  ;;  %1738 = vrot.lane.b32.xlu0 %v4812_v50, %s3014_s26  ;;  %v1875_v49 = vadd.f32 %v1841_v46, %v1827_v29  ;;  %v1301_v46 = vadd.f32 %v4624_v13, %v1229_v30  ;;  %v1757_v29 = vadd.f32 %v4735_v23, %v6490_v32 }
 0x189   :  { %6487 = vst [vmem:[#allocation34_spill] sm:$0xff] %v4891_v59  ;;  %6488 = vst [vmem:[#allocation41_spill] sm:$0xff] %v4894_v48 }
 0x18a   :  { %v1317_v36 = vpop.permute.xlu1 %1316  ;;  %v1829_v32 = vadd.f32 %v4800_v54, %v1757_v29  ;;  %v6492_v54 = vld [vmem:[#allocation25_spill] sm:$0xff] }
 0x18b   :  { %1332 = vrot.lane.b32.xlu1 %v6480_v14, %s3016_s9  ;;  %v1349_v30 = vadd.f32 %v1317_v36, %v1301_v46 }
 0x18c   :  { %v4825_v44 = vpop.permute.xlu0 %1274  ;;  %1854 = vrot.lane.b32.xlu0 %v4608_v26, %s3016_s9 }
 0x18d   :  { %6481 = vst [vmem:[#allocation43_spill] sm:$0xff] %v4825_v44 }
 0x18e   :  { %v1373_v47 = vpop.permute.xlu1 %1372 }
 0x18f   :  { %v1407_v14 = vadd.f32 %v1373_v47, %v1347_v31  ;;  %1860 = vrot.lane.b32.xlu1 %v4668_v56, %s3016_s9  ;;  %v4855_v47 = vmul.f32 0.120078385, %v6447_v8  ;;  %v1776_v8 = vmul.f32 0.2920817, %v4798_v4 }
 0x190   :  { %v4840_v17 = vpop.permute.xlu0 %1718  ;;  %1282 = vrot.lane.b32.xlu0 %v1248_v42, %s3015_s8 }
 0x191   :  { %v4847_v41 = vmul.f32 0.23388076, %v1407_v14  ;;  %v4849_v61 = vmul.f32 0.2920817, %v1407_v14  ;;  %6484 = vst [vmem:[#allocation18_spill] sm:$0xff] %v4855_v47 }
 0x192   :  { %v4852_v26 = vpop.permute.xlu1 %1728  ;;  %v4857_v56 = vmul.f32 0.120078385, %v1407_v14 }
 0x193   :  { %v6163_v31 = vrot.slane %v4847_v41, 1  ;;  %2252 = vrot.lane.b32.xlu1 %v4843_v34, %s3014_s26  ;;  %v6166_v24 = vrot.slane %v4849_v61, 2  ;;  %v6168_v37 = vrot.slane %v4847_v41, 3  ;;  %v6509_v27 = vrot.slane %v4847_v41, 1 }
 0x194   :  { %v4862_v63 = vpop.permute.xlu0 %1722  ;;  %1386 = vrot.lane.b32.xlu0 %v4855_v47, %s3017_s10  ;;  %v6486_v47 = vld [vmem:[#allocation9_spill] sm:$0xff]  ;;  %v6510_v52 = vrot.slane %v4847_v41, 3  ;;  %v5097_v41 = vadd.f32 %v4681_v10, %v1233_v1 }
 0x195   :  { %v1485_v42 = vadd.f32 %v6163_v31, %v4857_v56  ;;  %v2998_v31 = vld [vmem:[%s6046_s0] sm:$0xff] }
 0x196   :  { %v1845_v14 = vpop.permute.xlu1 %1844  ;;  %v4884_v0 = vmul.f32 %v2998_v31, %v6486_v47  ;;  %v4906_v31 = vmul.f32 0.120078385, %v4605_v58 }
 0x197   :  { %v1551_v25 = vadd.f32 %v6166_v24, %v1485_v42  ;;  %2320 = vrot.lane.b32.xlu1 %v2295_v53, %s3015_s8  ;;  %v6167_v24 = vrot.slane %v4857_v56, 4 }
 0x198   :  { %v4878_v28 = vpop.permute.xlu0 %1790  ;;  %1810 = vrot.lane.b32.xlu0 %v1776_v8, %s3015_s8  ;;  %6489 = vst [vmem:[#allocation45_spill] sm:$0xff] %v4906_v31  ;;  %v4909_v62 = vmul.f32 0.23388076, %v4884_v0  ;;  %v6491_v8 = vld [vmem:[#allocation53_spill] sm:$0xff] }
 0x199   :  { %v1593_v42 = vadd.f32 %v6168_v37, %v1551_v25 }
 0x19a   :  { %v1901_v53 = vpop.permute.xlu1 %1900 }
 0x19b   :  { %v4898_v44 = vadd.f32 %v6167_v24, %v1593_v42  ;;  %v1935_v47 = vadd.f32 %v1901_v53, %v1875_v49  ;;  %1392 = vrot.lane.b32.xlu1 %v4894_v48, %s3017_s10  ;;  %v3001_v48 = vld [vmem:[%s6047_s1 + $0x10] sm:$0xff] }
 0x19c   :  { %v4903_v25 = vpop.permute.xlu0 %1310  ;;  %1914 = vrot.lane.b32.xlu0 %v4891_v59, %s3017_s10 }
 0x19d   :  { %v1659_v42 = vsub.f32 %v4898_v44, %v6491_v8  ;;  %v4915_v49 = vmul.f32 0.23388076, %v1935_v47  ;;  %v4917_v13 = vmul.f32 0.2920817, %v1935_v47  ;;  %v4921_v58 = vmul.f32 0.120078385, %v1935_v47 }
 0x19e   :  { %v1377_v53 = vpop.permute.xlu1 %1376  ;;  %v2297_v44 = vmul.f32 0.2920817, %v4833_v15 }
 0x19f   :  { %v6169_v24 = vrot.slane %v4915_v49, 1  ;;  %v1409_v37 = vadd.f32 %v1377_v53, %v1349_v30  ;;  %1920 = vrot.lane.b32.xlu1 %v4906_v31, %s3017_s10  ;;  %v6174_v36 = vrot.slane %v4917_v13, 2  ;;  %v2999_v53 = vld [vmem:[%s6046_s0 + $0x28] sm:$0xff]  ;;  %v6179_v59 = vrot.slane %v4915_v49, 3  ;;  %v3000_v31 = vld [vmem:[%s6046_s0 + $0x10] sm:$0xff] }
 0x1a0   :  { %v4926_v23 = vpop.permute.xlu0 %1794  ;;  %2246 = vrot.lane.b32.xlu0 %v4909_v62, %s3014_s26  ;;  %v4946_v29 = vmul.f32 %v2999_v53, %v6492_v54  ;;  %v4957_v43 = vmul.f32 %v3001_v48, %v3000_v31  ;;  %v6182_v35 = vrot.slane %v4921_v58, 4  ;;  %v6493_v48 = vld [vmem:[#allocation5_spill] sm:$0xff]  ;;  %v6495_v31 = vld [vmem:[#allocation3_spill] sm:$0xff] }
 0x1a1   :  { %v2013_v8 = vadd.f32 %v6169_v24, %v4921_v58  ;;  %v4936_v47 = vmul.f32 0.23388076, %v1409_v37  ;;  %v4938_v46 = vmul.f32 0.2920817, %v1409_v37  ;;  %v4959_v51 = vmul.f32 0.120078385, %v1409_v37 }
 0x1a2   :  { %v4940_v30 = vpop.permute.xlu1 %1800  ;;  %v6494_v37 = vld [vmem:[#allocation21_spill] sm:$0xff]  ;;  %v4987_v2 = vmul.f32 0.23388076, %v4957_v43  ;;  %v5013_v21 = vmul.f32 0.2920817, %v4946_v29 }
 0x1a3   :  { %v2079_v24 = vadd.f32 %v6174_v36, %v2013_v8  ;;  %v6180_v53 = vrot.slane %v4936_v47, 1  ;;  %2324 = vrot.lane.b32.xlu1 %v2297_v44, %s3015_s8  ;;  %v4966_v8 = vmul.f32 0.120078385, %v6482_v7  ;;  %v1877_v36 = vadd.f32 %v1845_v14, %v1829_v32  ;;  %v6496_v32 = vld [vmem:[#allocation29_spill] sm:$0xff] }
 0x1a4   :  { %v4963_v54 = vpop.permute.xlu0 %1838  ;;  %1330 = vrot.lane.b32.xlu0 %v6493_v48, %s3016_s9  ;;  %v1231_v6 = vadd.f32 %v6495_v31, %v6494_v37  ;;  %v6183_v3 = vrot.slane %v4938_v46, 2  ;;  %v4980_v14 = vmul.f32 0.23388076, %v4946_v29  ;;  %6497 = vst [vmem:[#allocation19_spill] sm:$0xff] %v4987_v2  ;;  %v6185_v31 = vrot.slane %v4936_v47, 3 }
 0x1a5   :  { %v2121_v18 = vadd.f32 %v6179_v59, %v2079_v24  ;;  %v1487_v44 = vadd.f32 %v6180_v53, %v4959_v51  ;;  %v1226_v24 = vadd.f32 %v4632_v60, %v6496_v32  ;;  %v2294_v60 = vmul.f32 0.2920817, %v4884_v0 }
 0x1a6   :  { %v1905_v7 = vpop.permute.xlu1 %1904  ;;  %v6186_v39 = vrot.slane %v4959_v51, 4  ;;  %v5110_v1 = vmul.f32 0.120078385, %v4946_v29 }
 0x1a7   :  { %v2175_v59 = vadd.f32 %v6182_v35, %v2121_v18  ;;  %v1937_v48 = vadd.f32 %v1905_v7, %v1877_v36  ;;  %v1553_v37 = vadd.f32 %v6183_v3, %v1487_v44  ;;  %2368 = vrot.lane.b32.xlu1 %v4807_v5, %s3016_s9  ;;  %v1298_v18 = vadd.f32 %v4773_v22, %v1226_v24  ;;  %v6498_v36 = vld [vmem:[#allocation13_spill] sm:$0xff] }
 0x1a8   :  { %v4994_v53 = vpop.permute.xlu0 %1314  ;;  %1858 = vrot.lane.b32.xlu0 %v4812_v50, %s3016_s9  ;;  %v1303_v5 = vadd.f32 %v4657_v38, %v1231_v6  ;;  %v2799_v50 = vadd.f32 0.0001, %v6501_v16 }
 0x1a9   :  { %v2187_v7 = vsub.f32 %v2175_v59, %v6498_v36  ;;  %v5002_v32 = vmul.f32 0.23388076, %v1937_v48  ;;  %v5004_v35 = vmul.f32 0.2920817, %v1937_v48  ;;  %v1595_v44 = vadd.f32 %v6185_v31, %v1553_v37  ;;  %v6503_v31 = vld [vmem:[#allocation56_spill] sm:$0xff] }
 0x1aa   :  { %v1321_v3 = vpop.permute.xlu1 %1320  ;;  %v1346_v59 = vadd.f32 %v4903_v25, %v1298_v18  ;;  %v5016_v24 = vmul.f32 0.120078385, %v1937_v48  ;;  %v3003_v25 = vld [vmem:[%s6047_s1 + $0x38] sm:$0xff] }
 0x1ab   :  { %6499 = vst [vmem:[#allocation9_spill] sm:$0xff] %v5002_v32  ;;  %6500 = vst [vmem:[#allocation48_spill] sm:$0xff] %v5004_v35  ;;  %v2811_v22 = vadd.f32 %v2187_v7, %v1659_v42  ;;  %v6188_v36 = vrot.slane %v5002_v32, 1  ;;  %v1649_v38 = vadd.f32 %v6186_v39, %v1595_v44  ;;  %v1351_v6 = vadd.f32 %v1321_v3, %v1303_v5  ;;  %v3002_v42 = vld [vmem:[%s6046_s0 + $0x38] sm:$0xff]  ;;  %v6502_v5 = vld [vmem:[#allocation60_spill] sm:$0xff] }
 0x1ac   :  { %2256 = vrot.lane.b32.xlu1 %v4980_v14, %s3014_s26  ;;  %v1371_v37 = vpop.permute.xlu0 %1370  ;;  %v5030_v48 = vmul.f32 %v3003_v25, %v3002_v42  ;;  %v6189_v3 = vrot.slane %v5004_v35, 2  ;;  %2250 = vrot.lane.b32.xlu0 %v4987_v2, %s3014_s26  ;;  %v5039_v44 = vadd.f32 0.0001, %v6502_v5  ;;  %v6191_v33 = vrot.slane %v5002_v32, 3  ;;  %v6511_v32 = vld [vmem:[#allocation51_spill] sm:$0xff] }
 0x1ad   :  { %v2823_v18 = vadd.f32 0.0009, %v2811_v22  ;;  %v2015_v16 = vadd.f32 %v6188_v36, %v5016_v24  ;;  %v1406_v7 = vadd.f32 %v1371_v37, %v1346_v59  ;;  %v1661_v39 = vsub.f32 %v1649_v38, %v6503_v31 }
 0x1ae   :  { %v1733_v42 = vpop.permute.xlu1 %1732  ;;  %v5044_v22 = vmul.f32 0.120078385, %v4833_v15  ;;  %v5057_v38 = vmul.f32 0.120078385, %v4798_v4  ;;  %v5060_v15 = vmul.f32 0.23388076, %v5030_v48  ;;  %v1759_v2 = vadd.f32 %v4852_v26, %v6511_v32 }
 0x1af   :  { %v5046_v25 = vmul.f32 %v2823_v18, %v2799_v50  ;;  %v2081_v36 = vadd.f32 %v6189_v3, %v2015_v16  ;;  %v1418_v59 = vmul.f32 0.120078385, %v1406_v7  ;;  %v1430_v37 = vmul.f32 0.23388076, %v1406_v7  ;;  %v3004_v4 = vld [vmem:[%s6046_s0 + $0x20] sm:$0xff]  ;;  %v6507_v18 = vld [vmem:[#allocation49_spill] sm:$0xff] }
 0x1b0   :  { %v1496_v5 = vmul.f32 0.2920817, %v1406_v7  ;;  %2372 = vrot.lane.b32.xlu1 %v4843_v34, %s3016_s9  ;;  %v5054_v31 = vpop.permute.xlu0 %1726  ;;  %2318 = vrot.lane.b32.xlu0 %v2294_v60, %s3015_s8  ;;  %v6508_v60 = vrot.slane %v5016_v24, 4  ;;  %v6514_v32 = vld [vmem:[#allocation58_spill] sm:$0xff] }
 0x1b1   :  { %6504 = vst [vmem:[#allocation53_spill] sm:$0xff] %v5046_v25  ;;  %6505 = vst [vmem:[#allocation25_spill] sm:$0xff] %v5054_v31  ;;  %v2123_v50 = vadd.f32 %v6191_v33, %v2081_v36  ;;  %v1454_v16 = vrot.slane %v1430_v37, 1  ;;  %v1562_v3 = vrot.slane %v1430_v37, 3  ;;  %v1616_v7 = vrot.slane %v1418_v59, 4  ;;  %v3005_v36 = vld [vmem:[%s6047_s1 + $0x20] sm:$0xff] }
 0x1b2   :  { %v1520_v34 = vrot.slane %v1496_v5, 2  ;;  %v1849_v25 = vpop.permute.xlu1 %1848  ;;  %v5074_v33 = vmul.f32 %v3005_v36, %v3004_v4  ;;  %v1754_v37 = vadd.f32 %v4840_v17, %v6507_v18  ;;  %v6512_v4 = vrot.slane %v4849_v61, 2 }
 0x1b3   :  { %v2177_v31 = vadd.f32 %v6508_v60, %v2123_v50  ;;  %v1456_v5 = vsel %vm394_vm1, %v1454_v16, %v6509_v27  ;;  %v1564_v35 = vsel %vm504_vm3, %v1562_v3, %v6510_v52  ;;  %v6513_v17 = vrot.slane %v4857_v56, 4 }
 0x1b4   :  { %v1484_v11 = vadd.f32 %v1456_v5, %v1418_v59  ;;  %v1522_v36 = vsel %vm461_vm2, %v1520_v34, %v6512_v4  ;;  %2428 = vrot.lane.b32.xlu1 %v4997_v12, %s3017_s10  ;;  %v1843_v18 = vpop.permute.xlu0 %1842  ;;  %v1230_v3 = vadd.f32 %v4688_v19, %v4226_v20  ;;  %v1826_v26 = vadd.f32 %v4878_v28, %v1754_v37  ;;  %v3006_v28 = vld [vmem:[%s6046_s0 + $0x48] sm:$0xff] }
 0x1b5   :  { %v1618_v50 = vsel %vm559_vm4, %v1616_v7, %v6513_v17  ;;  %v2189_v61 = vsub.f32 %v2177_v31, %v6514_v32  ;;  %1390 = vrot.lane.b32.xlu0 %v4966_v8, %s3017_s10  ;;  %v2296_v16 = vmul.f32 0.2920817, %v4957_v43  ;;  %v5107_v34 = vmul.f32 0.2920817, %v5030_v48 }
 0x1b6   :  { %v1550_v56 = vadd.f32 %v1522_v36, %v1484_v11  ;;  %v1381_v59 = vpop.permute.xlu1 %1380  ;;  %v1874_v10 = vadd.f32 %v4963_v54, %v1826_v26  ;;  %v3007_v11 = vld [vmem:[%s6047_s1 + $0x48] sm:$0xff]  ;;  %v1300_v7 = vadd.f32 %v4804_v45, %v1228_v55  ;;  %v1831_v37 = vadd.f32 %v4940_v30, %v1759_v2  ;;  %v6515_v2 = vld [vmem:[#allocation52_spill] sm:$0xff] }
 0x1b7   :  { %v2813_v20 = vadd.f32 %v2189_v61, %v1661_v39  ;;  %v1411_v19 = vadd.f32 %v1381_v59, %v1351_v6  ;;  %v5119_v31 = vmul.f32 %v3007_v11, %v3006_v28  ;;  %v5126_v39 = vmul.f32 0.23388076, %v5074_v33 }
 0x1b8   :  { %v1592_v29 = vadd.f32 %v1564_v35, %v1550_v56  ;;  %2328 = vrot.lane.b32.xlu1 %v5013_v21, %s3015_s8  ;;  %v1899_v54 = vpop.permute.xlu0 %1898  ;;  %v1761_v60 = vadd.f32 %v1733_v42, %v4596_v40  ;;  %v5134_v45 = vadd.f32 %v4818_v9, %v1230_v3  ;;  %v1756_v35 = vadd.f32 %v4862_v63, %v6515_v2 }
 0x1b9   :  { %v2825_v6 = vadd.f32 0.0009, %v2813_v20  ;;  %v5129_v27 = vmul.f32 0.23388076, %v1411_v19  ;;  %v1934_v5 = vadd.f32 %v1899_v54, %v1874_v10  ;;  %1918 = vrot.lane.b32.xlu0 %v5057_v38, %s3017_s10  ;;  %v5140_v30 = vmul.f32 0.2920817, %v1411_v19 }
 0x1ba   :  { %v5138_v21 = vadd.f32 %v1618_v50, %v1592_v29  ;;  %v1805_v55 = vpop.permute.xlu1 %1804  ;;  %v1348_v40 = vadd.f32 %v4994_v53, %v1300_v7  ;;  %v5146_v42 = vmul.f32 0.120078385, %v1411_v19  ;;  %v1879_v36 = vadd.f32 %v1849_v25, %v1831_v37 }
 0x1bb   :  { %v5143_v52 = vmul.f32 %v2825_v6, %v5039_v44  ;;  %v1461_v4 = vrot.slane %v5129_v27, 1  ;;  %v1527_v63 = vrot.slane %v5140_v30, 2  ;;  %v1958_v17 = vmul.f32 0.23388076, %v1934_v5 }
 0x1bc   :  { %v1658_v9 = vsub.f32 %v5138_v21, %v4425_v57  ;;  %2432 = vrot.lane.b32.xlu1 %v5044_v22, %s3017_s10  ;;  %v1375_v50 = vpop.permute.xlu0 %1374  ;;  %v1946_v53 = vmul.f32 0.120078385, %v1934_v5  ;;  %v2024_v3 = vmul.f32 0.2920817, %v1934_v5  ;;  %v5157_v26 = vadd.f32 %v1805_v55, %v1761_v60 }
 0x1bd   :  { %v1489_v44 = vadd.f32 %v1461_v4, %v5146_v42  ;;  %2322 = vrot.lane.b32.xlu0 %v2296_v16, %s3015_s8  ;;  %v1828_v32 = vadd.f32 %v4926_v23, %v1756_v35  ;;  %v1982_v25 = vrot.slane %v1958_v17, 1  ;;  %v2090_v61 = vrot.slane %v1958_v17, 3 }
 0x1be   :  { %v1408_v56 = vadd.f32 %v1375_v50, %v1348_v40  ;;  %v1909_v59 = vpop.permute.xlu1 %1908  ;;  %v1569_v20 = vrot.slane %v5129_v27, 3  ;;  %v2048_v19 = vrot.slane %v2024_v3, 2  ;;  %v1623_v7 = vrot.slane %v5146_v42, 4  ;;  %v6546_v42 = vld [vmem:[#allocation38_spill] sm:$0xff] }
 0x1bf   :  { %v1555_v10 = vadd.f32 %v1527_v63, %v1489_v44  ;;  %v1939_v28 = vadd.f32 %v1909_v59, %v1879_v36  ;;  %v1876_v11 = vadd.f32 %v1843_v18, %v1828_v32  ;;  %v6516_v37 = vrot.slane %v4915_v49, 1 }
 0x1c0   :  { %v1420_v29 = vmul.f32 0.120078385, %v1408_v56  ;;  %2260 = vrot.lane.b32.xlu1 %v5060_v15, %s3014_s26  ;;  %v5170_v23 = vpop.permute.xlu0 %1798  ;;  %v6517_v60 = vrot.slane %v4915_v49, 3  ;;  %v2144_v5 = vrot.slane %v1946_v53, 4  ;;  %v6518_v2 = vrot.slane %v4917_v13, 2 }
 0x1c1   :  { %v1984_v16 = vsel %vm394_vm1, %v1982_v25, %v6516_v37  ;;  %v1597_v54 = vadd.f32 %v1569_v20, %v1555_v10  ;;  %2366 = vrot.lane.b32.xlu0 %v4909_v62, %s3016_s9  ;;  %v1432_v55 = vmul.f32 0.23388076, %v1408_v56  ;;  %v1498_v40 = vmul.f32 0.2920817, %v1408_v56  ;;  %v6520_v56 = vld [vmem:[#allocation57_spill] sm:$0xff] }
 0x1c2   :  { %v2012_v6 = vadd.f32 %v1984_v16, %v1946_v53  ;;  %v2092_v18 = vsel %vm504_vm3, %v2090_v61, %v6517_v60  ;;  %v2050_v35 = vsel %vm461_vm2, %v2048_v19, %v6518_v2  ;;  %v1619_v36 = vrot.slane %v1420_v29, 4  ;;  %v1325_v17 = vpop.permute.xlu1 %1324 }
 0x1c3   :  { %v5184_v50 = vadd.f32 %v1623_v7, %v1597_v54  ;;  %v5186_v49 = vmul.f32 0.120078385, %v1939_v28  ;;  %v5188_v3 = vmul.f32 0.23388076, %v1939_v28  ;;  %v1457_v53 = vrot.slane %v1432_v55, 1 }
 0x1c4   :  { %v2078_v44 = vadd.f32 %v2050_v35, %v2012_v6  ;;  %v1523_v32 = vrot.slane %v1498_v40, 2  ;;  %v1565_v62 = vrot.slane %v1432_v55, 3  ;;  %v6519_v13 = vrot.slane %v4959_v51, 4  ;;  %2376 = vrot.lane.b32.xlu1 %v4980_v14, %s3016_s9  ;;  %v1903_v61 = vpop.permute.xlu0 %1902 }
 0x1c5   :  { %v1663_v59 = vsub.f32 %v5184_v50, %v6520_v56  ;;  %v6199_v19 = vrot.slane %v5188_v3, 1  ;;  %v5198_v37 = vmul.f32 0.2920817, %v1939_v28  ;;  %2254 = vrot.lane.b32.xlu0 %v5126_v39, %s3014_s26  ;;  %v6521_v16 = vrot.slane %v4921_v58, 4 }
 0x1c6   :  { %v1621_v25 = vsel %vm559_vm4, %v1619_v36, %v6519_v13  ;;  %v2120_v10 = vadd.f32 %v2092_v18, %v2078_v44  ;;  %v6522_v54 = vrot.slane %v4936_v47, 1  ;;  %v6523_v6 = vrot.slane %v4938_v46, 2  ;;  %v5214_v2 = vpop.permute.xlu1 %1736 }
 0x1c7   :  { %v2146_v51 = vsel %vm559_vm4, %v2144_v5, %v6521_v16  ;;  %v6524_v18 = vrot.slane %v4936_v47, 3  ;;  %v2017_v58 = vadd.f32 %v6199_v19, %v5186_v49  ;;  %v6198_v5 = vrot.slane %v5198_v37, 2 }
 0x1c8   :  { %v1459_v14 = vsel %vm394_vm1, %v1457_v53, %v6522_v54  ;;  %v1525_v60 = vsel %vm461_vm2, %v1523_v32, %v6523_v6  ;;  %v2174_v35 = vadd.f32 %v2146_v51, %v2120_v10  ;;  %v6197_v40 = vrot.slane %v5188_v3, 3  ;;  %2332 = vrot.lane.b32.xlu1 %v5107_v34, %s3015_s8  ;;  %v1319_v47 = vpop.permute.xlu0 %1318  ;;  %v6525_v53 = vld [vmem:[#allocation44_spill] sm:$0xff]  ;;  %v6526_v10 = vld [vmem:[#allocation19_spill] sm:$0xff] }
 0x1c9   :  { %v1567_v28 = vsel %vm504_vm3, %v1565_v62, %v6524_v18  ;;  %v1486_v55 = vadd.f32 %v1459_v14, %v1420_v29  ;;  %v1353_v46 = vadd.f32 %v1325_v17, %v5097_v41  ;;  %v1936_v36 = vadd.f32 %v1903_v61, %v1876_v11  ;;  %2370 = vrot.lane.b32.xlu0 %v6526_v10, %s3016_s9  ;;  %v6527_v41 = vld [vmem:[#allocation12_spill] sm:$0xff]  ;;  %v6528_v17 = vld [vmem:[#allocation23_spill] sm:$0xff] }
 0x1ca   :  { %v5225_v44 = vmul.f32 0.120078385, %v4884_v0  ;;  %v2186_v29 = vsub.f32 %v2174_v35, %v6525_v53  ;;  %v2083_v62 = vadd.f32 %v6198_v5, %v2017_v58  ;;  %v5231_v13 = vadd.f32 %v1319_v47, %v5134_v45  ;;  %v6529_v34 = vld [vmem:[#allocation36_spill] sm:$0xff]  ;;  %v1853_v51 = vpop.permute.xlu1 %1852 }
 0x1cb   :  { %v1552_v32 = vadd.f32 %v1525_v60, %v1486_v55  ;;  %v2798_v11 = vadd.f32 0.0001, %v6527_v41  ;;  %v1235_v61 = vadd.f32 %v6529_v34, %v6528_v17  ;;  %v1960_v16 = vmul.f32 0.23388076, %v1936_v36  ;;  %v3010_v41 = vld [vmem:[%s6046_s0 + $0x58] sm:$0xff]  ;;  %v6532_v17 = vld [vmem:[#allocation10_spill] sm:$0xff] }
 0x1cc   :  { %v2026_v0 = vmul.f32 0.2920817, %v1936_v36  ;;  %v2810_v54 = vadd.f32 %v2186_v29, %v1658_v9  ;;  %v2125_v45 = vadd.f32 %v6197_v40, %v2083_v62  ;;  %v2151_v6 = vrot.slane %v5186_v49, 4  ;;  %2436 = vrot.lane.b32.xlu1 %v5110_v1, %s3017_s10  ;;  %v1731_v55 = vpop.permute.xlu0 %1730  ;;  %v6530_v9 = vld [vmem:[#allocation9_spill] sm:$0xff]  ;;  %v3008_v62 = vld [vmem:[%s6046_s0 + $0x30] sm:$0xff] }
 0x1cd   :  { %v1594_v14 = vadd.f32 %v1567_v28, %v1552_v32  ;;  %v1948_v60 = vmul.f32 0.120078385, %v1936_v36  ;;  %v1985_v18 = vrot.slane %v1960_v16, 1  ;;  %v5247_v58 = vmul.f32 0.23388076, %v5119_v31  ;;  %2426 = vrot.lane.b32.xlu0 %v5225_v44, %s3017_s10 }
 0x1ce   :  { %v2051_v35 = vrot.slane %v2026_v0, 2  ;;  %v2822_v47 = vadd.f32 0.0009, %v2810_v54  ;;  %v2179_v57 = vadd.f32 %v2151_v6, %v2125_v45  ;;  %v2298_v21 = vmul.f32 0.2920817, %v5074_v33  ;;  %v1281_v32 = vpop.permute.xlu1 %1280 }
 0x1cf   :  { %v5249_v53 = vadd.f32 %v1621_v25, %v1594_v14  ;;  %v6531_v28 = vrot.slane %v6530_v9, 1  ;;  %v2093_v29 = vrot.slane %v1960_v16, 3  ;;  %v3009_v25 = vld [vmem:[%s6047_s1 + $0x30] sm:$0xff]  ;;  %v5271_v34 = vmul.f32 %v3010_v41, %v6532_v17  ;;  %v6533_v16 = vld [vmem:[#allocation11_spill] sm:$0xff]  ;;  %v6534_v14 = vld [vmem:[#allocation61_spill] sm:$0xff] }
 0x1d0   :  { %v5265_v10 = vmul.f32 %v3009_v25, %v3008_v62  ;;  %v5273_v0 = vmul.f32 %v2822_v47, %v2798_v11  ;;  %v2191_v45 = vsub.f32 %v2179_v57, %v6534_v14  ;;  %v2147_v25 = vrot.slane %v1948_v60, 4  ;;  %2264 = vrot.lane.b32.xlu1 %v5247_v58, %s3014_s26  ;;  %v1847_v11 = vpop.permute.xlu0 %1846  ;;  %v6537_v47 = vld [vmem:[#allocation63_spill] sm:$0xff] }
 0x1d1   :  { %v1987_v36 = vsel %vm394_vm1, %v1985_v18, %v6531_v28  ;;  %v1660_v54 = vsub.f32 %v5249_v53, %v6533_v16  ;;  %v6535_v28 = vld [vmem:[#allocation48_spill] sm:$0xff]  ;;  %v1881_v5 = vadd.f32 %v1853_v51, %v5157_v26  ;;  %v5282_v19 = vadd.f32 %v1281_v32, %v1235_v61  ;;  %2326 = vrot.lane.b32.xlu0 %v2298_v21, %s3015_s8  ;;  %v6540_v51 = vld [vmem:[#allocation25_spill] sm:$0xff] }
 0x1d2   :  { %v2014_v18 = vadd.f32 %v1987_v36, %v1948_v60  ;;  %v6536_v40 = vrot.slane %v6535_v28, 2  ;;  %v2803_v41 = vadd.f32 0.0001, %v6537_v47  ;;  %v2815_v53 = vadd.f32 %v2191_v45, %v1663_v59  ;;  %v6538_v60 = vld [vmem:[#allocation22_spill] sm:$0xff]  ;;  %v6539_v61 = vld [vmem:[#allocation20_spill] sm:$0xff]  ;;  %v1385_v17 = vpop.permute.xlu1 %1384  ;;  %v6543_v28 = vld [vmem:[#allocation75_spill] sm:$0xff] }
 0x1d3   :  { %v2800_v26 = vadd.f32 0.0001, %v6538_v60  ;;  %v6541_v36 = vrot.slane %v6530_v9, 3  ;;  %v2303_v16 = vmul.f32 0.2920817, %v5119_v31  ;;  %v1413_v59 = vadd.f32 %v1385_v17, %v1353_v46 }
 0x1d4   :  { %v2053_v62 = vsel %vm461_vm2, %v2051_v35, %v6536_v40  ;;  %v5292_v40 = vmul.f32 0.120078385, %v4957_v43  ;;  %v1758_v35 = vadd.f32 %v6540_v51, %v6539_v61  ;;  %v2827_v50 = vadd.f32 0.0009, %v2815_v53  ;;  %2380 = vrot.lane.b32.xlu1 %v5060_v15, %s3016_s9  ;;  %v1379_v9 = vpop.permute.xlu0 %1378 }
 0x1d5   :  { %v2080_v57 = vadd.f32 %v2053_v62, %v2014_v18  ;;  %v2095_v32 = vsel %vm504_vm3, %v2093_v29, %v6541_v36  ;;  %v5302_v21 = vmul.f32 0.120078385, %v5030_v48  ;;  %v6542_v14 = vrot.slane %v5016_v24, 4  ;;  %v6544_v24 = vld [vmem:[#allocation73_spill] sm:$0xff] }
 0x1d6   :  { %v1830_v43 = vadd.f32 %v5170_v23, %v1758_v35  ;;  %v5311_v29 = vmul.f32 0.23388076, %v5265_v10  ;;  %v5314_v18 = vmul.f32 0.23388076, %v5271_v34  ;;  %v5316_v46 = vmul.f32 %v2827_v50, %v2803_v41  ;;  %2430 = vrot.lane.b32.xlu0 %v5292_v40, %s3017_s10  ;;  %v1809_v53 = vpop.permute.xlu1 %1808  ;;  %v6545_v41 = vld [vmem:[#allocation55_spill] sm:$0xff] }
 0x1d7   :  { %v2122_v56 = vadd.f32 %v2095_v32, %v2080_v57  ;;  %v2149_v45 = vsel %vm559_vm4, %v2147_v25, %v6542_v14  ;;  %v1763_v23 = vadd.f32 %v5214_v2, %v6543_v28  ;;  %v5320_v62 = vmul.f32 0.23388076, %v1413_v59 }
 0x1d8   :  { %v1760_v15 = vadd.f32 %v1731_v55, %v6544_v24  ;;  %v5325_v25 = vmul.f32 0.2920817, %v1413_v59  ;;  %v1410_v47 = vadd.f32 %v1379_v9, %v5231_v13  ;;  %v2300_v57 = vmul.f32 0.2920817, %v5265_v10  ;;  %2336 = vrot.lane.b32.xlu1 %v2303_v16, %s3015_s8  ;;  %v1803_v17 = vpop.permute.xlu0 %1802 }
 0x1d9   :  { %v2176_v48 = vadd.f32 %v2149_v45, %v2122_v56  ;;  %v1878_v61 = vadd.f32 %v1847_v11, %v1830_v43  ;;  %v5330_v51 = vmul.f32 0.120078385, %v1413_v59  ;;  %v1464_v2 = vrot.slane %v5320_v62, 1 }
 0x1da   :  { %v1530_v35 = vrot.slane %v5325_v25, 2  ;;  %v1572_v36 = vrot.slane %v5320_v62, 3  ;;  %v1422_v32 = vmul.f32 0.120078385, %v1410_v47  ;;  %v1434_v55 = vmul.f32 0.23388076, %v1410_v47  ;;  %2258 = vrot.lane.b32.xlu0 %v5311_v29, %s3014_s26  ;;  %v1913_v9 = vpop.permute.xlu1 %1912 }
 0x1db   :  { %v2188_v60 = vsub.f32 %v2176_v48, %v6545_v41  ;;  %v1491_v50 = vadd.f32 %v1464_v2, %v5330_v51  ;;  %v1500_v56 = vmul.f32 0.2920817, %v1410_v47  ;;  %v5339_v11 = vadd.f32 %v1809_v53, %v1763_v23 }
 0x1dc   :  { %v1460_v59 = vrot.slane %v1434_v55, 1  ;;  %v1568_v43 = vrot.slane %v1434_v55, 3  ;;  %v1622_v14 = vrot.slane %v1422_v32, 4  ;;  %v5343_v45 = vadd.f32 %v1803_v17, %v1760_v15  ;;  %2440 = vrot.lane.b32.xlu1 %v5302_v21, %s3017_s10  ;;  %v1907_v53 = vpop.permute.xlu0 %1906 }
 0x1dd   :  { %v2812_v13 = vadd.f32 %v2188_v60, %v1660_v54  ;;  %v1557_v54 = vadd.f32 %v1530_v35, %v1491_v50  ;;  %v1526_v16 = vrot.slane %v1500_v56, 2  ;;  %v1941_v28 = vadd.f32 %v1913_v9, %v1881_v5  ;;  %v6548_v56 = vld [vmem:[#allocation43_spill] sm:$0xff]  ;;  %v6549_v9 = vld [vmem:[#allocation14_spill] sm:$0xff] }
 0x1de   :  { %v1626_v24 = vrot.slane %v5330_v51, 4  ;;  %v1462_v23 = vsel %vm394_vm1, %v1460_v59, %v1461_v4  ;;  %v1570_v47 = vsel %vm504_vm3, %v1568_v43, %v1569_v20  ;;  %v1624_v15 = vsel %vm559_vm4, %v1622_v14, %v1623_v7  ;;  %2374 = vrot.lane.b32.xlu0 %v5126_v39, %s3016_s9  ;;  %v6547_v4 = vld [vmem:[#allocation66_spill] sm:$0xff]  ;;  %v1329_v17 = vpop.permute.xlu1 %1328 }
 0x1df   :  { %v2824_v48 = vadd.f32 0.0009, %v2812_v13  ;;  %v1599_v5 = vadd.f32 %v1572_v36, %v1557_v54  ;;  %v1488_v60 = vadd.f32 %v1462_v23, %v1422_v32  ;;  %v1528_v27 = vsel %vm461_vm2, %v1526_v16, %v1527_v63  ;;  %v3011_v39 = vld [vmem:[%s6046_s0 + $0x40] sm:$0xff] }
 0x1e0   :  { %v1232_v20 = vadd.f32 %v6547_v4, %v6546_v42  ;;  %v5370_v7 = vmul.f32 0.23388076, %v1941_v28  ;;  %v5372_v55 = vmul.f32 0.2920817, %v1941_v28  ;;  %v5377_v30 = vmul.f32 0.120078385, %v5074_v33  ;;  %2268 = vrot.lane.b32.xlu1 %v5314_v18, %s3014_s26  ;;  %v1323_v33 = vpop.permute.xlu0 %1322 }
 0x1e1   :  { %v5359_v41 = vmul.f32 %v2824_v48, %v2800_v26  ;;  %v1938_v26 = vadd.f32 %v1907_v53, %v1878_v61  ;;  %v1653_v13 = vadd.f32 %v1626_v24, %v1599_v5  ;;  %v1554_v32 = vadd.f32 %v1528_v27, %v1488_v60  ;;  %v3012_v63 = vld [vmem:[%s6047_s1 + $0x40] sm:$0xff] }
 0x1e2   :  { %v5385_v50 = vmul.f32 %v3012_v63, %v3011_v39  ;;  %v1304_v61 = vadd.f32 %v6548_v56, %v1232_v20  ;;  %v5388_v59 = vmul.f32 0.120078385, %v1941_v28  ;;  %v1992_v43 = vrot.slane %v5370_v7, 1  ;;  %2330 = vrot.lane.b32.xlu0 %v2300_v57, %s3015_s8  ;;  %v1741_v27 = vpop.permute.xlu1 %1740  ;;  %v6550_v56 = vld [vmem:[#allocation47_spill] sm:$0xff] }
 0x1e3   :  { %v2305_v14 = vmul.f32 0.2920817, %v5271_v34  ;;  %v1665_v48 = vsub.f32 %v1653_v13, %v6549_v9  ;;  %v1596_v54 = vadd.f32 %v1570_v47, %v1554_v32  ;;  %v2058_v16 = vrot.slane %v5372_v55, 2 }
 0x1e4   :  { %v1950_v23 = vmul.f32 0.120078385, %v1938_v26  ;;  %v2019_v28 = vadd.f32 %v1992_v43, %v5388_v59  ;;  %v1962_v53 = vmul.f32 0.23388076, %v1938_v26  ;;  %v2028_v5 = vmul.f32 0.2920817, %v1938_v26  ;;  %2384 = vrot.lane.b32.xlu1 %v5247_v58, %s3016_s9  ;;  %v1735_v63 = vpop.permute.xlu0 %1734 }
 0x1e5   :  { %v1355_v60 = vadd.f32 %v1329_v17, %v5282_v19  ;;  %v1650_v42 = vadd.f32 %v1624_v15, %v1596_v54  ;;  %v2100_v4 = vrot.slane %v5370_v7, 3  ;;  %v1352_v13 = vadd.f32 %v1323_v33, %v1304_v61 }
 0x1e6   :  { %v2150_v20 = vrot.slane %v1950_v23, 4  ;;  %v2085_v47 = vadd.f32 %v2058_v16, %v2019_v28  ;;  %v1988_v32 = vrot.slane %v1962_v53, 1  ;;  %v2054_v39 = vrot.slane %v2028_v5, 2  ;;  %2434 = vrot.lane.b32.xlu0 %v5377_v30, %s3017_s10  ;;  %v1857_v28 = vpop.permute.xlu1 %1856 }
 0x1e7   :  { %v2096_v57 = vrot.slane %v1962_v53, 3  ;;  %v1662_v26 = vsub.f32 %v1650_v42, %v6550_v56  ;;  %v2154_v19 = vrot.slane %v5388_v59, 4  ;;  %v5414_v17 = vmul.f32 0.23388076, %v5385_v50 }
 0x1e8   :  { %v2152_v15 = vsel %vm559_vm4, %v2150_v20, %v2151_v6  ;;  %v2127_v61 = vadd.f32 %v2100_v4, %v2085_v47  ;;  %v6551_v58 = vrot.slane %v5188_v3, 1  ;;  %v6552_v9 = vrot.slane %v5198_v37, 2  ;;  %2340 = vrot.lane.b32.xlu1 %v2305_v14, %s3015_s8  ;;  %v1851_v20 = vpop.permute.xlu0 %1850  ;;  %v6554_v37 = vld [vmem:[#allocation41_spill] sm:$0xff] }
 0x1e9   :  { %v6553_v49 = vrot.slane %v5188_v3, 3  ;;  %v5428_v5 = vadd.f32 %v1857_v28, %v5339_v11  ;;  %v5434_v47 = vmul.f32 0.120078385, %v5119_v31  ;;  %v6556_v11 = vld [vmem:[#allocation27_spill] sm:$0xff]  ;;  %v2302_v28 = vmul.f32 0.2920817, %v5385_v50 }
 0x1ea   :  { %v1990_v33 = vsel %vm394_vm1, %v1988_v32, %v6551_v58  ;;  %v2056_v54 = vsel %vm461_vm2, %v2054_v39, %v6552_v9  ;;  %v2181_v42 = vadd.f32 %v2154_v19, %v2127_v61  ;;  %v6555_v32 = vld [vmem:[#allocation40_spill] sm:$0xff]  ;;  %2262 = vrot.lane.b32.xlu0 %v5414_v17, %s3014_s26  ;;  %v1285_v56 = vpop.permute.xlu1 %1284  ;;  %v6557_v61 = vld [vmem:[#allocation18_spill] sm:$0xff]  ;;  %v5531_v25 = vmul.f32 0.120078385, %v5385_v50 }
 0x1eb   :  { %v2098_v6 = vsel %vm504_vm3, %v2096_v57, %v6553_v49  ;;  %v2016_v53 = vadd.f32 %v1990_v33, %v1950_v23  ;;  %v1237_v39 = vadd.f32 %v6555_v32, %v6554_v37  ;;  %v5439_v57 = vadd.f32 %v1851_v20, %v5343_v45  ;;  %v6558_v58 = vld [vmem:[#allocation70_spill] sm:$0xff] }
 0x1ec   :  { %v2193_v23 = vsub.f32 %v2181_v42, %v6556_v11  ;;  %v1234_v14 = vadd.f32 %v6558_v58, %v6557_v61  ;;  %2444 = vrot.lane.b32.xlu1 %v5434_v47, %s3017_s10  ;;  %v5469_v61 = vmul.f32 0.120078385, %v5271_v34  ;;  %v6564_v34 = vld [vmem:[#allocation34_spill] sm:$0xff] }
 0x1ed   :  { %v2082_v3 = vadd.f32 %v2056_v54, %v2016_v53  ;;  %v5446_v9 = vadd.f32 %v1285_v56, %v1237_v39  ;;  %v1279_v54 = vpop.permute.xlu0 %1278  ;;  %v6559_v53 = vld [vmem:[#allocation31_spill] sm:$0xff]  ;;  %v6561_v39 = vld [vmem:[#allocation2_spill] sm:$0xff] }
 0x1ee   :  { %v2817_v31 = vadd.f32 %v2193_v23, %v1665_v48  ;;  %v5450_v45 = vadd.f32 %v1279_v54, %v1234_v14  ;;  %2378 = vrot.lane.b32.xlu0 %v5311_v29, %s3016_s9  ;;  %v2805_v42 = vadd.f32 0.0001, %v6559_v53  ;;  %v1389_v37 = vpop.permute.xlu1 %1388  ;;  %v3013_v48 = vld [vmem:[%s6046_s0 + $0x50] sm:$0xff]  ;;  %v6562_v23 = vld [vmem:[#allocation45_spill] sm:$0xff] }
 0x1ef   :  { %v2124_v33 = vadd.f32 %v2098_v6, %v2082_v3  ;;  %v6560_v6 = vld [vmem:[#allocation77_spill] sm:$0xff]  ;;  %v1415_v3 = vadd.f32 %v1389_v37, %v1355_v60  ;;  %v1765_v29 = vadd.f32 %v1741_v27, %v6562_v23  ;;  %v5477_v60 = vmul.f32 0.120078385, %v5265_v10 }
 0x1f0   :  { %v2829_v20 = vadd.f32 0.0009, %v2817_v31  ;;  %v5460_v32 = vmul.f32 %v3013_v48, %v6560_v6  ;;  %2388 = vrot.lane.b32.xlu1 %v5314_v18, %s3016_s9  ;;  %v6563_v31 = vld [vmem:[#allocation4_spill] sm:$0xff] }
 0x1f1   :  { %v2178_v49 = vadd.f32 %v2152_v15, %v2124_v33  ;;  %v1383_v56 = vpop.permute.xlu0 %1382  ;;  %v5471_v14 = vmul.f32 0.23388076, %v1415_v3  ;;  %v5473_v33 = vmul.f32 0.2920817, %v1415_v3  ;;  %v2802_v54 = vadd.f32 0.0001, %v6563_v31 }
 0x1f2   :  { %v5463_v11 = vmul.f32 %v2829_v20, %v2805_v42  ;;  %2334 = vrot.lane.b32.xlu0 %v2302_v28, %s3015_s8  ;;  %v1412_v27 = vadd.f32 %v1383_v56, %v1352_v13  ;;  %v5481_v18 = vmul.f32 0.23388076, %v5460_v32  ;;  %v1762_v42 = vadd.f32 %v1735_v63, %v6564_v34 }
 0x1f3   :  { %v2190_v15 = vsub.f32 %v2178_v49, %v6561_v39  ;;  %v1813_v49 = vpop.permute.xlu1 %1812  ;;  %v1467_v20 = vrot.slane %v5471_v14, 1  ;;  %v6203_v37 = vrot.slane %v5473_v33, 2  ;;  %v6201_v31 = vrot.slane %v5471_v14, 3 }
 0x1f4   :  { %v1424_v28 = vmul.f32 0.120078385, %v1412_v27  ;;  %v1436_v48 = vmul.f32 0.23388076, %v1412_v27  ;;  %v5488_v10 = vadd.f32 %v1813_v49, %v1765_v29  ;;  %2448 = vrot.lane.b32.xlu1 %v5469_v61, %s3017_s10  ;;  %v1502_v39 = vmul.f32 0.2920817, %v1412_v27 }
 0x1f5   :  { %v2814_v58 = vadd.f32 %v2190_v15, %v1662_v26  ;;  %v5484_v26 = vmul.f32 0.120078385, %v1415_v3  ;;  %v1807_v13 = vpop.permute.xlu0 %1806 }
 0x1f6   :  { %v5497_v15 = vadd.f32 %v1807_v13, %v1762_v42  ;;  %2438 = vrot.lane.b32.xlu0 %v5477_v60, %s3017_s10  ;;  %v1463_v3 = vrot.slane %v1436_v48, 1  ;;  %v1571_v23 = vrot.slane %v1436_v48, 3  ;;  %v1625_v29 = vrot.slane %v1424_v28, 4 }
 0x1f7   :  { %v2826_v53 = vadd.f32 0.0009, %v2814_v58  ;;  %v1493_v63 = vadd.f32 %v1467_v20, %v5484_v26  ;;  %v1917_v56 = vpop.permute.xlu1 %1916  ;;  %v6200_v13 = vrot.slane %v5484_v26, 4 }
 0x1f8   :  { %v1943_v49 = vadd.f32 %v1917_v56, %v5428_v5  ;;  %v1465_v27 = vsel %vm394_vm1, %v1463_v3, %v1464_v2  ;;  %v1627_v34 = vsel %vm559_vm4, %v1625_v29, %v1626_v24  ;;  %v6565_v56 = vld [vmem:[#allocation15_spill] sm:$0xff] }
 0x1f9   :  { %v5492_v6 = vmul.f32 %v2826_v53, %v2802_v54  ;;  %v1559_v58 = vadd.f32 %v6203_v37, %v1493_v63  ;;  %v1529_v54 = vrot.slane %v1502_v39, 2  ;;  %v1573_v53 = vsel %vm504_vm3, %v1571_v23, %v1572_v36  ;;  %v1911_v42 = vpop.permute.xlu0 %1910 }
 0x1fa   :  { %v1490_v63 = vadd.f32 %v1465_v27, %v1424_v28  ;;  %2266 = vrot.lane.b32.xlu0 %v5481_v18, %s3014_s26  ;;  %v5522_v62 = vmul.f32 0.23388076, %v1943_v49  ;;  %v5524_v2 = vmul.f32 0.2920817, %v1943_v49  ;;  %v1940_v51 = vadd.f32 %v1911_v42, %v5439_v57 }
 0x1fb   :  { %v1601_v48 = vadd.f32 %v6201_v31, %v1559_v58  ;;  %v1531_v5 = vsel %vm461_vm2, %v1529_v54, %v1530_v35  ;;  %v2249_v36 = vpop.permute.xlu1 %2248  ;;  %v2304_v28 = vmul.f32 0.2920817, %v5460_v32  ;;  %v5533_v35 = vmul.f32 0.120078385, %v1943_v49 }
 0x1fc   :  { %v1556_v39 = vadd.f32 %v1531_v5, %v1490_v63  ;;  %v6202_v3 = vrot.slane %v5522_v62, 1  ;;  %v1952_v23 = vmul.f32 0.120078385, %v1940_v51  ;;  %v1964_v57 = vmul.f32 0.23388076, %v1940_v51 }
 0x1fd   :  { %v1655_v24 = vadd.f32 %v6200_v13, %v1601_v48  ;;  %v1327_v29 = vpop.permute.xlu0 %1326  ;;  %v2030_v27 = vmul.f32 0.2920817, %v1940_v51  ;;  %v2061_v50 = vrot.slane %v5524_v2, 2  ;;  %v2103_v51 = vrot.slane %v5522_v62, 3  ;;  %v6579_v2 = vld [vmem:[#allocation35_spill] sm:$0xff] }
 0x1fe   :  { %v1598_v54 = vadd.f32 %v1573_v53, %v1556_v39  ;;  %2382 = vrot.lane.b32.xlu0 %v5414_v17, %s3016_s9  ;;  %v2021_v42 = vadd.f32 %v6202_v3, %v5533_v35  ;;  %v2153_v49 = vrot.slane %v1952_v23, 4  ;;  %v1354_v48 = vadd.f32 %v1327_v29, %v5450_v45  ;;  %v6566_v3 = vld [vmem:[#allocation32_spill] sm:$0xff] }
 0x1ff   :  { %v1667_v58 = vsub.f32 %v1655_v24, %v6565_v56  ;;  %v1333_v63 = vpop.permute.xlu1 %1332  ;;  %v1991_v13 = vrot.slane %v1964_v57, 1  ;;  %v2057_v31 = vrot.slane %v2030_v27, 2  ;;  %v2099_v24 = vrot.slane %v1964_v57, 3 }
 0x200   :  { %v1652_v5 = vadd.f32 %v1627_v34, %v1598_v54  ;;  %v2087_v53 = vadd.f32 %v2061_v50, %v2021_v42  ;;  %v2155_v17 = vsel %vm559_vm4, %v2153_v49, %v2154_v19  ;;  %v1357_v39 = vadd.f32 %v1333_v63, %v5446_v9 }
 0x201   :  { %v1739_v56 = vpop.permute.xlu0 %1738  ;;  %v1993_v45 = vsel %vm394_vm1, %v1991_v13, %v1992_v43  ;;  %v2059_v34 = vsel %vm461_vm2, %v2057_v31, %v2058_v16  ;;  %v2101_v29 = vsel %vm504_vm3, %v2099_v24, %v2100_v4  ;;  %v2157_v19 = vrot.slane %v5533_v35, 4  ;;  %v6567_v4 = vld [vmem:[#allocation33_spill] sm:$0xff] }
 0x202   :  { %v1664_v37 = vsub.f32 %v1652_v5, %v6566_v3  ;;  %2338 = vrot.lane.b32.xlu0 %v2304_v28, %s3015_s8  ;;  %v2129_v59 = vadd.f32 %v2103_v51, %v2087_v53  ;;  %v2018_v9 = vadd.f32 %v1993_v45, %v1952_v23  ;;  %v6568_v23 = vld [vmem:[#allocation72_spill] sm:$0xff]  ;;  %v6569_v5 = vld [vmem:[#allocation30_spill] sm:$0xff]  ;;  %v6570_v45 = vld [vmem:[#allocation39_spill] sm:$0xff] }
 0x203   :  { %v1861_v3 = vpop.permute.xlu1 %1860  ;;  %v1236_v57 = vadd.f32 %v6568_v23, %v4966_v8  ;;  %v2807_v24 = vadd.f32 0.0001, %v6569_v5 }
 0x204   :  { %v1885_v54 = vadd.f32 %v1861_v3, %v5488_v10  ;;  %v2183_v55 = vadd.f32 %v2157_v19, %v2129_v59  ;;  %v2084_v43 = vadd.f32 %v2059_v34, %v2018_v9  ;;  %v2283_v10 = vadd.f32 %v2249_v36, %v4997_v12 }
 0x205   :  { %v1855_v16 = vpop.permute.xlu0 %1854 }
 0x206   :  { %v1882_v7 = vadd.f32 %v1855_v16, %v5497_v15  ;;  %2442 = vrot.lane.b32.xlu0 %v5531_v25, %s3017_s10  ;;  %v2195_v31 = vsub.f32 %v2183_v55, %v6567_v4  ;;  %v2126_v13 = vadd.f32 %v2101_v29, %v2084_v43  ;;  %v5582_v15 = vmul.f32 0.120078385, %v5460_v32 }
 0x207   :  { %v5572_v28 = vpop.permute.xlu1 %2252 }
 0x208   :  { %v2819_v27 = vadd.f32 %v2195_v31, %v1667_v58  ;;  %v2180_v42 = vadd.f32 %v2155_v17, %v2126_v13 }
 0x209   :  { %v1283_v49 = vpop.permute.xlu0 %1282 }
 0x20a   :  { %v5577_v63 = vadd.f32 %v1283_v49, %v1236_v57  ;;  %2386 = vrot.lane.b32.xlu0 %v5481_v18, %s3016_s9  ;;  %v2831_v53 = vadd.f32 0.0009, %v2819_v27  ;;  %v2192_v34 = vsub.f32 %v2180_v42, %v6570_v45  ;;  %v6571_v18 = vld [vmem:[#allocation26_spill] sm:$0xff]  ;;  %v6574_v45 = vrot.slane %v5484_v26, 4 }
 0x20b   :  { %v2321_v29 = vpop.permute.xlu1 %2320  ;;  %v2804_v59 = vadd.f32 0.0001, %v6571_v18 }
 0x20c   :  { %v5586_v8 = vadd.f32 %v2321_v29, %v2283_v10  ;;  %v5588_v12 = vmul.f32 %v2831_v53, %v2807_v24  ;;  %v2816_v36 = vadd.f32 %v2192_v34, %v1664_v37  ;;  %v6573_v24 = vrot.slane %v5471_v14, 3 }
 0x20d   :  { %v1387_v58 = vpop.permute.xlu0 %1386 }
 0x20e   :  { %v1414_v17 = vadd.f32 %v1387_v58, %v1354_v48  ;;  %2446 = vrot.lane.b32.xlu0 %v5582_v15, %s3017_s10  ;;  %v2828_v32 = vadd.f32 0.0009, %v2816_v36  ;;  %v1764_v48 = vadd.f32 %v1739_v56, %v5057_v38 }
 0x20f   :  { %v1393_v9 = vpop.permute.xlu1 %1392 }
 0x210   :  { %v1426_v3 = vmul.f32 0.120078385, %v1414_v17  ;;  %v1438_v55 = vmul.f32 0.23388076, %v1414_v17  ;;  %v1504_v43 = vmul.f32 0.2920817, %v1414_v17  ;;  %v1417_v16 = vadd.f32 %v1393_v9, %v1357_v39 }
 0x211   :  { %v5593_v4 = vmul.f32 %v2828_v32, %v2804_v59  ;;  %v1811_v31 = vpop.permute.xlu0 %1810  ;;  %v6572_v39 = vrot.slane %v5473_v33, 2  ;;  %v6575_v33 = vld [vmem:[#allocation53_spill] sm:$0xff] }
 0x212   :  { %v1466_v13 = vrot.slane %v1438_v55, 1  ;;  %v1532_v23 = vrot.slane %v1504_v43, 2  ;;  %v1574_v57 = vrot.slane %v1438_v55, 3  ;;  %v1628_v37 = vrot.slane %v1426_v3, 4 }
 0x213   :  { %v5596_v10 = vmul.f32 0.23388076, %v1417_v16  ;;  %v5598_v27 = vmul.f32 0.2920817, %v1417_v16  ;;  %v1921_v42 = vpop.permute.xlu1 %1920  ;;  %v5612_v34 = vmul.f32 0.120078385, %v1417_v16  ;;  %v1836_v58 = vadd.f32 %v1811_v31, %v1764_v48 }
 0x214   :  { %v1468_v49 = vsel %vm394_vm1, %v1466_v13, %v1467_v20  ;;  %v1534_v5 = vsel %vm461_vm2, %v1532_v23, %v6572_v39  ;;  %v1576_v53 = vsel %vm504_vm3, %v1574_v57, %v6573_v24  ;;  %v1630_v38 = vsel %vm559_vm4, %v1628_v37, %v6574_v45 }
 0x215   :  { %v1492_v56 = vadd.f32 %v1468_v49, %v1426_v3  ;;  %v1470_v29 = vrot.slane %v5596_v10, 1  ;;  %v1915_v36 = vpop.permute.xlu0 %1914  ;;  %v1945_v20 = vadd.f32 %v1921_v42, %v1885_v54  ;;  %2960 = vrcp.f32 %v6575_v33 }
 0x216   :  { %v1942_v17 = vadd.f32 %v1915_v36, %v1882_v7  ;;  %v1536_v26 = vrot.slane %v5598_v27, 2  ;;  %v1578_v32 = vrot.slane %v5596_v10, 3  ;;  %v1632_v31 = vrot.slane %v5612_v34, 4 }
 0x217   :  { %v1558_v18 = vadd.f32 %v1534_v5, %v1492_v56  ;;  %v1495_v14 = vadd.f32 %v1470_v29, %v5612_v34  ;;  %v5620_v59 = vpop.permute.xlu1 %2324  ;;  %v5623_v9 = vmul.f32 0.23388076, %v1945_v20  ;;  %v5625_v3 = vmul.f32 0.2920817, %v1945_v20  ;;  %v6576_v56 = vld [vmem:[#allocation8_spill] sm:$0xff] }
 0x218   :  { %v1954_v7 = vmul.f32 0.120078385, %v1942_v17  ;;  %v1966_v43 = vmul.f32 0.23388076, %v1942_v17  ;;  %v5630_v13 = vmul.f32 0.120078385, %v1945_v20  ;;  %2962 = vrcp.f32 %v5143_v52 }
 0x219   :  { %v1600_v55 = vadd.f32 %v1576_v53, %v1558_v18  ;;  %v1561_v54 = vadd.f32 %v1536_v26, %v1495_v14  ;;  %v2247_v16 = vpop.permute.xlu0 %2246  ;;  %v1998_v23 = vrot.slane %v5623_v9, 1  ;;  %v6206_v57 = vrot.slane %v5625_v3, 2 }
 0x21a   :  { %v1994_v42 = vrot.slane %v1966_v43, 1  ;;  %v2032_v49 = vmul.f32 0.2920817, %v1942_v17  ;;  %v2106_v24 = vrot.slane %v5623_v9, 3  ;;  %v2102_v53 = vrot.slane %v1966_v43, 3 }
 0x21b   :  { %v1654_v37 = vadd.f32 %v1630_v38, %v1600_v55  ;;  %v1603_v48 = vadd.f32 %v1578_v32, %v1561_v54  ;;  %v2369_v39 = vpop.permute.xlu1 %2368  ;;  %v2023_v5 = vadd.f32 %v1998_v23, %v5630_v13  ;;  %v2156_v45 = vrot.slane %v1954_v7, 4 }
 0x21c   :  { %v6577_v38 = vrot.slane %v5522_v62, 1  ;;  %v2060_v14 = vrot.slane %v2032_v49, 2  ;;  %v2104_v43 = vsel %vm504_vm3, %v2102_v53, %v2103_v51  ;;  %v2160_v62 = vrot.slane %v5630_v13, 4 }
 0x21d   :  { %v1666_v36 = vsub.f32 %v1654_v37, %v6576_v56  ;;  %v1657_v20 = vadd.f32 %v1632_v31, %v1603_v48  ;;  %v1331_v17 = vpop.permute.xlu0 %1330  ;;  %v2089_v55 = vadd.f32 %v6206_v57, %v2023_v5  ;;  %v2158_v37 = vsel %vm559_vm4, %v2156_v45, %v2157_v19  ;;  %v6578_v56 = vld [vmem:[#allocation64_spill] sm:$0xff] }
 0x21e   :  { %v1996_v18 = vsel %vm394_vm1, %v1994_v42, %v6577_v38  ;;  %v2062_v42 = vsel %vm461_vm2, %v2060_v14, %v2061_v50  ;;  %v1356_v49 = vadd.f32 %v1331_v17, %v5577_v63  ;;  %v6580_v17 = vld [vmem:[#allocation67_spill] sm:$0xff]  ;;  %2964 = vrcp.f32 %v5273_v0 }
 0x21f   :  { %v2020_v54 = vadd.f32 %v1996_v18, %v1954_v7  ;;  %v1669_v48 = vsub.f32 %v1657_v20, %v6578_v56  ;;  %v2257_v38 = vpop.permute.xlu1 %2256  ;;  %v2131_v7 = vadd.f32 %v2106_v24, %v2089_v55  ;;  %2966 = vrcp.f32 %v5316_v46 }
 0x220   :  { %2968 = vrcp.f32 %v5359_v41 }
 0x221   :  { %v2086_v5 = vadd.f32 %v2062_v42, %v2020_v54  ;;  %v1859_v51 = vpop.permute.xlu0 %1858  ;;  %v2185_v35 = vadd.f32 %v2160_v62, %v2131_v7  ;;  %v2403_v54 = vadd.f32 %v2369_v39, %v5586_v8  ;;  %2970 = vrcp.f32 %v5463_v11 }
 0x222   :  { %v1884_v53 = vadd.f32 %v1859_v51, %v1836_v58  ;;  %v2961_v20 = vpop.eup %2960  ;;  %v6581_v51 = vld [vmem:[#allocation6_spill] sm:$0xff]  ;;  %2972 = vrcp.f32 %v5492_v6 }
 0x223   :  { %v2128_v19 = vadd.f32 %v2104_v43, %v2086_v5  ;;  %v2373_v45 = vpop.permute.xlu1 %2372  ;;  %v2197_v18 = vsub.f32 %v2185_v35, %v6579_v2  ;;  %v2859_v56 = vmul.f32 %v2961_v20, %v6575_v33  ;;  %v2285_v43 = vadd.f32 %v5572_v28, %v5044_v22 }
 0x224   :  { %v2282_v5 = vadd.f32 %v2247_v16, %v5225_v44  ;;  %v2727_v35 = vmul.f32 2.0, %v6581_v51  ;;  %2974 = vrcp.f32 %v5588_v12 }
 0x225   :  { %v2182_v50 = vadd.f32 %v2158_v37, %v2128_v19  ;;  %v5665_v14 = vpop.permute.xlu0 %2250  ;;  %v2821_v63 = vadd.f32 %v2197_v18, %v1669_v48  ;;  %v6582_v19 = vld [vmem:[#allocation16_spill] sm:$0xff]  ;;  %v6583_v18 = vld [vmem:[#allocation69_spill] sm:$0xff]  ;;  %v2871_v39 = vsub.f32 2.0, %v2859_v56  ;;  %v2357_v22 = vadd.f32 %v5620_v59, %v2285_v43 }
 0x226   :  { %v2809_v2 = vadd.f32 0.0001, %v6582_v19  ;;  %2976 = vrcp.f32 %v5593_v4 }
 0x227   :  { %v2194_v55 = vsub.f32 %v2182_v50, %v6580_v17  ;;  %v2429_v58 = vpop.permute.xlu1 %2428  ;;  %v2833_v42 = vadd.f32 0.0009, %v2821_v63  ;;  %v2806_v50 = vadd.f32 0.0001, %v6583_v18  ;;  %v2287_v18 = vadd.f32 %v2257_v38, %v5110_v1 }
 0x228   :  { %v2463_v37 = vadd.f32 %v2429_v58, %v2403_v54  ;;  %v5691_v58 = vadd.f32 0.0001, %v2727_v35 }
 0x229   :  { %v2818_v7 = vadd.f32 %v2194_v55, %v1666_v36  ;;  %v2319_v48 = vpop.permute.xlu0 %2318  ;;  %v5684_v44 = vmul.f32 %v2833_v42, %v2809_v2  ;;  %v2405_v42 = vadd.f32 %v2373_v45, %v2357_v22 }
 0x22a   :  { %v5677_v8 = vmul.f32 0.23388076, %v2463_v37  ;;  %v5679_v33 = vadd.f32 %v2319_v48, %v2282_v5  ;;  %v5682_v28 = vmul.f32 0.2920817, %v2463_v37  ;;  %v5688_v63 = vmul.f32 0.120078385, %v2463_v37 }
 0x22b   :  { %v2830_v17 = vadd.f32 0.0009, %v2818_v7  ;;  %v2329_v36 = vpop.permute.xlu1 %2328  ;;  %v5699_v5 = vmul.f32 %v2961_v20, %v2871_v39  ;;  %2978 = vrcp.f32 %v5684_v44 }
 0x22c   :  { %v6205_v55 = vrot.slane %v5677_v8, 1  ;;  %v6204_v59 = vrot.slane %v5682_v28, 2  ;;  %v2619_v7 = vrot.slane %v5677_v8, 3 }
 0x22d   :  { %v5686_v16 = vmul.f32 %v2830_v17, %v2806_v50  ;;  %v1391_v54 = vpop.permute.xlu0 %1390 }
 0x22e   :  { %v2541_v56 = vadd.f32 %v6205_v55, %v5688_v63  ;;  %v1416_v43 = vadd.f32 %v1391_v54, %v1356_v49  ;;  %v2673_v49 = vrot.slane %v5688_v63, 4  ;;  %v5708_v54 = vpop.eup %2962 }
 0x22f   :  { %v2433_v37 = vpop.permute.xlu1 %2432  ;;  %v2861_v27 = vmul.f32 %v5708_v54, %v5143_v52  ;;  %2980 = vrcp.f32 %v5686_v16 }
 0x230   :  { %v2607_v19 = vadd.f32 %v6204_v59, %v2541_v56  ;;  %v1428_v35 = vmul.f32 0.120078385, %v1416_v43  ;;  %v1440_v2 = vmul.f32 0.23388076, %v1416_v43  ;;  %v1506_v48 = vmul.f32 0.2920817, %v1416_v43 }
 0x231   :  { %v2465_v50 = vadd.f32 %v2433_v37, %v2405_v42  ;;  %v1919_v17 = vpop.permute.xlu0 %1918 }
 0x232   :  { %v2649_v45 = vadd.f32 %v2619_v7, %v2607_v19  ;;  %v1469_v20 = vrot.slane %v1440_v2, 1  ;;  %v1535_v39 = vrot.slane %v1506_v48, 2  ;;  %v1577_v22 = vrot.slane %v1440_v2, 3 }
 0x233   :  { %v1631_v56 = vrot.slane %v1428_v35, 4  ;;  %v5710_v59 = vmul.f32 0.120078385, %v2465_v50  ;;  %v5712_v43 = vmul.f32 0.23388076, %v2465_v50  ;;  %v1944_v55 = vadd.f32 %v1919_v17, %v1884_v53  ;;  %v5714_v57 = vpop.permute.xlu1 %2260 }
 0x234   :  { %v2703_v1 = vadd.f32 %v2673_v49, %v2649_v45  ;;  %v1471_v38 = vsel %vm394_vm1, %v1469_v20, %v1470_v29  ;;  %v1537_v42 = vsel %vm461_vm2, %v1535_v39, %v1536_v26  ;;  %v1579_v37 = vsel %vm504_vm3, %v1577_v22, %v1578_v32 }
 0x235   :  { %v1494_v19 = vadd.f32 %v1471_v38, %v1428_v35  ;;  %v1633_v53 = vsel %vm559_vm4, %v1631_v56, %v1632_v31  ;;  %v6210_v2 = vrot.slane %v5712_v43, 1  ;;  %v5731_v48 = vmul.f32 0.2920817, %v2465_v50  ;;  %v5733_v17 = vpop.permute.xlu0 %2322 }
 0x236   :  { %v2715_v29 = vsub.f32 %v2703_v1, %v6581_v51  ;;  %v2359_v26 = vadd.f32 %v2329_v36, %v2287_v18  ;;  %v1956_v10 = vmul.f32 0.120078385, %v1944_v55  ;;  %v1968_v31 = vmul.f32 0.23388076, %v1944_v55 }
 0x237   :  { %v1560_v45 = vadd.f32 %v1537_v42, %v1494_v19  ;;  %v2543_v34 = vadd.f32 %v6210_v2, %v5710_v59  ;;  %v6207_v32 = vrot.slane %v5731_v48, 2  ;;  %v2377_v35 = vpop.permute.xlu1 %2376  ;;  %v6209_v20 = vrot.slane %v5712_v43, 3 }
 0x238   :  { %v2751_v50 = vmul.f32 2.0, %v2715_v29  ;;  %v2034_v39 = vmul.f32 0.2920817, %v1944_v55  ;;  %v2159_v22 = vrot.slane %v1956_v10, 4  ;;  %v1997_v51 = vrot.slane %v1968_v31, 1 }
 0x239   :  { %v1602_v56 = vadd.f32 %v1579_v37, %v1560_v45  ;;  %v2609_v52 = vadd.f32 %v6207_v32, %v2543_v34  ;;  %v2105_v36 = vrot.slane %v1968_v31, 3  ;;  %v2367_v18 = vpop.permute.xlu0 %2366  ;;  %v6208_v38 = vrot.slane %v5710_v59, 4  ;;  %v5757_v31 = vpop.eup %2964 }
 0x23a   :  { %v2763_v1 = vadd.f32 0.0009, %v2751_v50  ;;  %v2063_v42 = vrot.slane %v2034_v39, 2  ;;  %v2161_v19 = vsel %vm559_vm4, %v2159_v22, %v2160_v62  ;;  %v1999_v37 = vsel %vm394_vm1, %v1997_v51, %v1998_v23  ;;  %v6585_v22 = vld [vmem:[#allocation59_spill] sm:$0xff] }
 0x23b   :  { %v1656_v29 = vadd.f32 %v1633_v53, %v1602_v56  ;;  %v2651_v55 = vadd.f32 %v6209_v20, %v2609_v52  ;;  %v2107_v45 = vsel %vm504_vm3, %v2105_v36, %v2106_v24  ;;  %v2333_v34 = vpop.permute.xlu1 %2332  ;;  %v2022_v13 = vadd.f32 %v1999_v37, %v1956_v10  ;;  %v6586_v52 = vld [vmem:[#allocation24_spill] sm:$0xff]  ;;  %v5769_v24 = vpop.eup %2966  ;;  %v6588_v37 = vld [vmem:[#allocation65_spill] sm:$0xff] }
 0x23c   :  { %v2775_v50 = vmul.f32 %v2763_v1, %v5691_v58  ;;  %v6584_v62 = vrot.slane %v5625_v3, 2  ;;  %v2407_v39 = vadd.f32 %v2377_v35, %v2359_v26  ;;  %v2729_v56 = vmul.f32 2.0, %v6585_v22 }
 0x23d   :  { %v1668_v32 = vsub.f32 %v1656_v29, %v6586_v52  ;;  %v2705_v9 = vadd.f32 %v6208_v38, %v2651_v55  ;;  %v5767_v23 = vpop.permute.xlu0 %2254  ;;  %v2873_v10 = vsub.f32 2.0, %v2861_v27 }
 0x23e   :  { %v2065_v53 = vsel %vm461_vm2, %v2063_v42, %v6584_v62  ;;  %v5772_v51 = vmul.f32 %v5699_v5, %v2775_v50  ;;  %v2741_v1 = vadd.f32 0.0001, %v2729_v56  ;;  %v6587_v42 = vld [vmem:[#allocation62_spill] sm:$0xff]  ;;  %v2733_v62 = vmul.f32 2.0, %v6588_v37 }
 0x23f   :  { %v2088_v58 = vadd.f32 %v2065_v53, %v2022_v13  ;;  %v2717_v3 = vsub.f32 %v2705_v9, %v6585_v22  ;;  %v2437_v36 = vpop.permute.xlu1 %2436  ;;  %v2731_v29 = vmul.f32 2.0, %v6587_v42  ;;  %v2885_v27 = vmul.f32 %v5708_v54, %v2873_v10  ;;  %v6589_v53 = vld [vmem:[#allocation74_spill] sm:$0xff]  ;;  %v6590_v22 = vld [vmem:[#allocation71_spill] sm:$0xff] }
 0x240   :  { %v2467_v35 = vadd.f32 %v2437_v36, %v2407_v39  ;;  %v2808_v39 = vadd.f32 0.0001, %v6589_v53  ;;  %v2402_v9 = vadd.f32 %v2367_v18, %v5679_v33  ;;  %v2863_v54 = vmul.f32 %v5769_v24, %v5316_v46 }
 0x241   :  { %v2130_v26 = vadd.f32 %v2107_v45, %v2088_v58  ;;  %v2753_v55 = vmul.f32 2.0, %v2717_v3  ;;  %v2371_v52 = vpop.permute.xlu0 %2370  ;;  %v2289_v45 = vadd.f32 %v5714_v57, %v5302_v21  ;;  %v5793_v3 = vmul.f32 %v5757_v31, %v5273_v0 }
 0x242   :  { %v5777_v20 = vmul.f32 0.120078385, %v2467_v35  ;;  %v5779_v2 = vmul.f32 0.23388076, %v2467_v35  ;;  %v5781_v5 = vmul.f32 0.2920817, %v2467_v35  ;;  %v2284_v0 = vadd.f32 %v5665_v14, %v5292_v40 }
 0x243   :  { %v2184_v38 = vadd.f32 %v2161_v19, %v2130_v26  ;;  %v2765_v50 = vadd.f32 0.0009, %v2753_v55  ;;  %v2265_v13 = vpop.permute.xlu1 %2264  ;;  %v2361_v46 = vadd.f32 %v2333_v34, %v2289_v45 }
 0x244   :  { %v2517_v19 = vrot.slane %v5779_v2, 1  ;;  %v2583_v58 = vrot.slane %v5781_v5, 2  ;;  %v2625_v18 = vrot.slane %v5779_v2, 3  ;;  %v2356_v53 = vadd.f32 %v5733_v17, %v2284_v0 }
 0x245   :  { %v2196_v56 = vsub.f32 %v2184_v38, %v6590_v22  ;;  %v2777_v21 = vmul.f32 %v2765_v50, %v2741_v1  ;;  %v2427_v57 = vpop.permute.xlu0 %2426  ;;  %v2875_v50 = vsub.f32 2.0, %v2863_v54  ;;  %v2679_v22 = vrot.slane %v5777_v20, 4 }
 0x246   :  { %v2545_v33 = vadd.f32 %v2517_v19, %v5777_v20  ;;  %v2462_v38 = vadd.f32 %v2427_v57, %v2402_v9  ;;  %v2404_v45 = vadd.f32 %v2371_v52, %v2356_v53  ;;  %v6591_v54 = vrot.slane %v5677_v8, 1 }
 0x247   :  { %v2820_v10 = vadd.f32 %v2196_v56, %v1668_v32  ;;  %v5805_v36 = vmul.f32 %v2885_v27, %v2777_v21  ;;  %v2381_v26 = vpop.permute.xlu1 %2380  ;;  %v2887_v63 = vmul.f32 %v5769_v24, %v2875_v50 }
 0x248   :  { %v2611_v32 = vadd.f32 %v2583_v58, %v2545_v33  ;;  %v2474_v1 = vmul.f32 0.120078385, %v2462_v38  ;;  %v2486_v55 = vmul.f32 0.23388076, %v2462_v38  ;;  %v2552_v56 = vmul.f32 0.2920817, %v2462_v38 }
 0x249   :  { %v2832_v35 = vadd.f32 0.0009, %v2820_v10  ;;  %v5811_v9 = vpop.permute.xlu0 %2326  ;;  %v2409_v57 = vadd.f32 %v2381_v26, %v2361_v46  ;;  %v6592_v46 = vrot.slane %v5682_v28, 2 }
 0x24a   :  { %v2653_v40 = vadd.f32 %v2625_v18, %v2611_v32  ;;  %v2510_v14 = vrot.slane %v2486_v55, 1  ;;  %v2618_v34 = vrot.slane %v2486_v55, 3  ;;  %v2672_v27 = vrot.slane %v2474_v1, 4 }
 0x24b   :  { %v2576_v21 = vrot.slane %v2552_v56, 2  ;;  %v2337_v10 = vpop.permute.xlu1 %2336  ;;  %v5815_v33 = vmul.f32 %v2832_v35, %v2808_v39  ;;  %v2743_v35 = vadd.f32 0.0001, %v2731_v29  ;;  %v5831_v55 = vadd.f32 0.0001, %v2733_v62 }
 0x24c   :  { %v2707_v17 = vadd.f32 %v2679_v22, %v2653_v40  ;;  %v2512_v38 = vsel %vm394_vm1, %v2510_v14, %v6591_v54  ;;  %v2620_v0 = vsel %vm504_vm3, %v2618_v34, %v2619_v7  ;;  %v2674_v52 = vsel %vm559_vm4, %v2672_v27, %v2673_v49  ;;  %v6593_v40 = vld [vmem:[#allocation46_spill] sm:$0xff] }
 0x24d   :  { %v2540_v32 = vadd.f32 %v2512_v38, %v2474_v1  ;;  %v2578_v39 = vsel %vm461_vm2, %v2576_v21, %v6592_v46  ;;  %v2431_v26 = vpop.permute.xlu0 %2430  ;;  %v2726_v8 = vmul.f32 2.0, %v6593_v40  ;;  %v2870_v7 = vsub.f32 2.0, %v5793_v3 }
 0x24e   :  { %v2719_v53 = vsub.f32 %v2707_v17, %v6587_v42  ;;  %v2464_v56 = vadd.f32 %v2431_v26, %v2404_v45  ;;  %v2291_v29 = vadd.f32 %v2265_v13, %v5434_v47  ;;  %v2969_v45 = vpop.eup %2968  ;;  %v6594_v47 = vrot.slane %v5712_v43, 1 }
 0x24f   :  { %v2606_v14 = vadd.f32 %v2578_v39, %v2540_v32  ;;  %v2441_v49 = vpop.permute.xlu1 %2440  ;;  %v2971_v39 = vpop.eup %2970  ;;  %2982 = vrcp.f32 %v5815_v33 }
 0x250   :  { %v2755_v1 = vmul.f32 2.0, %v2719_v53  ;;  %v2476_v34 = vmul.f32 0.120078385, %v2464_v56  ;;  %v2488_v28 = vmul.f32 0.23388076, %v2464_v56  ;;  %v2469_v27 = vadd.f32 %v2441_v49, %v2409_v57 }
 0x251   :  { %v2648_v62 = vadd.f32 %v2620_v0, %v2606_v14  ;;  %v2554_v21 = vmul.f32 0.2920817, %v2464_v56  ;;  %v5839_v42 = vpop.permute.xlu0 %2258  ;;  %v6595_v0 = vrot.slane %v5712_v43, 3  ;;  %v6596_v56 = vrot.slane %v5710_v59, 4 }
 0x252   :  { %v2767_v17 = vadd.f32 0.0009, %v2755_v1  ;;  %v2513_v54 = vrot.slane %v2488_v28, 1  ;;  %v2621_v3 = vrot.slane %v2488_v28, 3  ;;  %v2675_v38 = vrot.slane %v2476_v34, 4 }
 0x253   :  { %v2702_v24 = vadd.f32 %v2674_v52, %v2648_v62  ;;  %v2579_v50 = vrot.slane %v2554_v21, 2  ;;  %v5841_v32 = vmul.f32 0.120078385, %v2469_v27  ;;  %v5843_v46 = vmul.f32 0.23388076, %v2469_v27  ;;  %v2269_v57 = vpop.permute.xlu1 %2268 }
 0x254   :  { %v2779_v26 = vmul.f32 %v2767_v17, %v2743_v35  ;;  %v2515_v13 = vsel %vm394_vm1, %v2513_v54, %v6594_v47  ;;  %v2623_v53 = vsel %vm504_vm3, %v2621_v3, %v6595_v0  ;;  %v2677_v52 = vsel %vm559_vm4, %v2675_v38, %v6596_v56 }
 0x255   :  { %v2714_v14 = vsub.f32 %v2702_v24, %v6593_v40  ;;  %v2542_v49 = vadd.f32 %v2515_v13, %v2476_v34  ;;  %v6597_v1 = vrot.slane %v5731_v48, 2  ;;  %v2520_v35 = vrot.slane %v5843_v46, 1  ;;  %v2375_v62 = vpop.permute.xlu0 %2374  ;;  %v6598_v34 = vld [vmem:[#allocation54_spill] sm:$0xff] }
 0x256   :  { %v2738_v21 = vadd.f32 0.0001, %v2726_v8  ;;  %v2860_v17 = vmul.f32 %v2969_v45, %v5359_v41  ;;  %v5860_v43 = vmul.f32 %v2887_v63, %v2779_v26  ;;  %v5862_v54 = vmul.f32 0.2920817, %v2469_v27 }
 0x257   :  { %v2581_v28 = vsel %vm461_vm2, %v2579_v50, %v6597_v1  ;;  %v2865_v59 = vmul.f32 %v2971_v39, %v5463_v11  ;;  %v2750_v3 = vmul.f32 2.0, %v2714_v14  ;;  %v2547_v48 = vadd.f32 %v2520_v35, %v5841_v32  ;;  %v2385_v40 = vpop.permute.xlu1 %2384 }
 0x258   :  { %v2608_v38 = vadd.f32 %v2581_v28, %v2542_v49  ;;  %v2728_v24 = vmul.f32 2.0, %v6598_v34  ;;  %v2286_v8 = vadd.f32 %v5767_v23, %v5377_v30  ;;  %v2586_v41 = vrot.slane %v5862_v54, 2 }
 0x259   :  { %v2628_v63 = vrot.slane %v5843_v46, 3  ;;  %v2882_v27 = vmul.f32 %v5757_v31, %v2870_v7  ;;  %v2762_v50 = vadd.f32 0.0009, %v2750_v3  ;;  %v2363_v11 = vadd.f32 %v2337_v10, %v2291_v29  ;;  %v5874_v47 = vpop.permute.xlu0 %2330 }
 0x25a   :  { %v2650_v26 = vadd.f32 %v2623_v53, %v2608_v38  ;;  %v2872_v13 = vsub.f32 2.0, %v2860_v17  ;;  %v2358_v0 = vadd.f32 %v5811_v9, %v2286_v8  ;;  %v2613_v56 = vadd.f32 %v2586_v41, %v2547_v48  ;;  %v5885_v17 = vpop.eup %2972 }
 0x25b   :  { %v2682_v14 = vrot.slane %v5841_v32, 4  ;;  %v2877_v30 = vsub.f32 2.0, %v2865_v59  ;;  %v2774_v23 = vmul.f32 %v2762_v50, %v2738_v21  ;;  %v2341_v1 = vpop.permute.xlu1 %2340  ;;  %v2293_v29 = vadd.f32 %v2269_v57, %v5469_v61 }
 0x25c   :  { %v2704_v49 = vadd.f32 %v2677_v52, %v2650_v26  ;;  %v2655_v31 = vadd.f32 %v2628_v63, %v2613_v56  ;;  %v2406_v10 = vadd.f32 %v2375_v62, %v2358_v0  ;;  %v2411_v53 = vadd.f32 %v2385_v40, %v2363_v11 }
 0x25d   :  { %v2894_v7 = vmul.f32 %v2882_v27, %v2774_v23  ;;  %v2435_v28 = vpop.permute.xlu0 %2434  ;;  %v2740_v21 = vadd.f32 0.0001, %v2728_v24  ;;  %v2884_v52 = vmul.f32 %v2969_v45, %v2872_v13  ;;  %v2889_v48 = vmul.f32 %v2971_v39, %v2877_v30 }
 0x25e   :  { %v2716_v9 = vsub.f32 %v2704_v49, %v6598_v34  ;;  %v2709_v59 = vadd.f32 %v2682_v14, %v2655_v31  ;;  %v2466_v3 = vadd.f32 %v2435_v28, %v2406_v10  ;;  %v2909_v40 = vsel %vm2908_vm5, %v5772_v51, 0.0 }
 0x25f   :  { %v2445_v62 = vpop.permute.xlu1 %2444  ;;  %v2907_v8 = vsel %vm2906_vm6, %v2894_v7, 0.0  ;;  %v2365_v45 = vadd.f32 %v2341_v1, %v2293_v29  ;;  %v5902_v51 = vmul.f32 %v5885_v17, %v5492_v6  ;;  %v2288_v7 = vadd.f32 %v5839_v42, %v5477_v60 }
 0x260   :  { %v2752_v38 = vmul.f32 2.0, %v2716_v9  ;;  %v2721_v34 = vsub.f32 %v2709_v59, %v6588_v37  ;;  %v2490_v61 = vmul.f32 0.23388076, %v2466_v3  ;;  %v2556_v57 = vmul.f32 0.2920817, %v2466_v3 }
 0x261   :  { %v2471_v27 = vadd.f32 %v2445_v62, %v2411_v53  ;;  %v5894_v50 = vpop.permute.xlu0 %2262  ;;  %v2910_v11 = vadd.f32 %v2909_v40, %v2907_v8  ;;  %v2478_v13 = vmul.f32 0.120078385, %v2466_v3  ;;  %v2975_v62 = vpop.eup %2974 }
 0x262   :  { %v2764_v24 = vadd.f32 0.0009, %v2752_v38  ;;  %v2757_v26 = vmul.f32 2.0, %v2721_v34  ;;  %v2516_v0 = vrot.slane %v2490_v61, 1  ;;  %v2582_v56 = vrot.slane %v2556_v57, 2 }
 0x263   :  { %v2624_v30 = vrot.slane %v2490_v61, 3  ;;  %v5896_v23 = vmul.f32 0.120078385, %v2471_v27  ;;  %v5898_v37 = vmul.f32 0.23388076, %v2471_v27  ;;  %v2389_v49 = vpop.permute.xlu1 %2388  ;;  %v2913_v61 = vsel %vm2908_vm5, %v5805_v36, 0.0 }
 0x264   :  { %v2776_v39 = vmul.f32 %v2764_v24, %v2740_v21  ;;  %v2769_v1 = vadd.f32 0.0009, %v2757_v26  ;;  %v2518_v31 = vsel %vm394_vm1, %v2516_v0, %v2517_v19  ;;  %v2584_v6 = vsel %vm461_vm2, %v2582_v56, %v2583_v58  ;;  %v6599_v36 = vld [vmem:[#allocation42_spill] sm:$0xff] }
 0x265   :  { %v2544_v9 = vadd.f32 %v2518_v31, %v2478_v13  ;;  %v2523_v29 = vrot.slane %v5898_v37, 1  ;;  %v2379_v53 = vpop.permute.xlu0 %2378  ;;  %v2678_v21 = vrot.slane %v2478_v13, 4  ;;  %v5915_v59 = vmul.f32 0.2920817, %v2471_v27  ;;  %v5945_v13 = vpop.eup %2976  ;;  %v6600_v31 = vld [vmem:[#allocation17_spill] sm:$0xff] }
 0x266   :  { %v2896_v10 = vmul.f32 %v2884_v52, %v2776_v39  ;;  %v2781_v28 = vmul.f32 %v2769_v1, %v5831_v55  ;;  %v2626_v52 = vsel %vm504_vm3, %v2624_v30, %v2625_v18  ;;  %v2413_v42 = vadd.f32 %v2389_v49, %v2365_v45 }
 0x267   :  { %v2610_v19 = vadd.f32 %v2584_v6, %v2544_v9  ;;  %v2549_v60 = vadd.f32 %v2523_v29, %v5896_v23  ;;  %v2449_v3 = vpop.permute.xlu1 %2448  ;;  %v2589_v55 = vrot.slane %v5915_v59, 2  ;;  %v2631_v5 = vrot.slane %v5898_v37, 3 }
 0x268   :  { %v5925_v38 = vmul.f32 %v2889_v48, %v2781_v28  ;;  %v2911_v58 = vsel %vm2906_vm6, %v2896_v10, 0.0  ;;  %v2473_v34 = vadd.f32 %v2449_v3, %v2413_v42  ;;  %v2360_v57 = vadd.f32 %v5874_v47, %v2288_v7  ;;  %v2979_v42 = vpop.eup %2978 }
 0x269   :  { %v2652_v8 = vadd.f32 %v2626_v52, %v2610_v19  ;;  %v5928_v2 = vpop.permute.xlu0 %2334  ;;  %v2912_v18 = vadd.f32 %v2911_v58, %v2910_v11  ;;  %v2680_v40 = vsel %vm559_vm4, %v2678_v21, %v2679_v22  ;;  %v2615_v48 = vadd.f32 %v2589_v55, %v2549_v60 }
 0x26a   :  { %v2685_v24 = vrot.slane %v5896_v23, 4  ;;  %v5939_v27 = vmul.f32 0.120078385, %v2473_v34  ;;  %v5941_v26 = vmul.f32 0.23388076, %v2473_v34  ;;  %v2730_v47 = vmul.f32 2.0, %v6599_v36 }
 0x26b   :  { %v2706_v45 = vadd.f32 %v2680_v40, %v2652_v8  ;;  %v5943_v11 = vmul.f32 0.2920817, %v2473_v34  ;;  %v2657_v20 = vadd.f32 %v2631_v5, %v2615_v48  ;;  %v2408_v22 = vadd.f32 %v2379_v53, %v2360_v57 }
 0x26c   :  { %v2914_v0 = vadd.f32 %v2913_v61, %v2912_v18  ;;  %v2526_v39 = vrot.slane %v5941_v26, 1  ;;  %v2867_v1 = vmul.f32 %v2975_v62, %v5588_v12  ;;  %v2735_v10 = vmul.f32 2.0, %v6600_v31 }
 0x26d   :  { %v2718_v56 = vsub.f32 %v2706_v45, %v6599_v36  ;;  %v2592_v30 = vrot.slane %v5943_v11, 2  ;;  %v2439_v49 = vpop.permute.xlu0 %2438  ;;  %v2711_v7 = vadd.f32 %v2685_v24, %v2657_v20  ;;  %v2874_v28 = vsub.f32 2.0, %v5902_v51 }
 0x26e   :  { %v2468_v9 = vadd.f32 %v2439_v49, %v2408_v22  ;;  %v2551_v53 = vadd.f32 %v2526_v39, %v5939_v27  ;;  %v2634_v21 = vrot.slane %v5941_v26, 3  ;;  %v2742_v19 = vadd.f32 0.0001, %v2730_v47  ;;  %v6601_v49 = vld [vmem:[#allocation37_spill] sm:$0xff] }
 0x26f   :  { %v2754_v6 = vmul.f32 2.0, %v2718_v56  ;;  %v2723_v52 = vsub.f32 %v2711_v7, %v6600_v31  ;;  %v2688_v8 = vrot.slane %v5939_v27, 4  ;;  %v2879_v34 = vsub.f32 2.0, %v2867_v1 }
 0x270   :  { %v2492_v60 = vmul.f32 0.23388076, %v2468_v9  ;;  %v2558_v12 = vmul.f32 0.2920817, %v2468_v9  ;;  %v2617_v58 = vadd.f32 %v2592_v30, %v2551_v53  ;;  %v2480_v61 = vmul.f32 0.120078385, %v2468_v9 }
 0x271   :  { %v2766_v3 = vadd.f32 0.0009, %v2754_v6  ;;  %v2267_v51 = vpop.permute.xlu0 %2266  ;;  %v2759_v18 = vmul.f32 2.0, %v2723_v52  ;;  %v2747_v48 = vadd.f32 0.0001, %v2735_v10  ;;  %v2886_v45 = vmul.f32 %v5885_v17, %v2874_v28 }
 0x272   :  { %v2519_v57 = vrot.slane %v2492_v60, 1  ;;  %v2585_v40 = vrot.slane %v2558_v12, 2  ;;  %v2659_v47 = vadd.f32 %v2634_v21, %v2617_v58  ;;  %v2627_v56 = vrot.slane %v2492_v60, 3 }
 0x273   :  { %v2778_v36 = vmul.f32 %v2766_v3, %v2742_v19  ;;  %v2771_v20 = vadd.f32 0.0009, %v2759_v18  ;;  %v2737_v31 = vmul.f32 2.0, %v6601_v49  ;;  %v2869_v17 = vmul.f32 %v2979_v42, %v5684_v44 }
 0x274   :  { %v2521_v22 = vsel %vm394_vm1, %v2519_v57, %v2520_v35  ;;  %v2713_v7 = vadd.f32 %v2688_v8, %v2659_v47  ;;  %v2587_v28 = vsel %vm461_vm2, %v2585_v40, %v2586_v41  ;;  %v2681_v6 = vrot.slane %v2480_v61, 4 }
 0x275   :  { %v2898_v1 = vmul.f32 %v2886_v45, %v2778_v36  ;;  %v2546_v9 = vadd.f32 %v2521_v22, %v2480_v61  ;;  %v2383_v10 = vpop.permute.xlu0 %2382  ;;  %v2783_v53 = vmul.f32 %v2771_v20, %v2747_v48  ;;  %v2891_v19 = vmul.f32 %v2975_v62, %v2879_v34  ;;  %v6602_v48 = vld [vmem:[#allocation7_spill] sm:$0xff] }
 0x276   :  { %v2725_v35 = vsub.f32 %v2713_v7, %v6601_v49  ;;  %v2290_v12 = vadd.f32 %v5894_v50, %v5531_v25  ;;  %v2629_v3 = vsel %vm504_vm3, %v2627_v56, %v2628_v63  ;;  %v2881_v61 = vsub.f32 2.0, %v2869_v17 }
 0x277   :  { %v2612_v52 = vadd.f32 %v2587_v28, %v2546_v9  ;;  %v2915_v60 = vsel %vm2906_vm6, %v2898_v1, 0.0  ;;  %v5986_v44 = vmul.f32 %v2891_v19, %v2783_v53  ;;  %v2917_v62 = vsel %vm2908_vm5, %v5860_v43, 0.0 }
 0x278   :  { %v2916_v54 = vadd.f32 %v2915_v60, %v2914_v0  ;;  %v2761_v18 = vmul.f32 2.0, %v2725_v35  ;;  %v2362_v34 = vadd.f32 %v5928_v2, %v2290_v12  ;;  %v2683_v25 = vsel %vm559_vm4, %v2681_v6, %v2682_v14 }
 0x279   :  { %v2654_v58 = vadd.f32 %v2629_v3, %v2612_v52  ;;  %v2339_v41 = vpop.permute.xlu0 %2338  ;;  %v2749_v50 = vadd.f32 0.0001, %v2737_v31  ;;  %v2864_v63 = vmul.f32 %v5945_v13, %v5593_v4  ;;  %v2732_v45 = vmul.f32 2.0, %v6602_v48 }
 0x27a   :  { %v2918_v46 = vadd.f32 %v2917_v62, %v2916_v54  ;;  %v2773_v57 = vadd.f32 0.0009, %v2761_v18  ;;  %v2410_v40 = vadd.f32 %v2383_v10, %v2362_v34  ;;  %v2893_v47 = vmul.f32 %v2979_v42, %v2881_v61 }
 0x27b   :  { %v2708_v0 = vadd.f32 %v2683_v25, %v2654_v58  ;;  %v2876_v14 = vsub.f32 2.0, %v2864_v63  ;;  %v2292_v56 = vadd.f32 %v2267_v51, %v5582_v15  ;;  %v2744_v31 = vadd.f32 0.0001, %v2732_v45 }
 0x27c   :  { %v2785_v2 = vmul.f32 %v2773_v57, %v2749_v50  ;;  %v2921_v34 = vsel %vm2908_vm5, %v5925_v38, 0.0  ;;  %v6603_v57 = vld [vmem:[#allocation68_spill] sm:$0xff]  ;;  %v2925_v27 = vsel %vm2908_vm5, %v5986_v44, 0.0 }
 0x27d   :  { %v2720_v43 = vsub.f32 %v2708_v0, %v6602_v48  ;;  %v2443_v36 = vpop.permute.xlu0 %2442  ;;  %v2364_v9 = vadd.f32 %v2339_v41, %v2292_v56  ;;  %v2888_v42 = vmul.f32 %v5945_v13, %v2876_v14  ;;  %v2981_v41 = vpop.eup %2980  ;;  %v2734_v38 = vmul.f32 2.0, %v6603_v57 }
 0x27e   :  { %v2470_v32 = vadd.f32 %v2443_v36, %v2410_v40  ;;  %v5999_v22 = vmul.f32 %v2893_v47, %v2785_v2  ;;  %v2866_v0 = vmul.f32 %v2981_v41, %v5686_v16  ;;  %v2983_v16 = vpop.eup %2982 }
 0x27f   :  { %v2756_v20 = vmul.f32 2.0, %v2720_v43 }
 0x280   :  { %v2494_v4 = vmul.f32 0.23388076, %v2470_v32  ;;  %v2560_v49 = vmul.f32 0.2920817, %v2470_v32  ;;  %v2482_v10 = vmul.f32 0.120078385, %v2470_v32 }
 0x281   :  { %v2768_v1 = vadd.f32 0.0009, %v2756_v20  ;;  %v2387_v7 = vpop.permute.xlu0 %2386  ;;  %v2878_v36 = vsub.f32 2.0, %v2866_v0  ;;  %v2746_v32 = vadd.f32 0.0001, %v2734_v38 }
 0x282   :  { %v2522_v17 = vrot.slane %v2494_v4, 1  ;;  %v2588_v28 = vrot.slane %v2560_v49, 2  ;;  %v2630_v19 = vrot.slane %v2494_v4, 3  ;;  %v2412_v15 = vadd.f32 %v2387_v7, %v2364_v9  ;;  %v6604_v4 = vld [vmem:[#allocation76_spill] sm:$0xff] }
 0x283   :  { %v2780_v6 = vmul.f32 %v2768_v1, %v2744_v31  ;;  %v2684_v12 = vrot.slane %v2482_v10, 4  ;;  %v2890_v56 = vmul.f32 %v2981_v41, %v2878_v36  ;;  %v2736_v31 = vmul.f32 2.0, %v6604_v4 }
 0x284   :  { %v2524_v53 = vsel %vm394_vm1, %v2522_v17, %v2523_v29  ;;  %v2590_v60 = vsel %vm461_vm2, %v2588_v28, %v2589_v55  ;;  %v2632_v13 = vsel %vm504_vm3, %v2630_v19, %v2631_v5  ;;  %v2929_v19 = vsel %vm2908_vm5, %v5999_v22, 0.0 }
 0x285   :  { %v2548_v51 = vadd.f32 %v2524_v53, %v2482_v10  ;;  %v2447_v35 = vpop.permute.xlu0 %2446  ;;  %v2900_v52 = vmul.f32 %v2888_v42, %v2780_v6  ;;  %v2686_v59 = vsel %vm559_vm4, %v2684_v12, %v2685_v24  ;;  %v2748_v10 = vadd.f32 0.0001, %v2736_v31 }
 0x286   :  { %v2472_v3 = vadd.f32 %v2447_v35, %v2412_v15 }
 0x287   :  { %v2614_v54 = vadd.f32 %v2590_v60, %v2548_v51  ;;  %v2919_v58 = vsel %vm2906_vm6, %v2900_v52, 0.0 }
 0x288   :  { %v2496_v29 = vmul.f32 0.23388076, %v2472_v3  ;;  %v2562_v18 = vmul.f32 0.2920817, %v2472_v3  ;;  %v2920_v61 = vadd.f32 %v2919_v58, %v2918_v46  ;;  %v2484_v55 = vmul.f32 0.120078385, %v2472_v3 }
 0x289   :  { %v2656_v62 = vadd.f32 %v2632_v13, %v2614_v54 }
 0x28a   :  { %v2525_v25 = vrot.slane %v2496_v29, 1  ;;  %v2591_v50 = vrot.slane %v2562_v18, 2  ;;  %v2922_v37 = vadd.f32 %v2921_v34, %v2920_v61  ;;  %v2633_v46 = vrot.slane %v2496_v29, 3 }
 0x28b   :  { %v2710_v63 = vadd.f32 %v2686_v59, %v2656_v62  ;;  %v2687_v24 = vrot.slane %v2484_v55, 4 }
 0x28c   :  { %v2527_v5 = vsel %vm394_vm1, %v2525_v25, %v2526_v39  ;;  %v2593_v23 = vsel %vm461_vm2, %v2591_v50, %v2592_v30  ;;  %v2635_v2 = vsel %vm504_vm3, %v2633_v46, %v2634_v21  ;;  %v2868_v30 = vmul.f32 %v2983_v16, %v5815_v33 }
 0x28d   :  { %v2722_v40 = vsub.f32 %v2710_v63, %v6603_v57  ;;  %v2550_v48 = vadd.f32 %v2527_v5, %v2484_v55  ;;  %v2689_v20 = vsel %vm559_vm4, %v2687_v24, %v2688_v8 }
 0x28e   :  { %v2880_v7 = vsub.f32 2.0, %v2868_v30 }
 0x28f   :  { %v2758_v45 = vmul.f32 2.0, %v2722_v40  ;;  %v2616_v43 = vadd.f32 %v2593_v23, %v2550_v48 }
 0x290   :  { %v2892_v6 = vmul.f32 %v2983_v16, %v2880_v7 }
 0x291   :  { %v2770_v39 = vadd.f32 0.0009, %v2758_v45  ;;  %v2658_v47 = vadd.f32 %v2635_v2, %v2616_v43 }
 0x293   :  { %v2712_v14 = vadd.f32 %v2689_v20, %v2658_v47  ;;  %v2782_v11 = vmul.f32 %v2770_v39, %v2746_v32 }
 0x295   :  { %v2724_v49 = vsub.f32 %v2712_v14, %v6604_v4  ;;  %v2902_v1 = vmul.f32 %v2890_v56, %v2782_v11 }
 0x297   :  { %v2760_v26 = vmul.f32 2.0, %v2724_v49  ;;  %v2923_v21 = vsel %vm2906_vm6, %v2902_v1, 0.0 }
 0x298   :  { %v2924_v9 = vadd.f32 %v2923_v21, %v2922_v37 }
 0x299   :  { %v2772_v17 = vadd.f32 0.0009, %v2760_v26 }
 0x29a   :  { %v2926_v8 = vadd.f32 %v2925_v27, %v2924_v9 }
 0x29b   :  { %v2784_v28 = vmul.f32 %v2772_v17, %v2748_v10 }
 0x29d   :  { %v2904_v33 = vmul.f32 %v2892_v6, %v2784_v28 }
 0x29f   :  { %v2927_v42 = vsel %vm2906_vm6, %v2904_v33, 0.0 }
 0x2a0   :  { %v2928_v53 = vadd.f32 %v2927_v42, %v2926_v8 }
 0x2a2   :  { %v2930_v15 = vadd.f32 %v2929_v19, %v2928_v53 }
 0x2a4   :  { %2931 = vadd.xlane.f32.xlu0 %v2930_v15 }
 0x32d   :  { %v2932_v51 = vpop.xlane.xlu0 %2931 }
 0x32e   :  { %v2933_v35 = vrot.slane %v2932_v51, 4 }
 0x330   :  { %v2934_v52 = vadd.f32 %v2933_v35, %v2932_v51 }
 0x332   :  { %v2935_v60 = vrot.slane %v2934_v52, 2 }
 0x334   :  { %v2936_v12 = vadd.f32 %v2935_v60, %v2934_v52 }
 0x336   :  { %v2937_v3 = vrot.slane %v2936_v12, 1 }
 0x338   :  { %v2938_v54 = vadd.f32 %v2937_v3, %v2936_v12 }
 0x33a   :  { %2954 = vpush %v2938_v54 }
 0x36b   :  { %s2955_s0 = spop %2954 }
 0x36c   :  { %v2942_v44 = vstv %s2955_s0 }
 0x36d   :  { %2943 = vst [vmem:[%s6049_s3] sm:$0xff] %v2942_v44 }

// kernel: perceptual_ssim_loss.3
= control target key start
LH: loop header
LB: loop body
LE: loop exit
PB: predicated region body
PF: predicated region fallthrough
CT: control target
= control target key end

     0   :  { %s6698_s21 = smov 0   ;;  %s6700_s22 = smov 0   ;;  %s8952_s0 = inlined_call_operand.vmem [shape: bf16[32,64], index: 0, kind: input, shape index: {}]   ;;  %s8953_s1 = inlined_call_operand.vmem [shape: f32[1,64], index: 1, kind: input, shape index: {}]   ;;  %s8954_s2 = inlined_call_operand.vmem [shape: bf16[3,192,64], index: 2, kind: input, shape index: {}]   ;;  %s8955_s3 = inlined_call_operand.vmem [shape: f32[1,64], index: 3, kind: input, shape index: {}]   ;;  %s8956_s4 = inlined_call_operand.vmem [shape: bf16[2,1,32,288], index: 4, kind: input, shape index: {}]   ;;  %s8957_s5 = inlined_call_operand.vmem [shape: bf16[2,1,32,288], index: 5, kind: input, shape index: {}]   ;;  %s8958_s6 = inlined_call_operand.vmem [shape: f32[2,1,8,128], index: 6, kind: output, shape index: {}]  }
   0x1   :  { %s6702_s23 = smov 0  }
   0x2 LB: > { %s28_s24 = sadd.s32 1, %s6655_s22  ;;  %p5790_p0 = scmp.ge.s32.totalorder %s6659_s23, 1  ;;  %s6659_s23 = sphi %s6702_s23, %s16_s23   ;;  %s6655_s22 = sphi %s6700_s22, %s9158_s22   ;;  %s6651_s21 = sphi %s6698_s21, %s9157_s21  }
   0x3   : > { %p30_p1 = scmp.ge.s32.totalorder %s28_s24, 2  ;;  %p248_p2 = scmp.lt.s32.totalorder %s6659_s23, 3 }
   0x5   : > { %s9160_s24 = smov (%p30_p1, %s28_s24), 0  ;;  %p249_p3 = pnand %p5790_p0, %p248_p2 }
   0x7   : > { %252 = sbr.rel (%p249_p3) target bundleno = 1387 (0x56b), region = 44 }
   0xc   : > { %p293_p4 = scmp.lt.s32.totalorder %s6651_s21, 1  ;;  %v6472_v0 = vld [vmem:[%s8952_s0 + $0x8] sm:$0xff]   ;;  %v6474_v2 = vld [vmem:[%s8952_s0] sm:$0xff]   ;;  %vm576_vm0 = vcmask 516096   ;;  %vm577_vm1 = vsmask.f32 256 }
   0xd   : > { %v6473_v1 = vld [vmem:[%s8952_s0 + $0x8] sm:$0xff]   ;;  %6323 = vmatprep.subr.bf16.mxu0 %v6472_v0  ;;  %v6475_v3 = vld [vmem:[%s8952_s0] sm:$0xff]   ;;  %vm6739_vm2 = vmand %vm576_vm0, %vm577_vm1  ;;  %vm908_vm3 = vcmask 261120   ;;  %vm687_vm4 = vsmask.f32 7938  ;;  %vm1682_vm6 = vcmask 519168  }
   0xe   : > { %s9162_s21 = smov (!%p293_p4, %s6651_s21), 1  ;;  %6363 = vmatprep.subr.bf16.mxu1 %v6473_v1  ;;  %6324 = vmatpush3.bf16.msra.mxu0 %v6472_v0  ;;  %v582_v12 = vld [vmem:[#allocation2 + $0xc] sm:$0x1]  ;;  %v636_v55 = vld [vmem:[#allocation2 + $0xe4] sm:$0x1]  ;;  %vm6785_vm5 = vmand %vm576_vm0, %vm687_vm4  ;;  %vm3865_vm10 = vcmask 1046528  }
   0xf   : > { %s6427_s9 = smul.u32 48, %s9162_s21  ;;  %6364 = vmatpush3.bf16.msra.mxu1 %v6473_v1  ;;  %6325 = vmatprep.subr.bf16.mxu0 %v6474_v2  ;;  %v583_v14 = vsel %vm6739_vm2, 0, %v582_v12  ;;  %v637_v56 = vsel %vm6739_vm2, 0, %v636_v55  ;;  %v579_v57 = vld [vmem:[#allocation2] sm:$0x1]  ;;  %vm6897_vm8 = vmand %vm1682_vm6, %vm687_vm4  ;;  %vm3974_vm11 = vcmask 523264  }
  0x10   : > { %6365 = vmatprep.subr.bf16.mxu1 %v6475_v3  ;;  %584 = vst [vmem:[#allocation2 + $0xc] sm:$0x1] %v583_v14  ;;  %638 = vst [vmem:[#allocation2 + $0xe4] sm:$0x1] %v637_v56  ;;  %v633_v58 = vld [vmem:[#allocation2 + $0xd8] sm:$0x1] }
  0x11   : > { %s310_s12 = scalar_lea.vmem %s8957_s5, %s6427_s9  ;;  %s301_s15 = scalar_lea.vmem %s8956_s4, %s6427_s9  ;;  %v580_v60 = vsel %vm6739_vm2, 0, %v579_v57  ;;  %v634_v61 = vsel %vm6739_vm2, 0, %v633_v58  ;;  %v692_v62 = vld [vmem:[#allocation2 + $0x14] sm:$0x1]  ;;  %v746_v63 = vld [vmem:[#allocation2 + $0xec] sm:$0x1] }
  0x12   : > { %v6456_v4 = vld [vmem:[%s310_s12] ss:$12 sps:$4 sm:$0xff]   ;;  %6326 = vmatpush3.bf16.msra.mxu0 %v6474_v2  ;;  %v6460_v6 = vld [vmem:[%s310_s12 + $0x18] ss:$12 sps:$4 sm:$0xff]   ;;  %v6462_v10 = vld [vmem:[%s310_s12 + $0x1c] ss:$12 sps:$4 sm:$0xff]  }
  0x13   : > { %v6458_v5 = vld [vmem:[%s301_s15] ss:$12 sps:$4 sm:$0xff]   ;;  %6366 = vmatpush3.bf16.msra.mxu1 %v6475_v3  ;;  %1862 = vxpose.xlu0.c.b16.start [1/2] (short) %v6456_v4, 128  ;;  %v6463_v7 = vld [vmem:[%s301_s15 + $0x18] ss:$12 sps:$4 sm:$0xff]   ;;  %v6465_v11 = vld [vmem:[%s301_s15 + $0x1c] ss:$12 sps:$4 sm:$0xff]  }
  0x14   : > { %848 = vxpose.xlu1.c.b16.start [1/2] (short) %v6458_v5, 128  ;;  %v6466_v8 = vld [vmem:[%s310_s12 + $0x4] ss:$12 sps:$4 sm:$0xff]   ;;  %v6468_v15 = vld [vmem:[%s310_s12 + $0x8] ss:$12 sps:$4 sm:$0xff]   ;;  %v6469_v17 = vld [vmem:[%s310_s12 + $0x20] ss:$12 sps:$4 sm:$0xff]  }
  0x15   : > { %v6467_v9 = vld [vmem:[%s301_s15 + $0x4] ss:$12 sps:$4 sm:$0xff]   ;;  %v6470_v16 = vld [vmem:[%s301_s15 + $0x8] ss:$12 sps:$4 sm:$0xff]   ;;  %v6471_v18 = vld [vmem:[%s301_s15 + $0x20] ss:$12 sps:$4 sm:$0xff]  }
  0x16   : > { %581 = vst [vmem:[#allocation2] sm:$0x1] %v580_v60  ;;  %635 = vst [vmem:[#allocation2 + $0xd8] sm:$0x1] %v634_v61  ;;  %v693_v0 = vsel %vm6785_vm5, 0, %v692_v62  ;;  %v747_v1 = vsel %vm6785_vm5, 0, %v746_v63 }
  0x17   : > { %1863 = vxpose.xlu0.c.b16.end [2/2] (short) %v6460_v6, 128  ;;  %694 = vst [vmem:[#allocation2 + $0x14] sm:$0x1] %v693_v0  ;;  %748 = vst [vmem:[#allocation2 + $0xec] sm:$0x1] %v747_v1  ;;  %v689_v2 = vld [vmem:[#allocation2 + $0x8] sm:$0x1] }
  0x18   : > { %849 = vxpose.xlu1.c.b16.end [2/2] (short) %v6463_v7, 128  ;;  %v690_v3 = vsel %vm6785_vm5, 0, %v689_v2  ;;  %v743_v4 = vld [vmem:[#allocation2 + $0xe0] sm:$0x1]  ;;  %v642_v6 = vld [vmem:[#allocation2 + $0xfc] sm:$0x1]  ;;  %s6661_s18 = smov 64  }
  0x19   : > { %691 = vst [vmem:[#allocation2 + $0x8] sm:$0x1] %v690_v3  ;;  %v744_v5 = vsel %vm6785_vm5, 0, %v743_v4  ;;  %v588_v7 = vld [vmem:[#allocation2 + $0x24] sm:$0x1]  ;;  %v8961_v13 = vmov 0  }
  0x1a   : > { %745 = vst [vmem:[#allocation2 + $0xe0] sm:$0x1] %v744_v5  ;;  %v639_v12 = vld [vmem:[#allocation2 + $0xf0] sm:$0x1]  ;;  %v657_v57 = vld [vmem:[#allocation2 + $0x138] sm:$0x1]  ;;  %6403 = vmatprep.subr.bf16.mxu1 %v8961_v13  ;;  %4300 = vmatprep.subr.bf16.mxu0 %v8961_v13 }
  0x1b   : > { %v640_v14 = vsel %vm6739_vm2, 0, %v639_v12  ;;  %v658_v58 = vsel %vm6739_vm2, 0, %v657_v57  ;;  %v606_v60 = vld [vmem:[#allocation2 + $0x6c] sm:$0x1]  ;;  %v603_v63 = vld [vmem:[#allocation2 + $0x60] sm:$0x1] }
  0x1c   : > { %641 = vst [vmem:[#allocation2 + $0xf0] sm:$0x1] %v640_v14  ;;  %659 = vst [vmem:[#allocation2 + $0x138] sm:$0x1] %v658_v58  ;;  %v607_v61 = vsel %vm6739_vm2, 0, %v606_v60  ;;  %v604_v1 = vsel %vm6739_vm2, 0, %v603_v63 }
  0x1d   : > { %608 = vst [vmem:[#allocation2 + $0x6c] sm:$0x1] %v607_v61  ;;  %v770_v62 = vld [vmem:[#allocation2 + $0x14c] sm:$0x1]  ;;  %v767_v2 = vld [vmem:[#allocation2 + $0x140] sm:$0x1] }
  0x1e   : > { %v771_v0 = vsel %vm6785_vm5, 0, %v770_v62  ;;  %605 = vst [vmem:[#allocation2 + $0x60] sm:$0x1] %v604_v1  ;;  %v768_v3 = vsel %vm6785_vm5, 0, %v767_v2  ;;  %v716_v4 = vld [vmem:[#allocation2 + $0x74] sm:$0x1] }
  0x1f   : > { %772 = vst [vmem:[#allocation2 + $0x14c] sm:$0x1] %v771_v0  ;;  %769 = vst [vmem:[#allocation2 + $0x140] sm:$0x1] %v768_v3  ;;  %v717_v5 = vsel %vm6785_vm5, 0, %v716_v4  ;;  %s5793_s17 = sshll.u32 %s9162_s21, 3 }
  0x20   : > { %718 = vst [vmem:[#allocation2 + $0x74] sm:$0x1] %v717_v5  ;;  %v612_v12 = vld [vmem:[#allocation2 + $0x84] sm:$0x1]  ;;  %vm1320_vm7 = vsmask.f32 4368  ;;  %s317_s25 = scalar_lea.vmem %s8958_s6, %s5793_s17 }
  0x21   : > { %v613_v14 = vsel %vm6739_vm2, 0, %v612_v12  ;;  %v2701_v61 = vld [vmem:[#allocation2 + $0xe4] sm:$0xf]  ;;  %v1692_v1 = vld [vmem:[#allocation2 + $0xc] sm:$0xf]  ;;  %vm6918_vm9 = vmor %vm577_vm1, %vm1320_vm7 }
  0x22   : > { %614 = vst [vmem:[#allocation2 + $0x84] sm:$0x1] %v613_v14  ;;  %vm3252_vm12 = vsmask.f32 7424 }
  0x30   : > { %1878 = vxpose.xlu0.c.b16.start [1/2] (short) %v6466_v8, 128  ;;  %v643_v8 = vsel %vm6739_vm2, 0, %v642_v6  ;;  %v666_v6 = vld [vmem:[#allocation2 + $0x15c] sm:$0x1] }
  0x31   : > { %864 = vxpose.xlu1.c.b16.start [1/2] (short) %v6467_v9, 128  ;;  %v589_v9 = vsel %vm6739_vm2, 0, %v588_v7  ;;  %644 = vst [vmem:[#allocation2 + $0xfc] sm:$0x1] %v643_v8  ;;  %v667_v7 = vsel %vm6739_vm2, 0, %v666_v6  ;;  %v713_v8 = vld [vmem:[#allocation2 + $0x68] sm:$0x1] }
  0x32   : > { %590 = vst [vmem:[#allocation2 + $0x24] sm:$0x1] %v589_v9  ;;  %668 = vst [vmem:[#allocation2 + $0x15c] sm:$0x1] %v667_v7  ;;  %v714_v9 = vsel %vm6785_vm5, 0, %v713_v8 }
  0x33   : > { %715 = vst [vmem:[#allocation2 + $0x68] sm:$0x1] %v714_v9 }
  0x34   : > { %1879 = vxpose.xlu0.c.b16.end [2/2] (short) %v6462_v10, 128  ;;  %v585_v10 = vld [vmem:[#allocation2 + $0x18] sm:$0x1] }
  0x35   : > { %865 = vxpose.xlu1.c.b16.end [2/2] (short) %v6465_v11, 128  ;;  %v586_v11 = vsel %vm6739_vm2, 0, %v585_v10  ;;  %v663_v10 = vld [vmem:[#allocation2 + $0x150] sm:$0x1] }
  0x36   : > { %587 = vst [vmem:[#allocation2 + $0x18] sm:$0x1] %v586_v11  ;;  %v664_v11 = vsel %vm6739_vm2, 0, %v663_v10 }
  0x37   : > { %665 = vst [vmem:[#allocation2 + $0x150] sm:$0x1] %v664_v11 }
  0x4d   : > { %1894 = vxpose.xlu0.c.b16.start [1/2] (short) (narrow) %v6468_v15, 32  ;;  %v698_v15 = vld [vmem:[#allocation2 + $0x2c] sm:$0x1] }
  0x4e   : > { %880 = vxpose.xlu1.c.b16.start [1/2] (short) (narrow) %v6470_v16, 32  ;;  %v699_v16 = vsel %vm6785_vm5, 0, %v698_v15  ;;  %v776_v15 = vld [vmem:[#allocation2 + $0x164] sm:$0x1] }
  0x4f   : > { %700 = vst [vmem:[#allocation2 + $0x2c] sm:$0x1] %v699_v16  ;;  %v777_v16 = vsel %vm6785_vm5, 0, %v776_v15 }
  0x50   : > { %778 = vst [vmem:[#allocation2 + $0x164] sm:$0x1] %v777_v16 }
  0x51   : > { %1895 = vxpose.xlu0.c.b16.end [2/2] (short) (narrow) %v6469_v17, 32  ;;  %v752_v17 = vld [vmem:[#allocation2 + $0x104] sm:$0x1] }
  0x52   : > { %881 = vxpose.xlu1.c.b16.end [2/2] (short) (narrow) %v6471_v18, 32  ;;  %v753_v18 = vsel %vm6785_vm5, 0, %v752_v17  ;;  %v609_v17 = vld [vmem:[#allocation2 + $0x78] sm:$0x1] }
  0x53   : > { %754 = vst [vmem:[#allocation2 + $0x104] sm:$0x1] %v753_v18  ;;  %v610_v18 = vsel %vm6739_vm2, 0, %v609_v17 }
  0x54   : > { %611 = vst [vmem:[#allocation2 + $0x78] sm:$0x1] %v610_v18 }
  0x75   : > { %v1870_v19 = vpop.trf.xlu0 }
  0x76   : > { %v856_v20 = vpop.trf.xlu1  ;;  %6367 = vmatprep.mubr.msk.bf16.mxu1 %vm908_vm3, %v1870_v19  ;;  %v695_v19 = vld [vmem:[#allocation2 + $0x20] sm:$0x1] }
  0x77   : > { %6327 = vmatprep.mubr.msk.bf16.mxu0 %vm908_vm3, %v856_v20  ;;  %v749_v20 = vld [vmem:[#allocation2 + $0xf8] sm:$0x1] }
  0x79   : > { %v1871_v21 = vpop.trf.xlu0 }
  0x7a   : > { %v857_v22 = vpop.trf.xlu1  ;;  %6368 = vmatmul.mubr.msk.bf16.vlgmr.msra.gmra.mxu1 %vm908_vm3, %v1871_v21  ;;  %v696_v21 = vsel %vm6785_vm5, 0, %v695_v19  ;;  %v6878_v19 = vld [vmem:[%s8953_s1] ss:$0 sm:$0xff] }
  0x7b   : > { %6328 = vmatmul.mubr.msk.bf16.vlgmr.msra.gmra.mxu0 %vm908_vm3, %v857_v22  ;;  %v750_v22 = vsel %vm6785_vm5, 0, %v749_v20  ;;  %697 = vst [vmem:[#allocation2 + $0x20] sm:$0x1] %v696_v21  ;;  %v773_v20 = vld [vmem:[#allocation2 + $0x158] sm:$0x1] }
  0x7c   : > { %751 = vst [vmem:[#allocation2 + $0xf8] sm:$0x1] %v750_v22  ;;  %v774_v22 = vsel %vm6785_vm5, 0, %v773_v20  ;;  %v2694_v20 = vld [vmem:[#allocation2 + $0xd8] sm:$0xf] }
  0x7d   : > { %v1872_v23 = vpop.trf.xlu0  ;;  %775 = vst [vmem:[#allocation2 + $0x158] sm:$0x1] %v774_v22 }
  0x7e   : > { %v858_v24 = vpop.trf.xlu1  ;;  %6371 = vmatprep.mubr.msk.bf16.mxu1 %vm908_vm3, %v1872_v23  ;;  %v648_v23 = vld [vmem:[#allocation2 + $0x114] sm:$0x1] }
  0x7f   : > { %6331 = vmatprep.mubr.msk.bf16.mxu0 %vm908_vm3, %v858_v24  ;;  %v645_v24 = vld [vmem:[#allocation2 + $0x108] sm:$0x1] }
  0x81   : > { %v1873_v25 = vpop.trf.xlu0 }
  0x82   : > { %v859_v26 = vpop.trf.xlu1  ;;  %6372 = vmatmul.mubr.msk.bf16.gmra.mxu1 %vm908_vm3, %v1873_v25  ;;  %v649_v25 = vsel %vm6739_vm2, 0, %v648_v23 }
  0x83   : > { %6332 = vmatmul.mubr.msk.bf16.gmra.mxu0 %vm908_vm3, %v859_v26  ;;  %v646_v26 = vsel %vm6739_vm2, 0, %v645_v24  ;;  %650 = vst [vmem:[#allocation2 + $0x114] sm:$0x1] %v649_v25 }
  0x84   : > { %647 = vst [vmem:[#allocation2 + $0x108] sm:$0x1] %v646_v26 }
  0x85   : > { %v1874_v27 = vpop.trf.xlu0 }
  0x86   : > { %v860_v28 = vpop.trf.xlu1  ;;  %6375 = vmatprep.mubr.msk.bf16.mxu1 %vm908_vm3, %v1874_v27  ;;  %v594_v27 = vld [vmem:[#allocation2 + $0x3c] sm:$0x1] }
  0x87   : > { %6335 = vmatprep.mubr.msk.bf16.mxu0 %vm908_vm3, %v860_v28  ;;  %v595_v28 = vsel %vm6739_vm2, 0, %v594_v27  ;;  %v722_v27 = vld [vmem:[#allocation2 + $0x8c] sm:$0x1] }
  0x88   : > { %596 = vst [vmem:[#allocation2 + $0x3c] sm:$0x1] %v595_v28  ;;  %v672_v28 = vld [vmem:[#allocation2 + $0x174] sm:$0x1] }
  0x89   : > { %v1875_v29 = vpop.trf.xlu0 }
  0x8a   : > { %6376 = vmatmul.mubr.msk.bf16.gmra.mxu1 %vm908_vm3, %v1875_v29  ;;  %v861_v30 = vpop.trf.xlu1  ;;  %v591_v29 = vld [vmem:[#allocation2 + $0x30] sm:$0x1] }
  0x8b   : > { %6336 = vmatmul.mubr.msk.bf16.gmra.mxu0 %vm908_vm3, %v861_v30  ;;  %v592_v30 = vsel %vm6739_vm2, 0, %v591_v29 }
  0x8c   : > { %593 = vst [vmem:[#allocation2 + $0x30] sm:$0x1] %v592_v30 }
  0x8d   : > { %v1876_v31 = vpop.trf.xlu0 }
  0x8e   : > { %6379 = vmatprep.mubr.msk.bf16.mxu1 %vm908_vm3, %v1876_v31  ;;  %v862_v32 = vpop.trf.xlu1  ;;  %v758_v31 = vld [vmem:[#allocation2 + $0x11c] sm:$0x1] }
  0x8f   : > { %6339 = vmatprep.mubr.msk.bf16.mxu0 %vm908_vm3, %v862_v32  ;;  %v759_v32 = vsel %vm6785_vm5, 0, %v758_v31 }
  0x90   : > { %760 = vst [vmem:[#allocation2 + $0x11c] sm:$0x1] %v759_v32  ;;  %v723_v32 = vsel %vm6785_vm5, 0, %v722_v27 }
  0x91   : > { %v1877_v33 = vpop.trf.xlu0  ;;  %724 = vst [vmem:[#allocation2 + $0x8c] sm:$0x1] %v723_v32 }
  0x92   : > { %6380 = vmatmul.mubr.msk.bf16.gmra.mxu1 %vm908_vm3, %v1877_v33  ;;  %v863_v34 = vpop.trf.xlu1  ;;  %v755_v33 = vld [vmem:[#allocation2 + $0x110] sm:$0x1] }
  0x93   : > { %6340 = vmatmul.mubr.msk.bf16.gmra.mxu0 %vm908_vm3, %v863_v34  ;;  %v756_v34 = vsel %vm6785_vm5, 0, %v755_v33  ;;  %v673_v33 = vsel %vm6739_vm2, 0, %v672_v28 }
  0x94   : > { %757 = vst [vmem:[#allocation2 + $0x110] sm:$0x1] %v756_v34  ;;  %674 = vst [vmem:[#allocation2 + $0x174] sm:$0x1] %v673_v33 }
  0x95   : > { %v1886_v35 = vpop.trf.xlu0 }
  0x96   : > { %6383 = vmatprep.mubr.msk.bf16.mxu1 %vm908_vm3, %v1886_v35  ;;  %v872_v36 = vpop.trf.xlu1  ;;  %v704_v35 = vld [vmem:[#allocation2 + $0x44] sm:$0x1] }
  0x97   : > { %6343 = vmatprep.mubr.msk.bf16.mxu0 %vm908_vm3, %v872_v36  ;;  %v705_v36 = vsel %vm6785_vm5, 0, %v704_v35 }
  0x98   : > { %706 = vst [vmem:[#allocation2 + $0x44] sm:$0x1] %v705_v36 }
  0x99   : > { %v1887_v37 = vpop.trf.xlu0 }
  0x9a   : > { %6384 = vmatmul.mubr.msk.bf16.gmra.mxu1 %vm908_vm3, %v1887_v37  ;;  %v873_v38 = vpop.trf.xlu1  ;;  %v701_v37 = vld [vmem:[#allocation2 + $0x38] sm:$0x1] }
  0x9b   : > { %6344 = vmatmul.mubr.msk.bf16.gmra.mxu0 %vm908_vm3, %v873_v38  ;;  %v702_v38 = vsel %vm6785_vm5, 0, %v701_v37 }
  0x9c   : > { %703 = vst [vmem:[#allocation2 + $0x38] sm:$0x1] %v702_v38 }
  0x9d   : > { %v1888_v39 = vpop.trf.xlu0 }
  0x9e   : > { %6387 = vmatprep.mubr.msk.bf16.mxu1 %vm908_vm3, %v1888_v39  ;;  %v874_v40 = vpop.trf.xlu1  ;;  %v651_v39 = vld [vmem:[#allocation2 + $0x120] sm:$0x1] }
  0x9f   : > { %6347 = vmatprep.mubr.msk.bf16.mxu0 %vm908_vm3, %v874_v40  ;;  %v652_v40 = vsel %vm6739_vm2, 0, %v651_v39 }
  0xa0   : > { %653 = vst [vmem:[#allocation2 + $0x120] sm:$0x1] %v652_v40 }
  0xa1   : > { %v1889_v41 = vpop.trf.xlu0 }
  0xa2   : > { %6388 = vmatmul.mubr.msk.bf16.gmra.mxu1 %vm908_vm3, %v1889_v41  ;;  %v875_v42 = vpop.trf.xlu1  ;;  %v654_v41 = vld [vmem:[#allocation2 + $0x12c] sm:$0x1] }
  0xa3   : > { %6348 = vmatmul.mubr.msk.bf16.gmra.mxu0 %vm908_vm3, %v875_v42  ;;  %v655_v42 = vsel %vm6739_vm2, 0, %v654_v41 }
  0xa4   : > { %656 = vst [vmem:[#allocation2 + $0x12c] sm:$0x1] %v655_v42 }
  0xa5   : > { %v1890_v43 = vpop.trf.xlu0 }
  0xa6   : > { %6391 = vmatprep.mubr.msk.bf16.mxu1 %vm908_vm3, %v1890_v43  ;;  %v876_v44 = vpop.trf.xlu1  ;;  %v597_v43 = vld [vmem:[#allocation2 + $0x48] sm:$0x1] }
  0xa7   : > { %6351 = vmatprep.mubr.msk.bf16.mxu0 %vm908_vm3, %v876_v44  ;;  %v598_v44 = vsel %vm6739_vm2, 0, %v597_v43 }
  0xa8   : > { %599 = vst [vmem:[#allocation2 + $0x48] sm:$0x1] %v598_v44 }
  0xa9   : > { %v1891_v45 = vpop.trf.xlu0 }
  0xaa   : > { %6392 = vmatmul.mubr.msk.bf16.gmra.mxu1 %vm908_vm3, %v1891_v45  ;;  %v877_v46 = vpop.trf.xlu1  ;;  %v761_v45 = vld [vmem:[#allocation2 + $0x128] sm:$0x1] }
  0xab   : > { %6352 = vmatmul.mubr.msk.bf16.gmra.mxu0 %vm908_vm3, %v877_v46  ;;  %v764_v46 = vld [vmem:[#allocation2 + $0x134] sm:$0x1] }
  0xad   : > { %v1892_v47 = vpop.trf.xlu0 }
  0xae   : > { %6395 = vmatprep.mubr.msk.bf16.mxu1 %vm908_vm3, %v1892_v47  ;;  %v878_v48 = vpop.trf.xlu1  ;;  %v762_v47 = vsel %vm6785_vm5, 0, %v761_v45 }
  0xaf   : > { %6355 = vmatprep.mubr.msk.bf16.mxu0 %vm908_vm3, %v878_v48  ;;  %v600_v48 = vld [vmem:[#allocation2 + $0x54] sm:$0x1]  ;;  %763 = vst [vmem:[#allocation2 + $0x128] sm:$0x1] %v762_v47 }
  0xb1   : > { %v1893_v49 = vpop.trf.xlu0 }
  0xb2   : > { %6396 = vmatmul.mubr.msk.bf16.gmra.mxu1 %vm908_vm3, %v1893_v49  ;;  %v879_v50 = vpop.trf.xlu1  ;;  %v765_v49 = vsel %vm6785_vm5, 0, %v764_v46 }
  0xb3   : > { %6356 = vmatmul.mubr.msk.bf16.gmra.mxu0 %vm908_vm3, %v879_v50  ;;  %v601_v50 = vsel %vm6739_vm2, 0, %v600_v48  ;;  %766 = vst [vmem:[#allocation2 + $0x134] sm:$0x1] %v765_v49 }
  0xb4   : > { %602 = vst [vmem:[#allocation2 + $0x54] sm:$0x1] %v601_v50 }
  0xb5   : > { %v1902_v51 = vpop.trf.xlu0 }
  0xb6   : > { %6399 = vmatprep.mubr.msk.bf16.mxu1 %vm908_vm3, %v1902_v51  ;;  %v888_v52 = vpop.trf.xlu1  ;;  %v710_v51 = vld [vmem:[#allocation2 + $0x5c] sm:$0x1] }
  0xb7   : > { %6359 = vmatprep.mubr.msk.bf16.mxu0 %vm908_vm3, %v888_v52  ;;  %v711_v52 = vsel %vm6785_vm5, 0, %v710_v51 }
  0xb8   : > { %712 = vst [vmem:[#allocation2 + $0x5c] sm:$0x1] %v711_v52 }
  0xb9   : > { %v1903_v53 = vpop.trf.xlu0 }
  0xba   : > { %6400 = vmatmul.mubr.msk.bf16.gmra.mxu1 %vm908_vm3, %v1903_v53  ;;  %v889_v54 = vpop.trf.xlu1  ;;  %v660_v53 = vld [vmem:[#allocation2 + $0x144] sm:$0x1] }
  0xbb   : > { %6360 = vmatmul.mubr.msk.bf16.gmra.mxu0 %vm908_vm3, %v889_v54  ;;  %v707_v54 = vld [vmem:[#allocation2 + $0x50] sm:$0x1]  ;;  %v661_v55 = vsel %vm6739_vm2, 0, %v660_v53 }
  0xbc   : > { %v708_v56 = vsel %vm6785_vm5, 0, %v707_v54  ;;  %662 = vst [vmem:[#allocation2 + $0x144] sm:$0x1] %v661_v55 }
  0xbd   : > { %709 = vst [vmem:[#allocation2 + $0x50] sm:$0x1] %v708_v56 }
 0x13a   : > { %v6369_v21 = vpop.f32.mrf.mxu1 }
 0x13b   : > { %v6329_v23 = vpop.f32.mrf.mxu0  ;;  %v2019_v24 = vadd.f32 %v6369_v21, %v6878_v19 }
 0x13c   : > { %v1006_v25 = vadd.f32 %v6329_v23, %v6878_v19  ;;  %v2010_v26 = vpop.f32.mrf.mxu1  ;;  %v1684_v23 = vld [vmem:[#allocation2] sm:$0xf] }
 0x13d   : > { %v2155_v29 = vmax.f32 %v2019_v24, 0.0  ;;  %v997_v30 = vpop.f32.mrf.mxu0  ;;  %v2011_v31 = vadd.f32 %v6878_v19, %v2010_v26 }
 0x13e   : > { %v1142_v34 = vmax.f32 %v1006_v25, 0.0  ;;  %v998_v35 = vadd.f32 %v6878_v19, %v997_v30  ;;  %v6370_v36 = vpop.f32.mrf.mxu1 }
 0x13f   : > { %v6249_v37 = vpack.c.bf16 %v2155_v29, %v2155_v29  ;;  %v2153_v38 = vmax.f32 %v2011_v31, 0.0  ;;  %v6330_v39 = vpop.f32.mrf.mxu0  ;;  %v2022_v40 = vadd.f32 %v6370_v36, %v6878_v19  ;;  %v1696_v31 = vld [vmem:[#allocation2 + $0x14] sm:$0x1] }
 0x140   : > { %v6213_v41 = vpack.c.bf16 %v1142_v34, %v1142_v34  ;;  %v1140_v42 = vmax.f32 %v998_v35, 0.0  ;;  %v1009_v43 = vadd.f32 %v6330_v39, %v6878_v19  ;;  %v2013_v49 = vpop.f32.mrf.mxu1 }
 0x141   : > { %v2351_v44 = vshrl.u32 %v6249_v37, 16  ;;  %v2354_v45 = vshll.u32 %v6249_v37, 16  ;;  %v2189_v46 = vmul.f32 0.0, %v2153_v38  ;;  %v2156_v47 = vmax.f32 %v2022_v40, 0.0  ;;  %v1000_v48 = vpop.f32.mrf.mxu0  ;;  %v2705_v38 = vld [vmem:[#allocation2 + $0xec] sm:$0x1] }
 0x142   : > { %v1340_v50 = vshrl.u32 %v6213_v41, 16  ;;  %v1343_v51 = vshll.u32 %v6213_v41, 16  ;;  %v1176_v52 = vmul.f32 0.0, %v1140_v42  ;;  %v1143_v53 = vmax.f32 %v1009_v43, 0.0  ;;  %v6373_v16 = vpop.f32.mrf.mxu1 }
 0x143   : > { %v6892_v54 = vrot.slane %v2351_v44, 7  ;;  %v6247_v55 = vpack.c.bf16 %v2189_v46, %v2189_v46  ;;  %v6250_v56 = vpack.c.bf16 %v2156_v47, %v2156_v47  ;;  %v1001_v57 = vadd.f32 %v6878_v19, %v1000_v48  ;;  %v6333_v10 = vpop.f32.mrf.mxu0 }
 0x144   : > { %v1342_v58 = vrot.slane %v1340_v50, 7  ;;  %v6211_v62 = vpack.c.bf16 %v1176_v52, %v1176_v52  ;;  %v6214_v63 = vpack.c.bf16 %v1143_v53, %v1143_v53  ;;  %v2014_v0 = vadd.f32 %v6878_v19, %v2013_v49  ;;  %v2026_v40 = vpop.f32.mrf.mxu1 }
 0x145   : > { %v2356_v2 = vor.u32 %v2354_v45, %v6892_v54  ;;  %v2357_v3 = vrot.slane %v6892_v54, 4  ;;  %v2334_v4 = vshrl.u32 %v6247_v55, 16  ;;  %v2337_v5 = vshll.u32 %v6247_v55, 16  ;;  %v1013_v34 = vpop.f32.mrf.mxu0 }
 0x146   : > { %v1345_v6 = vor.u32 %v1343_v51, %v1342_v58  ;;  %v1346_v7 = vrot.slane %v1342_v58, 4  ;;  %v1323_v8 = vshrl.u32 %v6211_v62, 16  ;;  %v1326_v9 = vshll.u32 %v6211_v62, 16  ;;  %v6374_v58 = vpop.f32.mrf.mxu1 }
 0x147   : > { %v2702_v11 = vsel %vm6897_vm8, %v2356_v2, %v2701_v61  ;;  %v6906_v12 = vrot.slane %v2334_v4, 7  ;;  %v1348_v14 = vshrl.u32 %v6214_v63, 16  ;;  %v1351_v15 = vshll.u32 %v6214_v63, 16  ;;  %v6334_v53 = vpop.f32.mrf.mxu0 }
 0x148   : > { %v1693_v17 = vsel %vm6897_vm8, %v1345_v6, %v1692_v1  ;;  %2703 = vst [vmem:[#allocation2 + $0xe4] sm:$0xf] %v2702_v11  ;;  %v6910_v18 = vrot.slane %v1323_v8, 7  ;;  %v2359_v21 = vshrl.u32 %v6250_v56, 16  ;;  %v2362_v22 = vshll.u32 %v6250_v56, 16 }
 0x149   : > { %1694 = vst [vmem:[#allocation2 + $0xc] sm:$0xf] %v1693_v17  ;;  %v2339_v24 = vor.u32 %v2337_v5, %v6906_v12  ;;  %v2340_v25 = vrot.slane %v6906_v12, 4  ;;  %v1350_v26 = vrot.slane %v1348_v14, 7  ;;  %v1141_v27 = vmax.f32 %v1001_v57, 0.0 }
 0x14a   : > { %v1328_v28 = vor.u32 %v1326_v9, %v6910_v18  ;;  %v1329_v29 = vrot.slane %v6910_v18, 4  ;;  %v2361_v32 = vrot.slane %v2359_v21, 7  ;;  %v2154_v33 = vmax.f32 %v2014_v0, 0.0  ;;  %v1689_v5 = vld [vmem:[#allocation2 + $0x8] sm:$0x1] }
 0x14b   : > { %v2695_v35 = vsel %vm6897_vm8, %v2339_v24, %v2694_v20  ;;  %v1353_v36 = vor.u32 %v1351_v15, %v1350_v26  ;;  %v1355_v37 = vrot.slane %v1350_v26, 4  ;;  %v1177_v39 = vmul.f32 0.0, %v1141_v27  ;;  %v2698_v14 = vld [vmem:[#allocation2 + $0xe0] sm:$0x1] }
 0x14c   : > { %v1685_v41 = vsel %vm6897_vm8, %v1328_v28, %v1684_v23  ;;  %2696 = vst [vmem:[#allocation2 + $0xd8] sm:$0xf] %v2695_v35  ;;  %v2364_v42 = vor.u32 %v2362_v22, %v2361_v32  ;;  %v2366_v43 = vrot.slane %v2361_v32, 4  ;;  %v2190_v44 = vmul.f32 0.0, %v2154_v33  ;;  %v2029_v22 = vpop.f32.mrf.mxu1  ;;  %v1706_v32 = vld [vmem:[#allocation2 + $0x24] sm:$0xf] }
 0x14d   : > { %1686 = vst [vmem:[#allocation2] sm:$0xf] %v1685_v41  ;;  %v1354_v45 = vsel %vm6918_vm9, %v1346_v7, %v1353_v36  ;;  %v1697_v46 = vsel %vm6739_vm2, %v1355_v37, %v1696_v31  ;;  %v6212_v47 = vpack.c.bf16 %v1177_v39, %v1177_v39  ;;  %v1022_v48 = vadd.f32 %v6333_v10, %v6878_v19 }
 0x14e   : > { %1695 = vst.msk [vmem:[#allocation2 + $0x10] sm:$0xf] %vm1682_vm6, %v1354_v45  ;;  %1698 = vst [vmem:[#allocation2 + $0x14] sm:$0x1] %v1697_v46  ;;  %v2365_v49 = vsel %vm6918_vm9, %v2357_v3, %v2364_v42  ;;  %v2706_v50 = vsel %vm6739_vm2, %v2366_v43, %v2705_v38  ;;  %v6248_v51 = vpack.c.bf16 %v2190_v44, %v2190_v44  ;;  %v1016_v38 = vpop.f32.mrf.mxu0  ;;  %v6377_v42 = vpop.f32.mrf.mxu1 }
 0x14f   : > { %v2035_v52 = vadd.f32 %v6373_v16, %v6878_v19  ;;  %2704 = vst.msk [vmem:[#allocation2 + $0xe8] sm:$0xf] %vm1682_vm6, %v2365_v49  ;;  %2707 = vst [vmem:[#allocation2 + $0xec] sm:$0x1] %v2706_v50  ;;  %v1331_v54 = vshrl.u32 %v6212_v47, 16  ;;  %v1334_v55 = vshll.u32 %v6212_v47, 16  ;;  %v1014_v57 = vadd.f32 %v6878_v19, %v1013_v34 }
 0x150   : > { %v1146_v56 = vmax.f32 %v1022_v48, 0.0  ;;  %v2342_v61 = vshrl.u32 %v6248_v51, 16  ;;  %v2345_v62 = vshll.u32 %v6248_v51, 16  ;;  %v2027_v0 = vadd.f32 %v6878_v19, %v2026_v40  ;;  %v1699_v48 = vld [vmem:[#allocation2 + $0x18] sm:$0xf] }
 0x151   : > { %v2159_v63 = vmax.f32 %v2035_v52, 0.0  ;;  %v1333_v1 = vrot.slane %v1331_v54, 7  ;;  %v1144_v3 = vmax.f32 %v1014_v57, 0.0  ;;  %v1025_v4 = vadd.f32 %v6334_v53, %v6878_v19  ;;  %v6337_v52 = vpop.f32.mrf.mxu0 }
 0x152   : > { %v6217_v2 = vpack.c.bf16 %v1146_v56, %v1146_v56  ;;  %v2344_v6 = vrot.slane %v2342_v61, 7  ;;  %v2157_v8 = vmax.f32 %v2027_v0, 0.0  ;;  %v2038_v9 = vadd.f32 %v6374_v58, %v6878_v19  ;;  %v2042_v0 = vpop.f32.mrf.mxu1 }
 0x153   : > { %v6253_v7 = vpack.c.bf16 %v2159_v63, %v2159_v63  ;;  %v1336_v10 = vor.u32 %v1334_v55, %v1333_v1  ;;  %v1338_v11 = vrot.slane %v1333_v1, 4  ;;  %v6215_v27 = vpack.c.bf16 %v1144_v3, %v1144_v3  ;;  %v2708_v55 = vld [vmem:[#allocation2 + $0xf0] sm:$0xf] }
 0x154   : > { %v1374_v15 = vshrl.u32 %v6217_v2, 16  ;;  %v1377_v16 = vshll.u32 %v6217_v2, 16  ;;  %v2347_v17 = vor.u32 %v2345_v62, %v2344_v6  ;;  %v2349_v18 = vrot.slane %v2344_v6, 4 }
 0x155   : > { %v2385_v20 = vshrl.u32 %v6253_v7, 16  ;;  %v2388_v21 = vshll.u32 %v6253_v7, 16  ;;  %v1337_v23 = vsel %vm6918_vm9, %v1329_v29, %v1336_v10  ;;  %v1690_v24 = vsel %vm6739_vm2, %v1338_v11, %v1689_v5  ;;  %v2715_v29 = vld [vmem:[#allocation2 + $0xfc] sm:$0xf]  ;;  %v1710_v11 = vld [vmem:[#allocation2 + $0x2c] sm:$0x1] }
 0x156   : > { %v6946_v26 = vrot.slane %v1374_v15, 7  ;;  %1688 = vst.msk [vmem:[#allocation2 + $0x4] sm:$0xf] %vm1682_vm6, %v1337_v23  ;;  %1691 = vst [vmem:[#allocation2 + $0x8] sm:$0x1] %v1690_v24  ;;  %v2348_v28 = vsel %vm6918_vm9, %v2340_v25, %v2347_v17  ;;  %v2699_v31 = vsel %vm6739_vm2, %v2349_v18, %v2698_v14  ;;  %v6251_v34 = vpack.c.bf16 %v2157_v8, %v2157_v8  ;;  %v6378_v23 = vpop.f32.mrf.mxu1 }
 0x157   : > { %v6955_v33 = vrot.slane %v2385_v20, 7  ;;  %2697 = vst.msk [vmem:[#allocation2 + $0xdc] sm:$0xf] %vm1682_vm6, %v2348_v28  ;;  %2700 = vst [vmem:[#allocation2 + $0xe0] sm:$0x1] %v2699_v31  ;;  %v1357_v37 = vshrl.u32 %v6215_v27, 16  ;;  %v1017_v50 = vadd.f32 %v6878_v19, %v1016_v38  ;;  %v2030_v51 = vadd.f32 %v6878_v19, %v2029_v22 }
 0x158   : > { %v1379_v35 = vor.u32 %v1377_v16, %v6946_v26  ;;  %v1380_v36 = vrot.slane %v6946_v26, 4  ;;  %v1360_v12 = vshll.u32 %v6215_v27, 16  ;;  %v2368_v40 = vshrl.u32 %v6251_v34, 16  ;;  %v2719_v17 = vld [vmem:[#allocation2 + $0x104] sm:$0x1] }
 0x159   : > { %v2390_v25 = vor.u32 %v2388_v21, %v6955_v33  ;;  %v2391_v39 = vrot.slane %v6955_v33, 4  ;;  %v2371_v41 = vshll.u32 %v6251_v34, 16  ;;  %v6964_v44 = vrot.slane %v1357_v37, 7 }
 0x15a   : > { %v1707_v43 = vsel %vm6897_vm8, %v1379_v35, %v1706_v32  ;;  %v1147_v45 = vmax.f32 %v1025_v4, 0.0  ;;  %v2160_v46 = vmax.f32 %v2038_v9, 0.0  ;;  %v6968_v49 = vrot.slane %v2368_v40, 7  ;;  %v1029_v9 = vpop.f32.mrf.mxu0  ;;  %v1703_v40 = vld [vmem:[#allocation2 + $0x20] sm:$0x1] }
 0x15b   : > { %1708 = vst [vmem:[#allocation2 + $0x24] sm:$0xf] %v1707_v43  ;;  %v2716_v47 = vsel %vm6897_vm8, %v2390_v25, %v2715_v29  ;;  %v1362_v53 = vor.u32 %v1360_v12, %v6964_v44  ;;  %v1363_v54 = vrot.slane %v6964_v44, 4  ;;  %v1145_v62 = vmax.f32 %v1017_v50, 0.0  ;;  %v2045_v44 = vpop.f32.mrf.mxu1 }
 0x15c   : > { %2717 = vst [vmem:[#allocation2 + $0xfc] sm:$0xf] %v2716_v47  ;;  %v6218_v56 = vpack.c.bf16 %v1147_v45, %v1147_v45  ;;  %v6254_v57 = vpack.c.bf16 %v2160_v46, %v2160_v46  ;;  %v2373_v58 = vor.u32 %v2371_v41, %v6968_v49  ;;  %v2374_v61 = vrot.slane %v6968_v49, 4  ;;  %v6338_v35 = vpop.f32.mrf.mxu0  ;;  %v2712_v41 = vld [vmem:[#allocation2 + $0xf8] sm:$0x1] }
 0x15d   : > { %v2158_v63 = vmax.f32 %v2030_v51, 0.0  ;;  %v1700_v1 = vsel %vm6897_vm8, %v1362_v53, %v1699_v48  ;;  %v6216_v7 = vpack.c.bf16 %v1145_v62, %v1145_v62  ;;  %v2051_v15 = vadd.f32 %v6377_v42, %v6878_v19 }
 0x15e   : > { %v1382_v2 = vshrl.u32 %v6218_v56, 16  ;;  %v1385_v3 = vshll.u32 %v6218_v56, 16  ;;  %v2393_v4 = vshrl.u32 %v6254_v57, 16  ;;  %1701 = vst [vmem:[#allocation2 + $0x18] sm:$0xf] %v1700_v1  ;;  %v2709_v5 = vsel %vm6897_vm8, %v2373_v58, %v2708_v55 }
 0x15f   : > { %v2396_v6 = vshll.u32 %v6254_v57, 16  ;;  %v6252_v8 = vpack.c.bf16 %v2158_v63, %v2158_v63  ;;  %2710 = vst [vmem:[#allocation2 + $0xf0] sm:$0xf] %v2709_v5  ;;  %v1038_v16 = vadd.f32 %v6337_v52, %v6878_v19  ;;  %v1365_v18 = vshrl.u32 %v6216_v7, 16  ;;  %v1032_v52 = vpop.f32.mrf.mxu0  ;;  %v6381_v63 = vpop.f32.mrf.mxu1  ;;  %v1720_v5 = vld [vmem:[#allocation2 + $0x3c] sm:$0xf] }
 0x160   : > { %v1384_v10 = vrot.slane %v1382_v2, 7  ;;  %v2395_v14 = vrot.slane %v2393_v4, 7  ;;  %v1368_v20 = vshll.u32 %v6216_v7, 16  ;;  %v2163_v29 = vmax.f32 %v2051_v15, 0.0  ;;  %v2729_v4 = vld [vmem:[#allocation2 + $0x114] sm:$0xf] }
 0x161   : > { %v2376_v21 = vshrl.u32 %v6252_v8, 16  ;;  %v2379_v22 = vshll.u32 %v6252_v8, 16  ;;  %v1367_v32 = vrot.slane %v1365_v18, 7  ;;  %v1150_v34 = vmax.f32 %v1038_v16, 0.0 }
 0x162   : > { %v1387_v24 = vor.u32 %v1385_v3, %v1384_v10  ;;  %v1389_v27 = vrot.slane %v1384_v10, 4  ;;  %v2398_v28 = vor.u32 %v2396_v6, %v2395_v14  ;;  %v2400_v31 = vrot.slane %v2395_v14, 4 }
 0x163   : > { %v2378_v33 = vrot.slane %v2376_v21, 7  ;;  %v1370_v26 = vor.u32 %v1368_v20, %v1367_v32  ;;  %v1372_v42 = vrot.slane %v1367_v32, 4  ;;  %v6257_v45 = vpack.c.bf16 %v2163_v29, %v2163_v29  ;;  %v2058_v21 = vpop.f32.mrf.mxu1 }
 0x164   : > { %v1388_v37 = vsel %vm6918_vm9, %v1380_v36, %v1387_v24  ;;  %v1711_v12 = vsel %vm6739_vm2, %v1389_v27, %v1710_v11  ;;  %v2399_v38 = vsel %vm6918_vm9, %v2391_v39, %v2398_v28  ;;  %v2720_v25 = vsel %vm6739_vm2, %v2400_v31, %v2719_v17  ;;  %v2722_v24 = vld [vmem:[#allocation2 + $0x108] sm:$0xf] }
 0x165   : > { %1709 = vst.msk [vmem:[#allocation2 + $0x28] sm:$0xf] %vm1682_vm6, %v1388_v37  ;;  %1712 = vst [vmem:[#allocation2 + $0x2c] sm:$0x1] %v1711_v12  ;;  %v2381_v36 = vor.u32 %v2379_v22, %v2378_v33  ;;  %v2383_v43 = vrot.slane %v2378_v33, 4  ;;  %v6221_v46 = vpack.c.bf16 %v1150_v34, %v1150_v34  ;;  %v2043_v39 = vadd.f32 %v6878_v19, %v2042_v0 }
 0x166   : > { %2718 = vst.msk [vmem:[#allocation2 + $0x100] sm:$0xf] %vm1682_vm6, %v2399_v38  ;;  %2721 = vst [vmem:[#allocation2 + $0x104] sm:$0x1] %v2720_v25  ;;  %v1030_v47 = vadd.f32 %v6878_v19, %v1029_v9  ;;  %v1371_v48 = vsel %vm6918_vm9, %v1363_v54, %v1370_v26  ;;  %v1704_v49 = vsel %vm6739_vm2, %v1372_v42, %v1703_v40  ;;  %v2419_v53 = vshrl.u32 %v6257_v45, 16  ;;  %v6382_v42 = vpop.f32.mrf.mxu1 }
 0x167   : > { %v2382_v50 = vsel %vm6918_vm9, %v2374_v61, %v2381_v36  ;;  %v2713_v51 = vsel %vm6739_vm2, %v2383_v43, %v2712_v41  ;;  %1702 = vst.msk [vmem:[#allocation2 + $0x1c] sm:$0xf] %vm1682_vm6, %v1371_v48  ;;  %1705 = vst [vmem:[#allocation2 + $0x20] sm:$0x1] %v1704_v49  ;;  %v2422_v55 = vshll.u32 %v6257_v45, 16  ;;  %v1408_v56 = vshrl.u32 %v6221_v46, 16 }
 0x168   : > { %2711 = vst.msk [vmem:[#allocation2 + $0xf4] sm:$0xf] %vm1682_vm6, %v2382_v50  ;;  %2714 = vst [vmem:[#allocation2 + $0xf8] sm:$0x1] %v2713_v51  ;;  %v1411_v54 = vshll.u32 %v6221_v46, 16  ;;  %v2161_v57 = vmax.f32 %v2043_v39, 0.0  ;;  %v2054_v62 = vadd.f32 %v6378_v23, %v6878_v19  ;;  %v1041_v61 = vadd.f32 %v6338_v35, %v6878_v19  ;;  %v6341_v51 = vpop.f32.mrf.mxu0 }
 0x169   : > { %v1148_v58 = vmax.f32 %v1030_v47, 0.0  ;;  %v7008_v0 = vrot.slane %v2419_v53, 7  ;;  %v7010_v1 = vrot.slane %v1408_v56, 7  ;;  %v2046_v2 = vadd.f32 %v6878_v19, %v2045_v44  ;;  %v1713_v33 = vld [vmem:[#allocation2 + $0x30] sm:$0xf] }
 0x16a   : > { %v1033_v3 = vadd.f32 %v6878_v19, %v1032_v52  ;;  %v6255_v6 = vpack.c.bf16 %v2161_v57, %v2161_v57  ;;  %v2164_v8 = vmax.f32 %v2054_v62, 0.0  ;;  %v1151_v9 = vmax.f32 %v1041_v61, 0.0  ;;  %v2733_v47 = vld [vmem:[#allocation2 + $0x11c] sm:$0x1]  ;;  %v1724_v48 = vld [vmem:[#allocation2 + $0x44] sm:$0x1]  ;;  %v2061_v61 = vpop.f32.mrf.mxu1 }
 0x16b   : > { %v6219_v7 = vpack.c.bf16 %v1148_v58, %v1148_v58  ;;  %v2424_v10 = vor.u32 %v2422_v55, %v7008_v0  ;;  %v2425_v11 = vrot.slane %v7008_v0, 4  ;;  %v1413_v14 = vor.u32 %v1411_v54, %v7010_v1 }
 0x16c   : > { %v1414_v15 = vrot.slane %v7010_v1, 4  ;;  %v2402_v16 = vshrl.u32 %v6255_v6, 16  ;;  %v2405_v17 = vshll.u32 %v6255_v6, 16  ;;  %v6258_v27 = vpack.c.bf16 %v2164_v8, %v2164_v8  ;;  %v2726_v8 = vld [vmem:[#allocation2 + $0x110] sm:$0x1] }
 0x16d   : > { %v1391_v18 = vshrl.u32 %v6219_v7, 16  ;;  %v1394_v20 = vshll.u32 %v6219_v7, 16  ;;  %v2730_v22 = vsel %vm6897_vm8, %v2424_v10, %v2729_v4  ;;  %v1721_v23 = vsel %vm6897_vm8, %v1413_v14, %v1720_v5  ;;  %v1045_v7 = vpop.f32.mrf.mxu0 }
 0x16e   : > { %v6222_v28 = vpack.c.bf16 %v1151_v9, %v1151_v9  ;;  %2731 = vst [vmem:[#allocation2 + $0x114] sm:$0xf] %v2730_v22  ;;  %1722 = vst [vmem:[#allocation2 + $0x3c] sm:$0xf] %v1721_v23  ;;  %v7022_v31 = vrot.slane %v2402_v16, 7  ;;  %v2162_v29 = vmax.f32 %v2046_v2, 0.0  ;;  %v2067_v49 = vadd.f32 %v6381_v63, %v6878_v19 }
 0x16f   : > { %v7024_v32 = vrot.slane %v1391_v18, 7  ;;  %v1149_v34 = vmax.f32 %v1033_v3, 0.0  ;;  %v2427_v35 = vshrl.u32 %v6258_v27, 16  ;;  %v2430_v37 = vshll.u32 %v6258_v27, 16  ;;  %v1717_v9 = vld [vmem:[#allocation2 + $0x38] sm:$0x1] }
 0x170   : > { %v1416_v12 = vshrl.u32 %v6222_v28, 16  ;;  %v1419_v38 = vshll.u32 %v6222_v28, 16  ;;  %v2407_v25 = vor.u32 %v2405_v17, %v7022_v31  ;;  %v2408_v40 = vrot.slane %v7022_v31, 4 }
 0x171   : > { %v1396_v41 = vor.u32 %v1394_v20, %v7024_v32  ;;  %v1397_v26 = vrot.slane %v7024_v32, 4  ;;  %v2429_v36 = vrot.slane %v2427_v35, 7  ;;  %v6256_v44 = vpack.c.bf16 %v2162_v29, %v2162_v29  ;;  %v2823_v29 = vld [vmem:[#allocation2 + $0x10] sm:$0xf] }
 0x172   : > { %v1418_v43 = vrot.slane %v1416_v12, 7  ;;  %v6220_v45 = vpack.c.bf16 %v1149_v34, %v1149_v34  ;;  %v2723_v46 = vsel %vm6897_vm8, %v2407_v25, %v2722_v24  ;;  %v2059_v50 = vadd.f32 %v6878_v19, %v2058_v21 }
 0x173   : > { %v1714_v39 = vsel %vm6897_vm8, %v1396_v41, %v1713_v33  ;;  %2724 = vst [vmem:[#allocation2 + $0x108] sm:$0xf] %v2723_v46  ;;  %v2432_v52 = vor.u32 %v2430_v37, %v2429_v36  ;;  %v2434_v53 = vrot.slane %v2429_v36, 4  ;;  %v2410_v54 = vshrl.u32 %v6256_v44, 16  ;;  %v2822_v33 = vld [vmem:[#allocation2 + $0xc] sm:$0xf] }
 0x174   : > { %1715 = vst [vmem:[#allocation2 + $0x30] sm:$0xf] %v1714_v39  ;;  %v1421_v55 = vor.u32 %v1419_v38, %v1418_v43  ;;  %v1423_v56 = vrot.slane %v1418_v43, 4  ;;  %v2413_v57 = vshll.u32 %v6256_v44, 16  ;;  %v1399_v58 = vshrl.u32 %v6220_v45, 16 }
 0x175   : > { %v1402_v62 = vshll.u32 %v6220_v45, 16  ;;  %v2433_v0 = vsel %vm6918_vm9, %v2425_v11, %v2432_v52  ;;  %v2734_v63 = vsel %vm6739_vm2, %v2434_v53, %v2733_v47  ;;  %v2412_v3 = vrot.slane %v2410_v54, 7  ;;  %v2929_v38 = vld [vmem:[#allocation2 + $0xc] sm:$0xe]  ;;  %v2736_v44 = vld [vmem:[#allocation2 + $0x120] sm:$0xf]  ;;  %v6342_v54 = vpop.f32.mrf.mxu0 }
 0x176   : > { %v1422_v1 = vsel %vm6918_vm9, %v1414_v15, %v1421_v55  ;;  %v1725_v2 = vsel %vm6739_vm2, %v1423_v56, %v1724_v48  ;;  %2732 = vst.msk [vmem:[#allocation2 + $0x118] sm:$0xf] %vm1682_vm6, %v2433_v0  ;;  %2735 = vst [vmem:[#allocation2 + $0x11c] sm:$0x1] %v2734_v63  ;;  %v1401_v4 = vrot.slane %v1399_v58, 7  ;;  %v2167_v5 = vmax.f32 %v2067_v49, 0.0 }
 0x177   : > { %1723 = vst.msk [vmem:[#allocation2 + $0x40] sm:$0xf] %vm1682_vm6, %v1422_v1  ;;  %1726 = vst [vmem:[#allocation2 + $0x44] sm:$0x1] %v1725_v2  ;;  %v2165_v6 = vmax.f32 %v2059_v50, 0.0  ;;  %v1054_v10 = vadd.f32 %v6341_v51, %v6878_v19  ;;  %v2070_v11 = vadd.f32 %v6382_v42, %v6878_v19  ;;  %v1046_v14 = vadd.f32 %v6878_v19, %v1045_v7 }
 0x178   : > { %v2062_v15 = vadd.f32 %v6878_v19, %v2061_v61  ;;  %v2415_v16 = vor.u32 %v2413_v57, %v2412_v3  ;;  %v2417_v17 = vrot.slane %v2412_v3, 4  ;;  %v1404_v18 = vor.u32 %v1402_v62, %v1401_v4  ;;  %v7060_v42 = vld [vmem:[#allocation2 + $0x14] ss:$0 sps:$4 sm:$0x11]   ;;  %v2743_v39 = vld [vmem:[#allocation2 + $0x12c] sm:$0xf] }
 0x179   : > { %v1406_v20 = vrot.slane %v1401_v4, 4  ;;  %v6261_v21 = vpack.c.bf16 %v2167_v5, %v2167_v5  ;;  %v6259_v22 = vpack.c.bf16 %v2165_v6, %v2165_v6  ;;  %v1154_v23 = vmax.f32 %v1054_v10, 0.0  ;;  %v2747_v56 = vld [vmem:[#allocation2 + $0x134] sm:$0x1] }
 0x17a   : > { %v2168_v24 = vmax.f32 %v2070_v11, 0.0  ;;  %v2416_v27 = vsel %vm6918_vm9, %v2408_v40, %v2415_v16  ;;  %v2727_v28 = vsel %vm6739_vm2, %v2417_v17, %v2726_v8  ;;  %v1405_v31 = vsel %vm6918_vm9, %v1397_v26, %v1404_v18  ;;  %v1734_v58 = vld [vmem:[#allocation2 + $0x54] sm:$0xf]  ;;  %v7075_v4 = vld [vmem:[#allocation2 + $0xec] ss:$0 sps:$4 sm:$0x11]   ;;  %v1048_v16 = vpop.f32.mrf.mxu0 }
 0x17b   : > { %v1718_v32 = vsel %vm6739_vm2, %v1406_v20, %v1717_v9  ;;  %2725 = vst.msk [vmem:[#allocation2 + $0x10c] sm:$0xf] %vm1682_vm6, %v2416_v27  ;;  %2728 = vst [vmem:[#allocation2 + $0x110] sm:$0x1] %v2727_v28  ;;  %v2453_v34 = vshrl.u32 %v6261_v21, 16  ;;  %v2456_v35 = vshll.u32 %v6261_v21, 16  ;;  %v6225_v25 = vpack.c.bf16 %v1154_v23, %v1154_v23 }
 0x17c   : > { %1716 = vst.msk [vmem:[#allocation2 + $0x34] sm:$0xf] %vm1682_vm6, %v1405_v31  ;;  %1719 = vst [vmem:[#allocation2 + $0x38] sm:$0x1] %v1718_v32  ;;  %v2436_v37 = vshrl.u32 %v6259_v22, 16  ;;  %v2439_v12 = vshll.u32 %v6259_v22, 16  ;;  %v6262_v40 = vpack.c.bf16 %v2168_v24, %v2168_v24  ;;  %v7064_v45 = vcombine.low %v2822_v33, %v2823_v29  ;;  %v6385_v24 = vpop.f32.mrf.mxu1 }
 0x17d   : > { %v1152_v41 = vmax.f32 %v1046_v14, 0.0  ;;  %v2166_v26 = vmax.f32 %v2062_v15, 0.0  ;;  %v2455_v36 = vrot.slane %v2453_v34, 7  ;;  %v5993_v46 = vcombine.low %v2929_v38, %v2823_v29  ;;  %v2859_v9 = vld [vmem:[#allocation2 + $0xe8] sm:$0xf] }
 0x17e   : > { %v7062_v43 = vrot.slane %v2436_v37, 7  ;;  %v1442_v47 = vshrl.u32 %v6225_v25, 16  ;;  %v1445_v48 = vshll.u32 %v6225_v25, 16  ;;  %v2461_v49 = vshrl.u32 %v6262_v40, 16  ;;  %v2858_v22 = vld [vmem:[#allocation2 + $0xe4] sm:$0xf] }
 0x17f   : > { %v2464_v50 = vshll.u32 %v6262_v40, 16  ;;  %v2458_v51 = vor.u32 %v2456_v35, %v2455_v36  ;;  %v2459_v52 = vrot.slane %v2455_v36, 4  ;;  %v6223_v61 = vpack.c.bf16 %v1152_v41, %v1152_v41  ;;  %v2947_v23 = vld [vmem:[#allocation2 + $0xe4] sm:$0xe]  ;;  %v1727_v33 = vld [vmem:[#allocation2 + $0x48] sm:$0xf] }
 0x180   : > { %v2441_v53 = vor.u32 %v2439_v12, %v7062_v43  ;;  %v2442_v55 = vrot.slane %v7062_v43, 4  ;;  %v7068_v57 = vrot.slane %v1442_v47, 7  ;;  %v2463_v62 = vrot.slane %v2461_v49, 7  ;;  %v2740_v29 = vld [vmem:[#allocation2 + $0x128] sm:$0x1] }
 0x181   : > { %v6260_v0 = vpack.c.bf16 %v2166_v26, %v2166_v26  ;;  %v2744_v63 = vsel %vm6897_vm8, %v2458_v51, %v2743_v39  ;;  %v3869_v2 = vrot.slane %v5993_v46, 1  ;;  %v3870_v3 = vrot.slane %v7060_v42, 1  ;;  %v2074_v46 = vpop.f32.mrf.mxu1 }
 0x182   : > { %v2737_v1 = vsel %vm6897_vm8, %v2441_v53, %v2736_v44  ;;  %2745 = vst [vmem:[#allocation2 + $0x12c] sm:$0xf] %v2744_v63  ;;  %v1447_v5 = vor.u32 %v1445_v48, %v7068_v57  ;;  %v1448_v6 = vrot.slane %v7068_v57, 4  ;;  %v2466_v7 = vor.u32 %v2464_v50, %v2463_v62  ;;  %v6345_v50 = vpop.f32.mrf.mxu0 }
 0x183   : > { %2738 = vst [vmem:[#allocation2 + $0x120] sm:$0xf] %v2737_v1  ;;  %v2468_v8 = vrot.slane %v2463_v62, 4  ;;  %v1425_v10 = vshrl.u32 %v6223_v61, 16  ;;  %v1428_v11 = vshll.u32 %v6223_v61, 16  ;;  %v2444_v14 = vshrl.u32 %v6260_v0, 16 }
 0x184   : > { %v2447_v15 = vshll.u32 %v6260_v0, 16  ;;  %v1735_v17 = vsel %vm6897_vm8, %v1447_v5, %v1734_v58  ;;  %v2467_v18 = vsel %vm6918_vm9, %v2459_v52, %v2466_v7  ;;  %v7086_v21 = vsel %vm3865_vm10, %v3869_v2, %v3870_v3 }
 0x185   : > { %v2748_v20 = vsel %vm6739_vm2, %v2468_v8, %v2747_v56  ;;  %9021 = vst [vmem:[#allocation3_spill] sm:$0xff] %v7086_v21  ;;  %1736 = vst [vmem:[#allocation2 + $0x54] sm:$0xf] %v1735_v17  ;;  %v7089_v27 = vrot.slane %v1425_v10, 7  ;;  %v2446_v28 = vrot.slane %v2444_v14, 7  ;;  %6064 = vmatprep.mubr.msk.bf16.mxu0 %vm3974_vm11, %v7086_v21  ;;  %v7093_v31 = vcombine.low %v2858_v22, %v2859_v9  ;;  %v1061_v8 = vpop.f32.mrf.mxu0 }
 0x186   : > { %2746 = vst.msk [vmem:[#allocation2 + $0x130] sm:$0xf] %vm1682_vm6, %v2467_v18  ;;  %2749 = vst [vmem:[#allocation2 + $0x134] sm:$0x1] %v2748_v20  ;;  %v6011_v32 = vcombine.low %v2947_v23, %v2859_v9  ;;  %v3924_v34 = vrot.slane %v7075_v4, 1  ;;  %v1057_v35 = vadd.f32 %v6342_v54, %v6878_v19  ;;  %v2083_v37 = vadd.f32 %v6385_v24, %v6878_v19 }
 0x187   : > { %v1049_v12 = vadd.f32 %v6878_v19, %v1048_v16  ;;  %v1430_v38 = vor.u32 %v1428_v11, %v7089_v27  ;;  %v1431_v25 = vrot.slane %v7089_v27, 4  ;;  %v2449_v40 = vor.u32 %v2447_v15, %v2446_v28  ;;  %v1738_v10 = vld [vmem:[#allocation2 + $0x5c] sm:$0x1]  ;;  %v6386_v16 = vpop.f32.mrf.mxu1  ;;  %v2757_v17 = vld [vmem:[#allocation2 + $0x144] sm:$0xf] }
 0x188   : > { %v2451_v41 = vrot.slane %v2446_v28, 4  ;;  %v3923_v26 = vrot.slane %v6011_v32, 1  ;;  %v1155_v36 = vmax.f32 %v1057_v35, 0.0  ;;  %v2171_v43 = vmax.f32 %v2083_v37, 0.0  ;;  %v7150_v27 = vld [vmem:[%s8953_s1] ss:$0 sm:$0xff] }
 0x189   : > { %v1153_v44 = vmax.f32 %v1049_v12, 0.0  ;;  %v1728_v39 = vsel %vm6897_vm8, %v1430_v38, %v1727_v33  ;;  %v2450_v47 = vsel %vm6918_vm9, %v2442_v55, %v2449_v40  ;;  %v2075_v49 = vadd.f32 %v6878_v19, %v2074_v46  ;;  %v1731_v33 = vld [vmem:[#allocation2 + $0x50] sm:$0x1]  ;;  %v6346_v12 = vpop.f32.mrf.mxu0 }
 0x18a   : > { %v2741_v48 = vsel %vm6739_vm2, %v2451_v41, %v2740_v29  ;;  %1729 = vst [vmem:[#allocation2 + $0x48] sm:$0xf] %v1728_v39  ;;  %2739 = vst.msk [vmem:[#allocation2 + $0x124] sm:$0xf] %vm1682_vm6, %v2450_v47  ;;  %v7110_v51 = vsel %vm3865_vm10, %v3923_v26, %v3924_v34  ;;  %v6226_v52 = vpack.c.bf16 %v1155_v36, %v1155_v36  ;;  %v3482_v54 = vshrl.u32 %v7093_v31, 16 }
 0x18b   : > { %2742 = vst [vmem:[#allocation2 + $0x128] sm:$0x1] %v2741_v48  ;;  %9022 = vst [vmem:[#allocation4_spill] sm:$0xff] %v7110_v51  ;;  %v6265_v53 = vpack.c.bf16 %v2171_v43, %v2171_v43  ;;  %v6224_v56 = vpack.c.bf16 %v1153_v44, %v1153_v44  ;;  %6080 = vmatprep.mubr.msk.bf16.mxu1 %vm3974_vm11, %v7110_v51  ;;  %v2169_v55 = vmax.f32 %v2075_v49, 0.0  ;;  %v3484_v58 = vshll.u32 %v7093_v31, 16  ;;  %v2077_v43 = vpop.f32.mrf.mxu1 }
 0x18c   : > { %v3489_v62 = vshll.u32 %v7075_v4, 16  ;;  %v1450_v61 = vshrl.u32 %v6226_v52, 16  ;;  %v1453_v0 = vshll.u32 %v6226_v52, 16  ;;  %v3266_v15 = vshrl.u32 %v7064_v45, 16  ;;  %v2750_v26 = vld [vmem:[#allocation2 + $0x138] sm:$0xf] }
 0x18d   : > { %v2487_v63 = vshrl.u32 %v6265_v53, 16  ;;  %v2490_v1 = vshll.u32 %v6265_v53, 16  ;;  %v1433_v2 = vshrl.u32 %v6224_v56, 16  ;;  %v1436_v3 = vshll.u32 %v6224_v56, 16 }
 0x18e   : > { %v6263_v5 = vpack.c.bf16 %v2169_v55, %v2169_v55  ;;  %v3486_v7 = vrot.slane %v3484_v58, 1  ;;  %v1452_v9 = vrot.slane %v1450_v61, 7  ;;  %v3491_v14 = vrot.slane %v3489_v62, 1  ;;  %v1064_v55 = vpop.f32.mrf.mxu0  ;;  %v6389_v58 = vpop.f32.mrf.mxu1 }
 0x18f   : > { %v7117_v11 = vrot.slane %v2487_v63, 7  ;;  %v1435_v18 = vrot.slane %v1433_v2, 7  ;;  %v3268_v36 = vshll.u32 %v7064_v45, 16  ;;  %v3273_v47 = vshll.u32 %v7060_v42, 16 }
 0x190   : > { %v2470_v4 = vshrl.u32 %v6263_v5, 16  ;;  %v2473_v20 = vshll.u32 %v6263_v5, 16  ;;  %v3487_v22 = vor.u32 %v3486_v7, %v3482_v54  ;;  %v1455_v23 = vor.u32 %v1453_v0, %v1452_v9 }
 0x191   : > { %v1457_v24 = vrot.slane %v1452_v9, 4  ;;  %v2492_v28 = vor.u32 %v2490_v1, %v7117_v11  ;;  %v2493_v32 = vrot.slane %v7117_v11, 4  ;;  %v1438_v29 = vor.u32 %v1436_v3, %v1435_v18 }
 0x192   : > { %v1440_v34 = vrot.slane %v1435_v18, 4  ;;  %v7122_v35 = vrot.slane %v2470_v4, 7  ;;  %v3492_v37 = vsel %vm3252_vm12, %v3487_v22, %v3491_v14  ;;  %v1456_v38 = vsel %vm6918_vm9, %v1448_v6, %v1455_v23  ;;  %v1748_v18 = vld [vmem:[#allocation2 + $0x6c] sm:$0xf] }
 0x193   : > { %v1739_v40 = vsel %vm6739_vm2, %v1457_v24, %v1738_v10  ;;  %v2758_v41 = vsel %vm6897_vm8, %v2492_v28, %v2757_v17  ;;  %3723 = vrot.lane.b32.xlu0 %v3492_v37, %s6661_s18  ;;  %1737 = vst.msk [vmem:[#allocation2 + $0x58] sm:$0xf] %vm1682_vm6, %v1456_v38  ;;  %v1439_v57 = vsel %vm6918_vm9, %v1431_v25, %v1438_v29  ;;  %v3270_v39 = vrot.slane %v3268_v36, 1  ;;  %v2761_v4 = vld [vmem:[#allocation2 + $0x14c] sm:$0x1] }
 0x194   : > { %1740 = vst [vmem:[#allocation2 + $0x5c] sm:$0x1] %v1739_v40  ;;  %2759 = vst [vmem:[#allocation2 + $0x144] sm:$0xf] %v2758_v41  ;;  %v1732_v6 = vsel %vm6739_vm2, %v1440_v34, %v1731_v33  ;;  %v2475_v44 = vor.u32 %v2473_v20, %v7122_v35  ;;  %v2476_v46 = vrot.slane %v7122_v35, 4  ;;  %v1070_v48 = vadd.f32 %v6345_v50, %v6878_v19 }
 0x195   : > { %1730 = vst.msk [vmem:[#allocation2 + $0x4c] sm:$0xf] %vm1682_vm6, %v1439_v57  ;;  %1733 = vst [vmem:[#allocation2 + $0x50] sm:$0x1] %v1732_v6  ;;  %v2086_v25 = vadd.f32 %v7150_v27, %v6386_v16  ;;  %v1062_v52 = vadd.f32 %v7150_v27, %v1061_v8  ;;  %v2078_v53 = vadd.f32 %v7150_v27, %v2077_v43  ;;  %v3275_v19 = vrot.slane %v3273_v47, 1 }
 0x196   : > { %v2751_v49 = vsel %vm6897_vm8, %v2475_v44, %v2750_v26  ;;  %v1073_v56 = vadd.f32 %v7150_v27, %v6346_v12  ;;  %v3271_v42 = vor.u32 %v3270_v39, %v3266_v15  ;;  %v1158_v50 = vmax.f32 %v1070_v48, 0.0  ;;  %v1741_v12 = vld [vmem:[#allocation2 + $0x60] sm:$0xf] }
 0x197   : > { %2752 = vst [vmem:[#allocation2 + $0x138] sm:$0xf] %v2751_v49  ;;  %v2172_v54 = vmax.f32 %v2086_v25, 0.0  ;;  %v1156_v62 = vmax.f32 %v1062_v52, 0.0  ;;  %v2170_v61 = vmax.f32 %v2078_v53, 0.0  ;;  %v2099_v63 = vadd.f32 %v7150_v27, %v6389_v58 }
 0x198   : > { %v1159_v0 = vmax.f32 %v1073_v56, 0.0  ;;  %v3276_v1 = vsel %vm3252_vm12, %v3271_v42, %v3275_v19  ;;  %v6229_v2 = vpack.c.bf16 %v1158_v50, %v1158_v50  ;;  %v1065_v5 = vadd.f32 %v7150_v27, %v1064_v55  ;;  %v2754_v6 = vld [vmem:[#allocation2 + $0x140] sm:$0x1]  ;;  %v6483_v25 = vld [vmem:[#allocation2 + $0x104] ss:$0 sps:$4 sm:$0x11]  }
 0x199   : > { %v6266_v3 = vpack.c.bf16 %v2172_v54, %v2172_v54  ;;  %3687 = vrot.lane.b32.xlu1 %v3276_v1, %s6661_s18  ;;  %v6227_v7 = vpack.c.bf16 %v1156_v62, %v1156_v62  ;;  %v6264_v8 = vpack.c.bf16 %v2170_v61, %v2170_v61  ;;  %v2175_v10 = vmax.f32 %v2099_v63, 0.0  ;;  %v2863_v55 = vld [vmem:[#allocation2 + $0x100] sm:$0xf]  ;;  %v1752_v19 = vld [vmem:[#allocation2 + $0x74] sm:$0x1] }
 0x19a   : > { %v6230_v9 = vpack.c.bf16 %v1159_v0, %v1159_v0  ;;  %v1476_v14 = vshrl.u32 %v6229_v2, 16  ;;  %v1479_v15 = vshll.u32 %v6229_v2, 16  ;;  %v1157_v41 = vmax.f32 %v1065_v5, 0.0  ;;  %v2090_v0 = vpop.f32.mrf.mxu1  ;;  %v2862_v63 = vld [vmem:[#allocation2 + $0xfc] sm:$0xf] }
 0x19b   : > { %v2495_v16 = vshrl.u32 %v6266_v3, 16  ;;  %v2498_v17 = vshll.u32 %v6266_v3, 16  ;;  %v1459_v20 = vshrl.u32 %v6227_v7, 16  ;;  %v1462_v22 = vshll.u32 %v6227_v7, 16  ;;  %v2771_v7 = vld [vmem:[#allocation2 + $0x15c] sm:$0xf] }
 0x19c   : > { %v2478_v23 = vshrl.u32 %v6264_v8, 16  ;;  %v2481_v24 = vshll.u32 %v6264_v8, 16  ;;  %v1478_v28 = vrot.slane %v1476_v14, 7  ;;  %v1484_v29 = vshrl.u32 %v6230_v9, 16 }
 0x19d   : > { %v2497_v33 = vrot.slane %v2495_v16, 7  ;;  %v1487_v34 = vshll.u32 %v6230_v9, 16  ;;  %v7162_v37 = vrot.slane %v1459_v20, 7  ;;  %v6269_v40 = vpack.c.bf16 %v2175_v10, %v2175_v10  ;;  %v2861_v10 = vld [vmem:[#allocation2 + $0xf4] sm:$0xf] }
 0x19e   : > { %v2480_v38 = vrot.slane %v2478_v23, 7  ;;  %v1481_v26 = vor.u32 %v1479_v15, %v1478_v28  ;;  %v1482_v36 = vrot.slane %v1478_v28, 4  ;;  %v1486_v56 = vrot.slane %v1484_v29, 7  ;;  %v2860_v28 = vld [vmem:[#allocation2 + $0xf0] sm:$0xf] }
 0x19f   : > { %v2500_v43 = vor.u32 %v2498_v17, %v2497_v33  ;;  %v2502_v57 = vrot.slane %v2497_v33, 4  ;;  %v1464_v44 = vor.u32 %v1462_v22, %v7162_v37  ;;  %v1465_v39 = vrot.slane %v7162_v37, 4  ;;  %v1745_v29 = vld [vmem:[#allocation2 + $0x68] sm:$0x1] }
 0x1a0   : > { %v2483_v47 = vor.u32 %v2481_v24, %v2480_v38  ;;  %v2485_v48 = vrot.slane %v2480_v38, 4  ;;  %v1749_v49 = vsel %vm6897_vm8, %v1481_v26, %v1748_v18  ;;  %v2521_v50 = vshrl.u32 %v6269_v40, 16  ;;  %v6349_v18 = vpop.f32.mrf.mxu0  ;;  %v6390_v24 = vpop.f32.mrf.mxu1 }
 0x1a1   : > { %v2501_v52 = vsel %vm6918_vm9, %v2493_v32, %v2500_v43  ;;  %v2762_v53 = vsel %vm6739_vm2, %v2502_v57, %v2761_v4  ;;  %1750 = vst [vmem:[#allocation2 + $0x6c] sm:$0xf] %v1749_v49  ;;  %v1742_v42 = vsel %vm6897_vm8, %v1464_v44, %v1741_v12  ;;  %v1489_v54 = vor.u32 %v1487_v34, %v1486_v56 }
 0x1a2   : > { %2760 = vst.msk [vmem:[#allocation2 + $0x148] sm:$0xf] %vm1682_vm6, %v2501_v52  ;;  %2763 = vst [vmem:[#allocation2 + $0x14c] sm:$0x1] %v2762_v53  ;;  %v2484_v11 = vsel %vm6918_vm9, %v2476_v46, %v2483_v47  ;;  %v2755_v32 = vsel %vm6739_vm2, %v2485_v48, %v2754_v6  ;;  %v1491_v58 = vrot.slane %v1486_v56, 4  ;;  %v2524_v62 = vshll.u32 %v6269_v40, 16  ;;  %v1077_v53 = vpop.f32.mrf.mxu0 }
 0x1a3   : > { %1743 = vst [vmem:[#allocation2 + $0x60] sm:$0xf] %v1742_v42  ;;  %2753 = vst.msk [vmem:[#allocation2 + $0x13c] sm:$0xf] %vm1682_vm6, %v2484_v11  ;;  %v6228_v61 = vpack.c.bf16 %v1157_v41, %v1157_v41  ;;  %v7184_v1 = vrot.slane %v2521_v50, 7  ;;  %v2091_v35 = vadd.f32 %v7150_v27, %v2090_v0  ;;  %v7187_v46 = vcombine.low %v2862_v63, %v2863_v55 }
 0x1a4   : > { %2756 = vst [vmem:[#allocation2 + $0x140] sm:$0x1] %v2755_v32  ;;  %v3513_v2 = vshll.u32 %v6483_v25, 16  ;;  %v1490_v3 = vsel %vm6918_vm9, %v1482_v36, %v1489_v54  ;;  %v1753_v5 = vsel %vm6739_vm2, %v1491_v58, %v1752_v19  ;;  %v1086_v23 = vadd.f32 %v7150_v27, %v6349_v18  ;;  %v6485_v40 = vld [vmem:[#allocation2 + $0xf8] ss:$0 sps:$4 sm:$0x11]   ;;  %v2093_v54 = vpop.f32.mrf.mxu1 }
 0x1a5   : > { %v1467_v8 = vshrl.u32 %v6228_v61, 16  ;;  %v1470_v9 = vshll.u32 %v6228_v61, 16  ;;  %1751 = vst.msk [vmem:[#allocation2 + $0x70] sm:$0xf] %vm1682_vm6, %v1490_v3  ;;  %1754 = vst [vmem:[#allocation2 + $0x74] sm:$0x1] %v1753_v5  ;;  %v2526_v14 = vor.u32 %v2524_v62, %v7184_v1  ;;  %v2102_v12 = vadd.f32 %v7150_v27, %v6390_v24  ;;  %v6350_v5 = vpop.f32.mrf.mxu0 }
 0x1a6   : > { %v2527_v15 = vrot.slane %v7184_v1, 4  ;;  %v2173_v16 = vmax.f32 %v2091_v35, 0.0  ;;  %v3506_v17 = vshrl.u32 %v7187_v46, 16  ;;  %v3508_v20 = vshll.u32 %v7187_v46, 16  ;;  %v2764_v32 = vld [vmem:[#allocation2 + $0x150] sm:$0xf] }
 0x1a7   : > { %v1469_v4 = vrot.slane %v1467_v8, 7  ;;  %v3515_v22 = vrot.slane %v3513_v2, 1  ;;  %v2772_v33 = vsel %vm6897_vm8, %v2526_v14, %v2771_v7  ;;  %v7202_v38 = vcombine.low %v2860_v28, %v2861_v10  ;;  %v1762_v8 = vld [vmem:[#allocation2 + $0x84] sm:$0xf] }
 0x1a8   : > { %v6267_v34 = vpack.c.bf16 %v2173_v16, %v2173_v16  ;;  %2773 = vst [vmem:[#allocation2 + $0x15c] sm:$0xf] %v2772_v33  ;;  %v3510_v36 = vrot.slane %v3508_v20, 1  ;;  %v1162_v43 = vmax.f32 %v1086_v23, 0.0  ;;  %v2176_v44 = vmax.f32 %v2102_v12, 0.0 }
 0x1a9   : > { %v1472_v41 = vor.u32 %v1470_v9, %v1469_v4  ;;  %v1474_v26 = vrot.slane %v1469_v4, 4  ;;  %v3494_v47 = vshrl.u32 %v7202_v38, 16  ;;  %v3496_v42 = vshll.u32 %v7202_v38, 16  ;;  %v2775_v18 = vld [vmem:[#allocation2 + $0x164] sm:$0x1] }
 0x1aa   : > { %v2504_v57 = vshrl.u32 %v6267_v34, 16  ;;  %v2507_v6 = vshll.u32 %v6267_v34, 16  ;;  %v3511_v49 = vor.u32 %v3510_v36, %v3506_v17  ;;  %v6233_v52 = vpack.c.bf16 %v1162_v43, %v1162_v43 }
 0x1ab   : > { %v1473_v48 = vsel %vm6918_vm9, %v1465_v39, %v1472_v41  ;;  %v1746_v25 = vsel %vm6739_vm2, %v1474_v26, %v1745_v29  ;;  %v6270_v55 = vpack.c.bf16 %v2176_v44, %v2176_v44  ;;  %v3501_v11 = vshll.u32 %v6485_v40, 16  ;;  %v2825_v29 = vld [vmem:[#allocation2 + $0x1c] sm:$0xf]  ;;  %v2824_v44 = vld [vmem:[#allocation2 + $0x18] sm:$0xf] }
 0x1ac   : > { %1744 = vst.msk [vmem:[#allocation2 + $0x64] sm:$0xf] %vm1682_vm6, %v1473_v48  ;;  %1747 = vst [vmem:[#allocation2 + $0x68] sm:$0x1] %v1746_v25  ;;  %v7212_v56 = vrot.slane %v2504_v57, 7  ;;  %v3516_v37 = vsel %vm3252_vm12, %v3511_v49, %v3515_v22  ;;  %v1510_v19 = vshrl.u32 %v6233_v52, 16  ;;  %v1078_v50 = vadd.f32 %v7150_v27, %v1077_v53 }
 0x1ad   : > { %v1513_v39 = vshll.u32 %v6233_v52, 16  ;;  %3727 = vrot.lane.b32.xlu0 %v3516_v37, %s6661_s18  ;;  %v2529_v61 = vshrl.u32 %v6270_v55, 16  ;;  %v2532_v0 = vshll.u32 %v6270_v55, 16  ;;  %v3498_v35 = vrot.slane %v3496_v42, 1  ;;  %v1755_v48 = vld [vmem:[#allocation2 + $0x78] sm:$0xf] }
 0x1ae   : > { %v2509_v58 = vor.u32 %v2507_v6, %v7212_v56  ;;  %v2510_v62 = vrot.slane %v7212_v56, 4  ;;  %v7220_v63 = vrot.slane %v1510_v19, 7  ;;  %v3503_v2 = vrot.slane %v3501_v11, 1  ;;  %v6487_v22 = vld [vmem:[#allocation2 + $0x20] ss:$0 sps:$4 sm:$0x11]   ;;  %v6393_v6 = vpop.f32.mrf.mxu1  ;;  %v1080_v11 = vpop.f32.mrf.mxu0 }
 0x1af   : > { %v1160_v3 = vmax.f32 %v1078_v50, 0.0  ;;  %v2531_v9 = vrot.slane %v2529_v61, 7  ;;  %v2094_v10 = vadd.f32 %v7150_v27, %v2093_v54  ;;  %v1089_v14 = vadd.f32 %v7150_v27, %v6350_v5  ;;  %v719_v42 = vld [vmem:[#allocation2 + $0x80] sm:$0x1]  ;;  %v7559_v59 = vld [vmem:[#allocation2 + $0x70] sm:$0xf] }
 0x1b0   : > { %v2765_v7 = vsel %vm6897_vm8, %v2509_v58, %v2764_v32  ;;  %v1515_v16 = vor.u32 %v1513_v39, %v7220_v63  ;;  %v1516_v17 = vrot.slane %v7220_v63, 4  ;;  %v3499_v4 = vor.u32 %v3498_v35, %v3494_v47  ;;  %v2768_v35 = vld [vmem:[#allocation2 + $0x158] sm:$0x1] }
 0x1b1   : > { %2766 = vst [vmem:[#allocation2 + $0x150] sm:$0xf] %v2765_v7  ;;  %v6231_v20 = vpack.c.bf16 %v1160_v3, %v1160_v3  ;;  %v2534_v23 = vor.u32 %v2532_v0, %v2531_v9  ;;  %v2536_v24 = vrot.slane %v2531_v9, 4  ;;  %v2174_v28 = vmax.f32 %v2094_v10, 0.0 }
 0x1b2   : > { %v1163_v33 = vmax.f32 %v1089_v14, 0.0  ;;  %v1763_v34 = vsel %vm6897_vm8, %v1515_v16, %v1762_v8  ;;  %v3504_v12 = vsel %vm3252_vm12, %v3499_v4, %v3503_v2  ;;  %v2115_v1 = vadd.f32 %v7150_v27, %v6393_v6  ;;  %v1766_v2 = vld [vmem:[#allocation2 + $0x8c] sm:$0x1]  ;;  %v669_v16 = vld [vmem:[#allocation2 + $0x168] sm:$0x1] }
 0x1b3   : > { %v1493_v40 = vshrl.u32 %v6231_v20, 16  ;;  %v1496_v41 = vshll.u32 %v6231_v20, 16  ;;  %1764 = vst [vmem:[#allocation2 + $0x84] sm:$0xf] %v1763_v34  ;;  %v2535_v26 = vsel %vm6918_vm9, %v2527_v15, %v2534_v23  ;;  %v2776_v36 = vsel %vm6739_vm2, %v2536_v24, %v2775_v18  ;;  %3725 = vrot.lane.b32.xlu1 %v3504_v12, %s6661_s18  ;;  %v618_v18 = vld [vmem:[#allocation2 + $0x9c] sm:$0x1]  ;;  %v2106_v24 = vpop.f32.mrf.mxu1 }
 0x1b4   : > { %v6268_v43 = vpack.c.bf16 %v2174_v28, %v2174_v28  ;;  %v6234_v57 = vpack.c.bf16 %v1163_v33, %v1163_v33  ;;  %2774 = vst.msk [vmem:[#allocation2 + $0x160] sm:$0xf] %vm1682_vm6, %v2535_v26  ;;  %2777 = vst [vmem:[#allocation2 + $0x164] sm:$0x1] %v2776_v36  ;;  %v7242_v25 = vcombine.low %v2824_v44, %v2825_v29  ;;  %v3285_v15 = vshll.u32 %v6487_v22, 16  ;;  %v6353_v26 = vpop.f32.mrf.mxu0 }
 0x1b5   : > { %v7239_v47 = vrot.slane %v1493_v40, 7  ;;  %v2179_v19 = vmax.f32 %v2115_v1, 0.0  ;;  %v720_v5 = vsel %vm6785_vm5, 0, %v719_v42  ;;  %v1081_v7 = vadd.f32 %v7150_v27, %v1080_v11  ;;  %v782_v28 = vld [vmem:[#allocation2 + $0x17c] sm:$0x1] }
 0x1b6   : > { %v2512_v49 = vshrl.u32 %v6268_v43, 16  ;;  %v2515_v52 = vshll.u32 %v6268_v43, 16  ;;  %v1518_v53 = vshrl.u32 %v6234_v57, 16  ;;  %v1521_v55 = vshll.u32 %v6234_v57, 16  ;;  %721 = vst [vmem:[#allocation2 + $0x80] sm:$0x1] %v720_v5 }
 0x1b7   : > { %v1498_v32 = vor.u32 %v1496_v41, %v7239_v47  ;;  %v1499_v37 = vrot.slane %v7239_v47, 4  ;;  %v3278_v39 = vshrl.u32 %v7242_v25, 16  ;;  %v3280_v58 = vshll.u32 %v7242_v25, 16  ;;  %v2785_v40 = vld [vmem:[#allocation2 + $0x174] sm:$0xf] }
 0x1b8   : > { %v2514_v50 = vrot.slane %v2512_v49, 7  ;;  %v1520_v54 = vrot.slane %v1518_v53, 7  ;;  %v3287_v61 = vrot.slane %v3285_v15, 1  ;;  %v6273_v3 = vpack.c.bf16 %v2179_v19, %v2179_v19  ;;  %v6489_v36 = vld [vmem:[#allocation2 + $0x110] ss:$0 sps:$4 sm:$0x11]   ;;  %v6394_v53 = vpop.f32.mrf.mxu1 }
 0x1b9   : > { %v1756_v0 = vsel %vm6897_vm8, %v1498_v32, %v1755_v48  ;;  %v3282_v22 = vrot.slane %v3280_v58, 1  ;;  %v1161_v23 = vmax.f32 %v1081_v7, 0.0  ;;  %v670_v63 = vsel %vm6739_vm2, 0, %v669_v16  ;;  %v2864_v44 = vld [vmem:[#allocation2 + $0x108] sm:$0xf] }
 0x1ba   : > { %1757 = vst [vmem:[#allocation2 + $0x78] sm:$0xf] %v1756_v0  ;;  %v2517_v8 = vor.u32 %v2515_v52, %v2514_v50  ;;  %v2519_v9 = vrot.slane %v2514_v50, 4  ;;  %v1523_v10 = vor.u32 %v1521_v55, %v1520_v54  ;;  %v1525_v14 = vrot.slane %v1520_v54, 4  ;;  %671 = vst [vmem:[#allocation2 + $0x168] sm:$0x1] %v670_v63 }
 0x1bb   : > { %v2555_v4 = vshrl.u32 %v6273_v3, 16  ;;  %v2558_v20 = vshll.u32 %v6273_v3, 16  ;;  %v6232_v41 = vpack.c.bf16 %v1161_v23, %v1161_v23  ;;  %v619_v43 = vsel %vm6739_vm2, 0, %v618_v18  ;;  %v2865_v48 = vld [vmem:[#allocation2 + $0x10c] sm:$0xf] }
 0x1bc   : > { %v2518_v33 = vsel %vm6918_vm9, %v2510_v62, %v2517_v8  ;;  %v2769_v29 = vsel %vm6739_vm2, %v2519_v9, %v2768_v35  ;;  %v1524_v34 = vsel %vm6918_vm9, %v1516_v17, %v1523_v10  ;;  %v1767_v12 = vsel %vm6739_vm2, %v1525_v14, %v1766_v2  ;;  %620 = vst [vmem:[#allocation2 + $0x9c] sm:$0x1] %v619_v43  ;;  %v2827_v55 = vld [vmem:[#allocation2 + $0x28] sm:$0xf]  ;;  %v2109_v14 = vpop.f32.mrf.mxu1 }
 0x1bd   : > { %2767 = vst.msk [vmem:[#allocation2 + $0x154] sm:$0xf] %vm1682_vm6, %v2518_v33  ;;  %2770 = vst [vmem:[#allocation2 + $0x158] sm:$0x1] %v2769_v29  ;;  %v7267_v56 = vrot.slane %v2555_v4, 7  ;;  %v3283_v62 = vor.u32 %v3282_v22, %v3278_v39  ;;  %v2107_v17 = vadd.f32 %v7150_v27, %v2106_v24  ;;  %v1102_v57 = vadd.f32 %v7150_v27, %v6353_v26  ;;  %v1093_v29 = vpop.f32.mrf.mxu0 }
 0x1be   : > { %1765 = vst.msk [vmem:[#allocation2 + $0x88] sm:$0xf] %vm1682_vm6, %v1524_v34  ;;  %1768 = vst [vmem:[#allocation2 + $0x8c] sm:$0x1] %v1767_v12  ;;  %v783_v6 = vsel %vm6785_vm5, 0, %v782_v28  ;;  %v1501_v52 = vshrl.u32 %v6232_v41, 16  ;;  %v2118_v19 = vadd.f32 %v7150_v27, %v6394_v53  ;;  %v7284_v54 = vcombine.low %v2864_v44, %v2865_v48 }
 0x1bf   : > { %v2560_v1 = vor.u32 %v2558_v20, %v7267_v56  ;;  %v2561_v15 = vrot.slane %v7267_v56, 4  ;;  %v3288_v49 = vsel %vm3252_vm12, %v3283_v62, %v3287_v61  ;;  %784 = vst [vmem:[#allocation2 + $0x17c] sm:$0x1] %v783_v6  ;;  %v1504_v42 = vshll.u32 %v6232_v41, 16  ;;  %v2826_v61 = vld [vmem:[#allocation2 + $0x24] sm:$0xf] }
 0x1c0   : > { %3689 = vrot.lane.b32.xlu1 %v3288_v49, %s6661_s18  ;;  %v2177_v11 = vmax.f32 %v2107_v17, 0.0  ;;  %v1166_v32 = vmax.f32 %v1102_v57, 0.0  ;;  %v1503_v50 = vrot.slane %v1501_v52, 7  ;;  %9023 = vst [vmem:[#allocation5_spill] sm:$0xff] %v7284_v54  ;;  %v3525_v58 = vshll.u32 %v6489_v36, 16 }
 0x1c1   : > { %v2786_v39 = vsel %vm6897_vm8, %v2560_v1, %v2785_v40  ;;  %v1759_v0 = vld [vmem:[#allocation2 + $0x80] sm:$0x1]  ;;  %v2180_v3 = vmax.f32 %v2118_v19, 0.0  ;;  %v7286_v5 = vcombine.low %v2826_v61, %v2827_v55  ;;  %v3518_v9 = vshrl.u32 %v7284_v54, 16  ;;  %v2778_v12 = vld [vmem:[#allocation2 + $0x168] sm:$0xf] }
 0x1c2   : > { %2787 = vst [vmem:[#allocation2 + $0x174] sm:$0xf] %v2786_v39  ;;  %v6271_v35 = vpack.c.bf16 %v2177_v11, %v2177_v11  ;;  %v6237_v2 = vpack.c.bf16 %v1166_v32, %v1166_v32  ;;  %v1506_v7 = vor.u32 %v1504_v42, %v1503_v50  ;;  %v1508_v8 = vrot.slane %v1503_v50, 4  ;;  %v6491_v33 = vld [vmem:[#allocation2 + $0x2c] ss:$0 sps:$4 sm:$0x11]  }
 0x1c3   : > { %v3520_v10 = vshll.u32 %v7284_v54, 16  ;;  %v6274_v24 = vpack.c.bf16 %v2180_v3, %v2180_v3  ;;  %v615_v62 = vld [vmem:[#allocation2 + $0x90] sm:$0x1]  ;;  %v1094_v47 = vadd.f32 %v7150_v27, %v1093_v29  ;;  %v1776_v41 = vld [vmem:[#allocation2 + $0x9c] sm:$0xf]  ;;  %v3527_v17 = vrot.slane %v3525_v58, 1 }
 0x1c4   : > { %v2538_v16 = vshrl.u32 %v6271_v35, 16  ;;  %v2541_v18 = vshll.u32 %v6271_v35, 16  ;;  %v1544_v4 = vshrl.u32 %v6237_v2, 16  ;;  %v1547_v20 = vshll.u32 %v6237_v2, 16  ;;  %v779_v48 = vld [vmem:[#allocation2 + $0x170] sm:$0x1] }
 0x1c5   : > { %v1507_v22 = vsel %vm6918_vm9, %v1499_v37, %v1506_v7  ;;  %v1760_v23 = vsel %vm6739_vm2, %v1508_v8, %v1759_v0  ;;  %v3522_v28 = vrot.slane %v3520_v10, 1  ;;  %v2110_v37 = vadd.f32 %v7150_v27, %v2109_v14  ;;  %v728_v55 = vld [vmem:[#allocation2 + $0xa4] sm:$0x1]  ;;  %v678_v50 = vld [vmem:[#allocation2 + $0x18c] sm:$0x1] }
 0x1c6   : > { %1758 = vst.msk [vmem:[#allocation2 + $0x7c] sm:$0xf] %vm1682_vm6, %v1507_v22  ;;  %1761 = vst [vmem:[#allocation2 + $0x80] sm:$0x1] %v1760_v23  ;;  %v7297_v34 = vrot.slane %v2538_v16, 7  ;;  %v7299_v40 = vrot.slane %v1544_v4, 7  ;;  %v6397_v22 = vpop.f32.mrf.mxu1 }
 0x1c7   : > { %v2563_v63 = vshrl.u32 %v6274_v24, 16  ;;  %v2566_v26 = vshll.u32 %v6274_v24, 16  ;;  %v3523_v36 = vor.u32 %v3522_v28, %v3518_v9  ;;  %v3290_v52 = vshrl.u32 %v7286_v5, 16  ;;  %v2789_v32 = vld [vmem:[#allocation2 + $0x17c] sm:$0x1] }
 0x1c8   : > { %v2543_v43 = vor.u32 %v2541_v18, %v7297_v34  ;;  %v2544_v57 = vrot.slane %v7297_v34, 4  ;;  %v1549_v6 = vor.u32 %v1547_v20, %v7299_v40  ;;  %v1550_v44 = vrot.slane %v7299_v40, 4  ;;  %v2866_v2 = vld [vmem:[#allocation2 + $0x114] sm:$0xf]  ;;  %v2867_v10 = vld [vmem:[#allocation2 + $0x118] sm:$0xf]  ;;  %v6354_v20 = vpop.f32.mrf.mxu0 }
 0x1c9   : > { %v2565_v1 = vrot.slane %v2563_v63, 7  ;;  %v3528_v49 = vsel %vm3252_vm12, %v3523_v36, %v3527_v17  ;;  %v3292_v53 = vshll.u32 %v7286_v5, 16  ;;  %v3297_v19 = vshll.u32 %v6491_v33, 16  ;;  %v6493_v23 = vld [vmem:[#allocation2 + $0x11c] ss:$0 sps:$4 sm:$0x11]  }
 0x1ca   : > { %v2779_v42 = vsel %vm6897_vm8, %v2543_v43, %v2778_v12  ;;  %v1777_v11 = vsel %vm6897_vm8, %v1549_v6, %v1776_v41  ;;  %3729 = vrot.lane.b32.xlu0 %v3528_v49, %s6661_s18  ;;  %v616_v39 = vsel %vm6739_vm2, 0, %v615_v62  ;;  %v1164_v35 = vmax.f32 %v1094_v47, 0.0  ;;  %v2828_v47 = vld [vmem:[#allocation2 + $0x30] sm:$0xf] }
 0x1cb   : > { %2780 = vst [vmem:[#allocation2 + $0x168] sm:$0xf] %v2779_v42  ;;  %1778 = vst [vmem:[#allocation2 + $0x9c] sm:$0xf] %v1777_v11  ;;  %v2568_v58 = vor.u32 %v2566_v26, %v2565_v1  ;;  %v2570_v61 = vrot.slane %v2565_v1, 4  ;;  %v3294_v0 = vrot.slane %v3292_v53, 1  ;;  %v1105_v28 = vadd.f32 %v7150_v27, %v6354_v20 }
 0x1cc   : > { %617 = vst [vmem:[#allocation2 + $0x90] sm:$0x1] %v616_v39  ;;  %v3299_v3 = vrot.slane %v3297_v19, 1  ;;  %v780_v7 = vsel %vm6785_vm5, 0, %v779_v48  ;;  %v2178_v8 = vmax.f32 %v2110_v37, 0.0  ;;  %v729_v9 = vsel %vm6785_vm5, 0, %v728_v55 }
 0x1cd   : > { %v2569_v14 = vsel %vm6918_vm9, %v2561_v15, %v2568_v58  ;;  %v2790_v16 = vsel %vm6739_vm2, %v2570_v61, %v2789_v32  ;;  %v3295_v18 = vor.u32 %v3294_v0, %v3290_v52  ;;  %v6235_v4 = vpack.c.bf16 %v1164_v35, %v1164_v35  ;;  %781 = vst [vmem:[#allocation2 + $0x170] sm:$0x1] %v780_v7  ;;  %v2829_v37 = vld [vmem:[#allocation2 + $0x34] sm:$0xf] }
 0x1ce   : > { %730 = vst [vmem:[#allocation2 + $0xa4] sm:$0x1] %v729_v9  ;;  %2788 = vst.msk [vmem:[#allocation2 + $0x178] sm:$0xf] %vm1682_vm6, %v2569_v14  ;;  %v6272_v24 = vpack.c.bf16 %v2178_v8, %v2178_v8  ;;  %v679_v56 = vsel %vm6739_vm2, 0, %v678_v50  ;;  %v2131_v15 = vadd.f32 %v7150_v27, %v6397_v22  ;;  %v7333_v62 = vcombine.low %v2866_v2, %v2867_v10  ;;  %v1096_v10 = vpop.f32.mrf.mxu0 }
 0x1cf   : > { %2791 = vst [vmem:[#allocation2 + $0x17c] sm:$0x1] %v2790_v16  ;;  %v3300_v33 = vsel %vm3252_vm12, %v3295_v18, %v3299_v3  ;;  %v1527_v29 = vshrl.u32 %v6235_v4, 16  ;;  %v1530_v12 = vshll.u32 %v6235_v4, 16  ;;  %680 = vst [vmem:[#allocation2 + $0x18c] sm:$0x1] %v679_v56  ;;  %v7340_v55 = vcombine.low %v2828_v47, %v2829_v37 }
 0x1d0   : > { %9024 = vst [vmem:[#allocation6_spill] sm:$0xff] %v7333_v62  ;;  %3691 = vrot.lane.b32.xlu1 %v3300_v33, %s6661_s18  ;;  %v2546_v41 = vshrl.u32 %v6272_v24, 16  ;;  %v2549_v63 = vshll.u32 %v6272_v24, 16  ;;  %v1167_v26 = vmax.f32 %v1105_v28, 0.0  ;;  %v2183_v36 = vmax.f32 %v2131_v15, 0.0  ;;  %v2122_v15 = vpop.f32.mrf.mxu1 }
 0x1d1   : > { %v7336_v17 = vrot.slane %v1527_v29, 7  ;;  %v3530_v43 = vshrl.u32 %v7333_v62, 16  ;;  %v3532_v6 = vshll.u32 %v7333_v62, 16  ;;  %v3537_v48 = vshll.u32 %v6493_v23, 16  ;;  %9025 = vst [vmem:[#allocation7_spill] sm:$0xff] %v7340_v55 }
 0x1d2   : > { %v2548_v49 = vrot.slane %v2546_v41, 7  ;;  %v6238_v52 = vpack.c.bf16 %v1167_v26, %v1167_v26  ;;  %v6277_v53 = vpack.c.bf16 %v2183_v36, %v2183_v36  ;;  %v6495_v39 = vld [vmem:[#allocation2 + $0x38] ss:$0 sps:$4 sm:$0x11]   ;;  %v675_v14 = vld [vmem:[#allocation2 + $0x180] sm:$0x1]  ;;  %v1097_v47 = vadd.f32 %v7150_v27, %v1096_v10 }
 0x1d3   : > { %v1769_v1 = vld [vmem:[#allocation2 + $0x90] sm:$0xf]  ;;  %v1532_v42 = vor.u32 %v1530_v12, %v7336_v17  ;;  %v1533_v11 = vrot.slane %v7336_v17, 4  ;;  %v3534_v32 = vrot.slane %v3532_v6, 1  ;;  %v3539_v19 = vrot.slane %v3537_v48, 1 }
 0x1d4   : > { %v2551_v50 = vor.u32 %v2549_v63, %v2548_v49  ;;  %v2553_v58 = vrot.slane %v2548_v49, 4  ;;  %v2782_v61 = vld [vmem:[#allocation2 + $0x170] sm:$0x1]  ;;  %v1552_v0 = vshrl.u32 %v6238_v52, 16  ;;  %v1555_v35 = vshll.u32 %v6238_v52, 16 }
 0x1d5   : > { %v1770_v2 = vsel %vm6897_vm8, %v1532_v42, %v1769_v1  ;;  %v2589_v3 = vshrl.u32 %v6277_v53, 16  ;;  %v2592_v7 = vshll.u32 %v6277_v53, 16  ;;  %v3535_v8 = vor.u32 %v3534_v32, %v3530_v43  ;;  %v725_v9 = vld [vmem:[#allocation2 + $0x98] sm:$0x1]  ;;  %v624_v22 = vld [vmem:[#allocation2 + $0xb4] sm:$0x1] }
 0x1d6   : > { %1771 = vst [vmem:[#allocation2 + $0x90] sm:$0xf] %v1770_v2  ;;  %v2552_v16 = vsel %vm6918_vm9, %v2544_v57, %v2551_v50  ;;  %v2783_v18 = vsel %vm6739_vm2, %v2553_v58, %v2782_v61  ;;  %v1554_v4 = vrot.slane %v1552_v0, 7  ;;  %v3302_v20 = vshrl.u32 %v7340_v55, 16  ;;  %v1780_v23 = vld [vmem:[#allocation2 + $0xa4] sm:$0x1] }
 0x1d7   : > { %2781 = vst.msk [vmem:[#allocation2 + $0x16c] sm:$0xf] %vm1682_vm6, %v2552_v16  ;;  %2784 = vst [vmem:[#allocation2 + $0x170] sm:$0x1] %v2783_v18  ;;  %v7354_v24 = vrot.slane %v2589_v3, 7  ;;  %v3540_v28 = vsel %vm3252_vm12, %v3535_v8, %v3539_v19  ;;  %v3304_v34 = vshll.u32 %v7340_v55, 16  ;;  %v2123_v40 = vadd.f32 %v7150_v27, %v2122_v15  ;;  %v6357_v19 = vpop.f32.mrf.mxu0 }
 0x1d8   : > { %v3309_v56 = vshll.u32 %v6495_v39, 16  ;;  %v1557_v57 = vor.u32 %v1555_v35, %v1554_v4  ;;  %v1559_v33 = vrot.slane %v1554_v4, 4  ;;  %v2799_v29 = vld [vmem:[#allocation2 + $0x18c] sm:$0xf]  ;;  %3731 = vrot.lane.b32.xlu0 %v3540_v28, %s6661_s18  ;;  %v726_v12 = vsel %vm6785_vm5, 0, %v725_v9  ;;  %v6398_v39 = vpop.f32.mrf.mxu1 }
 0x1d9   : > { %v788_v37 = vld [vmem:[#allocation2 + $0x194] sm:$0x1]  ;;  %v2594_v41 = vor.u32 %v2592_v7, %v7354_v24  ;;  %v2595_v63 = vrot.slane %v7354_v24, 4  ;;  %v3306_v26 = vrot.slane %v3304_v34, 1  ;;  %727 = vst [vmem:[#allocation2 + $0x98] sm:$0x1] %v726_v12  ;;  %v1118_v58 = vadd.f32 %v7150_v27, %v6357_v19 }
 0x1da   : > { %v3311_v36 = vrot.slane %v3309_v56, 1  ;;  %v6497_v43 = vld [vmem:[#allocation2 + $0x128] ss:$0 sps:$4 sm:$0x11]   ;;  %v1558_v6 = vsel %vm6918_vm9, %v1550_v44, %v1557_v57  ;;  %v1781_v48 = vsel %vm6739_vm2, %v1559_v33, %v1780_v23  ;;  %v1165_v1 = vmax.f32 %v1097_v47, 0.0 }
 0x1db   : > { %v676_v49 = vsel %vm6739_vm2, 0, %v675_v14  ;;  %v2868_v52 = vld [vmem:[#allocation2 + $0x120] sm:$0xf]  ;;  %v2869_v53 = vld [vmem:[#allocation2 + $0x124] sm:$0xf]  ;;  %v2800_v42 = vsel %vm6897_vm8, %v2594_v41, %v2799_v29  ;;  %v3307_v32 = vor.u32 %v3306_v26, %v3302_v20  ;;  %v625_v44 = vsel %vm6739_vm2, 0, %v624_v22 }
 0x1dc   : > { %1779 = vst.msk [vmem:[#allocation2 + $0xa0] sm:$0xf] %vm1682_vm6, %v1558_v6  ;;  %1782 = vst [vmem:[#allocation2 + $0xa4] sm:$0x1] %v1781_v48  ;;  %v6236_v50 = vpack.c.bf16 %v1165_v1, %v1165_v1  ;;  %v789_v61 = vsel %vm6785_vm5, 0, %v788_v37  ;;  %v2134_v0 = vadd.f32 %v7150_v27, %v6398_v39  ;;  %v2181_v7 = vmax.f32 %v2123_v40, 0.0 }
 0x1dd   : > { %677 = vst [vmem:[#allocation2 + $0x180] sm:$0x1] %v676_v49  ;;  %2801 = vst [vmem:[#allocation2 + $0x18c] sm:$0xf] %v2800_v42  ;;  %v2830_v35 = vld [vmem:[#allocation2 + $0x3c] sm:$0xf]  ;;  %v3312_v3 = vsel %vm3252_vm12, %v3307_v32, %v3311_v36  ;;  %v7383_v8 = vcombine.low %v2868_v52, %v2869_v53 }
 0x1de   : > { %626 = vst [vmem:[#allocation2 + $0xb4] sm:$0x1] %v625_v44  ;;  %v2831_v2 = vld [vmem:[#allocation2 + $0x40] sm:$0xf]  ;;  %790 = vst [vmem:[#allocation2 + $0x194] sm:$0x1] %v789_v61  ;;  %3693 = vrot.lane.b32.xlu1 %v3312_v3, %s6661_s18  ;;  %v6275_v20 = vpack.c.bf16 %v2181_v7, %v2181_v7 }
 0x1df   : > { %9026 = vst [vmem:[#allocation8_spill] sm:$0xff] %v7383_v8  ;;  %v3549_v9 = vshll.u32 %v6497_v43, 16  ;;  %v6499_v10 = vld [vmem:[#allocation2 + $0x44] ss:$0 sps:$4 sm:$0x11]   ;;  %v1535_v14 = vshrl.u32 %v6236_v50, 16  ;;  %v7388_v57 = vcombine.low %v2830_v35, %v2831_v2 }
 0x1e0   : > { %v1538_v16 = vshll.u32 %v6236_v50, 16  ;;  %v1170_v18 = vmax.f32 %v1118_v58, 0.0  ;;  %v2184_v4 = vmax.f32 %v2134_v0, 0.0  ;;  %v3542_v22 = vshrl.u32 %v7383_v8, 16  ;;  %v1773_v33 = vld [vmem:[#allocation2 + $0x98] sm:$0x1]  ;;  %v1109_v0 = vpop.f32.mrf.mxu0 }
 0x1e1   : > { %v3544_v23 = vshll.u32 %v7383_v8, 16  ;;  %v3551_v28 = vrot.slane %v3549_v9, 1  ;;  %v1537_v34 = vrot.slane %v1535_v14, 7  ;;  %9027 = vst [vmem:[#allocation9_spill] sm:$0xff] %v7388_v57  ;;  %v2572_v29 = vshrl.u32 %v6275_v20, 16  ;;  %v2125_v14 = vpop.f32.mrf.mxu1 }
 0x1e2   : > { %v6241_v56 = vpack.c.bf16 %v1170_v18, %v1170_v18  ;;  %v6278_v15 = vpack.c.bf16 %v2184_v4, %v2184_v4  ;;  %v2575_v12 = vshll.u32 %v6275_v20, 16  ;;  %v3321_v37 = vshll.u32 %v6499_v10, 16  ;;  %v621_v6 = vld [vmem:[#allocation2 + $0xa8] sm:$0x1]  ;;  %v734_v39 = vld [vmem:[#allocation2 + $0xbc] sm:$0x1] }
 0x1e3   : > { %v3546_v47 = vrot.slane %v3544_v23, 1  ;;  %v1540_v41 = vor.u32 %v1538_v16, %v1537_v34  ;;  %v1542_v26 = vrot.slane %v1537_v34, 4  ;;  %v7390_v48 = vrot.slane %v2572_v29, 7  ;;  %v785_v53 = vld [vmem:[#allocation2 + $0x188] sm:$0x1] }
 0x1e4   : > { %v1578_v36 = vshrl.u32 %v6241_v56, 16  ;;  %v1581_v43 = vshll.u32 %v6241_v56, 16  ;;  %v2597_v1 = vshrl.u32 %v6278_v15, 16  ;;  %v2600_v49 = vshll.u32 %v6278_v15, 16  ;;  %v2792_v40 = vld [vmem:[#allocation2 + $0x180] sm:$0xf] }
 0x1e5   : > { %v3547_v52 = vor.u32 %v3546_v47, %v3542_v22  ;;  %v1541_v42 = vsel %vm6918_vm9, %v1533_v11, %v1540_v41  ;;  %v1774_v32 = vsel %vm6739_vm2, %v1542_v26, %v1773_v33  ;;  %v3314_v19 = vshrl.u32 %v7388_v57, 16  ;;  %v1790_v17 = vld [vmem:[#allocation2 + $0xb4] sm:$0xf]  ;;  %v684_v35 = vld [vmem:[#allocation2 + $0x1a4] sm:$0x1]  ;;  %v6358_v41 = vpop.f32.mrf.mxu0 }
 0x1e6   : > { %v7398_v44 = vrot.slane %v1578_v36, 7  ;;  %1772 = vst.msk [vmem:[#allocation2 + $0x94] sm:$0xf] %vm1682_vm6, %v1541_v42  ;;  %1775 = vst [vmem:[#allocation2 + $0x98] sm:$0x1] %v1774_v32  ;;  %v2577_v50 = vor.u32 %v2575_v12, %v7390_v48  ;;  %v2578_v58 = vrot.slane %v7390_v48, 4  ;;  %v1110_v34 = vadd.f32 %v7150_v27, %v1109_v0 }
 0x1e7   : > { %v2599_v61 = vrot.slane %v2597_v1, 7  ;;  %v3552_v11 = vsel %vm3252_vm12, %v3547_v52, %v3551_v28  ;;  %v2803_v7 = vld [vmem:[#allocation2 + $0x194] sm:$0x1]  ;;  %v3316_v9 = vshll.u32 %v7388_v57, 16  ;;  %v3323_v10 = vrot.slane %v3321_v37, 1  ;;  %v6401_v1 = vpop.f32.mrf.mxu1 }
 0x1e8   : > { %v1583_v2 = vor.u32 %v1581_v43, %v7398_v44  ;;  %v1584_v3 = vrot.slane %v7398_v44, 4  ;;  %3733 = vrot.lane.b32.xlu0 %v3552_v11, %s6661_s18  ;;  %v2793_v16 = vsel %vm6897_vm8, %v2577_v50, %v2792_v40  ;;  %v622_v20 = vsel %vm6739_vm2, 0, %v621_v6  ;;  %v6501_v22 = vld [vmem:[#allocation2 + $0x134] ss:$0 sps:$4 sm:$0x11]  }
 0x1e9   : > { %v2602_v18 = vor.u32 %v2600_v49, %v2599_v61  ;;  %v2604_v4 = vrot.slane %v2599_v61, 4  ;;  %2794 = vst [vmem:[#allocation2 + $0x180] sm:$0xf] %v2793_v16  ;;  %v3318_v28 = vrot.slane %v3316_v9, 1  ;;  %623 = vst [vmem:[#allocation2 + $0xa8] sm:$0x1] %v622_v20  ;;  %v2126_v47 = vadd.f32 %v7150_v27, %v2125_v14 }
 0x1ea   : > { %v1791_v23 = vsel %vm6897_vm8, %v1583_v2, %v1790_v17  ;;  %v786_v56 = vsel %vm6785_vm5, 0, %v785_v53  ;;  %v2870_v15 = vld [vmem:[#allocation2 + $0x12c] sm:$0xf]  ;;  %v2871_v33 = vld [vmem:[#allocation2 + $0x130] sm:$0xf]  ;;  %v735_v37 = vsel %vm6785_vm5, 0, %v734_v39 }
 0x1eb   : > { %1792 = vst [vmem:[#allocation2 + $0xb4] sm:$0xf] %v1791_v23  ;;  %v2603_v29 = vsel %vm6918_vm9, %v2595_v63, %v2602_v18  ;;  %v2804_v12 = vsel %vm6739_vm2, %v2604_v4, %v2803_v7  ;;  %787 = vst [vmem:[#allocation2 + $0x188] sm:$0x1] %v786_v56  ;;  %v2832_v26 = vld [vmem:[#allocation2 + $0x48] sm:$0xf]  ;;  %v3319_v43 = vor.u32 %v3318_v28, %v3314_v19 }
 0x1ec   : > { %v2833_v36 = vld [vmem:[#allocation2 + $0x4c] sm:$0xf]  ;;  %2802 = vst.msk [vmem:[#allocation2 + $0x190] sm:$0xf] %vm1682_vm6, %v2603_v29  ;;  %2805 = vst [vmem:[#allocation2 + $0x194] sm:$0x1] %v2804_v12  ;;  %v7437_v53 = vcombine.low %v2870_v15, %v2871_v33 }
 0x1ed   : > { %v1168_v24 = vmax.f32 %v1110_v34, 0.0  ;;  %736 = vst [vmem:[#allocation2 + $0xbc] sm:$0x1] %v735_v37  ;;  %v7431_v63 = vld [vmem:[%s8953_s1] ss:$0 sm:$0xff]  ;;  %v685_v27 = vsel %vm6739_vm2, 0, %v684_v35  ;;  %v3324_v32 = vsel %vm3252_vm12, %v3319_v43, %v3323_v10  ;;  %v7440_v39 = vcombine.low %v2832_v26, %v2833_v36 }
 0x1ee   : > { %v1121_v6 = vadd.f32 %v7431_v63, %v6358_v41  ;;  %v2182_v49 = vmax.f32 %v2126_v47, 0.0  ;;  %686 = vst [vmem:[#allocation2 + $0x1a4] sm:$0x1] %v685_v27  ;;  %v2147_v52 = vadd.f32 %v7431_v63, %v6401_v1  ;;  %9028 = vst [vmem:[#allocation10_spill] sm:$0xff] %v7437_v53  ;;  %v3561_v42 = vshll.u32 %v6501_v22, 16  ;;  %3695 = vrot.lane.b32.xlu1 %v3324_v32, %s6661_s18  ;;  %v1112_v1 = vpop.f32.mrf.mxu0 }
 0x1ef   : > { %v6239_v40 = vpack.c.bf16 %v1168_v24, %v1168_v24  ;;  %9029 = vst [vmem:[#allocation11_spill] sm:$0xff] %v7440_v39  ;;  %v3554_v61 = vshrl.u32 %v7437_v53, 16  ;;  %v3556_v11 = vshll.u32 %v7437_v53, 16  ;;  %v6503_v9 = vld [vmem:[#allocation2 + $0x50] ss:$0 sps:$4 sm:$0x11]  }
 0x1f0   : > { %v1171_v19 = vmax.f32 %v1121_v6, 0.0  ;;  %v6276_v50 = vpack.c.bf16 %v2182_v49, %v2182_v49  ;;  %v2187_v17 = vmax.f32 %v2147_v52, 0.0  ;;  %v3563_v7 = vrot.slane %v3561_v42, 1  ;;  %v1783_v28 = vld [vmem:[#allocation2 + $0xa8] sm:$0xf] }
 0x1f1   : > { %v1561_v0 = vshrl.u32 %v6239_v40, 16  ;;  %v1564_v35 = vshll.u32 %v6239_v40, 16  ;;  %v3558_v18 = vrot.slane %v3556_v11, 1  ;;  %v3326_v23 = vshrl.u32 %v7440_v39, 16  ;;  %v731_v29 = vld [vmem:[#allocation2 + $0xb0] sm:$0x1] }
 0x1f2   : > { %v6242_v2 = vpack.c.bf16 %v1171_v19, %v1171_v19  ;;  %v2580_v14 = vshrl.u32 %v6276_v50, 16  ;;  %v2583_v16 = vshll.u32 %v6276_v50, 16  ;;  %v2223_v10 = vmul.f32 0.0, %v2187_v17  ;;  %v2796_v37 = vld [vmem:[#allocation2 + $0x188] sm:$0x1] }
 0x1f3   : > { %v7445_v4 = vrot.slane %v1561_v0, 7  ;;  %v3559_v15 = vor.u32 %v3558_v18, %v3554_v61  ;;  %v3328_v33 = vshll.u32 %v7440_v39, 16  ;;  %v3333_v26 = vshll.u32 %v6503_v9, 16  ;;  %v681_v49 = vld [vmem:[#allocation2 + $0x198] sm:$0x1] }
 0x1f4   : > { %v1586_v20 = vshrl.u32 %v6242_v2, 16  ;;  %v1589_v22 = vshll.u32 %v6242_v2, 16  ;;  %v2582_v34 = vrot.slane %v2580_v14, 7  ;;  %v6281_v56 = vpack.c.bf16 %v2223_v10, %v2223_v10  ;;  %v1794_v24 = vld [vmem:[#allocation2 + $0xbc] sm:$0x1] }
 0x1f5   : > { %v1566_v12 = vor.u32 %v1564_v35, %v7445_v4  ;;  %v1567_v47 = vrot.slane %v7445_v4, 4  ;;  %v630_v52 = vld [vmem:[#allocation2 + $0xcc] sm:$0x1]  ;;  %v3564_v19 = vsel %vm3252_vm12, %v3559_v15, %v3563_v7  ;;  %v3330_v0 = vrot.slane %v3328_v33, 1  ;;  %v2138_v35 = vpop.f32.mrf.mxu1  ;;  %v2813_v7 = vld [vmem:[#allocation2 + $0x1a4] sm:$0xf] }
 0x1f6   : > { %v1588_v41 = vrot.slane %v1586_v20, 7  ;;  %v2585_v36 = vor.u32 %v2583_v16, %v2582_v34  ;;  %v2587_v43 = vrot.slane %v2582_v34, 4  ;;  %v2623_v6 = vshrl.u32 %v6281_v56, 16  ;;  %v794_v50 = vld [vmem:[#allocation2 + $0x1ac] sm:$0x1]  ;;  %3735 = vrot.lane.b32.xlu0 %v3564_v19, %s6661_s18  ;;  %v6361_v20 = vpop.f32.mrf.mxu0 }
 0x1f7   : > { %v2626_v27 = vshll.u32 %v6281_v56, 16  ;;  %v1784_v42 = vsel %vm6897_vm8, %v1566_v12, %v1783_v28  ;;  %v7463_v2 = vld [vmem:[#allocation2 + $0x5c] ss:$0 sps:$4 sm:$0x11]   ;;  %v3335_v9 = vrot.slane %v3333_v26, 1  ;;  %v732_v14 = vsel %vm6785_vm5, 0, %v731_v29 }
 0x1f8   : > { %v1591_v32 = vor.u32 %v1589_v22, %v1588_v41  ;;  %v1593_v40 = vrot.slane %v1588_v41, 4  ;;  %1785 = vst [vmem:[#allocation2 + $0xa8] sm:$0xf] %v1784_v42  ;;  %v2586_v17 = vsel %vm6918_vm9, %v2578_v58, %v2585_v36  ;;  %v2797_v61 = vsel %vm6739_vm2, %v2587_v43, %v2796_v37  ;;  %v2872_v16 = vld [vmem:[#allocation2 + $0x138] sm:$0xf]  ;;  %v6402_v36 = vpop.f32.mrf.mxu1 }
 0x1f9   : > { %v7460_v11 = vrot.slane %v2623_v6, 7  ;;  %2795 = vst.msk [vmem:[#allocation2 + $0x184] sm:$0xf] %vm1682_vm6, %v2586_v17  ;;  %2798 = vst [vmem:[#allocation2 + $0x188] sm:$0x1] %v2797_v61  ;;  %v3331_v44 = vor.u32 %v3330_v0, %v3326_v23  ;;  %v682_v34 = vsel %vm6739_vm2, 0, %v681_v49  ;;  %v2139_v56 = vadd.f32 %v7431_v63, %v2138_v35 }
 0x1fa   : > { %v1592_v48 = vsel %vm6918_vm9, %v1584_v3, %v1591_v32  ;;  %v1795_v58 = vsel %vm6739_vm2, %v1593_v40, %v1794_v24  ;;  %733 = vst [vmem:[#allocation2 + $0xb0] sm:$0x1] %v732_v14  ;;  %v1113_v3 = vadd.f32 %v7431_v63, %v1112_v1  ;;  %v2873_v22 = vld [vmem:[#allocation2 + $0x13c] sm:$0xf]  ;;  %v631_v15 = vsel %vm6739_vm2, 0, %v630_v52 }
 0x1fb   : > { %1793 = vst.msk [vmem:[#allocation2 + $0xb8] sm:$0xf] %vm1682_vm6, %v1592_v48  ;;  %1796 = vst [vmem:[#allocation2 + $0xbc] sm:$0x1] %v1795_v58  ;;  %v2628_v10 = vor.u32 %v2626_v27, %v7460_v11  ;;  %v2629_v18 = vrot.slane %v7460_v11, 4  ;;  %v1134_v33 = vadd.f32 %v7431_v63, %v6361_v20  ;;  %v3336_v37 = vsel %vm3252_vm12, %v3331_v44, %v3335_v9 }
 0x1fc   : > { %v6505_v28 = vld [vmem:[#allocation2 + $0x140] ss:$0 sps:$4 sm:$0x11]   ;;  %v2834_v29 = vld [vmem:[#allocation2 + $0x54] sm:$0xf]  ;;  %v1169_v41 = vmax.f32 %v1113_v3, 0.0  ;;  %3697 = vrot.lane.b32.xlu1 %v3336_v37, %s6661_s18  ;;  %v2150_v6 = vadd.f32 %v7431_v63, %v6402_v36  ;;  %v7491_v27 = vcombine.low %v2872_v16, %v2873_v22 }
 0x1fd   : > { %v2835_v12 = vld [vmem:[#allocation2 + $0x58] sm:$0xf]  ;;  %v2814_v23 = vsel %vm6897_vm8, %v2628_v10, %v2813_v7  ;;  %683 = vst [vmem:[#allocation2 + $0x198] sm:$0x1] %v682_v34  ;;  %632 = vst [vmem:[#allocation2 + $0xcc] sm:$0x1] %v631_v15 }
 0x1fe   : > { %v795_v26 = vsel %vm6785_vm5, 0, %v794_v50  ;;  %2815 = vst [vmem:[#allocation2 + $0x1a4] sm:$0xf] %v2814_v23  ;;  %v2185_v43 = vmax.f32 %v2139_v56, 0.0  ;;  %v1174_v24 = vmax.f32 %v1134_v33, 0.0  ;;  %9030 = vst [vmem:[#allocation12_spill] sm:$0xff] %v7491_v27  ;;  %v6240_v1 = vpack.c.bf16 %v1169_v41, %v1169_v41 }
 0x1ff   : > { %796 = vst [vmem:[#allocation2 + $0x1ac] sm:$0x1] %v795_v26  ;;  %v3573_v49 = vshll.u32 %v6505_v28, 16  ;;  %v7493_v52 = vcombine.low %v2834_v29, %v2835_v12  ;;  %v3345_v42 = vshll.u32 %v7463_v2, 16  ;;  %v2188_v19 = vmax.f32 %v2150_v6, 0.0 }
 0x200   : > { %v6279_v32 = vpack.c.bf16 %v2185_v43, %v2185_v43  ;;  %v1210_v40 = vmul.f32 0.0, %v1174_v24  ;;  %v3566_v50 = vshrl.u32 %v7491_v27, 16  ;;  %v1569_v17 = vshrl.u32 %v6240_v1, 16  ;;  %v627_v34 = vld [vmem:[#allocation2 + $0xc0] sm:$0x1] }
 0x201   : > { %9031 = vst [vmem:[#allocation13_spill] sm:$0xff] %v7493_v52  ;;  %v1572_v61 = vshll.u32 %v6240_v1, 16  ;;  %v3568_v0 = vshll.u32 %v7491_v27, 16  ;;  %v3575_v35 = vrot.slane %v3573_v49, 1  ;;  %v2224_v9 = vmul.f32 0.0, %v2188_v19 }
 0x202   : > { %v2606_v48 = vshrl.u32 %v6279_v32, 16  ;;  %v2609_v58 = vshll.u32 %v6279_v32, 16  ;;  %v6245_v7 = vpack.c.bf16 %v1210_v40, %v1210_v40  ;;  %v1571_v14 = vrot.slane %v1569_v17, 7  ;;  %v1787_v44 = vld [vmem:[#allocation2 + $0xb0] sm:$0x1]  ;;  %v1125_v40 = vpop.f32.mrf.mxu0 }
 0x203   : > { %v3570_v16 = vrot.slane %v3568_v0, 1  ;;  %v3338_v10 = vshrl.u32 %v7493_v52, 16  ;;  %v3340_v2 = vshll.u32 %v7493_v52, 16  ;;  %v6282_v28 = vpack.c.bf16 %v2224_v9, %v2224_v9  ;;  %v791_v23 = vld [vmem:[#allocation2 + $0x1a0] sm:$0x1]  ;;  %v2141_v0 = vpop.f32.mrf.mxu1 }
 0x204   : > { %v7500_v3 = vrot.slane %v2606_v48, 7  ;;  %v1612_v20 = vshrl.u32 %v6245_v7, 16  ;;  %v1615_v22 = vshll.u32 %v6245_v7, 16  ;;  %v1574_v56 = vor.u32 %v1572_v61, %v1571_v14  ;;  %v2806_v33 = vld [vmem:[#allocation2 + $0x198] sm:$0xf] }
 0x205   : > { %v1576_v15 = vrot.slane %v1571_v14, 4  ;;  %v3571_v29 = vor.u32 %v3570_v16, %v3566_v50  ;;  %v3342_v12 = vrot.slane %v3340_v2, 1  ;;  %v2631_v36 = vshrl.u32 %v6282_v28, 16  ;;  %v740_v43 = vld [vmem:[#allocation2 + $0xd4] sm:$0x1] }
 0x206   : > { %v2611_v37 = vor.u32 %v2609_v58, %v7500_v3  ;;  %v2612_v41 = vrot.slane %v7500_v3, 4  ;;  %v7504_v26 = vrot.slane %v1612_v20, 7  ;;  %v1575_v24 = vsel %vm6918_vm9, %v1567_v47, %v1574_v56  ;;  %v1804_v1 = vld [vmem:[#allocation2 + $0xcc] sm:$0xf]  ;;  %v2874_v19 = vld [vmem:[#allocation2 + $0x144] sm:$0xf] }
 0x207   : > { %v1788_v6 = vsel %vm6739_vm2, %v1576_v15, %v1787_v44  ;;  %v2634_v49 = vshll.u32 %v6282_v28, 16  ;;  %v3576_v32 = vsel %vm3252_vm12, %v3571_v29, %v3575_v35  ;;  %v6509_v50 = vld [vmem:[#allocation2 + $0x14c] ss:$0 sps:$4 sm:$0x11]   ;;  %1786 = vst.msk [vmem:[#allocation2 + $0xac] sm:$0xf] %vm1682_vm6, %v1575_v24  ;;  %v3343_v7 = vor.u32 %v3342_v12, %v3338_v10 }
 0x208   : > { %1789 = vst [vmem:[#allocation2 + $0xb0] sm:$0x1] %v1788_v6  ;;  %v2807_v17 = vsel %vm6897_vm8, %v2611_v37, %v2806_v33  ;;  %v1617_v4 = vor.u32 %v1615_v22, %v7504_v26  ;;  %v1618_v47 = vrot.slane %v7504_v26, 4  ;;  %v2633_v61 = vrot.slane %v2631_v36, 7  ;;  %3737 = vrot.lane.b32.xlu0 %v3576_v32, %s6661_s18  ;;  %v2875_v48 = vld [vmem:[#allocation2 + $0x148] sm:$0xf]  ;;  %v6362_v33 = vpop.f32.mrf.mxu0 }
 0x209   : > { %v2836_v58 = vld [vmem:[#allocation2 + $0x60] sm:$0xf]  ;;  %2808 = vst [vmem:[#allocation2 + $0x198] sm:$0xf] %v2807_v17  ;;  %v2817_v35 = vld [vmem:[#allocation2 + $0x1ac] sm:$0x1]  ;;  %v1126_v16 = vadd.f32 %v7431_v63, %v1125_v40  ;;  %v7538_v37 = vcombine.low %v2874_v19, %v2875_v48 }
 0x20a   : > { %v3347_v9 = vrot.slane %v3345_v42, 1  ;;  %v628_v14 = vsel %vm6739_vm2, 0, %v627_v34  ;;  %v2837_v2 = vld [vmem:[#allocation2 + $0x64] sm:$0xf]  ;;  %v1805_v44 = vsel %vm6897_vm8, %v1617_v4, %v1804_v1  ;;  %v2636_v20 = vor.u32 %v2634_v49, %v2633_v61  ;;  %v737_v19 = vld [vmem:[#allocation2 + $0xc8] sm:$0x1] }
 0x20b   : > { %v2638_v22 = vrot.slane %v2633_v61, 4  ;;  %629 = vst [vmem:[#allocation2 + $0xc0] sm:$0x1] %v628_v14  ;;  %v792_v28 = vsel %vm6785_vm5, 0, %v791_v23  ;;  %1806 = vst [vmem:[#allocation2 + $0xcc] sm:$0xf] %v1805_v44  ;;  %v2142_v34 = vadd.f32 %v7431_v63, %v2141_v0  ;;  %v1137_v23 = vadd.f32 %v7431_v63, %v6362_v33 }
 0x20c   : > { %v6511_v56 = vld [vmem:[#allocation2 + $0x68] ss:$0 sps:$4 sm:$0x11]   ;;  %v3348_v10 = vsel %vm3252_vm12, %v3343_v7, %v3347_v9  ;;  %v1172_v42 = vmax.f32 %v1126_v16, 0.0  ;;  %793 = vst [vmem:[#allocation2 + $0x1a0] sm:$0x1] %v792_v28  ;;  %v2637_v29 = vsel %vm6918_vm9, %v2629_v18, %v2636_v20  ;;  %v7541_v11 = vcombine.low %v2836_v58, %v2837_v2 }
 0x20d   : > { %v741_v15 = vsel %vm6785_vm5, 0, %v740_v43  ;;  %v2818_v12 = vsel %vm6739_vm2, %v2638_v22, %v2817_v35  ;;  %3699 = vrot.lane.b32.xlu1 %v3348_v10, %s6661_s18  ;;  %9032 = vst [vmem:[#allocation14_spill] sm:$0xff] %v7538_v37  ;;  %2816 = vst.msk [vmem:[#allocation2 + $0x1a8] sm:$0xf] %vm1682_vm6, %v2637_v29  ;;  %v2186_v43 = vmax.f32 %v2142_v34, 0.0  ;;  %v3585_v24 = vshll.u32 %v6509_v50, 16  ;;  %v1128_v50 = vpop.f32.mrf.mxu0 }
 0x20e   : > { %742 = vst [vmem:[#allocation2 + $0xd4] sm:$0x1] %v741_v15  ;;  %2819 = vst [vmem:[#allocation2 + $0x1ac] sm:$0x1] %v2818_v12  ;;  %v6243_v36 = vpack.c.bf16 %v1172_v42, %v1172_v42  ;;  %v1175_v6 = vmax.f32 %v1137_v23, 0.0  ;;  %v3578_v18 = vshrl.u32 %v7538_v37, 16  ;;  %v1129_v15 = vadd.f32 %v7431_v63, %v1128_v50 }
 0x20f   : > { %9033 = vst [vmem:[#allocation15_spill] sm:$0xff] %v7541_v11  ;;  %v3580_v1 = vshll.u32 %v7538_v37, 16  ;;  %v3357_v49 = vshll.u32 %v6511_v56, 16  ;;  %v6280_v17 = vpack.c.bf16 %v2186_v43, %v2186_v43  ;;  %v3587_v4 = vrot.slane %v3585_v24, 1  ;;  %v2838_v56 = vld [vmem:[#allocation2 + $0x6c] sm:$0xf] }
 0x210   : > { %v1595_v32 = vshrl.u32 %v6243_v36, 16  ;;  %v1598_v40 = vshll.u32 %v6243_v36, 16  ;;  %v1211_v61 = vmul.f32 0.0, %v1175_v6  ;;  %v3350_v48 = vshrl.u32 %v7541_v11, 16  ;;  %v2876_v33 = vld [vmem:[#allocation2 + $0x150] sm:$0xf] }
 0x211   : > { %v3582_v0 = vrot.slane %v3580_v1, 1  ;;  %v3352_v35 = vshll.u32 %v7541_v11, 16  ;;  %v7547_v58 = vld [vmem:[#allocation2 + $0x158] ss:$0 sps:$4 sm:$0x11]   ;;  %v2614_v9 = vshrl.u32 %v6280_v17, 16  ;;  %v7581_v50 = vcombine.low %v2838_v56, %v7559_v59 }
 0x212   : > { %v7549_v7 = vrot.slane %v1595_v32, 7  ;;  %v2617_v14 = vshll.u32 %v6280_v17, 16  ;;  %v3359_v16 = vrot.slane %v3357_v49, 1  ;;  %v1797_v2 = vld [vmem:[#allocation2 + $0xc0] sm:$0xf]  ;;  %v6246_v44 = vpack.c.bf16 %v1211_v61, %v1211_v61 }
 0x213   : > { %v3583_v20 = vor.u32 %v3582_v0, %v3578_v18  ;;  %v3354_v22 = vrot.slane %v3352_v35, 1  ;;  %v738_v28 = vsel %vm6785_vm5, 0, %v737_v19  ;;  %v2616_v34 = vrot.slane %v2614_v9, 7  ;;  %v7556_v29 = vld [vmem:[#allocation2 + $0x154] sm:$0xf]  ;;  %9035 = vst [vmem:[#allocation17_spill] sm:$0xff] %v7581_v50 }
 0x214   : > { %v1600_v10 = vor.u32 %v1598_v40, %v7549_v7  ;;  %v1601_v42 = vrot.slane %v7549_v7, 4  ;;  %739 = vst [vmem:[#allocation2 + $0xc8] sm:$0x1] %v738_v28  ;;  %v2810_v12 = vld [vmem:[#allocation2 + $0x1a0] sm:$0x1]  ;;  %v1620_v23 = vshrl.u32 %v6246_v44, 16  ;;  %v7568_v17 = vcombine.low %v2876_v33, %v7556_v29 }
 0x215   : > { %v1623_v36 = vshll.u32 %v6246_v44, 16  ;;  %v3588_v43 = vsel %vm3252_vm12, %v3583_v20, %v3587_v4  ;;  %v3355_v24 = vor.u32 %v3354_v22, %v3350_v48  ;;  %v2619_v18 = vor.u32 %v2617_v14, %v2616_v34  ;;  %v7564_v63 = vld [vmem:[#allocation2 + $0x74] ss:$0 sps:$4 sm:$0x11]   ;;  %v2878_v19 = vld [vmem:[#allocation2 + $0x15c] sm:$0xf] }
 0x216   : > { %v1798_v6 = vsel %vm6897_vm8, %v1600_v10, %v1797_v2  ;;  %v2621_v1 = vrot.slane %v2616_v34, 4  ;;  %3739 = vrot.lane.b32.xlu0 %v3588_v43, %s6661_s18  ;;  %v1173_v49 = vmax.f32 %v1129_v15, 0.0  ;;  %v1622_v32 = vrot.slane %v1620_v23, 7  ;;  %9034 = vst [vmem:[#allocation16_spill] sm:$0xff] %v7568_v17  ;;  %v1808_v48 = vld [vmem:[#allocation2 + $0xd4] sm:$0x1] }
 0x217   : > { %1799 = vst [vmem:[#allocation2 + $0xc0] sm:$0xf] %v1798_v6  ;;  %v3360_v40 = vsel %vm3252_vm12, %v3355_v24, %v3359_v16  ;;  %v3597_v4 = vshll.u32 %v7547_v58, 16  ;;  %v7571_v61 = vld [vmem:[#allocation2 + $0x164] ss:$0 sps:$4 sm:$0x11]   ;;  %v2620_v60 = vsel %vm6918_vm9, %v2612_v41, %v2619_v18 }
 0x218   : > { %v2811_v0 = vsel %vm6739_vm2, %v2621_v1, %v2810_v12  ;;  %3701 = vrot.lane.b32.xlu1 %v3360_v40, %s6661_s18  ;;  %v6244_v35 = vpack.c.bf16 %v1173_v49, %v1173_v49  ;;  %v7583_v9 = vld [vmem:[#allocation2 + $0x160] sm:$0xf]  ;;  %v2840_v14 = vld [vmem:[#allocation2 + $0x78] sm:$0xf]  ;;  %2809 = vst.msk [vmem:[#allocation2 + $0x19c] sm:$0xf] %vm1682_vm6, %v2620_v60  ;;  %v1625_v3 = vor.u32 %v1623_v36, %v1622_v32 }
 0x219   : > { %2812 = vst [vmem:[#allocation2 + $0x1a0] sm:$0x1] %v2811_v0  ;;  %v1627_v16 = vrot.slane %v1622_v32, 4  ;;  %v3590_v41 = vshrl.u32 %v7568_v17, 16  ;;  %v3592_v2 = vshll.u32 %v7568_v17, 16  ;;  %v3599_v28 = vrot.slane %v3597_v4, 1 }
 0x21a   : > { %v7588_v44 = vld [vmem:[#allocation2 + $0x80] ss:$0 sps:$4 sm:$0x11]   ;;  %v1603_v20 = vshrl.u32 %v6244_v35, 16  ;;  %v1606_v22 = vshll.u32 %v6244_v35, 16  ;;  %v3362_v56 = vshrl.u32 %v7581_v50, 16  ;;  %v1626_v34 = vsel %vm6918_vm9, %v1618_v47, %v1625_v3 }
 0x21b   : > { %v7591_v10 = vld [vmem:[#allocation2 + $0x7c] sm:$0xf]  ;;  %v1809_v15 = vsel %vm6739_vm2, %v1627_v16, %v1808_v48  ;;  %v3594_v33 = vrot.slane %v3592_v2, 1  ;;  %v3364_v12 = vshll.u32 %v7581_v50, 16  ;;  %1807 = vst.msk [vmem:[#allocation2 + $0xd0] sm:$0xf] %vm1682_vm6, %v1626_v34  ;;  %v7603_v43 = vcombine.low %v2878_v19, %v7583_v9 }
 0x21c   : > { %1810 = vst [vmem:[#allocation2 + $0xd4] sm:$0x1] %v1809_v15  ;;  %v1605_v23 = vrot.slane %v1603_v20, 7  ;;  %v3369_v36 = vshll.u32 %v7564_v63, 16  ;;  %v3609_v26 = vshll.u32 %v7571_v61, 16  ;;  %v7607_v18 = vcombine.low %v2840_v14, %v7591_v10  ;;  %v6520_v49 = vld [vmem:[%s8954_s2 + $0x98] sm:$0xff]  }
 0x21d   : > { %9036 = vst [vmem:[#allocation18_spill] sm:$0xff] %v7603_v43  ;;  %v1801_v24 = vld [vmem:[#allocation2 + $0xc8] sm:$0x1]  ;;  %v3595_v6 = vor.u32 %v3594_v33, %v3590_v41  ;;  %v3366_v47 = vrot.slane %v3364_v12, 1  ;;  %v3381_v1 = vshll.u32 %v7588_v44, 16  ;;  %v3602_v35 = vshrl.u32 %v7603_v43, 16  ;;  %6415 = vmatpush1.bf16.msra.mxu1 %v6520_v49  ;;  %4301 = vmatpush1.bf16.msra.mxu0 %v6520_v49 }
 0x21e   : > { %9037 = vst [vmem:[#allocation19_spill] sm:$0xff] %v7607_v18  ;;  %v2842_v32 = vld [vmem:[#allocation2 + $0x84] sm:$0xf]  ;;  %v7613_v40 = vld [vmem:[#allocation2 + $0x88] sm:$0xf]  ;;  %v1608_v60 = vor.u32 %v1606_v22, %v1605_v23  ;;  %v1610_v0 = vrot.slane %v1605_v23, 4  ;;  %6404 = vmatprep.subr.bf16.mxu1 %v8961_v13  ;;  %4302 = vmatprep.subr.bf16.mxu0 %v8961_v13 }
 0x21f   : > { %v7615_v4 = vld [vmem:[#allocation2 + $0x8c] ss:$0 sps:$4 sm:$0x11]   ;;  %v7617_v19 = vld [vmem:[#allocation2 + $0x17c] ss:$0 sps:$4 sm:$0x11]   ;;  %v3600_v16 = vsel %vm3252_vm12, %v3595_v6, %v3599_v28  ;;  %v3367_v41 = vor.u32 %v3366_v47, %v3362_v56 }
 0x220   : > { %v3371_v48 = vrot.slane %v3369_v36, 1  ;;  %v7620_v14 = vld [vmem:[#allocation2 + $0x170] ss:$0 sps:$4 sm:$0x11]   ;;  %v2882_v3 = vld [vmem:[#allocation2 + $0x174] sm:$0xf]  ;;  %v1609_v22 = vsel %vm6918_vm9, %v1601_v42, %v1608_v60  ;;  %v1802_v33 = vsel %vm6739_vm2, %v1610_v0, %v1801_v24  ;;  %3741 = vrot.lane.b32.xlu0 %v3600_v16, %s6661_s18  ;;  %v7646_v24 = vcombine.low %v2842_v32, %v7613_v40 }
 0x221   : > { %v3604_v2 = vshll.u32 %v7603_v43, 16  ;;  %v3611_v20 = vrot.slane %v3609_v26, 1  ;;  %v2880_v34 = vld [vmem:[#allocation2 + $0x168] sm:$0xf]  ;;  %v7624_v15 = vld [vmem:[#allocation2 + $0x16c] sm:$0xf] }
 0x222   : > { %v3374_v12 = vshrl.u32 %v7607_v18, 16  ;;  %v3376_v28 = vshll.u32 %v7607_v18, 16  ;;  %v7635_v56 = vld [vmem:[#allocation2 + $0x178] sm:$0xf]  ;;  %1800 = vst.msk [vmem:[#allocation2 + $0xc4] sm:$0xf] %vm1682_vm6, %v1609_v22  ;;  %v3372_v23 = vsel %vm3252_vm12, %v3367_v41, %v3371_v48  ;;  %v7642_v42 = vcombine.low %v2880_v34, %v7624_v15 }
 0x223   : > { %1803 = vst [vmem:[#allocation2 + $0xc8] sm:$0x1] %v1802_v33  ;;  %v3606_v7 = vrot.slane %v3604_v2, 1  ;;  %v3383_v36 = vrot.slane %v3381_v1, 1  ;;  %3703 = vrot.lane.b32.xlu1 %v3372_v23, %s6661_s18  ;;  %v3621_v26 = vshll.u32 %v7620_v14, 16  ;;  %9039 = vst [vmem:[#allocation21_spill] sm:$0xff] %v7646_v24  ;;  %v7658_v16 = vcombine.low %v2882_v3, %v7635_v56 }
 0x224   : > { %v3378_v30 = vrot.slane %v3376_v28, 1  ;;  %9038 = vst [vmem:[#allocation20_spill] sm:$0xff] %v7642_v42  ;;  %v6525_v6 = vld [vmem:[%s8954_s2 + $0x90] sm:$0xff]   ;;  %v7653_v60 = vld [vmem:[#allocation2 + $0x98] ss:$0 sps:$4 sm:$0x11]  }
 0x225   : > { %v2844_v47 = vld [vmem:[#allocation2 + $0x90] sm:$0xf]  ;;  %v7651_v1 = vld [vmem:[#allocation2 + $0x94] sm:$0xf]  ;;  %v3607_v0 = vor.u32 %v3606_v7, %v3602_v35  ;;  %v3393_v48 = vshll.u32 %v7615_v4, 16  ;;  %9040 = vst [vmem:[#allocation22_spill] sm:$0xff] %v7658_v16  ;;  %6416 = vmatpush1.bf16.msra.mxu1 %v6525_v6  ;;  %4303 = vmatpush1.bf16.msra.mxu0 %v6525_v6 }
 0x226   : > { %v3633_v32 = vshll.u32 %v7617_v19, 16  ;;  %v2884_v41 = vld [vmem:[#allocation2 + $0x180] sm:$0xf]  ;;  %v3379_v2 = vor.u32 %v3378_v30, %v3374_v12  ;;  %v3614_v34 = vshrl.u32 %v7642_v42, 16  ;;  %v3616_v22 = vshll.u32 %v7642_v42, 16 }
 0x227   : > { %v3623_v33 = vrot.slane %v3621_v26, 1  ;;  %v7664_v35 = vld [vmem:[#allocation2 + $0x188] ss:$0 sps:$4 sm:$0x11]   ;;  %v3612_v28 = vsel %vm3252_vm12, %v3607_v0, %v3611_v20  ;;  %v3386_v23 = vshrl.u32 %v7646_v24, 16  ;;  %v3388_v3 = vshll.u32 %v7646_v24, 16 }
 0x228   : > { %v3395_v7 = vrot.slane %v3393_v48, 1  ;;  %v7670_v12 = vld [vmem:[#allocation2 + $0x184] sm:$0xf]  ;;  %3743 = vrot.lane.b32.xlu0 %v3612_v28, %s6661_s18  ;;  %v3384_v30 = vsel %vm3252_vm12, %v3379_v2, %v3383_v36  ;;  %v3618_v49 = vrot.slane %v3616_v22, 1  ;;  %v3626_v26 = vshrl.u32 %v7658_v16, 16  ;;  %v6534_v0 = vld [vmem:[%s8954_s2 + $0x88] sm:$0xff]  }
 0x229   : > { %v3628_v51 = vshll.u32 %v7658_v16, 16  ;;  %v2846_v21 = vld [vmem:[#allocation2 + $0x9c] sm:$0xf]  ;;  %v7676_v20 = vld [vmem:[#allocation2 + $0xa0] sm:$0xf]  ;;  %3705 = vrot.lane.b32.xlu1 %v3384_v30, %s6661_s18  ;;  %v3390_v48 = vrot.slane %v3388_v3, 1  ;;  %v7683_v28 = vcombine.low %v2844_v47, %v7651_v1  ;;  %v7689_v24 = vcombine.low %v2884_v41, %v7670_v12 }
 0x22a   : > { %v3635_v13 = vrot.slane %v3633_v32, 1  ;;  %v3405_v36 = vshll.u32 %v7653_v60, 16  ;;  %v7686_v2 = vld [vmem:[#allocation2 + $0xa4] ss:$0 sps:$4 sm:$0x11]   ;;  %v3619_v16 = vor.u32 %v3618_v49, %v3614_v34  ;;  %v3645_v43 = vshll.u32 %v7664_v35, 16 }
 0x22b   : > { %9041 = vst [vmem:[#allocation23_spill] sm:$0xff] %v7683_v28  ;;  %v2886_v22 = vld [vmem:[#allocation2 + $0x18c] sm:$0xf]  ;;  %v3630_v42 = vrot.slane %v3628_v51, 1  ;;  %9042 = vst [vmem:[#allocation24_spill] sm:$0xff] %v7689_v24  ;;  %v9043_v30 = vmov 0   ;;  %v3391_v32 = vor.u32 %v3390_v48, %v3386_v23 }
 0x22c   : > { %6405 = vmatprep.subr.bf16.mxu1 %v9043_v30  ;;  %v7693_v3 = vld [vmem:[#allocation2 + $0x190] sm:$0xf]  ;;  %v3398_v47 = vshrl.u32 %v7683_v28, 16  ;;  %v3400_v18 = vshll.u32 %v7683_v28, 16  ;;  %v3407_v17 = vrot.slane %v3405_v36, 1  ;;  %4304 = vmatprep.subr.bf16.mxu0 %v9043_v30  ;;  %v3624_v51 = vsel %vm3252_vm12, %v3619_v16, %v3623_v33 }
 0x22d   : > { %v7698_v34 = vld [vmem:[#allocation2 + $0x194] ss:$0 sps:$4 sm:$0x11]   ;;  %v3631_v6 = vor.u32 %v3630_v42, %v3626_v26  ;;  %v3638_v41 = vshrl.u32 %v7689_v24, 16  ;;  %v3640_v49 = vshll.u32 %v7689_v24, 16  ;;  %3745 = vrot.lane.b32.xlu0 %v3624_v51, %s6661_s18  ;;  %v3396_v23 = vsel %vm3252_vm12, %v3391_v32, %v3395_v7  ;;  %6417 = vmatpush1.bf16.msra.mxu1 %v6534_v0  ;;  %v6539_v42 = vld [vmem:[%s8954_s2 + $0x80] sm:$0xff]  }
 0x22e   : > { %v2848_v50 = vld [vmem:[#allocation2 + $0xa8] sm:$0xf]  ;;  %v7703_v37 = vld [vmem:[#allocation2 + $0xac] sm:$0xf]  ;;  %v3402_v48 = vrot.slane %v3400_v18, 1  ;;  %v3647_v36 = vrot.slane %v3645_v43, 1  ;;  %v7708_v28 = vcombine.low %v2846_v21, %v7676_v20  ;;  %3707 = vrot.lane.b32.xlu1 %v3396_v23, %s6661_s18  ;;  %v7719_v18 = vcombine.low %v2886_v22, %v7693_v3  ;;  %4305 = vmatpush1.bf16.msra.mxu0 %v6534_v0 }
 0x22f   : > { %v7710_v11 = vld [vmem:[#allocation2 + $0xb0] ss:$0 sps:$4 sm:$0x11]   ;;  %v3636_v16 = vsel %vm3252_vm12, %v3631_v6, %v3635_v13  ;;  %v3642_v33 = vrot.slane %v3640_v49, 1  ;;  %v3417_v26 = vshll.u32 %v7686_v2, 16  ;;  %v3657_v24 = vshll.u32 %v7698_v34, 16  ;;  %6406 = vmatprep.subr.bf16.mxu1 %v9043_v30  ;;  %4306 = vmatprep.subr.bf16.mxu0 %v9043_v30 }
 0x230   : > { %9044 = vst [vmem:[#allocation25_spill] sm:$0xff] %v7708_v28  ;;  %9045 = vst [vmem:[#allocation26_spill] sm:$0xff] %v7719_v18  ;;  %v2888_v21 = vld [vmem:[#allocation2 + $0x198] sm:$0xf]  ;;  %v7721_v43 = vld [vmem:[#allocation2 + $0x19c] sm:$0xf]  ;;  %v3403_v7 = vor.u32 %v3402_v48, %v3398_v47  ;;  %v7738_v27 = vcombine.low %v2848_v50, %v7703_v37 }
 0x231   : > { %v3410_v32 = vshrl.u32 %v7708_v28, 16  ;;  %v3412_v51 = vshll.u32 %v7708_v28, 16  ;;  %v7727_v13 = vld [vmem:[#allocation2 + $0x1a0] ss:$0 sps:$4 sm:$0x11]   ;;  %v3643_v6 = vor.u32 %v3642_v33, %v3638_v41  ;;  %v3419_v22 = vrot.slane %v3417_v26, 1  ;;  %3747 = vrot.lane.b32.xlu0 %v3636_v16, %s6661_s18  ;;  %6418 = vmatpush1.bf16.msra.mxu1 %v6539_v42 }
 0x232   : > { %v3650_v0 = vshrl.u32 %v7719_v18, 16  ;;  %v3652_v49 = vshll.u32 %v7719_v18, 16  ;;  %v6548_v47 = vld [vmem:[%s8954_s2 + $0x78] sm:$0xff]   ;;  %v3408_v23 = vsel %vm3252_vm12, %v3403_v7, %v3407_v17  ;;  %v3659_v28 = vrot.slane %v3657_v24, 1  ;;  %9046 = vst [vmem:[#allocation27_spill] sm:$0xff] %v7738_v27  ;;  %4307 = vmatpush1.bf16.msra.mxu0 %v6539_v42  ;;  %6407 = vmatprep.subr.bf16.mxu1 %v9043_v30 }
 0x233   : > { %v3414_v48 = vrot.slane %v3412_v51, 1  ;;  %v2850_v41 = vld [vmem:[#allocation2 + $0xb4] sm:$0xf]  ;;  %v7740_v33 = vld [vmem:[#allocation2 + $0xb8] sm:$0xf]  ;;  %3709 = vrot.lane.b32.xlu1 %v3408_v23, %s6661_s18  ;;  %v3648_v18 = vsel %vm3252_vm12, %v3643_v6, %v3647_v36  ;;  %v3429_v16 = vshll.u32 %v7710_v11, 16  ;;  %v7748_v17 = vcombine.low %v2888_v21, %v7721_v43  ;;  %4308 = vmatprep.subr.bf16.mxu0 %v9043_v30 }
 0x234   : > { %v7742_v26 = vld [vmem:[#allocation2 + $0x4] sm:$0xf]  ;;  %v3654_v52 = vrot.slane %v3652_v49, 1  ;;  %v7750_v24 = vld [vmem:[#allocation2 + $0xbc] ss:$0 sps:$4 sm:$0x11]   ;;  %v7767_v8 = vcombine.low %v2850_v41, %v7740_v33 }
 0x235   : > { %9047 = vst [vmem:[#allocation28_spill] sm:$0xff] %v7742_v26  ;;  %9048 = vst [vmem:[#allocation29_spill] sm:$0xff] %v7748_v17  ;;  %v3415_v50 = vor.u32 %v3414_v48, %v3410_v32  ;;  %v3422_v7 = vshrl.u32 %v7738_v27, 16  ;;  %v3424_v51 = vshll.u32 %v7738_v27, 16  ;;  %v3669_v53 = vshll.u32 %v7727_v13, 16  ;;  %v6553_v32 = vld [vmem:[%s8954_s2 + $0x70] sm:$0xff]   ;;  %3749 = vrot.lane.b32.xlu0 %v3648_v18, %s6661_s18  ;;  %6419 = vmatpush1.bf16.msra.mxu1 %v6548_v47 }
 0x236   : > { %v7755_v39 = vld [vmem:[#allocation2 + $0x8] ss:$0 sps:$4 sm:$0x11]   ;;  %v3655_v36 = vor.u32 %v3654_v52, %v3650_v0  ;;  %v3431_v6 = vrot.slane %v3429_v16, 1  ;;  %v3662_v21 = vshrl.u32 %v7748_v17, 16  ;;  %v3664_v49 = vshll.u32 %v7748_v17, 16  ;;  %4309 = vmatpush1.bf16.msra.mxu0 %v6548_v47  ;;  %6408 = vmatprep.subr.bf16.mxu1 %v9043_v30 }
 0x237   : > { %9049 = vst [vmem:[#allocation30_spill] sm:$0xff] %v7755_v39  ;;  %v2820_v42 = vld [vmem:[#allocation2] sm:$0xf]  ;;  %v3420_v23 = vsel %vm3252_vm12, %v3415_v50, %v3419_v22  ;;  %v3426_v48 = vrot.slane %v3424_v51, 1  ;;  %v3671_v27 = vrot.slane %v3669_v53, 1  ;;  %9050 = vst [vmem:[#allocation31_spill] sm:$0xff] %v7767_v8  ;;  %4310 = vmatprep.subr.bf16.mxu0 %v9043_v30 }
 0x238   : > { %v2852_v52 = vld [vmem:[#allocation2 + $0xc0] sm:$0xf]  ;;  %v7769_v0 = vld [vmem:[#allocation2 + $0xc4] sm:$0xf]  ;;  %v7771_v16 = vld [vmem:[#allocation2 + $0xdc] sm:$0xf]  ;;  %3711 = vrot.lane.b32.xlu1 %v3420_v23, %s6661_s18  ;;  %v3660_v17 = vsel %vm3252_vm12, %v3655_v36, %v3659_v28  ;;  %v7777_v22 = vcombine.low %v2820_v42, %v7742_v26 }
 0x239   : > { %9051 = vst [vmem:[#allocation32_spill] sm:$0xff] %v7769_v0  ;;  %9052 = vst [vmem:[#allocation33_spill] sm:$0xff] %v7771_v16  ;;  %v3666_v57 = vrot.slane %v3664_v49, 1  ;;  %v3441_v18 = vshll.u32 %v7750_v24, 16  ;;  %v3427_v41 = vor.u32 %v3426_v48, %v3422_v7  ;;  %v3434_v50 = vshrl.u32 %v7767_v8, 16  ;;  %v6556_v47 = vld [vmem:[%s8954_s2 + $0x68] sm:$0xff]   ;;  %3751 = vrot.lane.b32.xlu0 %v3660_v17, %s6661_s18  ;;  %6420 = vmatpush1.bf16.msra.mxu1 %v6553_v32 }
 0x23a   : > { %9053 = vst [vmem:[#allocation34_spill] sm:$0xff] %v7777_v22  ;;  %v7779_v53 = vld [vmem:[#allocation2 + $0xc8] ss:$0 sps:$4 sm:$0x11]   ;;  %v3436_v51 = vshll.u32 %v7767_v8, 16  ;;  %v3256_v49 = vshll.u32 %v7777_v22, 16  ;;  %v7796_v54 = vcombine.low %v2852_v52, %v7769_v0  ;;  %4311 = vmatpush1.bf16.msra.mxu0 %v6553_v32  ;;  %6409 = vmatprep.subr.bf16.mxu1 %v9043_v30 }
 0x23b   : > { %v2856_v62 = vld [vmem:[#allocation2 + $0xd8] sm:$0xf]  ;;  %v7783_v55 = vld [vmem:[#allocation2 + $0xe0] ss:$0 sps:$4 sm:$0x11]   ;;  %v3667_v28 = vor.u32 %v3666_v57, %v3662_v21  ;;  %v3443_v36 = vrot.slane %v3441_v18, 1  ;;  %v3432_v7 = vsel %vm3252_vm12, %v3427_v41, %v3431_v6  ;;  %4312 = vmatprep.subr.bf16.mxu0 %v9043_v30 }
 0x23c   : > { %9054 = vst [vmem:[#allocation35_spill] sm:$0xff] %v7783_v55  ;;  %v3261_v42 = vshll.u32 %v7755_v39, 16  ;;  %v2854_v23 = vld [vmem:[#allocation2 + $0xcc] sm:$0xf]  ;;  %v3438_v48 = vrot.slane %v3436_v51, 1  ;;  %v3254_v8 = vshrl.u32 %v7777_v22, 16  ;;  %3713 = vrot.lane.b32.xlu1 %v3432_v7, %s6661_s18  ;;  %v7806_v6 = vcombine.low %v2856_v62, %v7771_v16 }
 0x23d   : > { %9055 = vst [vmem:[#allocation36_spill] sm:$0xff] %v7796_v54  ;;  %v7798_v57 = vld [vmem:[#allocation2 + $0xd0] sm:$0xf]  ;;  %v2890_v21 = vld [vmem:[#allocation2 + $0x1a4] sm:$0xf]  ;;  %v3672_v39 = vsel %vm3252_vm12, %v3667_v28, %v3671_v27  ;;  %v3258_v26 = vrot.slane %v3256_v49, 1  ;;  %6421 = vmatpush1.bf16.msra.mxu1 %v6556_v47 }
 0x23e   : > { %v7800_v18 = vld [vmem:[#allocation2 + $0x1a8] sm:$0xf]  ;;  %v3453_v17 = vshll.u32 %v7779_v53, 16  ;;  %9057 = vst [vmem:[#allocation38_spill] sm:$0xff] %v7806_v6  ;;  %v3439_v52 = vor.u32 %v3438_v48, %v3434_v50  ;;  %v3446_v51 = vshrl.u32 %v7796_v54, 16  ;;  %v3448_v22 = vshll.u32 %v7796_v54, 16  ;;  %3753 = vrot.lane.b32.xlu0 %v3672_v39, %s6661_s18  ;;  %4313 = vmatpush1.bf16.msra.mxu0 %v6556_v47 }
 0x23f   : > { %9056 = vst [vmem:[#allocation37_spill] sm:$0xff] %v7800_v18  ;;  %v7808_v41 = vld [vmem:[#allocation2 + $0xd4] ss:$0 sps:$4 sm:$0x11]   ;;  %v3259_v27 = vor.u32 %v3258_v26, %v3254_v8  ;;  %v3263_v28 = vrot.slane %v3261_v42, 1  ;;  %v3472_v49 = vshll.u32 %v7806_v6, 16  ;;  %v7821_v48 = vcombine.low %v2854_v23, %v7798_v57  ;;  %6410 = vmatprep.subr.bf16.mxu1 %v9043_v30  ;;  %4314 = vmatprep.subr.bf16.mxu0 %v9043_v30 }
 0x240   : > { %v7812_v0 = vld [vmem:[#allocation2 + $0x1ac] ss:$0 sps:$4 sm:$0x11]   ;;  %v3477_v62 = vshll.u32 %v7783_v55, 16  ;;  %v3444_v32 = vsel %vm3252_vm12, %v3439_v52, %v3443_v36  ;;  %v3450_v50 = vrot.slane %v3448_v22, 1  ;;  %v3455_v7 = vrot.slane %v3453_v17, 1 }
 0x241   : > { %9058 = vst [vmem:[#allocation39_spill] sm:$0xff] %v7812_v0  ;;  %9059 = vst [vmem:[#allocation40_spill] sm:$0xff] %v7821_v48  ;;  %v6557_v54 = vld [vmem:[%s8954_s2 + $0x60] sm:$0xff]   ;;  %3715 = vrot.lane.b32.xlu1 %v3444_v32, %s6661_s18  ;;  %v3470_v8 = vshrl.u32 %v7806_v6, 16  ;;  %v3474_v26 = vrot.slane %v3472_v49, 1  ;;  %v3465_v42 = vshll.u32 %v7808_v41, 16  ;;  %v7830_v39 = vcombine.low %v2890_v21, %v7800_v18 }
 0x242   : > { %v3451_v22 = vor.u32 %v3450_v50, %v3446_v51  ;;  %v3458_v36 = vshrl.u32 %v7821_v48, 16  ;;  %v3460_v23 = vshll.u32 %v7821_v48, 16  ;;  %v3681_v17 = vshll.u32 %v7812_v0, 16  ;;  %6422 = vmatpush1.bf16.msra.mxu1 %v6557_v54  ;;  %v6558_v6 = vld [vmem:[%s8954_s2 + $0xb8] sm:$0xff]   ;;  %v7845_v48 = vpop.permute.xlu1 %3687  ;;  %4315 = vmatpush1.bf16.msra.mxu0 %v6557_v54  ;;  %v2932_v18 = vld [vmem:[#allocation2 + $0x30] sm:$0xe] }
 0x243   : > { %9060 = vst [vmem:[#allocation41_spill] sm:$0xff] %v7830_v39  ;;  %v3264_v52 = vsel %vm3252_vm12, %v3259_v27, %v3263_v28  ;;  %v3475_v49 = vor.u32 %v3474_v26, %v3470_v8  ;;  %v3674_v32 = vshrl.u32 %v7830_v39, 16  ;;  %v3676_v21 = vshll.u32 %v7830_v39, 16  ;;  %6411 = vmatprep.subr.bf16.mxu1 %v9043_v30  ;;  %4324 = vmatprep.subr.bf16.mxu0 %v9043_v30  ;;  %v6613_v39 = vld [vmem:[#allocation2 + $0x104] ss:$0 sps:$4 sm:$0x11]  }
 0x244   : > { %3685 = vrot.lane.b32.xlu0 %v3264_v52, %s6661_s18  ;;  %v3456_v47 = vsel %vm3252_vm12, %v3451_v22, %v3455_v7  ;;  %v3462_v51 = vrot.slane %v3460_v23, 1  ;;  %v3467_v50 = vrot.slane %v3465_v42, 1  ;;  %v3479_v27 = vrot.slane %v3477_v62, 1  ;;  %v6559_v62 = vld [vmem:[%s8954_s2 + $0xb0] sm:$0xff]   ;;  %v6560_v52 = vld [vmem:[%s8954_s2 + $0xa8] sm:$0xff]  }
 0x245   : > { %3717 = vrot.lane.b32.xlu1 %v3456_v47, %s6661_s18  ;;  %v3678_v28 = vrot.slane %v3676_v21, 1  ;;  %v3683_v26 = vrot.slane %v3681_v17, 1  ;;  %v2948_v17 = vld [vmem:[#allocation2 + $0xf0] sm:$0xe]  ;;  %v6608_v21 = vld [vmem:[#allocation2 + $0xf4] sm:$0xf] }
 0x246   : > { %v3463_v8 = vor.u32 %v3462_v51, %v3458_v36  ;;  %v3480_v7 = vsel %vm3252_vm12, %v3475_v49, %v3479_v27  ;;  %6423 = vmatpush2.bf16.msra.mxu1 %v6558_v6  ;;  %v3726_v23 = vpop.permute.xlu1 %3725  ;;  %4325 = vmatpush2.bf16.msra.mxu0 %v6558_v6  ;;  %v2930_v36 = vld [vmem:[#allocation2 + $0x18] sm:$0xe]  ;;  %v6607_v49 = vld [vmem:[#allocation2 + $0x1c] sm:$0xf]  ;;  %v6012_v47 = vcombine.low %v2948_v17, %v6608_v21  ;;  %v3724_v6 = vpop.permute.xlu0 %3723  ;;  %v3930_v0 = vrot.slane %v6613_v39, 1 }
 0x247   : > { %v3679_v42 = vor.u32 %v3678_v28, %v3674_v32  ;;  %6412 = vmatprep.subr.bf16.mxu1 %v9043_v30  ;;  %4326 = vmatprep.subr.bf16.mxu0 %v9043_v30  ;;  %v5994_v32 = vcombine.low %v2930_v36, %v6607_v49  ;;  %v2949_v51 = vld [vmem:[#allocation2 + $0xfc] sm:$0xe]  ;;  %v2931_v28 = vld [vmem:[#allocation2 + $0x24] sm:$0xe]  ;;  %v7882_v39 = vsel %vm3974_vm11, %v7202_v38, %v3726_v23  ;;  %v6616_v38 = vld [vmem:[#allocation2 + $0x34] sm:$0xf] }
 0x248   : > { %3721 = vrot.lane.b32.xlu0 %v3480_v7, %s6661_s18  ;;  %v3468_v22 = vsel %vm3252_vm12, %v3463_v8, %v3467_v50  ;;  %v6609_v50 = vld [vmem:[#allocation2 + $0x100] sm:$0xf]  ;;  %v3926_v17 = vrot.slane %v6012_v47, 1  ;;  %v6612_v49 = vld [vmem:[#allocation2 + $0xf8] ss:$0 sps:$4 sm:$0x11]   ;;  %v7873_v47 = vsel %vm3974_vm11, %v7093_v31, %v3724_v6  ;;  %v5996_v23 = vcombine.low %v2932_v18, %v6616_v38 }
 0x249   : > { %3719 = vrot.lane.b32.xlu1 %v3468_v22, %s6661_s18  ;;  %v3684_v54 = vsel %vm3252_vm12, %v3679_v42, %v3683_v26  ;;  %v6013_v27 = vcombine.low %v2949_v51, %v6609_v50  ;;  %v6610_v26 = vld [vmem:[#allocation2 + $0x28] sm:$0xf]  ;;  %v6561_v22 = vld [vmem:[%s8954_s2 + $0xa0] sm:$0xff]   ;;  %v3872_v36 = vrot.slane %v5994_v32, 1  ;;  %v3927_v21 = vrot.slane %v6612_v49, 1 }
 0x24a   : > { %6424 = vmatpush2.bf16.msra.mxu1 %v6559_v62  ;;  %4327 = vmatpush2.bf16.msra.mxu0 %v6559_v62  ;;  %v3690_v8 = vpop.permute.xlu1 %3689  ;;  %v5995_v7 = vcombine.low %v2931_v28, %v6610_v26  ;;  %v2950_v42 = vld [vmem:[#allocation2 + $0x108] sm:$0xe]  ;;  %v3728_v51 = vpop.permute.xlu0 %3727  ;;  %v6614_v28 = vld [vmem:[#allocation2 + $0x10c] sm:$0xf]  ;;  %v2957_v18 = vld [vmem:[#allocation2 + $0x15c] sm:$0xe] }
 0x24b   : > { %6413 = vmatprep.subr.bf16.mxu1 %v9043_v30  ;;  %4328 = vmatprep.subr.bf16.mxu0 %v9043_v30  ;;  %v3929_v50 = vrot.slane %v6013_v27, 1  ;;  %v6014_v26 = vcombine.low %v2950_v42, %v6614_v28  ;;  %v6615_v16 = vld [vmem:[#allocation2 + $0x2c] ss:$0 sps:$4 sm:$0x11]   ;;  %v7886_v27 = vsel %vm3974_vm11, %v7242_v25, %v3690_v8  ;;  %v7894_v6 = vsel %vm3865_vm10, %v3926_v17, %v3927_v21  ;;  %v2956_v42 = vld [vmem:[#allocation2 + $0x150] sm:$0xe] }
 0x24c   : > { %v3875_v55 = vrot.slane %v5995_v7, 1  ;;  %v3876_v32 = vrot.slane %v6615_v16, 1  ;;  %v7888_v7 = vld [vmem:[#allocation2 + $0x114] sm:$0xe]  ;;  %v2937_v16 = vld [vmem:[#allocation2 + $0x6c] sm:$0xe] }
 0x24d   : > { %3755 = vrot.lane.b32.xlu1 %v3684_v54, %s6661_s18  ;;  %v6611_v54 = vld [vmem:[#allocation2 + $0x20] ss:$0 sps:$4 sm:$0x11]   ;;  %v2938_v25 = vld [vmem:[#allocation2 + $0x78] sm:$0xe]  ;;  %v3894_v28 = vrot.slane %v7564_v63, 1 }
 0x24e   : > { %6425 = vmatpush2.bf16.msra.mxu1 %v6560_v52  ;;  %v3873_v62 = vrot.slane %v6611_v54, 1  ;;  %4329 = vmatpush2.bf16.msra.mxu0 %v6560_v52  ;;  %v7878_v52 = vsel %vm3974_vm11, %v7064_v45, %v7845_v48  ;;  %v3692_v45 = vpop.permute.xlu1 %3691  ;;  %v7898_v48 = vsel %vm3974_vm11, %v7187_v46, %v3728_v51  ;;  %v6562_v8 = vld [vmem:[%s8954_s2 + $0x38] sm:$0xff]   ;;  %v3932_v54 = vrot.slane %v6014_v26, 1  ;;  %v2939_v46 = vld [vmem:[#allocation2 + $0x84] sm:$0xe] }
 0x24f   : > { %6414 = vmatprep.subr.bf16.mxu1 %v9043_v30  ;;  %4330 = vmatprep.subr.bf16.mxu0 %v9043_v30  ;;  %v7907_v49 = vld [vmem:[#allocation2 + $0x38] ss:$0 sps:$4 sm:$0x11]   ;;  %v7915_v21 = vsel %vm3865_vm10, %v3875_v55, %v3876_v32  ;;  %v7926_v26 = vsel %vm3974_vm11, %v7286_v5, %v3692_v45  ;;  %v7928_v38 = vld [vmem:[#allocation2 + $0x3c] sm:$0xe]  ;;  %v6020_v55 = vcombine.low %v2956_v42, %v7556_v29  ;;  %v3951_v32 = vrot.slane %v7547_v58, 1 }
 0x250   : > { %v7891_v31 = vsel %vm3865_vm10, %v3872_v36, %v3873_v62  ;;  %v7905_v36 = vsel %vm3865_vm10, %v3929_v50, %v3930_v0  ;;  %v6617_v62 = vld [vmem:[#allocation2 + $0x110] ss:$0 sps:$4 sm:$0x11]   ;;  %v7917_v51 = vld [vmem:[#allocation2 + $0x118] sm:$0xf]  ;;  %v6001_v50 = vcombine.low %v2937_v16, %v7559_v59  ;;  %v7936_v59 = vrot.slane %v5996_v23, 1 }
 0x251   : > { %v3933_v17 = vrot.slane %v6617_v62, 1  ;;  %v6015_v0 = vcombine.low %v7888_v7, %v7917_v51  ;;  %v6002_v62 = vcombine.low %v2938_v25, %v7591_v10  ;;  %v3897_v5 = vrot.slane %v7588_v44, 1  ;;  %v2958_v45 = vld [vmem:[#allocation2 + $0x168] sm:$0xe]  ;;  %v6564_v58 = vld [vmem:[%s8954_s2 + $0x30] sm:$0xff]  }
 0x252   : > { %6426 = vmatpush2.bf16.msra.mxu1 %v6561_v22  ;;  %4331 = vmatpush2.bf16.msra.mxu0 %v6561_v22  ;;  %v6563_v22 = vld [vmem:[%s8954_s2 + $0xf8] sm:$0xff]   ;;  %v3893_v63 = vrot.slane %v6001_v50, 1  ;;  %v6021_v16 = vcombine.low %v2957_v18, %v7583_v9  ;;  %v3950_v10 = vrot.slane %v6020_v55, 1  ;;  %v3954_v42 = vrot.slane %v7571_v61, 1  ;;  %v2940_v25 = vld [vmem:[#allocation2 + $0x90] sm:$0xe] }
 0x253   : > { %4667 = vmatprep.subr.bf16.mxu1 %v9043_v30  ;;  %5059 = vmatprep.subr.bf16.mxu0 %v9043_v30  ;;  %v7946_v29 = vsel %vm3865_vm10, %v3932_v54, %v3933_v17  ;;  %v3896_v23 = vrot.slane %v6002_v62, 1  ;;  %v6565_v9 = vld [vmem:[%s8954_s2 + $0xf0] sm:$0xff]   ;;  %v6003_v18 = vcombine.low %v2939_v46, %v7613_v40  ;;  %v3900_v54 = vrot.slane %v7615_v4, 1  ;;  %v7959_v61 = vld [vmem:[#allocation2 + $0x40] sm:$0xf]  ;;  %v6576_v51 = vld [vmem:[%s8954_s2 + $0x8] sm:$0xff]  }
 0x254   : > { %v7954_v44 = vsel %vm3865_vm10, %v3893_v63, %v3894_v28  ;;  %v2959_v17 = vld [vmem:[#allocation2 + $0x174] sm:$0xe]  ;;  %v7964_v50 = vsel %vm3865_vm10, %v3950_v10, %v3951_v32  ;;  %v6022_v28 = vcombine.low %v2958_v45, %v7624_v15  ;;  %v2941_v62 = vld [vmem:[#allocation2 + $0x9c] sm:$0xe]  ;;  %v3957_v46 = vrot.slane %v7620_v14, 1  ;;  %v6566_v32 = vld [vmem:[%s8954_s2 + $0x28] sm:$0xff]  }
 0x255   : > { %4461 = vmatmul.mubr.bf16.vlgmr.msra.gmra.mxu1 %v7873_v47  ;;  %4333 = vmatmul.mubr.bf16.vlgmr.msra.gmra.mxu0 %v7878_v52  ;;  %v7967_v55 = vsel %vm3865_vm10, %v3896_v23, %v3897_v5  ;;  %v3899_v4 = vrot.slane %v6003_v18, 1  ;;  %v6004_v63 = vcombine.low %v2940_v25, %v7651_v1  ;;  %v3903_v5 = vrot.slane %v7653_v60, 1  ;;  %v2942_v23 = vld [vmem:[#allocation2 + $0xa8] sm:$0xe]  ;;  %v2961_v25 = vld [vmem:[#allocation2 + $0x18c] sm:$0xe] }
 0x256   : > { %6081 = vmatprep.mubr.msk.bf16.mxu1 %vm3974_vm11, %v7894_v6  ;;  %6065 = vmatprep.mubr.msk.bf16.mxu0 %vm3974_vm11, %v7891_v31  ;;  %v3956_v10 = vrot.slane %v6022_v28, 1  ;;  %v6023_v15 = vcombine.low %v2959_v17, %v7635_v56  ;;  %v3960_v45 = vrot.slane %v7617_v19, 1  ;;  %v6567_v14 = vld [vmem:[%s8954_s2 + $0xe8] sm:$0xff]   ;;  %v3906_v60 = vrot.slane %v7686_v2, 1  ;;  %v2943_v18 = vld [vmem:[#allocation2 + $0xb4] sm:$0xe] }
 0x257   : > { %4668 = vmatpush1.bf16.msra.mxu1 %v6562_v8  ;;  %5060 = vmatpush1.bf16.msra.mxu0 %v6563_v22  ;;  %v3953_v8 = vrot.slane %v6021_v16, 1  ;;  %v5997_v22 = vcombine.low %v7928_v38, %v7959_v61  ;;  %v2960_v16 = vld [vmem:[#allocation2 + $0x180] sm:$0xe]  ;;  %v7986_v1 = vsel %vm3865_vm10, %v3899_v4, %v3900_v54  ;;  %v6006_v54 = vcombine.low %v2942_v23, %v7703_v37  ;;  %v2962_v28 = vld [vmem:[#allocation2 + $0x198] sm:$0xe]  ;;  %v6577_v38 = vld [vmem:[%s8954_s2 + $0xc8] sm:$0xff]  }
 0x258   : > { %4669 = vmatprep.subr.bf16.mxu1 %v9043_v30  ;;  %5061 = vmatprep.subr.bf16.mxu0 %v9043_v30  ;;  %v7993_v19 = vsel %vm3865_vm10, %v3956_v10, %v3957_v46  ;;  %v3959_v56 = vrot.slane %v6023_v15, 1  ;;  %v3909_v17 = vrot.slane %v7710_v11, 1  ;;  %v6025_v4 = vcombine.low %v2961_v25, %v7693_v3  ;;  %v2944_v37 = vld [vmem:[#allocation2 + $0xc0] sm:$0xe]  ;;  %v2945_v23 = vld [vmem:[#allocation2 + $0xcc] sm:$0xe] }
 0x259   : > { %v7971_v40 = vsel %vm3865_vm10, %v3953_v8, %v3954_v42  ;;  %v6005_v42 = vcombine.low %v2941_v62, %v7676_v20  ;;  %v3963_v8 = vrot.slane %v7664_v35, 1  ;;  %v6568_v35 = vld [vmem:[%s8954_s2 + $0x20] sm:$0xff]   ;;  %v3966_v46 = vrot.slane %v7698_v34, 1  ;;  %v2934_v7 = vld [vmem:[#allocation2 + $0x48] sm:$0xe] }
 0x25a   : > { %v6569_v11 = vld [vmem:[%s8954_s2 + $0xe0] sm:$0xff]   ;;  %v3912_v10 = vrot.slane %v7750_v24, 1  ;;  %v9062_v3 = vrot.slane %v7907_v49, 1  ;;  %v3965_v15 = vrot.slane %v6025_v4, 1  ;;  %v3969_v24 = vrot.slane %v7727_v13, 1  ;;  %v9064_v49 = vld [vmem:[#allocation32_spill] sm:$0xff] }
 0x25b   : > { %4670 = vmatpush1.bf16.msra.mxu1 %v6564_v58  ;;  %5062 = vmatpush1.bf16.msra.mxu0 %v6565_v9  ;;  %v3902_v58 = vrot.slane %v6004_v63, 1  ;;  %v6024_v9 = vcombine.low %v2960_v16, %v7670_v12  ;;  %v3905_v2 = vrot.slane %v6005_v42, 1  ;;  %v8011_v12 = vsel %vm3865_vm10, %v3959_v56, %v3960_v45  ;;  %v2928_v42 = vld [vmem:[#allocation2] sm:$0xe]  ;;  %v9066_v56 = vld [vmem:[#allocation28_spill] sm:$0xff] }
 0x25c   : > { %4671 = vmatprep.subr.bf16.mxu1 %v9043_v30  ;;  %5063 = vmatprep.subr.bf16.mxu0 %v9043_v30  ;;  %9061 = vst [vmem:[#allocation42_spill] sm:$0xff] %v8011_v12  ;;  %v3908_v16 = vrot.slane %v6006_v54, 1  ;;  %v8028_v34 = vsel %vm3865_vm10, %v7936_v59, %v9062_v3  ;;  %v6026_v45 = vcombine.low %v2962_v28, %v7721_v43  ;;  %v6570_v59 = vld [vmem:[%s8954_s2 + $0x18] sm:$0xff]   ;;  %v3915_v43 = vrot.slane %v7779_v53, 1  ;;  %v9067_v54 = vld [vmem:[#allocation30_spill] sm:$0xff] }
 0x25d   : > { %4469 = vmatmul.mubr.bf16.gmra.mxu1 %v7882_v39  ;;  %4341 = vmatmul.mubr.bf16.gmra.mxu0 %v7886_v27  ;;  %v8001_v20 = vsel %vm3865_vm10, %v3902_v58, %v3903_v5  ;;  %v3962_v62 = vrot.slane %v6024_v9, 1  ;;  %v8020_v63 = vsel %vm3865_vm10, %v3905_v2, %v3906_v60  ;;  %v6008_v58 = vcombine.low %v2944_v37, %v9064_v49  ;;  %v6571_v13 = vld [vmem:[%s8954_s2 + $0xd8] sm:$0xff]  }
 0x25e   : > { %6082 = vmatprep.mubr.msk.bf16.mxu1 %vm3974_vm11, %v7905_v36  ;;  %6066 = vmatprep.mubr.msk.bf16.mxu0 %vm3974_vm11, %v7915_v21  ;;  %v8044_v60 = vsel %vm3865_vm10, %v3965_v15, %v3966_v46  ;;  %v3968_v25 = vrot.slane %v6026_v45, 1  ;;  %v5992_v9 = vcombine.low %v2928_v42, %v9066_v56  ;;  %v6009_v28 = vcombine.low %v2945_v23, %v7798_v57  ;;  %v9069_v46 = vld [vmem:[#allocation33_spill] sm:$0xff]  ;;  %v9072_v23 = vld [vmem:[#allocation39_spill] sm:$0xff]  ;;  %v3730_v42 = vpop.permute.xlu0 %3729 }
 0x25f   : > { %4672 = vmatpush1.bf16.msra.mxu1 %v6566_v32  ;;  %5064 = vmatpush1.bf16.msra.mxu0 %v6567_v14  ;;  %v6007_v32 = vcombine.low %v2943_v18, %v7740_v33  ;;  %v8032_v5 = vsel %vm3865_vm10, %v3962_v62, %v3963_v8  ;;  %v8036_v14 = vsel %vm3865_vm10, %v3908_v16, %v3909_v17  ;;  %v2963_v8 = vld [vmem:[#allocation2 + $0x1a4] sm:$0xe]  ;;  %v3914_v2 = vrot.slane %v6008_v58, 1  ;;  %v9070_v16 = vld [vmem:[#allocation35_spill] sm:$0xff] }
 0x260   : > { %4673 = vmatprep.subr.bf16.mxu1 %v9043_v30  ;;  %5065 = vmatprep.subr.bf16.mxu0 %v9043_v30  ;;  %9063 = vst [vmem:[#allocation43_spill] sm:$0xff] %v8032_v5  ;;  %9065 = vst [vmem:[#allocation32_spill] sm:$0xff] %v8044_v60  ;;  %v3867_v17 = vrot.slane %v9067_v54, 1  ;;  %v8060_v53 = vsel %vm3865_vm10, %v3968_v25, %v3969_v24  ;;  %v3866_v62 = vrot.slane %v5992_v9, 1  ;;  %v3918_v4 = vrot.slane %v7808_v41, 1  ;;  %v6572_v41 = vld [vmem:[%s8954_s2 + $0x10] sm:$0xff]   ;;  %v3694_v9 = vpop.permute.xlu1 %3693 }
 0x261   : > { %v3911_v33 = vrot.slane %v6007_v32, 1  ;;  %9068 = vst [vmem:[#allocation28_spill] sm:$0xff] %v8060_v53  ;;  %v8068_v57 = vsel %vm3865_vm10, %v3914_v2, %v3915_v43  ;;  %v3921_v32 = vrot.slane %v9070_v16, 1  ;;  %v6573_v24 = vld [vmem:[%s8954_s2 + $0xd0] sm:$0xff]   ;;  %v2952_v54 = vld [vmem:[#allocation2 + $0x120] sm:$0xe] }
 0x262   : > { %v8078_v15 = vsel %vm3865_vm10, %v3866_v62, %v3867_v17  ;;  %v6621_v25 = vld [vmem:[#allocation2 + $0x11c] ss:$0 sps:$4 sm:$0x11]   ;;  %v6623_v62 = vld [vmem:[#allocation2 + $0x124] sm:$0xf] }
 0x263   : > { %4674 = vmatpush1.bf16.msra.mxu1 %v6568_v35  ;;  %5066 = vmatpush1.bf16.msra.mxu0 %v6569_v11  ;;  %v8053_v18 = vsel %vm3865_vm10, %v3911_v33, %v3912_v10  ;;  %v2946_v35 = vld [vmem:[#allocation2 + $0xd8] sm:$0xe]  ;;  %v3917_v11 = vrot.slane %v6009_v28, 1  ;;  %v9071_v10 = vld [vmem:[#allocation37_spill] sm:$0xff]  ;;  %v3972_v33 = vrot.slane %v9072_v23, 1  ;;  %v3936_v43 = vrot.slane %v6621_v25, 1 }
 0x264   : > { %4675 = vmatprep.subr.bf16.mxu1 %v9043_v30  ;;  %5067 = vmatprep.subr.bf16.mxu0 %v9043_v30  ;;  %v6010_v37 = vcombine.low %v2946_v35, %v9069_v46  ;;  %v6027_v3 = vcombine.low %v2963_v8, %v9071_v10  ;;  %v3881_v8 = vrot.slane %v5997_v22, 1  ;;  %v9075_v22 = vld [vmem:[#allocation7_spill] sm:$0xff]  ;;  %v6581_v16 = vld [vmem:[%s8954_s2] sm:$0xff]   ;;  %v3732_v10 = vpop.permute.xlu0 %3731  ;;  %v3696_v23 = vpop.permute.xlu1 %3695  ;;  %v6585_v25 = vld [vmem:[%s8954_s2 + $0x58] sm:$0xff]  }
 0x265   : > { %4477 = vmatmul.mubr.bf16.gmra.mxu1 %v7898_v48  ;;  %4349 = vmatmul.mubr.bf16.gmra.mxu0 %v7926_v26  ;;  %v8086_v49 = vsel %vm3865_vm10, %v3917_v11, %v3918_v4  ;;  %v8118_v35 = vsel %vm3974_vm11, %v9075_v22, %v3694_v9  ;;  %v6016_v4 = vcombine.low %v2952_v54, %v6623_v62  ;;  %v6590_v62 = vld [vmem:[%s8954_s2 + $0x50] sm:$0xff]  }
 0x266   : > { %6083 = vmatprep.mubr.msk.bf16.mxu1 %vm3974_vm11, %v7946_v29  ;;  %6067 = vmatprep.mubr.msk.bf16.mxu0 %vm3974_vm11, %v8028_v34  ;;  %v3920_v45 = vrot.slane %v6010_v37, 1  ;;  %v3971_v58 = vrot.slane %v6027_v3, 1  ;;  %v6624_v37 = vld [vmem:[#allocation2 + $0x4c] sm:$0xf] }
 0x267   : > { %4676 = vmatpush1.bf16.msra.mxu1 %v6570_v59  ;;  %5068 = vmatpush1.bf16.msra.mxu0 %v6571_v13  ;;  %v3935_v59 = vrot.slane %v6015_v0, 1  ;;  %v6622_v13 = vld [vmem:[#allocation2 + $0x44] ss:$0 sps:$4 sm:$0x11]   ;;  %v5998_v11 = vcombine.low %v2934_v7, %v6624_v37  ;;  %v3938_v3 = vrot.slane %v6016_v4, 1  ;;  %v6591_v4 = vld [vmem:[%s8954_s2 + $0x110] sm:$0xff]  }
 0x268   : > { %4677 = vmatprep.subr.bf16.mxu1 %v9043_v30  ;;  %5069 = vmatprep.subr.bf16.mxu0 %v9043_v30  ;;  %v8093_v56 = vsel %vm3865_vm10, %v3920_v45, %v3921_v32  ;;  %v3882_v2 = vrot.slane %v6622_v13, 1  ;;  %v8099_v17 = vsel %vm3865_vm10, %v3971_v58, %v3972_v33  ;;  %v9074_v0 = vld [vmem:[#allocation5_spill] sm:$0xff]  ;;  %v6627_v7 = vld [vmem:[#allocation2 + $0x130] sm:$0xf]  ;;  %v3734_v37 = vpop.permute.xlu0 %3733 }
 0x269   : > { %9073 = vst [vmem:[#allocation30_spill] sm:$0xff] %v8099_v17  ;;  %v8106_v28 = vsel %vm3974_vm11, %v9074_v0, %v3730_v42  ;;  %v8114_v61 = vsel %vm3865_vm10, %v3935_v59, %v3936_v43  ;;  %v6582_v32 = vld [vmem:[%s8954_s2 + $0xc0] sm:$0xff]   ;;  %v3884_v33 = vrot.slane %v5998_v11, 1  ;;  %v2953_v42 = vld [vmem:[#allocation2 + $0x12c] sm:$0xe] }
 0x26a   : > { %v8125_v46 = vsel %vm3865_vm10, %v3881_v8, %v3882_v2  ;;  %v2935_v59 = vld [vmem:[#allocation2 + $0x54] sm:$0xe]  ;;  %v9076_v43 = vld [vmem:[#allocation6_spill] sm:$0xff]  ;;  %v6587_v8 = vld [vmem:[%s8954_s2 + $0x118] sm:$0xff]  }
 0x26b   : > { %4678 = vmatpush1.bf16.msra.mxu1 %v6572_v41  ;;  %5070 = vmatpush1.bf16.msra.mxu0 %v6573_v24  ;;  %v6625_v41 = vld [vmem:[#allocation2 + $0x128] ss:$0 sps:$4 sm:$0x11]   ;;  %v6626_v24 = vld [vmem:[#allocation2 + $0x50] ss:$0 sps:$4 sm:$0x11]   ;;  %v8142_v9 = vsel %vm3974_vm11, %v9076_v43, %v3732_v10 }
 0x26c   : > { %4679 = vmatprep.subr.bf16.mxu1 %v9043_v30  ;;  %5071 = vmatprep.subr.bf16.mxu0 %v9043_v30  ;;  %v3939_v45 = vrot.slane %v6625_v41, 1  ;;  %v3885_v58 = vrot.slane %v6626_v24, 1  ;;  %v9077_v2 = vld [vmem:[#allocation9_spill] sm:$0xff]  ;;  %v6630_v41 = vld [vmem:[#allocation2 + $0x5c] ss:$0 sps:$4 sm:$0x11]  }
 0x26d   : > { %4485 = vmatmul.mubr.bf16.gmra.mxu1 %v8106_v28  ;;  %4357 = vmatmul.mubr.bf16.gmra.mxu0 %v8118_v35  ;;  %v8154_v54 = vsel %vm3974_vm11, %v9077_v2, %v3696_v23  ;;  %v2954_v23 = vld [vmem:[#allocation2 + $0x138] sm:$0xe]  ;;  %v6595_v24 = vld [vmem:[%s8954_s2 + $0x48] sm:$0xff]   ;;  %v9079_v43 = vld [vmem:[#allocation11_spill] sm:$0xff] }
 0x26e   : > { %6084 = vmatprep.mubr.msk.bf16.mxu1 %vm3974_vm11, %v8114_v61  ;;  %6068 = vmatprep.mubr.msk.bf16.mxu0 %vm3974_vm11, %v8125_v46  ;;  %v8150_v13 = vsel %vm3865_vm10, %v3938_v3, %v3939_v45  ;;  %v8161_v0 = vsel %vm3865_vm10, %v3884_v33, %v3885_v58  ;;  %v3698_v10 = vpop.permute.xlu1 %3697  ;;  %v3888_v45 = vrot.slane %v6630_v41, 1  ;;  %v2936_v33 = vld [vmem:[#allocation2 + $0x60] sm:$0xe]  ;;  %v9078_v58 = vld [vmem:[#allocation8_spill] sm:$0xff] }
 0x26f   : > { %4680 = vmatpush1.bf16.msra.mxu1 %v6576_v51  ;;  %5072 = vmatpush1.bf16.msra.mxu0 %v6577_v38  ;;  %v6017_v51 = vcombine.low %v2953_v42, %v6627_v7  ;;  %v6628_v38 = vld [vmem:[#allocation2 + $0x58] sm:$0xf]  ;;  %v8178_v42 = vsel %vm3974_vm11, %v9078_v58, %v3734_v37  ;;  %v6631_v2 = vld [vmem:[#allocation2 + $0x13c] sm:$0xf]  ;;  %v3736_v37 = vpop.permute.xlu0 %3735  ;;  %v9094_v17 = vld [vmem:[#allocation25_spill] sm:$0xff] }
 0x270   : > { %4681 = vmatprep.subr.bf16.mxu1 %v9043_v30  ;;  %5073 = vmatprep.subr.bf16.mxu0 %v9043_v30  ;;  %v5999_v22 = vcombine.low %v2935_v59, %v6628_v38  ;;  %v6596_v59 = vld [vmem:[%s8954_s2 + $0x108] sm:$0xff]   ;;  %v6018_v7 = vcombine.low %v2954_v23, %v6631_v2  ;;  %v6632_v38 = vld [vmem:[#allocation2 + $0x64] sm:$0xf] }
 0x271   : > { %v3941_v11 = vrot.slane %v6017_v51, 1  ;;  %v6634_v41 = vld [vmem:[#allocation2 + $0x68] ss:$0 sps:$4 sm:$0x11]   ;;  %v2955_v23 = vld [vmem:[#allocation2 + $0x144] sm:$0xe] }
 0x272   : > { %v3887_v3 = vrot.slane %v5999_v22, 1  ;;  %v6000_v22 = vcombine.low %v2936_v33, %v6632_v38  ;;  %v9080_v33 = vld [vmem:[#allocation10_spill] sm:$0xff] }
 0x273   : > { %4682 = vmatpush1.bf16.msra.mxu1 %v6581_v16  ;;  %5074 = vmatpush1.bf16.msra.mxu0 %v6582_v32  ;;  %v6629_v16 = vld [vmem:[#allocation2 + $0x134] ss:$0 sps:$4 sm:$0x11]  }
 0x274   : > { %4691 = vmatprep.subr.bf16.mxu1 %v9043_v30  ;;  %5083 = vmatprep.subr.bf16.mxu0 %v9043_v30  ;;  %v3942_v32 = vrot.slane %v6629_v16, 1  ;;  %v8197_v51 = vsel %vm3865_vm10, %v3887_v3, %v3888_v45  ;;  %v6633_v16 = vld [vmem:[#allocation2 + $0x140] ss:$0 sps:$4 sm:$0x11]   ;;  %v3890_v3 = vrot.slane %v6000_v22, 1  ;;  %v3891_v45 = vrot.slane %v6634_v41, 1 }
 0x275   : > { %4493 = vmatmul.mubr.bf16.gmra.mxu1 %v8142_v9  ;;  %4365 = vmatmul.mubr.bf16.gmra.mxu0 %v8154_v54 }
 0x276   : > { %6085 = vmatprep.mubr.msk.bf16.mxu1 %vm3974_vm11, %v8150_v13  ;;  %6069 = vmatprep.mubr.msk.bf16.mxu0 %vm3974_vm11, %v8161_v0 }
 0x277   : > { %4692 = vmatpush2.bf16.msra.mxu1 %v6585_v25  ;;  %5084 = vmatpush2.bf16.msra.mxu0 %v6587_v8  ;;  %v8186_v25 = vsel %vm3865_vm10, %v3941_v11, %v3942_v32  ;;  %v8190_v8 = vsel %vm3974_vm11, %v9079_v43, %v3698_v10  ;;  %v3944_v11 = vrot.slane %v6018_v7, 1  ;;  %v3945_v32 = vrot.slane %v6633_v16, 1 }
 0x278   : > { %4693 = vmatprep.subr.bf16.mxu1 %v9043_v30  ;;  %5085 = vmatprep.subr.bf16.mxu0 %v9043_v30  ;;  %v8225_v7 = vsel %vm3865_vm10, %v3890_v3, %v3891_v45  ;;  %v9084_v45 = vld [vmem:[#allocation14_spill] sm:$0xff] }
 0x279   : > { %v8215_v58 = vsel %vm3865_vm10, %v3944_v11, %v3945_v32 }
 0x27a   : > { %v3738_v38 = vpop.permute.xlu0 %3737 }
 0x27b   : > { %4694 = vmatpush2.bf16.msra.mxu1 %v6590_v62  ;;  %5086 = vmatpush2.bf16.msra.mxu0 %v6591_v4  ;;  %v6599_v62 = vld [vmem:[%s8954_s2 + $0x40] sm:$0xff]  }
 0x27c   : > { %4695 = vmatprep.subr.bf16.mxu1 %v9043_v30  ;;  %5087 = vmatprep.subr.bf16.mxu0 %v9043_v30  ;;  %v6601_v4 = vld [vmem:[%s8954_s2 + $0x100] sm:$0xff]  }
 0x27d   : > { %4501 = vmatmul.mubr.bf16.gmra.mxu1 %v8178_v42  ;;  %4373 = vmatmul.mubr.bf16.gmra.mxu0 %v8190_v8 }
 0x27e   : > { %6086 = vmatprep.mubr.msk.bf16.mxu1 %vm3974_vm11, %v8186_v25  ;;  %6070 = vmatprep.mubr.msk.bf16.mxu0 %vm3974_vm11, %v8197_v51 }
 0x27f   : > { %4696 = vmatpush2.bf16.msra.mxu1 %v6595_v24  ;;  %5088 = vmatpush2.bf16.msra.mxu0 %v6596_v59  ;;  %v3700_v10 = vpop.permute.xlu1 %3699  ;;  %v8211_v24 = vsel %vm3974_vm11, %v9080_v33, %v3736_v37  ;;  %v9081_v59 = vld [vmem:[#allocation13_spill] sm:$0xff]  ;;  %v9082_v37 = vld [vmem:[#allocation12_spill] sm:$0xff] }
 0x280   : > { %4697 = vmatprep.subr.bf16.mxu1 %v9043_v30  ;;  %5089 = vmatprep.subr.bf16.mxu0 %v9043_v30  ;;  %v8219_v43 = vsel %vm3974_vm11, %v9081_v59, %v3700_v10  ;;  %v6635_v30 = vld [vmem:[#allocation2 + $0x148] sm:$0xf]  ;;  %v8231_v11 = vsel %vm3974_vm11, %v9082_v37, %v3738_v38  ;;  %v9083_v10 = vld [vmem:[#allocation15_spill] sm:$0xff]  ;;  %v9085_v59 = vld [vmem:[#allocation17_spill] sm:$0xff] }
 0x281   : > { %v6019_v2 = vcombine.low %v2955_v23, %v6635_v30  ;;  %v9086_v38 = vld [vmem:[#allocation16_spill] sm:$0xff] }
 0x283   : > { %4698 = vmatpush2.bf16.msra.mxu1 %v6599_v62  ;;  %5090 = vmatpush2.bf16.msra.mxu0 %v6601_v4  ;;  %v3947_v22 = vrot.slane %v6019_v2, 1  ;;  %v6636_v62 = vld [vmem:[#allocation2 + $0x14c] ss:$0 sps:$4 sm:$0x11]  }
 0x284   : > { %v3948_v4 = vrot.slane %v6636_v62, 1 }
 0x285   : > { %4509 = vmatmul.mubr.bf16.gmra.mxu1 %v8211_v24  ;;  %4381 = vmatmul.mubr.bf16.gmra.mxu0 %v8219_v43 }
 0x286   : > { %6087 = vmatprep.mubr.msk.bf16.mxu1 %vm3974_vm11, %v8215_v58  ;;  %6071 = vmatprep.mubr.msk.bf16.mxu0 %vm3974_vm11, %v8225_v7  ;;  %v8235_v32 = vsel %vm3865_vm10, %v3947_v22, %v3948_v4  ;;  %v9087_v4 = vld [vmem:[#allocation19_spill] sm:$0xff] }
 0x288   : > { %v3740_v41 = vpop.permute.xlu0 %3739 }
 0x289   : > { %v8248_v23 = vsel %vm3974_vm11, %v9084_v45, %v3740_v41 }
 0x28a   : > { %v3702_v16 = vpop.permute.xlu1 %3701 }
 0x28b   : > { %v8241_v3 = vsel %vm3974_vm11, %v9083_v10, %v3702_v16  ;;  %v9088_v10 = vld [vmem:[#allocation18_spill] sm:$0xff] }
 0x28d   : > { %4517 = vmatmul.mubr.bf16.gmra.mxu1 %v8231_v11  ;;  %4389 = vmatmul.mubr.bf16.gmra.mxu0 %v8241_v3 }
 0x28e   : > { %6088 = vmatprep.mubr.msk.bf16.mxu1 %vm3974_vm11, %v8235_v32  ;;  %6072 = vmatprep.mubr.msk.bf16.mxu0 %vm3974_vm11, %v7954_v44 }
 0x292   : > { %v3742_v2 = vpop.permute.xlu0 %3741 }
 0x293   : > { %v8262_v22 = vsel %vm3974_vm11, %v9086_v38, %v3742_v2  ;;  %v9090_v38 = vld [vmem:[#allocation20_spill] sm:$0xff] }
 0x295   : > { %4525 = vmatmul.mubr.bf16.gmra.mxu1 %v8248_v23  ;;  %v3704_v33 = vpop.permute.xlu1 %3703 }
 0x296   : > { %6089 = vmatprep.mubr.msk.bf16.mxu1 %vm3974_vm11, %v7964_v50  ;;  %v8255_v30 = vsel %vm3974_vm11, %v9085_v59, %v3704_v33  ;;  %v9089_v33 = vld [vmem:[#allocation21_spill] sm:$0xff] }
 0x297   : > { %4397 = vmatmul.mubr.bf16.gmra.mxu0 %v8255_v30 }
 0x298   : > { %6073 = vmatprep.mubr.msk.bf16.mxu0 %vm3974_vm11, %v7967_v55 }
 0x29a   : > { %v3744_v16 = vpop.permute.xlu0 %3743 }
 0x29b   : > { %v3706_v62 = vpop.permute.xlu1 %3705  ;;  %v8276_v41 = vsel %vm3974_vm11, %v9088_v10, %v3744_v16  ;;  %v9091_v16 = vld [vmem:[#allocation23_spill] sm:$0xff] }
 0x29c   : > { %v8269_v37 = vsel %vm3974_vm11, %v9087_v4, %v3706_v62 }
 0x29d   : > { %4533 = vmatmul.mubr.bf16.gmra.mxu1 %v8262_v22 }
 0x29e   : > { %6090 = vmatprep.mubr.msk.bf16.mxu1 %vm3974_vm11, %v7971_v40 }
 0x29f   : > { %4405 = vmatmul.mubr.bf16.gmra.mxu0 %v8269_v37  ;;  %v3746_v2 = vpop.permute.xlu0 %3745 }
 0x2a0   : > { %6074 = vmatprep.mubr.msk.bf16.mxu0 %vm3974_vm11, %v7986_v1  ;;  %v3708_v45 = vpop.permute.xlu1 %3707  ;;  %v8290_v62 = vsel %vm3974_vm11, %v9090_v38, %v3746_v2 }
 0x2a1   : > { %v8283_v59 = vsel %vm3974_vm11, %v9089_v33, %v3708_v45  ;;  %v9092_v33 = vld [vmem:[#allocation22_spill] sm:$0xff] }
 0x2a3   : > { %v3748_v45 = vpop.permute.xlu0 %3747 }
 0x2a4   : > { %v8304_v2 = vsel %vm3974_vm11, %v9092_v33, %v3748_v45 }
 0x2a5   : > { %4541 = vmatmul.mubr.bf16.gmra.mxu1 %v8276_v41  ;;  %v3710_v4 = vpop.permute.xlu1 %3709  ;;  %9093 = vst [vmem:[#allocation33_spill] sm:$0xff] %v8304_v2 }
 0x2a6   : > { %6091 = vmatprep.mubr.msk.bf16.mxu1 %vm3974_vm11, %v7993_v19  ;;  %v8297_v10 = vsel %vm3974_vm11, %v9091_v16, %v3710_v4 }
 0x2a7   : > { %4413 = vmatmul.mubr.bf16.gmra.mxu0 %v8283_v59  ;;  %v3750_v16 = vpop.permute.xlu0 %3749 }
 0x2a8   : > { %6075 = vmatprep.mubr.msk.bf16.mxu0 %vm3974_vm11, %v8001_v20 }
 0x2aa   : > { %v3712_v38 = vpop.permute.xlu1 %3711 }
 0x2ab   : > { %v8311_v4 = vsel %vm3974_vm11, %v9094_v17, %v3712_v38  ;;  %v3752_v38 = vpop.permute.xlu0 %3751 }
 0x2ad   : > { %4549 = vmatmul.mubr.bf16.gmra.mxu1 %v8290_v62 }
 0x2ae   : > { %6092 = vmatprep.mubr.msk.bf16.mxu1 %vm3974_vm11, %v8011_v12  ;;  %v9095_v12 = vld [vmem:[#allocation24_spill] sm:$0xff]  ;;  %v3714_v33 = vpop.permute.xlu1 %3713 }
 0x2af   : > { %4421 = vmatmul.mubr.bf16.gmra.mxu0 %v8297_v10  ;;  %v8318_v45 = vsel %vm3974_vm11, %v9095_v12, %v3750_v16 }
 0x2b0   : > { %6076 = vmatprep.mubr.msk.bf16.mxu0 %vm3974_vm11, %v8020_v63  ;;  %9096 = vst [vmem:[#allocation35_spill] sm:$0xff] %v8318_v45 }
 0x2b3   : > { %v3716_v16 = vpop.permute.xlu1 %3715 }
 0x2b5   : > { %4557 = vmatmul.mubr.bf16.gmra.mxu1 %v8304_v2  ;;  %v9098_v2 = vld [vmem:[#allocation26_spill] sm:$0xff] }
 0x2b6   : > { %6093 = vmatprep.mubr.msk.bf16.mxu1 %vm3974_vm11, %v8032_v5  ;;  %v9097_v5 = vld [vmem:[#allocation27_spill] sm:$0xff]  ;;  %v8332_v12 = vsel %vm3974_vm11, %v9098_v2, %v3752_v38 }
 0x2b7   : > { %4429 = vmatmul.mubr.bf16.gmra.mxu0 %v8311_v4  ;;  %v8325_v17 = vsel %vm3974_vm11, %v9097_v5, %v3714_v33  ;;  %9099 = vst [vmem:[#allocation37_spill] sm:$0xff] %v8332_v12  ;;  %v3754_v33 = vpop.permute.xlu0 %3753  ;;  %v3718_v38 = vpop.permute.xlu1 %3717 }
 0x2b8   : > { %6077 = vmatprep.mubr.msk.bf16.mxu0 %vm3974_vm11, %v8036_v14 }
 0x2bd   : > { %4565 = vmatmul.mubr.bf16.gmra.mxu1 %v8318_v45  ;;  %v9101_v45 = vld [vmem:[#allocation29_spill] sm:$0xff] }
 0x2be   : > { %6094 = vmatprep.mubr.msk.bf16.mxu1 %vm3974_vm11, %v8044_v60  ;;  %v9100_v60 = vld [vmem:[#allocation31_spill] sm:$0xff]  ;;  %v8346_v2 = vsel %vm3974_vm11, %v9101_v45, %v3754_v33 }
 0x2bf   : > { %4437 = vmatmul.mubr.bf16.gmra.mxu0 %v8325_v17  ;;  %v8339_v5 = vsel %vm3974_vm11, %v9100_v60, %v3716_v16  ;;  %v3686_v16 = vpop.permute.xlu0 %3685  ;;  %v9104_v33 = vld [vmem:[#allocation3_spill] sm:$0xff] }
 0x2c0   : > { %6078 = vmatprep.mubr.msk.bf16.mxu0 %vm3974_vm11, %v8053_v18 }
 0x2c5   : > { %4573 = vmatmul.mubr.bf16.gmra.mxu1 %v8332_v12  ;;  %v9103_v12 = vld [vmem:[#allocation34_spill] sm:$0xff] }
 0x2c6   : > { %6095 = vmatprep.mubr.msk.bf16.mxu1 %vm3974_vm11, %v8060_v53  ;;  %v9102_v53 = vld [vmem:[#allocation36_spill] sm:$0xff]  ;;  %v3976_v45 = vsel %vm3974_vm11, %v9103_v12, %v3686_v16 }
 0x2c7   : > { %4445 = vmatmul.mubr.bf16.gmra.mxu0 %v8339_v5  ;;  %v8353_v60 = vsel %vm3974_vm11, %v9102_v53, %v3718_v38 }
 0x2c8   : > { %6079 = vmatprep.mubr.msk.bf16.mxu0 %vm3974_vm11, %v8068_v57 }
 0x2cd   : > { %4581 = vmatmul.mubr.bf16.gmra.mxu1 %v8346_v2 }
 0x2ce   : > { %6108 = vmatprep.mubr.msk.bf16.mxu1 %vm3974_vm11, %v8078_v15 }
 0x2cf   : > { %4453 = vmatmul.mubr.bf16.gmra.mxu0 %v8353_v60 }
 0x2d0   : > { %6176 = vmatprep.mubr.msk.bf16.mxu0 %vm3974_vm11, %v7891_v31 }
 0x2d5   : > { %4700 = vmatmul.mubr.bf16.vlgmr.msra.gmra.mxu1 %v3976_v45 }
 0x2d6   : > { %6109 = vmatprep.mubr.msk.bf16.mxu1 %vm3974_vm11, %v9104_v33 }
 0x2d7   : > { %5092 = vmatmul.mubr.bf16.vlgmr.msra.gmra.mxu0 %v7886_v27 }
 0x2d8   : > { %6177 = vmatprep.mubr.msk.bf16.mxu0 %vm3974_vm11, %v7915_v21 }
 0x2dd   : > { %4708 = vmatmul.mubr.bf16.gmra.mxu1 %v7878_v52 }
 0x2de   : > { %6110 = vmatprep.mubr.msk.bf16.mxu1 %vm3974_vm11, %v7891_v31 }
 0x2df   : > { %5100 = vmatmul.mubr.bf16.gmra.mxu0 %v7926_v26 }
 0x2e0   : > { %6178 = vmatprep.mubr.msk.bf16.mxu0 %vm3974_vm11, %v8028_v34 }
 0x2e5   : > { %4716 = vmatmul.mubr.bf16.gmra.mxu1 %v7886_v27 }
 0x2e6   : > { %6111 = vmatprep.mubr.msk.bf16.mxu1 %vm3974_vm11, %v7915_v21 }
 0x2e7   : > { %5108 = vmatmul.mubr.bf16.gmra.mxu0 %v8118_v35 }
 0x2e8   : > { %6179 = vmatprep.mubr.msk.bf16.mxu0 %vm3974_vm11, %v8125_v46 }
 0x2ed   : > { %4724 = vmatmul.mubr.bf16.gmra.mxu1 %v7926_v26 }
 0x2ee   : > { %6112 = vmatprep.mubr.msk.bf16.mxu1 %vm3974_vm11, %v8028_v34 }
 0x2ef   : > { %5116 = vmatmul.mubr.bf16.gmra.mxu0 %v8154_v54 }
 0x2f0   : > { %6180 = vmatprep.mubr.msk.bf16.mxu0 %vm3974_vm11, %v8161_v0 }
 0x2f5   : > { %4732 = vmatmul.mubr.bf16.gmra.mxu1 %v8118_v35 }
 0x2f6   : > { %6113 = vmatprep.mubr.msk.bf16.mxu1 %vm3974_vm11, %v8125_v46 }
 0x2f7   : > { %5124 = vmatmul.mubr.bf16.gmra.mxu0 %v8190_v8 }
 0x2f8   : > { %6181 = vmatprep.mubr.msk.bf16.mxu0 %vm3974_vm11, %v8197_v51 }
 0x2fd   : > { %4740 = vmatmul.mubr.bf16.gmra.mxu1 %v8154_v54 }
 0x2fe   : > { %6114 = vmatprep.mubr.msk.bf16.mxu1 %vm3974_vm11, %v8161_v0 }
 0x2ff   : > { %5132 = vmatmul.mubr.bf16.gmra.mxu0 %v8219_v43 }
 0x300   : > { %6182 = vmatprep.mubr.msk.bf16.mxu0 %vm3974_vm11, %v8225_v7 }
 0x305   : > { %4748 = vmatmul.mubr.bf16.gmra.mxu1 %v8190_v8 }
 0x306   : > { %6115 = vmatprep.mubr.msk.bf16.mxu1 %vm3974_vm11, %v8197_v51 }
 0x307   : > { %5140 = vmatmul.mubr.bf16.gmra.mxu0 %v8241_v3 }
 0x308   : > { %6183 = vmatprep.mubr.msk.bf16.mxu0 %vm3974_vm11, %v7954_v44 }
 0x30d   : > { %4756 = vmatmul.mubr.bf16.gmra.mxu1 %v8219_v43 }
 0x30e   : > { %6116 = vmatprep.mubr.msk.bf16.mxu1 %vm3974_vm11, %v8225_v7 }
 0x30f   : > { %5148 = vmatmul.mubr.bf16.gmra.mxu0 %v8255_v30 }
 0x310   : > { %6184 = vmatprep.mubr.msk.bf16.mxu0 %vm3974_vm11, %v7967_v55 }
 0x315   : > { %v8407_v52 = vpop.f32.mrf.mxu1  ;;  %4764 = vmatmul.mubr.bf16.gmra.mxu1 %v8241_v3  ;;  %v8410_v27 = vpop.f32.mrf.mxu0 }
 0x316   : > { %6117 = vmatprep.mubr.msk.bf16.mxu1 %vm3974_vm11, %v7954_v44 }
 0x317   : > { %v4464_v31 = vpop.f32.mrf.mxu1  ;;  %v4336_v21 = vpop.f32.mrf.mxu0  ;;  %5156 = vmatmul.mubr.bf16.gmra.mxu0 %v8269_v37 }
 0x318   : > { %6185 = vmatprep.mubr.msk.bf16.mxu0 %vm3974_vm11, %v7986_v1 }
 0x319   : > { %v8414_v26 = vpop.f32.mrf.mxu1  ;;  %v8417_v34 = vpop.f32.mrf.mxu0 }
 0x31b   : > { %v4467_v53 = vpop.f32.mrf.mxu1  ;;  %v4339_v15 = vpop.f32.mrf.mxu0 }
 0x31d   : > { %v8421_v35 = vpop.f32.mrf.mxu1  ;;  %4772 = vmatmul.mubr.bf16.gmra.mxu1 %v8255_v30  ;;  %v8426_v44 = vpop.f32.mrf.mxu0 }
 0x31e   : > { %6118 = vmatprep.mubr.msk.bf16.mxu1 %vm3974_vm11, %v7967_v55 }
 0x31f   : > { %v4472_v46 = vpop.f32.mrf.mxu1  ;;  %v4344_v54 = vpop.f32.mrf.mxu0  ;;  %5164 = vmatmul.mubr.bf16.gmra.mxu0 %v8283_v59 }
 0x320   : > { %6186 = vmatprep.mubr.msk.bf16.mxu0 %vm3974_vm11, %v8001_v20 }
 0x321   : > { %v8428_v0 = vpop.f32.mrf.mxu1  ;;  %v8433_v8 = vpop.f32.mrf.mxu0 }
 0x323   : > { %v4475_v51 = vpop.f32.mrf.mxu1  ;;  %v4347_v43 = vpop.f32.mrf.mxu0 }
 0x325   : > { %v8435_v7 = vpop.f32.mrf.mxu1  ;;  %4780 = vmatmul.mubr.bf16.gmra.mxu1 %v8269_v37  ;;  %v8440_v55 = vpop.f32.mrf.mxu0 }
 0x326   : > { %6119 = vmatprep.mubr.msk.bf16.mxu1 %vm3974_vm11, %v7986_v1 }
 0x327   : > { %v4480_v3 = vpop.f32.mrf.mxu1  ;;  %v4352_v30 = vpop.f32.mrf.mxu0  ;;  %5172 = vmatmul.mubr.bf16.gmra.mxu0 %v8297_v10 }
 0x328   : > { %6187 = vmatprep.mubr.msk.bf16.mxu0 %vm3974_vm11, %v8020_v63 }
 0x329   : > { %v8442_v12 = vpop.f32.mrf.mxu1  ;;  %v8447_v38 = vpop.f32.mrf.mxu0 }
 0x32b   : > { %v4483_v16 = vpop.f32.mrf.mxu1  ;;  %v4355_v45 = vpop.f32.mrf.mxu0 }
 0x32d   : > { %v8449_v33 = vpop.f32.mrf.mxu1  ;;  %4788 = vmatmul.mubr.bf16.gmra.mxu1 %v8283_v59  ;;  %v8454_v1 = vpop.f32.mrf.mxu0 }
 0x32e   : > { %6120 = vmatprep.mubr.msk.bf16.mxu1 %vm3974_vm11, %v8001_v20 }
 0x32f   : > { %v4488_v37 = vpop.f32.mrf.mxu1  ;;  %v4360_v31 = vpop.f32.mrf.mxu0  ;;  %5180 = vmatmul.mubr.bf16.gmra.mxu0 %v8311_v4 }
 0x330   : > { %6188 = vmatprep.mubr.msk.bf16.mxu0 %vm3974_vm11, %v8036_v14 }
 0x331   : > { %v8456_v21 = vpop.f32.mrf.mxu1  ;;  %v8461_v53 = vpop.f32.mrf.mxu0 }
 0x333   : > { %v4491_v15 = vpop.f32.mrf.mxu1  ;;  %v4363_v46 = vpop.f32.mrf.mxu0 }
 0x335   : > { %v8463_v54 = vpop.f32.mrf.mxu1  ;;  %4796 = vmatmul.mubr.bf16.gmra.mxu1 %v8297_v10  ;;  %v8468_v20 = vpop.f32.mrf.mxu0 }
 0x336   : > { %6121 = vmatprep.mubr.msk.bf16.mxu1 %vm3974_vm11, %v8020_v63 }
 0x337   : > { %v4496_v59 = vpop.f32.mrf.mxu1  ;;  %v4368_v51 = vpop.f32.mrf.mxu0  ;;  %5188 = vmatmul.mubr.bf16.gmra.mxu0 %v8325_v17 }
 0x338   : > { %6189 = vmatprep.mubr.msk.bf16.mxu0 %vm3974_vm11, %v8053_v18 }
 0x339   : > { %v8470_v43 = vpop.f32.mrf.mxu1  ;;  %v8475_v3 = vpop.f32.mrf.mxu0 }
 0x33b   : > { %v4499_v30 = vpop.f32.mrf.mxu1  ;;  %v4371_v16 = vpop.f32.mrf.mxu0 }
 0x33d   : > { %v8477_v45 = vpop.f32.mrf.mxu1  ;;  %4804 = vmatmul.mubr.bf16.gmra.mxu1 %v8311_v4  ;;  %v8482_v63 = vpop.f32.mrf.mxu0 }
 0x33e   : > { %6122 = vmatprep.mubr.msk.bf16.mxu1 %vm3974_vm11, %v8036_v14 }
 0x33f   : > { %v4504_v10 = vpop.f32.mrf.mxu1  ;;  %v4376_v37 = vpop.f32.mrf.mxu0  ;;  %5196 = vmatmul.mubr.bf16.gmra.mxu0 %v8339_v5 }
 0x340   : > { %6190 = vmatprep.mubr.msk.bf16.mxu0 %vm3974_vm11, %v8068_v57 }
 0x341   : > { %v8484_v31 = vpop.f32.mrf.mxu1  ;;  %v8489_v15 = vpop.f32.mrf.mxu0 }
 0x343   : > { %v4507_v46 = vpop.f32.mrf.mxu1  ;;  %v4379_v59 = vpop.f32.mrf.mxu0 }
 0x344   : > { %v3720_v46 = vpop.permute.xlu1 %3719 }
 0x345   : > { %v8491_v51 = vpop.f32.mrf.mxu1  ;;  %4812 = vmatmul.mubr.bf16.gmra.mxu1 %v8325_v17  ;;  %v8496_v14 = vpop.f32.mrf.mxu0 }
 0x346   : > { %9105 = vst [vmem:[#allocation39_spill] sm:$0xff] %v8491_v51  ;;  %6123 = vmatprep.mubr.msk.bf16.mxu1 %vm3974_vm11, %v8053_v18  ;;  %v9112_v51 = vld [vmem:[#allocation4_spill] sm:$0xff] }
 0x347   : > { %v4512_v4 = vpop.f32.mrf.mxu1  ;;  %v4384_v30 = vpop.f32.mrf.mxu0  ;;  %5204 = vmatmul.mubr.bf16.gmra.mxu0 %v8353_v60  ;;  %v9108_v60 = vld [vmem:[#allocation40_spill] sm:$0xff] }
 0x348   : > { %6191 = vmatprep.mubr.msk.bf16.mxu0 %vm3974_vm11, %v8086_v49  ;;  %v3722_v4 = vpop.permute.xlu0 %3721  ;;  %v4027_v30 = vsel %vm3974_vm11, %v9108_v60, %v3720_v46 }
 0x349   : > { %v8498_v16 = vpop.f32.mrf.mxu1  ;;  %v8503_v57 = vpop.f32.mrf.mxu0 }
 0x34a   : > { %9106 = vst [vmem:[#allocation5_spill] sm:$0xff] %v8498_v16 }
 0x34b   : > { %v4515_v10 = vpop.f32.mrf.mxu1  ;;  %v4387_v37 = vpop.f32.mrf.mxu0 }
 0x34d   : > { %v8505_v17 = vpop.f32.mrf.mxu1  ;;  %4820 = vmatmul.mubr.bf16.gmra.mxu1 %v8339_v5  ;;  %v8510_v59 = vpop.f32.mrf.mxu0  ;;  %v9110_v5 = vld [vmem:[#allocation38_spill] sm:$0xff] }
 0x34e   : > { %9107 = vst [vmem:[#allocation7_spill] sm:$0xff] %v8505_v17  ;;  %6124 = vmatprep.mubr.msk.bf16.mxu1 %vm3974_vm11, %v8093_v56  ;;  %v4030_v56 = vsel %vm3974_vm11, %v9110_v5, %v3722_v4 }
 0x34f   : > { %v4520_v18 = vpop.f32.mrf.mxu1  ;;  %5212 = vmatmul.mubr.bf16.gmra.mxu0 %v4027_v30  ;;  %v4392_v10 = vpop.f32.mrf.mxu0 }
 0x350   : > { %6192 = vmatprep.mubr.msk.bf16.mxu0 %vm3974_vm11, %v7894_v6 }
 0x351   : > { %v8514_v49 = vpop.f32.mrf.mxu1  ;;  %v8518_v17 = vpop.f32.mrf.mxu0 }
 0x352   : > { %9109 = vst [vmem:[#allocation6_spill] sm:$0xff] %v8514_v49 }
 0x353   : > { %v4523_v37 = vpop.f32.mrf.mxu1  ;;  %v4395_v16 = vpop.f32.mrf.mxu0 }
 0x355   : > { %v8522_v18 = vpop.f32.mrf.mxu1  ;;  %4828 = vmatmul.mubr.bf16.gmra.mxu1 %v4030_v56 }
 0x356   : > { %9111 = vst [vmem:[#allocation9_spill] sm:$0xff] %v8522_v18  ;;  %6125 = vmatprep.mubr.msk.bf16.mxu1 %vm3974_vm11, %v9112_v51 }
 0x357   : > { %v4528_v46 = vpop.f32.mrf.mxu1  ;;  %v8526_v60 = vpop.f32.mrf.mxu0  ;;  %5220 = vmatmul.mubr.bf16.gmra.mxu0 %v7882_v39 }
 0x358   : > { %6193 = vmatprep.mubr.msk.bf16.mxu0 %vm3974_vm11, %v7905_v36 }
 0x359   : > { %v8528_v30 = vpop.f32.mrf.mxu1  ;;  %v4400_v10 = vpop.f32.mrf.mxu0 }
 0x35a   : > { %9113 = vst [vmem:[#allocation8_spill] sm:$0xff] %v8528_v30 }
 0x35b   : > { %v4531_v37 = vpop.f32.mrf.mxu1  ;;  %v8533_v4 = vpop.f32.mrf.mxu0 }
 0x35d   : > { %v8535_v5 = vpop.f32.mrf.mxu1  ;;  %4836 = vmatmul.mubr.bf16.gmra.mxu1 %v7873_v47  ;;  %v4403_v51 = vpop.f32.mrf.mxu0 }
 0x35e   : > { %9114 = vst [vmem:[#allocation11_spill] sm:$0xff] %v8535_v5  ;;  %6126 = vmatprep.mubr.msk.bf16.mxu1 %vm3974_vm11, %v7894_v6 }
 0x35f   : > { %v4536_v16 = vpop.f32.mrf.mxu1  ;;  %v8540_v56 = vpop.f32.mrf.mxu0  ;;  %5228 = vmatmul.mubr.bf16.gmra.mxu0 %v7898_v48 }
 0x360   : > { %6194 = vmatprep.mubr.msk.bf16.mxu0 %vm3974_vm11, %v7946_v29 }
 0x361   : > { %v8542_v46 = vpop.f32.mrf.mxu1  ;;  %v4408_v10 = vpop.f32.mrf.mxu0 }
 0x362   : > { %9115 = vst [vmem:[#allocation10_spill] sm:$0xff] %v8542_v46 }
 0x363   : > { %v4539_v37 = vpop.f32.mrf.mxu1  ;;  %v8547_v30 = vpop.f32.mrf.mxu0 }
 0x365   : > { %v8549_v5 = vpop.f32.mrf.mxu1  ;;  %4844 = vmatmul.mubr.bf16.gmra.mxu1 %v7882_v39  ;;  %v4411_v47 = vpop.f32.mrf.mxu0 }
 0x366   : > { %9116 = vst [vmem:[#allocation13_spill] sm:$0xff] %v8549_v5  ;;  %6127 = vmatprep.mubr.msk.bf16.mxu1 %vm3974_vm11, %v7905_v36 }
 0x367   : > { %v4544_v6 = vpop.f32.mrf.mxu1  ;;  %v8554_v51 = vpop.f32.mrf.mxu0  ;;  %5236 = vmatmul.mubr.bf16.gmra.mxu0 %v8106_v28 }
 0x368   : > { %6195 = vmatprep.mubr.msk.bf16.mxu0 %vm3974_vm11, %v8114_v61 }
 0x369   : > { %v8556_v16 = vpop.f32.mrf.mxu1  ;;  %v4416_v10 = vpop.f32.mrf.mxu0 }
 0x36a   : > { %9117 = vst [vmem:[#allocation12_spill] sm:$0xff] %v8556_v16 }
 0x36b   : > { %v4547_v37 = vpop.f32.mrf.mxu1  ;;  %v8561_v46 = vpop.f32.mrf.mxu0 }
 0x36d   : > { %v8563_v5 = vpop.f32.mrf.mxu1  ;;  %4852 = vmatmul.mubr.bf16.gmra.mxu1 %v7898_v48  ;;  %v4419_v39 = vpop.f32.mrf.mxu0 }
 0x36e   : > { %9118 = vst [vmem:[#allocation15_spill] sm:$0xff] %v8563_v5  ;;  %6128 = vmatprep.mubr.msk.bf16.mxu1 %vm3974_vm11, %v7946_v29 }
 0x36f   : > { %v4552_v36 = vpop.f32.mrf.mxu1  ;;  %v8568_v47 = vpop.f32.mrf.mxu0  ;;  %5244 = vmatmul.mubr.bf16.gmra.mxu0 %v8142_v9 }
 0x370   : > { %6196 = vmatprep.mubr.msk.bf16.mxu0 %vm3974_vm11, %v8150_v13 }
 0x371   : > { %v8570_v6 = vpop.f32.mrf.mxu1  ;;  %v4424_v10 = vpop.f32.mrf.mxu0 }
 0x372   : > { %9119 = vst [vmem:[#allocation14_spill] sm:$0xff] %v8570_v6 }
 0x373   : > { %v4555_v37 = vpop.f32.mrf.mxu1  ;;  %v8575_v16 = vpop.f32.mrf.mxu0 }
 0x375   : > { %v8577_v5 = vpop.f32.mrf.mxu1  ;;  %4860 = vmatmul.mubr.bf16.gmra.mxu1 %v8106_v28  ;;  %v4427_v48 = vpop.f32.mrf.mxu0 }
 0x376   : > { %9120 = vst [vmem:[#allocation17_spill] sm:$0xff] %v8577_v5  ;;  %6129 = vmatprep.mubr.msk.bf16.mxu1 %vm3974_vm11, %v8114_v61 }
 0x377   : > { %v4560_v29 = vpop.f32.mrf.mxu1  ;;  %v8582_v39 = vpop.f32.mrf.mxu0  ;;  %5252 = vmatmul.mubr.bf16.gmra.mxu0 %v8178_v42 }
 0x378   : > { %6197 = vmatprep.mubr.msk.bf16.mxu0 %vm3974_vm11, %v8186_v25 }
 0x379   : > { %v8584_v36 = vpop.f32.mrf.mxu1  ;;  %v4432_v10 = vpop.f32.mrf.mxu0 }
 0x37a   : > { %9121 = vst [vmem:[#allocation16_spill] sm:$0xff] %v8584_v36 }
 0x37b   : > { %v4563_v37 = vpop.f32.mrf.mxu1  ;;  %v8589_v6 = vpop.f32.mrf.mxu0 }
 0x37d   : > { %v8591_v5 = vpop.f32.mrf.mxu1  ;;  %4868 = vmatmul.mubr.bf16.gmra.mxu1 %v8142_v9  ;;  %v4435_v28 = vpop.f32.mrf.mxu0 }
 0x37e   : > { %9122 = vst [vmem:[#allocation19_spill] sm:$0xff] %v8591_v5  ;;  %6130 = vmatprep.mubr.msk.bf16.mxu1 %vm3974_vm11, %v8150_v13 }
 0x37f   : > { %v4568_v61 = vpop.f32.mrf.mxu1  ;;  %v8596_v48 = vpop.f32.mrf.mxu0  ;;  %5260 = vmatmul.mubr.bf16.gmra.mxu0 %v8211_v24 }
 0x380   : > { %6198 = vmatprep.mubr.msk.bf16.mxu0 %vm3974_vm11, %v8215_v58 }
 0x381   : > { %v8598_v29 = vpop.f32.mrf.mxu1  ;;  %v4440_v10 = vpop.f32.mrf.mxu0 }
 0x382   : > { %9123 = vst [vmem:[#allocation18_spill] sm:$0xff] %v8598_v29 }
 0x383   : > { %v4571_v37 = vpop.f32.mrf.mxu1  ;;  %v8603_v36 = vpop.f32.mrf.mxu0 }
 0x385   : > { %v8605_v5 = vpop.f32.mrf.mxu1  ;;  %4876 = vmatmul.mubr.bf16.gmra.mxu1 %v8178_v42  ;;  %v4443_v9 = vpop.f32.mrf.mxu0 }
 0x386   : > { %9124 = vst [vmem:[#allocation21_spill] sm:$0xff] %v8605_v5  ;;  %6131 = vmatprep.mubr.msk.bf16.mxu1 %vm3974_vm11, %v8186_v25 }
 0x387   : > { %v4576_v13 = vpop.f32.mrf.mxu1  ;;  %v8610_v28 = vpop.f32.mrf.mxu0  ;;  %5268 = vmatmul.mubr.bf16.gmra.mxu0 %v8231_v11 }
 0x388   : > { %6199 = vmatprep.mubr.msk.bf16.mxu0 %vm3974_vm11, %v8235_v32 }
 0x389   : > { %v8612_v61 = vpop.f32.mrf.mxu1  ;;  %v4448_v10 = vpop.f32.mrf.mxu0 }
 0x38a   : > { %9125 = vst [vmem:[#allocation20_spill] sm:$0xff] %v8612_v61 }
 0x38b   : > { %v4579_v37 = vpop.f32.mrf.mxu1  ;;  %v8617_v29 = vpop.f32.mrf.mxu0 }
 0x38d   : > { %v8619_v5 = vpop.f32.mrf.mxu1  ;;  %4884 = vmatmul.mubr.bf16.gmra.mxu1 %v8211_v24  ;;  %v4451_v42 = vpop.f32.mrf.mxu0 }
 0x38e   : > { %9126 = vst [vmem:[#allocation23_spill] sm:$0xff] %v8619_v5  ;;  %6132 = vmatprep.mubr.msk.bf16.mxu1 %vm3974_vm11, %v8215_v58 }
 0x38f   : > { %v4584_v25 = vpop.f32.mrf.mxu1  ;;  %v8624_v9 = vpop.f32.mrf.mxu0  ;;  %5276 = vmatmul.mubr.bf16.gmra.mxu0 %v8248_v23 }
 0x390   : > { %6200 = vmatprep.mubr.msk.bf16.mxu0 %vm3974_vm11, %v7964_v50 }
 0x391   : > { %v8626_v13 = vpop.f32.mrf.mxu1  ;;  %v4456_v10 = vpop.f32.mrf.mxu0 }
 0x392   : > { %9127 = vst [vmem:[#allocation22_spill] sm:$0xff] %v8626_v13 }
 0x393   : > { %v4587_v37 = vpop.f32.mrf.mxu1  ;;  %v8631_v61 = vpop.f32.mrf.mxu0 }
 0x395   : > { %v4701_v5 = vpop.f32.mrf.mxu1  ;;  %4892 = vmatmul.mubr.bf16.gmra.mxu1 %v8231_v11  ;;  %v4459_v24 = vpop.f32.mrf.mxu0 }
 0x396   : > { %6133 = vmatprep.mubr.msk.bf16.mxu1 %vm3974_vm11, %v8235_v32  ;;  %v4702_v42 = vadd.f32 %v4701_v5, %v8410_v27 }
 0x397   : > { %v4703_v58 = vpop.f32.mrf.mxu1  ;;  %v5093_v13 = vpop.f32.mrf.mxu0  ;;  %5284 = vmatmul.mubr.bf16.gmra.mxu0 %v8262_v22 }
 0x398   : > { %v8638_v18 = vadd.f32 %v5093_v13, %v4702_v42  ;;  %6201 = vmatprep.mubr.msk.bf16.mxu0 %vm3974_vm11, %v7971_v40 }
 0x399   : > { %v4704_v25 = vpop.f32.mrf.mxu1  ;;  %v5095_v37 = vpop.f32.mrf.mxu0 }
 0x39a   : > { %v4705_v11 = vadd.f32 %v4704_v25, %v8417_v34 }
 0x39b   : > { %v4706_v10 = vpop.f32.mrf.mxu1  ;;  %v5096_v32 = vpop.f32.mrf.mxu0 }
 0x39c   : > { %v8644_v24 = vadd.f32 %v5096_v32, %v4705_v11 }
 0x39d   : > { %v4709_v49 = vpop.f32.mrf.mxu1  ;;  %4900 = vmatmul.mubr.bf16.gmra.mxu1 %v8248_v23  ;;  %v5098_v5 = vpop.f32.mrf.mxu0 }
 0x39e   : > { %6134 = vmatprep.mubr.msk.bf16.mxu1 %vm3974_vm11, %v7964_v50  ;;  %v4710_v13 = vadd.f32 %v4709_v49, %v8426_v44 }
 0x39f   : > { %v4711_v27 = vpop.f32.mrf.mxu1  ;;  %v5101_v42 = vpop.f32.mrf.mxu0  ;;  %5292 = vmatmul.mubr.bf16.gmra.mxu0 %v8276_v41 }
 0x3a0   : > { %v8650_v10 = vadd.f32 %v5101_v42, %v4710_v13  ;;  %6202 = vmatprep.mubr.msk.bf16.mxu0 %vm3974_vm11, %v7993_v19 }
 0x3a1   : > { %v4712_v58 = vpop.f32.mrf.mxu1  ;;  %v5103_v34 = vpop.f32.mrf.mxu0 }
 0x3a2   : > { %v4713_v25 = vadd.f32 %v4712_v58, %v8433_v8  ;;  %v9128_v8 = vld [vmem:[#allocation42_spill] sm:$0xff] }
 0x3a3   : > { %v4714_v23 = vpop.f32.mrf.mxu1  ;;  %v5104_v50 = vpop.f32.mrf.mxu0 }
 0x3a4   : > { %v8656_v11 = vadd.f32 %v5104_v50, %v4713_v25 }
 0x3a5   : > { %v4717_v37 = vpop.f32.mrf.mxu1  ;;  %4908 = vmatmul.mubr.bf16.gmra.mxu1 %v8262_v22  ;;  %v5106_v49 = vpop.f32.mrf.mxu0 }
 0x3a6   : > { %6135 = vmatprep.mubr.msk.bf16.mxu1 %vm3974_vm11, %v7971_v40  ;;  %v4718_v32 = vadd.f32 %v4717_v37, %v8440_v55  ;;  %v9129_v49 = vld [vmem:[#allocation33_spill] sm:$0xff] }
 0x3a7   : > { %v4719_v44 = vpop.f32.mrf.mxu1  ;;  %v5109_v5 = vpop.f32.mrf.mxu0  ;;  %5300 = vmatmul.mubr.bf16.gmra.mxu0 %v8290_v62 }
 0x3a8   : > { %v8662_v13 = vadd.f32 %v5109_v5, %v4718_v32  ;;  %6203 = vmatprep.mubr.msk.bf16.mxu0 %vm3974_vm11, %v9128_v8 }
 0x3a9   : > { %v4720_v27 = vpop.f32.mrf.mxu1  ;;  %v5111_v58 = vpop.f32.mrf.mxu0 }
 0x3aa   : > { %v4721_v42 = vadd.f32 %v4720_v27, %v8447_v38  ;;  %v9130_v38 = vld [vmem:[#allocation43_spill] sm:$0xff] }
 0x3ab   : > { %v4722_v22 = vpop.f32.mrf.mxu1  ;;  %v5112_v40 = vpop.f32.mrf.mxu0 }
 0x3ac   : > { %v8668_v34 = vadd.f32 %v5112_v40, %v4721_v42 }
 0x3ad   : > { %v4725_v23 = vpop.f32.mrf.mxu1  ;;  %4916 = vmatmul.mubr.bf16.gmra.mxu1 %v8276_v41  ;;  %v5114_v25 = vpop.f32.mrf.mxu0 }
 0x3ae   : > { %6136 = vmatprep.mubr.msk.bf16.mxu1 %vm3974_vm11, %v7993_v19  ;;  %v4726_v37 = vadd.f32 %v4725_v23, %v8454_v1  ;;  %v9131_v25 = vld [vmem:[#allocation35_spill] sm:$0xff] }
 0x3af   : > { %v4727_v55 = vpop.f32.mrf.mxu1  ;;  %v5117_v44 = vpop.f32.mrf.mxu0  ;;  %5308 = vmatmul.mubr.bf16.gmra.mxu0 %v9129_v49 }
 0x3b0   : > { %v8674_v32 = vadd.f32 %v5117_v44, %v4726_v37  ;;  %6204 = vmatprep.mubr.msk.bf16.mxu0 %vm3974_vm11, %v9130_v38 }
 0x3b1   : > { %v4728_v50 = vpop.f32.mrf.mxu1  ;;  %v5119_v27 = vpop.f32.mrf.mxu0 }
 0x3b2   : > { %v4729_v5 = vadd.f32 %v4728_v50, %v8461_v53  ;;  %v9132_v53 = vld [vmem:[#allocation32_spill] sm:$0xff] }
 0x3b3   : > { %v4730_v41 = vpop.f32.mrf.mxu1  ;;  %v5120_v19 = vpop.f32.mrf.mxu0 }
 0x3b4   : > { %v8680_v58 = vadd.f32 %v5120_v19, %v4729_v5 }
 0x3b5   : > { %v4733_v22 = vpop.f32.mrf.mxu1  ;;  %4924 = vmatmul.mubr.bf16.gmra.mxu1 %v8290_v62  ;;  %v5122_v42 = vpop.f32.mrf.mxu0 }
 0x3b6   : > { %6137 = vmatprep.mubr.msk.bf16.mxu1 %vm3974_vm11, %v9128_v8  ;;  %v4734_v23 = vadd.f32 %v4733_v22, %v8468_v20  ;;  %v9133_v42 = vld [vmem:[#allocation37_spill] sm:$0xff] }
 0x3b7   : > { %v4735_v1 = vpop.f32.mrf.mxu1  ;;  %v5125_v55 = vpop.f32.mrf.mxu0  ;;  %5316 = vmatmul.mubr.bf16.gmra.mxu0 %v9131_v25 }
 0x3b8   : > { %v8686_v37 = vadd.f32 %v5125_v55, %v4734_v23  ;;  %6205 = vmatprep.mubr.msk.bf16.mxu0 %vm3974_vm11, %v9132_v53 }
 0x3b9   : > { %v4736_v40 = vpop.f32.mrf.mxu1  ;;  %v5127_v50 = vpop.f32.mrf.mxu0 }
 0x3ba   : > { %v4737_v44 = vadd.f32 %v4736_v40, %v8475_v3  ;;  %v9134_v3 = vld [vmem:[#allocation28_spill] sm:$0xff] }
 0x3bb   : > { %v4738_v62 = vpop.f32.mrf.mxu1  ;;  %v5128_v8 = vpop.f32.mrf.mxu0 }
 0x3bc   : > { %v8692_v27 = vadd.f32 %v5128_v8, %v4737_v44 }
 0x3bd   : > { %v4741_v41 = vpop.f32.mrf.mxu1  ;;  %4932 = vmatmul.mubr.bf16.gmra.mxu1 %v9129_v49  ;;  %v5130_v5 = vpop.f32.mrf.mxu0 }
 0x3be   : > { %6138 = vmatprep.mubr.msk.bf16.mxu1 %vm3974_vm11, %v9130_v38  ;;  %v4742_v22 = vadd.f32 %v4741_v41, %v8482_v63 }
 0x3bf   : > { %v4743_v20 = vpop.f32.mrf.mxu1  ;;  %v5133_v1 = vpop.f32.mrf.mxu0  ;;  %5324 = vmatmul.mubr.bf16.gmra.mxu0 %v9133_v42 }
 0x3c0   : > { %v8698_v23 = vadd.f32 %v5133_v1, %v4742_v22  ;;  %6206 = vmatprep.mubr.msk.bf16.mxu0 %vm3974_vm11, %v9134_v3 }
 0x3c1   : > { %v4744_v19 = vpop.f32.mrf.mxu1  ;;  %v5135_v40 = vpop.f32.mrf.mxu0 }
 0x3c2   : > { %v4745_v55 = vadd.f32 %v4744_v19, %v8489_v15  ;;  %v9135_v15 = vld [vmem:[#allocation30_spill] sm:$0xff]  ;;  %v3756_v19 = vpop.permute.xlu1 %3755 }
 0x3c3   : > { %v4746_v49 = vpop.f32.mrf.mxu1  ;;  %v5136_v38 = vpop.f32.mrf.mxu0 }
 0x3c4   : > { %v8704_v50 = vadd.f32 %v5136_v38, %v4745_v55  ;;  %v9136_v55 = vld [vmem:[#allocation41_spill] sm:$0xff] }
 0x3c5   : > { %v4749_v62 = vpop.f32.mrf.mxu1  ;;  %4940 = vmatmul.mubr.bf16.gmra.mxu1 %v9131_v25  ;;  %v5138_v44 = vpop.f32.mrf.mxu0 }
 0x3c6   : > { %6139 = vmatprep.mubr.msk.bf16.mxu1 %vm3974_vm11, %v9132_v53  ;;  %v4750_v41 = vadd.f32 %v4749_v62, %v8496_v14 }
 0x3c7   : > { %v4751_v63 = vpop.f32.mrf.mxu1  ;;  %v5141_v20 = vpop.f32.mrf.mxu0  ;;  %5332 = vmatmul.mubr.bf16.gmra.mxu0 %v8346_v2  ;;  %v4081_v2 = vsel %vm3974_vm11, %v9136_v55, %v3756_v19 }
 0x3c8   : > { %v8710_v5 = vadd.f32 %v5141_v20, %v4750_v41  ;;  %6207 = vmatprep.mubr.msk.bf16.mxu0 %vm3974_vm11, %v9135_v15 }
 0x3c9   : > { %v4752_v8 = vpop.f32.mrf.mxu1  ;;  %v5143_v22 = vpop.f32.mrf.mxu0 }
 0x3ca   : > { %v4753_v1 = vadd.f32 %v4752_v8, %v8503_v57 }
 0x3cb   : > { %v4754_v25 = vpop.f32.mrf.mxu1  ;;  %v5144_v53 = vpop.f32.mrf.mxu0 }
 0x3cc   : > { %v8716_v49 = vadd.f32 %v5144_v53, %v4753_v1 }
 0x3cd   : > { %v4757_v3 = vpop.f32.mrf.mxu1  ;;  %4948 = vmatmul.mubr.bf16.gmra.mxu1 %v9133_v42  ;;  %v5146_v40 = vpop.f32.mrf.mxu0 }
 0x3ce   : > { %v4758_v62 = vadd.f32 %v4757_v3, %v8510_v59 }
 0x3cf   : > { %v4759_v14 = vpop.f32.mrf.mxu1  ;;  %v5149_v63 = vpop.f32.mrf.mxu0  ;;  %5340 = vmatmul.mubr.bf16.gmra.mxu0 %v4081_v2 }
 0x3d0   : > { %v8721_v44 = vadd.f32 %v5149_v63, %v4758_v62 }
 0x3d1   : > { %v4760_v38 = vpop.f32.mrf.mxu1  ;;  %v5151_v57 = vpop.f32.mrf.mxu0 }
 0x3d2   : > { %v4761_v8 = vadd.f32 %v4760_v38, %v8518_v17 }
 0x3d3   : > { %v4762_v41 = vpop.f32.mrf.mxu1  ;;  %v5152_v20 = vpop.f32.mrf.mxu0 }
 0x3d4   : > { %v8724_v15 = vadd.f32 %v5152_v20, %v4761_v8 }
 0x3d5   : > { %v4765_v42 = vpop.f32.mrf.mxu1  ;;  %v5154_v22 = vpop.f32.mrf.mxu0 }
 0x3d6   : > { %v4766_v1 = vadd.f32 %v4765_v42, %v8526_v60 }
 0x3d7   : > { %v4767_v25 = vpop.f32.mrf.mxu1  ;;  %v5157_v53 = vpop.f32.mrf.mxu0 }
 0x3d8   : > { %v8727_v59 = vadd.f32 %v5157_v53, %v4766_v1 }
 0x3d9   : > { %v4768_v19 = vpop.f32.mrf.mxu1  ;;  %v5159_v14 = vpop.f32.mrf.mxu0 }
 0x3da   : > { %v4769_v40 = vadd.f32 %v4768_v19, %v8533_v4 }
 0x3db   : > { %v4770_v3 = vpop.f32.mrf.mxu1  ;;  %v5160_v2 = vpop.f32.mrf.mxu0 }
 0x3dc   : > { %v8730_v62 = vadd.f32 %v5160_v2, %v4769_v40 }
 0x3dd   : > { %v4773_v55 = vpop.f32.mrf.mxu1  ;;  %v5162_v38 = vpop.f32.mrf.mxu0 }
 0x3de   : > { %v4774_v63 = vadd.f32 %v4773_v55, %v8540_v56 }
 0x3df   : > { %v4775_v17 = vpop.f32.mrf.mxu1  ;;  %v5165_v57 = vpop.f32.mrf.mxu0 }
 0x3e0   : > { %v8733_v8 = vadd.f32 %v5165_v57, %v4774_v63 }
 0x3e1   : > { %v4776_v41 = vpop.f32.mrf.mxu1  ;;  %v5167_v42 = vpop.f32.mrf.mxu0 }
 0x3e2   : > { %v4777_v20 = vadd.f32 %v4776_v41, %v8547_v30 }
 0x3e3   : > { %v4778_v60 = vpop.f32.mrf.mxu1  ;;  %v5168_v22 = vpop.f32.mrf.mxu0 }
 0x3e4   : > { %v8736_v1 = vadd.f32 %v5168_v22, %v4777_v20 }
 0x3e5   : > { %v4781_v25 = vpop.f32.mrf.mxu1  ;;  %v5170_v19 = vpop.f32.mrf.mxu0 }
 0x3e6   : > { %v4782_v53 = vadd.f32 %v4781_v25, %v8554_v51 }
 0x3e7   : > { %v4783_v4 = vpop.f32.mrf.mxu1  ;;  %v5173_v14 = vpop.f32.mrf.mxu0 }
 0x3e8   : > { %v8739_v40 = vadd.f32 %v5173_v14, %v4782_v53 }
 0x3e9   : > { %v4784_v3 = vpop.f32.mrf.mxu1  ;;  %v5175_v55 = vpop.f32.mrf.mxu0 }
 0x3ea   : > { %v4785_v2 = vadd.f32 %v4784_v3, %v8561_v46 }
 0x3eb   : > { %v4786_v56 = vpop.f32.mrf.mxu1  ;;  %v5176_v38 = vpop.f32.mrf.mxu0 }
 0x3ec   : > { %v8742_v63 = vadd.f32 %v5176_v38, %v4785_v2 }
 0x3ed   : > { %v4789_v17 = vpop.f32.mrf.mxu1  ;;  %v5178_v41 = vpop.f32.mrf.mxu0 }
 0x3ee   : > { %v4790_v57 = vadd.f32 %v4789_v17, %v8568_v47 }
 0x3ef   : > { %v4791_v30 = vpop.f32.mrf.mxu1  ;;  %v5181_v42 = vpop.f32.mrf.mxu0 }
 0x3f0   : > { %v8745_v20 = vadd.f32 %v5181_v42, %v4790_v57 }
 0x3f1   : > { %v4792_v60 = vpop.f32.mrf.mxu1  ;;  %v5183_v25 = vpop.f32.mrf.mxu0 }
 0x3f2   : > { %v4793_v22 = vadd.f32 %v4792_v60, %v8575_v16 }
 0x3f3   : > { %v4794_v51 = vpop.f32.mrf.mxu1  ;;  %v5184_v19 = vpop.f32.mrf.mxu0 }
 0x3f4   : > { %v8748_v53 = vadd.f32 %v5184_v19, %v4793_v22 }
 0x3f5   : > { %v4797_v4 = vpop.f32.mrf.mxu1  ;;  %v5186_v3 = vpop.f32.mrf.mxu0 }
 0x3f6   : > { %v4798_v14 = vadd.f32 %v4797_v4, %v8582_v39 }
 0x3f7   : > { %v4799_v46 = vpop.f32.mrf.mxu1  ;;  %v5189_v55 = vpop.f32.mrf.mxu0 }
 0x3f8   : > { %v8751_v2 = vadd.f32 %v5189_v55, %v4798_v14 }
 0x3f9   : > { %v4800_v56 = vpop.f32.mrf.mxu1  ;;  %v5191_v17 = vpop.f32.mrf.mxu0 }
 0x3fa   : > { %v4801_v38 = vadd.f32 %v4800_v56, %v8589_v6 }
 0x3fb   : > { %v4802_v47 = vpop.f32.mrf.mxu1  ;;  %v5192_v41 = vpop.f32.mrf.mxu0 }
 0x3fc   : > { %v8754_v57 = vadd.f32 %v5192_v41, %v4801_v38 }
 0x3fd   : > { %v4805_v30 = vpop.f32.mrf.mxu1  ;;  %v5194_v60 = vpop.f32.mrf.mxu0 }
 0x3fe   : > { %v4806_v42 = vadd.f32 %v4805_v30, %v8596_v48 }
 0x3ff   : > { %v4807_v16 = vpop.f32.mrf.mxu1  ;;  %v5197_v25 = vpop.f32.mrf.mxu0 }
 0x400   : > { %v8757_v22 = vadd.f32 %v5197_v25, %v4806_v42 }
 0x401   : > { %v4808_v51 = vpop.f32.mrf.mxu1  ;;  %v5199_v4 = vpop.f32.mrf.mxu0 }
 0x402   : > { %v4809_v19 = vadd.f32 %v4808_v51, %v8603_v36 }
 0x403   : > { %v4810_v39 = vpop.f32.mrf.mxu1  ;;  %v5200_v3 = vpop.f32.mrf.mxu0 }
 0x404   : > { %v8760_v14 = vadd.f32 %v5200_v3, %v4809_v19 }
 0x405   : > { %v4813_v46 = vpop.f32.mrf.mxu1  ;;  %v5202_v56 = vpop.f32.mrf.mxu0 }
 0x406   : > { %v4814_v55 = vadd.f32 %v4813_v46, %v8610_v28 }
 0x407   : > { %v4815_v6 = vpop.f32.mrf.mxu1  ;;  %v5205_v17 = vpop.f32.mrf.mxu0 }
 0x408   : > { %v8763_v38 = vadd.f32 %v5205_v17, %v4814_v55 }
 0x409   : > { %v4816_v47 = vpop.f32.mrf.mxu1  ;;  %v5207_v30 = vpop.f32.mrf.mxu0 }
 0x40a   : > { %v4817_v41 = vadd.f32 %v4816_v47, %v8617_v29  ;;  %v8777_v29 = vld [vmem:[%s8955_s3] ss:$0 sm:$0xff] }
 0x40b   : > { %v4818_v48 = vpop.f32.mrf.mxu1  ;;  %v5208_v60 = vpop.f32.mrf.mxu0 }
 0x40c   : > { %v8766_v42 = vadd.f32 %v5208_v60, %v4817_v41  ;;  %v5419_v41 = vadd.f32 %v8777_v29, %v8638_v18 }
 0x40d   : > { %v4821_v16 = vpop.f32.mrf.mxu1  ;;  %v5210_v51 = vpop.f32.mrf.mxu0 }
 0x40e   : > { %v4822_v25 = vadd.f32 %v4821_v16, %v8624_v9 }
 0x40f   : > { %v4823_v36 = vpop.f32.mrf.mxu1  ;;  %v5213_v4 = vpop.f32.mrf.mxu0 }
 0x410   : > { %v8769_v19 = vadd.f32 %v5213_v4, %v4822_v25  ;;  %v5483_v4 = vmax.f32 %v5419_v41, 0.0 }
 0x411   : > { %v4824_v39 = vpop.f32.mrf.mxu1  ;;  %v5215_v46 = vpop.f32.mrf.mxu0 }
 0x412   : > { %v4825_v3 = vadd.f32 %v4824_v39, %v8631_v61 }
 0x413   : > { %v4826_v28 = vpop.f32.mrf.mxu1  ;;  %v5216_v56 = vpop.f32.mrf.mxu0 }
 0x414   : > { %v8772_v55 = vadd.f32 %v5216_v56, %v4825_v3  ;;  %v5420_v28 = vadd.f32 %v8777_v29, %v8644_v24 }
 0x415   : > { %v4829_v6 = vpop.f32.mrf.mxu1  ;;  %v5218_v17 = vpop.f32.mrf.mxu0 }
 0x416   : > { %v4830_v9 = vadd.f32 %v4829_v6, %v8407_v52 }
 0x417   : > { %v4831_v47 = vpop.f32.mrf.mxu1  ;;  %v5221_v30 = vpop.f32.mrf.mxu0 }
 0x418   : > { %v5380_v16 = vadd.f32 %v5221_v30, %v4830_v9 }
 0x419   : > { %v4832_v48 = vpop.f32.mrf.mxu1  ;;  %v5223_v60 = vpop.f32.mrf.mxu0 }
 0x41a   : > { %v4833_v36 = vadd.f32 %v4832_v48, %v8414_v26  ;;  %v5451_v51 = vadd.f32 %v8777_v29, %v5380_v16  ;;  %v5421_v26 = vadd.f32 %v8777_v29, %v8650_v10  ;;  %v5484_v48 = vmax.f32 %v5420_v28, 0.0 }
 0x41b   : > { %v4834_v61 = vpop.f32.mrf.mxu1  ;;  %v5224_v39 = vpop.f32.mrf.mxu0 }
 0x41c   : > { %v5515_v46 = vmax.f32 %v5451_v51, 0.0  ;;  %v5381_v52 = vadd.f32 %v5224_v39, %v4833_v36  ;;  %v5485_v39 = vmax.f32 %v5421_v26, 0.0  ;;  %v5423_v26 = vadd.f32 %v8777_v29, %v8662_v13 }
 0x41d   : > { %v4837_v25 = vpop.f32.mrf.mxu1  ;;  %v5226_v6 = vpop.f32.mrf.mxu0 }
 0x41e   : > { %v5547_v56 = vsub.f32 %v5483_v4, %v5515_v46  ;;  %v4838_v18 = vadd.f32 %v4837_v25, %v8421_v35  ;;  %v5452_v47 = vadd.f32 %v8777_v29, %v5381_v52  ;;  %v5422_v4 = vadd.f32 %v8777_v29, %v8656_v11 }
 0x41f   : > { %v4839_v3 = vpop.f32.mrf.mxu1  ;;  %v5229_v9 = vpop.f32.mrf.mxu0 }
 0x420   : > { %v5516_v30 = vmax.f32 %v5452_v47, 0.0  ;;  %v5382_v41 = vadd.f32 %v5229_v9, %v4838_v18  ;;  %v5579_v16 = vand.u32 2147483647, %v5547_v56 }
 0x421   : > { %v4840_v17 = vpop.f32.mrf.mxu1  ;;  %v5231_v24 = vpop.f32.mrf.mxu0 }
 0x422   : > { %v5548_v60 = vsub.f32 %v5484_v48, %v5516_v30  ;;  %v4841_v36 = vadd.f32 %v4840_v17, %v8428_v0  ;;  %v5453_v51 = vadd.f32 %v8777_v29, %v5382_v41  ;;  %v5611_v28 = vsel %vm3974_vm11, %v5579_v16, 0.0 }
 0x423   : > { %v4842_v61 = vpop.f32.mrf.mxu1  ;;  %v5232_v25 = vpop.f32.mrf.mxu0  ;;  %v5486_v48 = vmax.f32 %v5422_v4, 0.0 }
 0x424   : > { %v5580_v10 = vand.u32 2147483647, %v5548_v60  ;;  %v5517_v46 = vmax.f32 %v5453_v51, 0.0  ;;  %v5383_v52 = vadd.f32 %v5232_v25, %v4841_v36 }
 0x425   : > { %v4845_v35 = vpop.f32.mrf.mxu1  ;;  %v5234_v6 = vpop.f32.mrf.mxu0 }
 0x426   : > { %v5612_v56 = vsel %vm3974_vm11, %v5580_v10, 0.0  ;;  %v5549_v18 = vsub.f32 %v5485_v39, %v5517_v46  ;;  %v4846_v0 = vadd.f32 %v4845_v35, %v8435_v7  ;;  %v5454_v47 = vadd.f32 %v8777_v29, %v5383_v52 }
 0x427   : > { %v4847_v3 = vpop.f32.mrf.mxu1  ;;  %v5613_v17 = vadd.f32 %v5612_v56, %v5611_v28  ;;  %v5237_v11 = vpop.f32.mrf.mxu0  ;;  %v5487_v39 = vmax.f32 %v5423_v26, 0.0  ;;  %v5424_v10 = vadd.f32 %v8777_v29, %v8668_v34 }
 0x428   : > { %v5581_v30 = vand.u32 2147483647, %v5549_v18  ;;  %v5518_v41 = vmax.f32 %v5454_v47, 0.0  ;;  %v5384_v61 = vadd.f32 %v5237_v11, %v4846_v0  ;;  %v5425_v0 = vadd.f32 %v8777_v29, %v8674_v32 }
 0x429   : > { %v4848_v9 = vpop.f32.mrf.mxu1  ;;  %v5239_v24 = vpop.f32.mrf.mxu0 }
 0x42a   : > { %v5614_v60 = vsel %vm3974_vm11, %v5581_v30, 0.0  ;;  %v5550_v36 = vsub.f32 %v5486_v48, %v5518_v41  ;;  %v4849_v51 = vadd.f32 %v4848_v9, %v8442_v12  ;;  %v5455_v7 = vadd.f32 %v8777_v29, %v5384_v61 }
 0x42b   : > { %v4850_v16 = vpop.f32.mrf.mxu1  ;;  %v5615_v35 = vadd.f32 %v5614_v60, %v5613_v17  ;;  %v5240_v13 = vpop.f32.mrf.mxu0  ;;  %v5488_v9 = vmax.f32 %v5424_v10, 0.0  ;;  %v5489_v60 = vmax.f32 %v5425_v0, 0.0 }
 0x42c   : > { %v5582_v4 = vand.u32 2147483647, %v5550_v36  ;;  %v5519_v46 = vmax.f32 %v5455_v7, 0.0  ;;  %v5385_v52 = vadd.f32 %v5240_v13, %v4849_v51  ;;  %v5426_v7 = vadd.f32 %v8777_v29, %v8680_v58 }
 0x42d   : > { %v4853_v25 = vpop.f32.mrf.mxu1  ;;  %v5242_v3 = vpop.f32.mrf.mxu0 }
 0x42e   : > { %v5616_v6 = vsel %vm3974_vm11, %v5582_v4, 0.0  ;;  %v5551_v56 = vsub.f32 %v5487_v39, %v5519_v46  ;;  %v4854_v18 = vadd.f32 %v4853_v25, %v8449_v33  ;;  %v5456_v12 = vadd.f32 %v8777_v29, %v5385_v52 }
 0x42f   : > { %v4855_v28 = vpop.f32.mrf.mxu1  ;;  %v5617_v47 = vadd.f32 %v5616_v6, %v5615_v35  ;;  %v5245_v17 = vpop.f32.mrf.mxu0 }
 0x430   : > { %v5583_v34 = vand.u32 2147483647, %v5551_v56  ;;  %v5520_v11 = vmax.f32 %v5456_v12, 0.0  ;;  %v5386_v48 = vadd.f32 %v5245_v17, %v4854_v18  ;;  %v5427_v28 = vadd.f32 %v8777_v29, %v8686_v37 }
 0x431   : > { %v4856_v26 = vpop.f32.mrf.mxu1  ;;  %v5247_v41 = vpop.f32.mrf.mxu0  ;;  %v5490_v18 = vmax.f32 %v5426_v7, 0.0  ;;  %v5429_v7 = vadd.f32 %v8777_v29, %v8698_v23 }
 0x432   : > { %v5618_v61 = vsel %vm3974_vm11, %v5583_v34, 0.0  ;;  %v5552_v16 = vsub.f32 %v5488_v9, %v5520_v11  ;;  %v4857_v24 = vadd.f32 %v4856_v26, %v8456_v21  ;;  %v5457_v33 = vadd.f32 %v8777_v29, %v5386_v48 }
 0x433   : > { %v4858_v30 = vpop.f32.mrf.mxu1  ;;  %v5619_v36 = vadd.f32 %v5618_v61, %v5617_v47  ;;  %v5248_v32 = vpop.f32.mrf.mxu0  ;;  %v5491_v11 = vmax.f32 %v5427_v28, 0.0  ;;  %v5428_v41 = vadd.f32 %v8777_v29, %v8692_v27 }
 0x434   : > { %v5584_v39 = vand.u32 2147483647, %v5552_v16  ;;  %v5521_v35 = vmax.f32 %v5457_v33, 0.0  ;;  %v5387_v25 = vadd.f32 %v5248_v32, %v4857_v24 }
 0x435   : > { %v4861_v51 = vpop.f32.mrf.mxu1  ;;  %v5250_v10 = vpop.f32.mrf.mxu0 }
 0x436   : > { %v5620_v4 = vsel %vm3974_vm11, %v5584_v39, 0.0  ;;  %v5553_v46 = vsub.f32 %v5489_v60, %v5521_v35  ;;  %v4862_v52 = vadd.f32 %v4861_v51, %v8463_v54  ;;  %v5458_v21 = vadd.f32 %v8777_v29, %v5387_v25 }
 0x437   : > { %v4863_v13 = vpop.f32.mrf.mxu1  ;;  %v5621_v3 = vadd.f32 %v5620_v4, %v5619_v36  ;;  %v5253_v56 = vpop.f32.mrf.mxu0 }
 0x438   : > { %v5585_v58 = vand.u32 2147483647, %v5553_v46  ;;  %v5522_v12 = vmax.f32 %v5458_v21, 0.0  ;;  %v5388_v0 = vadd.f32 %v5253_v56, %v4862_v52  ;;  %v5492_v13 = vmax.f32 %v5428_v41, 0.0 }
 0x439   : > { %v4864_v6 = vpop.f32.mrf.mxu1  ;;  %v5255_v26 = vpop.f32.mrf.mxu0 }
 0x43a   : > { %v5622_v17 = vsel %vm3974_vm11, %v5585_v58, 0.0  ;;  %v5554_v9 = vsub.f32 %v5490_v18, %v5522_v12  ;;  %v4865_v34 = vadd.f32 %v4864_v6, %v8470_v43  ;;  %v5459_v54 = vadd.f32 %v8777_v29, %v5388_v0 }
 0x43b   : > { %v4866_v47 = vpop.f32.mrf.mxu1  ;;  %v5623_v48 = vadd.f32 %v5622_v17, %v5621_v3  ;;  %v5256_v37 = vpop.f32.mrf.mxu0  ;;  %v5493_v6 = vmax.f32 %v5429_v7, 0.0  ;;  %v5430_v58 = vadd.f32 %v8777_v29, %v8704_v50 }
 0x43c   : > { %v5586_v61 = vand.u32 2147483647, %v5554_v9  ;;  %v5523_v16 = vmax.f32 %v5459_v54, 0.0  ;;  %v5389_v24 = vadd.f32 %v5256_v37, %v4865_v34  ;;  %v9137_v54 = vld [vmem:[#allocation39_spill] sm:$0xff] }
 0x43d   : > { %v4869_v30 = vpop.f32.mrf.mxu1  ;;  %v5258_v60 = vpop.f32.mrf.mxu0 }
 0x43e   : > { %v5624_v36 = vsel %vm3974_vm11, %v5586_v61, 0.0  ;;  %v5555_v51 = vsub.f32 %v5491_v11, %v5523_v16  ;;  %v4870_v32 = vadd.f32 %v4869_v30, %v8477_v45  ;;  %v5460_v43 = vadd.f32 %v8777_v29, %v5389_v24 }
 0x43f   : > { %v4871_v33 = vpop.f32.mrf.mxu1  ;;  %v5625_v39 = vadd.f32 %v5624_v36, %v5623_v48  ;;  %v5261_v25 = vpop.f32.mrf.mxu0  ;;  %v5431_v48 = vadd.f32 %v8777_v29, %v8710_v5  ;;  %v5494_v61 = vmax.f32 %v5430_v58, 0.0 }
 0x440   : > { %v5587_v27 = vand.u32 2147483647, %v5555_v51  ;;  %v5524_v10 = vmax.f32 %v5460_v43, 0.0  ;;  %v5390_v4 = vadd.f32 %v5261_v25, %v4870_v32  ;;  %v9138_v32 = vld [vmem:[#allocation5_spill] sm:$0xff] }
 0x441   : > { %v4872_v35 = vpop.f32.mrf.mxu1  ;;  %v5263_v52 = vpop.f32.mrf.mxu0 }
 0x442   : > { %v5626_v21 = vsel %vm3974_vm11, %v5587_v27, 0.0  ;;  %v5556_v28 = vsub.f32 %v5492_v13, %v5524_v10  ;;  %v4873_v3 = vadd.f32 %v4872_v35, %v8484_v31  ;;  %v5461_v45 = vadd.f32 %v8777_v29, %v5390_v4 }
 0x443   : > { %v4874_v46 = vpop.f32.mrf.mxu1  ;;  %v5627_v56 = vadd.f32 %v5626_v21, %v5625_v39  ;;  %v5264_v23 = vpop.f32.mrf.mxu0  ;;  %v5495_v39 = vmax.f32 %v5431_v48, 0.0  ;;  %v5432_v13 = vadd.f32 %v8777_v29, %v8716_v49 }
 0x444   : > { %v5588_v12 = vand.u32 2147483647, %v5556_v28  ;;  %v5525_v0 = vmax.f32 %v5461_v45, 0.0  ;;  %v5391_v47 = vadd.f32 %v5264_v23, %v4873_v3  ;;  %v9139_v3 = vld [vmem:[#allocation7_spill] sm:$0xff] }
 0x445   : > { %v4877_v18 = vpop.f32.mrf.mxu1  ;;  %v5266_v17 = vpop.f32.mrf.mxu0 }
 0x446   : > { %v5628_v9 = vsel %vm3974_vm11, %v5588_v12, 0.0  ;;  %v5557_v34 = vsub.f32 %v5493_v6, %v5525_v0  ;;  %v4878_v11 = vadd.f32 %v4877_v18, %v9137_v54  ;;  %v5462_v31 = vadd.f32 %v8777_v29, %v5391_v47  ;;  %v9140_v54 = vld [vmem:[#allocation6_spill] sm:$0xff] }
 0x447   : > { %v4879_v26 = vpop.f32.mrf.mxu1  ;;  %v5629_v30 = vadd.f32 %v5628_v9, %v5627_v56  ;;  %v5269_v41 = vpop.f32.mrf.mxu0  ;;  %v5433_v56 = vadd.f32 %v8777_v29, %v8721_v44  ;;  %v5496_v12 = vmax.f32 %v5432_v13, 0.0 }
 0x448   : > { %v5589_v50 = vand.u32 2147483647, %v5557_v34  ;;  %v5526_v16 = vmax.f32 %v5462_v31, 0.0  ;;  %v5392_v24 = vadd.f32 %v5269_v41, %v4878_v11  ;;  %v5434_v41 = vadd.f32 %v8777_v29, %v8724_v15 }
 0x449   : > { %v4880_v37 = vpop.f32.mrf.mxu1  ;;  %v5271_v60 = vpop.f32.mrf.mxu0  ;;  %v5497_v48 = vmax.f32 %v5433_v56, 0.0 }
 0x44a   : > { %v5630_v36 = vsel %vm3974_vm11, %v5589_v50, 0.0  ;;  %v5558_v51 = vsub.f32 %v5494_v61, %v5526_v16  ;;  %v4881_v43 = vadd.f32 %v4880_v37, %v9138_v32  ;;  %v5463_v7 = vadd.f32 %v8777_v29, %v5392_v24 }
 0x44b   : > { %v4882_v33 = vpop.f32.mrf.mxu1  ;;  %v5631_v35 = vadd.f32 %v5630_v36, %v5629_v30  ;;  %v5272_v5 = vpop.f32.mrf.mxu0 }
 0x44c   : > { %v5590_v27 = vand.u32 2147483647, %v5558_v51  ;;  %v5527_v10 = vmax.f32 %v5463_v7, 0.0  ;;  %v5393_v4 = vadd.f32 %v5272_v5, %v4881_v43  ;;  %v9141_v51 = vld [vmem:[#allocation9_spill] sm:$0xff]  ;;  %v5435_v7 = vadd.f32 %v8777_v29, %v8727_v59 }
 0x44d   : > { %v4885_v25 = vpop.f32.mrf.mxu1  ;;  %v5274_v52 = vpop.f32.mrf.mxu0  ;;  %v5498_v5 = vmax.f32 %v5434_v41, 0.0 }
 0x44e   : > { %v5632_v21 = vsel %vm3974_vm11, %v5590_v27, 0.0  ;;  %v5559_v28 = vsub.f32 %v5495_v39, %v5527_v10  ;;  %v4886_v45 = vadd.f32 %v4885_v25, %v9139_v3  ;;  %v5464_v6 = vadd.f32 %v8777_v29, %v5393_v4 }
 0x44f   : > { %v4887_v46 = vpop.f32.mrf.mxu1  ;;  %v5633_v18 = vadd.f32 %v5632_v21, %v5631_v35  ;;  %v5277_v58 = vpop.f32.mrf.mxu0  ;;  %v9142_v21 = vld [vmem:[#allocation8_spill] sm:$0xff] }
 0x450   : > { %v5591_v49 = vand.u32 2147483647, %v5559_v28  ;;  %v5528_v0 = vmax.f32 %v5464_v6, 0.0  ;;  %v5394_v47 = vadd.f32 %v5277_v58, %v4886_v45  ;;  %v5499_v45 = vmax.f32 %v5435_v7, 0.0 }
 0x451   : > { %v4888_v23 = vpop.f32.mrf.mxu1  ;;  %v5279_v17 = vpop.f32.mrf.mxu0 }
 0x452   : > { %v5634_v9 = vsel %vm3974_vm11, %v5591_v49, 0.0  ;;  %v5560_v34 = vsub.f32 %v5496_v12, %v5528_v0  ;;  %v4889_v11 = vadd.f32 %v4888_v23, %v9140_v54  ;;  %v5465_v31 = vadd.f32 %v8777_v29, %v5394_v47  ;;  %v9143_v17 = vld [vmem:[#allocation11_spill] sm:$0xff] }
 0x453   : > { %v4890_v26 = vpop.f32.mrf.mxu1  ;;  %v5635_v30 = vadd.f32 %v5634_v9, %v5633_v18  ;;  %v5280_v44 = vpop.f32.mrf.mxu0  ;;  %v5436_v18 = vadd.f32 %v8777_v29, %v8730_v62  ;;  %v5437_v54 = vadd.f32 %v8777_v29, %v8733_v8 }
 0x454   : > { %v5592_v61 = vand.u32 2147483647, %v5560_v34  ;;  %v5529_v50 = vmax.f32 %v5465_v31, 0.0  ;;  %v5395_v16 = vadd.f32 %v5280_v44, %v4889_v11 }
 0x455   : > { %v4893_v37 = vpop.f32.mrf.mxu1  ;;  %v5282_v33 = vpop.f32.mrf.mxu0 }
 0x456   : > { %v5636_v60 = vsel %vm3974_vm11, %v5592_v61, 0.0  ;;  %v5561_v36 = vsub.f32 %v5497_v48, %v5529_v50  ;;  %v4894_v32 = vadd.f32 %v4893_v37, %v9141_v51  ;;  %v5466_v43 = vadd.f32 %v8777_v29, %v5395_v16 }
 0x457   : > { %v4895_v24 = vpop.f32.mrf.mxu1  ;;  %v5637_v39 = vadd.f32 %v5636_v60, %v5635_v30  ;;  %v5285_v25 = vpop.f32.mrf.mxu0  ;;  %v5500_v30 = vmax.f32 %v5436_v18, 0.0 }
 0x458   : > { %v5593_v15 = vand.u32 2147483647, %v5561_v36  ;;  %v5530_v13 = vmax.f32 %v5466_v43, 0.0  ;;  %v5396_v27 = vadd.f32 %v5285_v25, %v4894_v32  ;;  %v9144_v24 = vld [vmem:[#allocation10_spill] sm:$0xff]  ;;  %v5501_v36 = vmax.f32 %v5437_v54, 0.0 }
 0x459   : > { %v4896_v35 = vpop.f32.mrf.mxu1  ;;  %v5287_v4 = vpop.f32.mrf.mxu0  ;;  %v5438_v43 = vadd.f32 %v8777_v29, %v8736_v1 }
 0x45a   : > { %v5638_v46 = vsel %vm3974_vm11, %v5593_v15, 0.0  ;;  %v5562_v52 = vsub.f32 %v5498_v5, %v5530_v13  ;;  %v4897_v28 = vadd.f32 %v4896_v35, %v9142_v21  ;;  %v5467_v3 = vadd.f32 %v8777_v29, %v5396_v27  ;;  %v9145_v27 = vld [vmem:[#allocation13_spill] sm:$0xff] }
 0x45b   : > { %v4898_v10 = vpop.f32.mrf.mxu1  ;;  %v5639_v6 = vadd.f32 %v5638_v46, %v5637_v39  ;;  %v5288_v59 = vpop.f32.mrf.mxu0  ;;  %v5439_v46 = vadd.f32 %v8777_v29, %v8739_v40 }
 0x45c   : > { %v5594_v23 = vand.u32 2147483647, %v5562_v52  ;;  %v5531_v58 = vmax.f32 %v5467_v3, 0.0  ;;  %v5397_v12 = vadd.f32 %v5288_v59, %v4897_v28  ;;  %v5502_v3 = vmax.f32 %v5438_v43, 0.0  ;;  %v9148_v43 = vld [vmem:[#allocation14_spill] sm:$0xff] }
 0x45d   : > { %v4901_v56 = vpop.f32.mrf.mxu1  ;;  %v5290_v0 = vpop.f32.mrf.mxu0 }
 0x45e   : > { %v5640_v47 = vsel %vm3974_vm11, %v5594_v23, 0.0  ;;  %v5563_v26 = vsub.f32 %v5499_v45, %v5531_v58  ;;  %v4902_v9 = vadd.f32 %v4901_v56, %v9143_v17  ;;  %v5468_v34 = vadd.f32 %v8777_v29, %v5397_v12  ;;  %v9146_v58 = vld [vmem:[#allocation12_spill] sm:$0xff] }
 0x45f   : > { %v4903_v49 = vpop.f32.mrf.mxu1  ;;  %v5641_v11 = vadd.f32 %v5640_v47, %v5639_v6  ;;  %v5293_v48 = vpop.f32.mrf.mxu0  ;;  %v5503_v0 = vmax.f32 %v5439_v46, 0.0  ;;  %v5440_v17 = vadd.f32 %v8777_v29, %v8742_v63 }
 0x460   : > { %v5595_v62 = vand.u32 2147483647, %v5563_v26  ;;  %v5532_v37 = vmax.f32 %v5468_v34, 0.0  ;;  %v5398_v44 = vadd.f32 %v5293_v48, %v4902_v9 }
 0x461   : > { %v4904_v31 = vpop.f32.mrf.mxu1  ;;  %v5295_v61 = vpop.f32.mrf.mxu0 }
 0x462   : > { %v5642_v50 = vsel %vm3974_vm11, %v5595_v62, 0.0  ;;  %v5564_v16 = vsub.f32 %v5500_v30, %v5532_v37  ;;  %v4905_v33 = vadd.f32 %v4904_v31, %v9144_v24  ;;  %v5469_v60 = vadd.f32 %v8777_v29, %v5398_v44  ;;  %v9147_v62 = vld [vmem:[#allocation15_spill] sm:$0xff] }
 0x463   : > { %v4906_v41 = vpop.f32.mrf.mxu1  ;;  %v5643_v51 = vadd.f32 %v5642_v50, %v5641_v11  ;;  %v5296_v8 = vpop.f32.mrf.mxu0  ;;  %v5504_v24 = vmax.f32 %v5440_v17, 0.0 }
 0x464   : > { %v5596_v7 = vand.u32 2147483647, %v5564_v16  ;;  %v5533_v39 = vmax.f32 %v5469_v60, 0.0  ;;  %v5399_v35 = vadd.f32 %v5296_v8, %v4905_v33  ;;  %v5441_v41 = vadd.f32 %v8777_v29, %v8745_v20 }
 0x465   : > { %v4909_v32 = vpop.f32.mrf.mxu1  ;;  %v5298_v5 = vpop.f32.mrf.mxu0 }
 0x466   : > { %v5644_v15 = vsel %vm3974_vm11, %v5596_v7, 0.0  ;;  %v5565_v13 = vsub.f32 %v5501_v36, %v5533_v39  ;;  %v4910_v10 = vadd.f32 %v4909_v32, %v9145_v27  ;;  %v5470_v4 = vadd.f32 %v8777_v29, %v5399_v35 }
 0x467   : > { %v4911_v25 = vpop.f32.mrf.mxu1  ;;  %v5645_v52 = vadd.f32 %v5644_v15, %v5643_v51  ;;  %v5301_v28 = vpop.f32.mrf.mxu0  ;;  %v5505_v35 = vmax.f32 %v5441_v41, 0.0  ;;  %v5442_v15 = vadd.f32 %v8777_v29, %v8748_v53 }
 0x468   : > { %v5597_v1 = vand.u32 2147483647, %v5565_v13  ;;  %v5534_v45 = vmax.f32 %v5470_v4, 0.0  ;;  %v5400_v6 = vadd.f32 %v5301_v28, %v4910_v10  ;;  %v9149_v28 = vld [vmem:[#allocation17_spill] sm:$0xff] }
 0x469   : > { %v4912_v21 = vpop.f32.mrf.mxu1  ;;  %v5303_v59 = vpop.f32.mrf.mxu0 }
 0x46a   : > { %v5646_v18 = vsel %vm3974_vm11, %v5597_v1, 0.0  ;;  %v5566_v23 = vsub.f32 %v5502_v3, %v5534_v45  ;;  %v4913_v12 = vadd.f32 %v4912_v21, %v9146_v58  ;;  %v5471_v49 = vadd.f32 %v8777_v29, %v5400_v6 }
 0x46b   : > { %v4914_v56 = vpop.f32.mrf.mxu1  ;;  %v5647_v47 = vadd.f32 %v5646_v18, %v5645_v52  ;;  %v5304_v40 = vpop.f32.mrf.mxu0  ;;  %v5443_v45 = vadd.f32 %v8777_v29, %v8751_v2  ;;  %v5506_v18 = vmax.f32 %v5442_v15, 0.0 }
 0x46c   : > { %v5598_v9 = vand.u32 2147483647, %v5566_v23  ;;  %v5535_v34 = vmax.f32 %v5471_v49, 0.0  ;;  %v5401_v54 = vadd.f32 %v5304_v40, %v4913_v12 }
 0x46d   : > { %v4917_v26 = vpop.f32.mrf.mxu1  ;;  %v5306_v31 = vpop.f32.mrf.mxu0 }
 0x46e   : > { %v5648_v48 = vsel %vm3974_vm11, %v5598_v9, 0.0  ;;  %v5567_v30 = vsub.f32 %v5503_v0, %v5535_v34  ;;  %v4918_v37 = vadd.f32 %v4917_v26, %v9147_v62  ;;  %v5472_v44 = vadd.f32 %v8777_v29, %v5401_v54  ;;  %v9150_v26 = vld [vmem:[#allocation16_spill] sm:$0xff] }
 0x46f   : > { %v4919_v11 = vpop.f32.mrf.mxu1  ;;  %v5649_v61 = vadd.f32 %v5648_v48, %v5647_v47  ;;  %v5309_v16 = vpop.f32.mrf.mxu0  ;;  %v5507_v9 = vmax.f32 %v5443_v45, 0.0 }
 0x470   : > { %v5599_v63 = vand.u32 2147483647, %v5567_v30  ;;  %v5536_v33 = vmax.f32 %v5472_v44, 0.0  ;;  %v5402_v60 = vadd.f32 %v5309_v16, %v4918_v37  ;;  %v5444_v11 = vadd.f32 %v8777_v29, %v8754_v57 }
 0x471   : > { %v4920_v50 = vpop.f32.mrf.mxu1  ;;  %v5311_v51 = vpop.f32.mrf.mxu0 }
 0x472   : > { %v5650_v32 = vsel %vm3974_vm11, %v5599_v63, 0.0  ;;  %v5568_v8 = vsub.f32 %v5504_v24, %v5536_v33  ;;  %v4921_v7 = vadd.f32 %v4920_v50, %v9148_v43  ;;  %v5473_v39 = vadd.f32 %v8777_v29, %v5402_v60 }
 0x473   : > { %v4922_v36 = vpop.f32.mrf.mxu1  ;;  %v5651_v25 = vadd.f32 %v5650_v32, %v5649_v61  ;;  %v5312_v20 = vpop.f32.mrf.mxu0  ;;  %v9151_v61 = vld [vmem:[#allocation19_spill] sm:$0xff]  ;;  %v5445_v24 = vadd.f32 %v8777_v29, %v8757_v22 }
 0x474   : > { %v5600_v13 = vand.u32 2147483647, %v5568_v8  ;;  %v5537_v27 = vmax.f32 %v5473_v39, 0.0  ;;  %v5403_v10 = vadd.f32 %v5312_v20, %v4921_v7  ;;  %v5508_v36 = vmax.f32 %v5444_v11, 0.0 }
 0x475   : > { %v4925_v5 = vpop.f32.mrf.mxu1  ;;  %v5314_v46 = vpop.f32.mrf.mxu0  ;;  %v5509_v20 = vmax.f32 %v5445_v24, 0.0  ;;  %v5448_v11 = vadd.f32 %v8777_v29, %v8766_v42  ;;  %v5449_v24 = vadd.f32 %v8777_v29, %v8769_v19  ;;  %v5450_v19 = vadd.f32 %v8777_v29, %v8772_v55 }
 0x476   : > { %v5652_v52 = vsel %vm3974_vm11, %v5600_v13, 0.0  ;;  %v5569_v21 = vsub.f32 %v5505_v35, %v5537_v27  ;;  %v4926_v3 = vadd.f32 %v4925_v5, %v9149_v28  ;;  %v5474_v1 = vadd.f32 %v8777_v29, %v5403_v10  ;;  %v9152_v35 = vld [vmem:[#allocation18_spill] sm:$0xff] }
 0x477   : > { %v4927_v4 = vpop.f32.mrf.mxu1  ;;  %v5653_v6 = vadd.f32 %v5652_v52, %v5651_v25  ;;  %v5317_v59 = vpop.f32.mrf.mxu0  ;;  %v5446_v27 = vadd.f32 %v8777_v29, %v8760_v14 }
 0x478   : > { %v5601_v53 = vand.u32 2147483647, %v5569_v21  ;;  %v5538_v23 = vmax.f32 %v5474_v1, 0.0  ;;  %v5404_v58 = vadd.f32 %v5317_v59, %v4926_v3  ;;  %v9153_v1 = vld [vmem:[#allocation21_spill] sm:$0xff] }
 0x479   : > { %v4928_v56 = vpop.f32.mrf.mxu1  ;;  %v5319_v49 = vpop.f32.mrf.mxu0 }
 0x47a   : > { %v5654_v0 = vsel %vm3974_vm11, %v5601_v53, 0.0  ;;  %v5570_v47 = vsub.f32 %v5506_v18, %v5538_v23  ;;  %v4929_v40 = vadd.f32 %v4928_v56, %v9150_v26  ;;  %v5475_v17 = vadd.f32 %v8777_v29, %v5404_v58 }
 0x47b   : > { %v4930_v12 = vpop.f32.mrf.mxu1  ;;  %v5655_v34 = vadd.f32 %v5654_v0, %v5653_v6  ;;  %v5320_v2 = vpop.f32.mrf.mxu0  ;;  %v5447_v56 = vadd.f32 %v8777_v29, %v8763_v38  ;;  %v5510_v23 = vmax.f32 %v5446_v27, 0.0 }
 0x47c   : > { %v5602_v31 = vand.u32 2147483647, %v5570_v47  ;;  %v5539_v48 = vmax.f32 %v5475_v17, 0.0  ;;  %v5405_v30 = vadd.f32 %v5320_v2, %v4929_v40  ;;  %v9154_v40 = vld [vmem:[#allocation20_spill] sm:$0xff] }
 0x47d   : > { %v4933_v54 = vpop.f32.mrf.mxu1  ;;  %v5322_v37 = vpop.f32.mrf.mxu0 }
 0x47e   : > { %v5656_v44 = vsel %vm3974_vm11, %v5602_v31, 0.0  ;;  %v5571_v41 = vsub.f32 %v5507_v9, %v5539_v48  ;;  %v4934_v50 = vadd.f32 %v4933_v54, %v9151_v61  ;;  %v5476_v16 = vadd.f32 %v8777_v29, %v5405_v30  ;;  %v9155_v61 = vld [vmem:[#allocation23_spill] sm:$0xff] }
 0x47f   : > { %v4935_v62 = vpop.f32.mrf.mxu1  ;;  %v5657_v63 = vadd.f32 %v5656_v44, %v5655_v34  ;;  %v5325_v60 = vpop.f32.mrf.mxu0  ;;  %v5511_v34 = vmax.f32 %v5447_v56, 0.0 }
 0x480   : > { %v5603_v57 = vand.u32 2147483647, %v5571_v41  ;;  %v5540_v51 = vmax.f32 %v5476_v16, 0.0  ;;  %v5406_v32 = vadd.f32 %v5325_v60, %v4934_v50 }
 0x481   : > { %v4936_v33 = vpop.f32.mrf.mxu1  ;;  %v5327_v43 = vpop.f32.mrf.mxu0 }
 0x482   : > { %v5658_v7 = vsel %vm3974_vm11, %v5603_v57, 0.0  ;;  %v5572_v39 = vsub.f32 %v5508_v36, %v5540_v51  ;;  %v4937_v25 = vadd.f32 %v4936_v33, %v9152_v35  ;;  %v5477_v5 = vadd.f32 %v8777_v29, %v5406_v32 }
 0x483   : > { %v4938_v8 = vpop.f32.mrf.mxu1  ;;  %v5659_v15 = vadd.f32 %v5658_v7, %v5657_v63  ;;  %v5328_v22 = vpop.f32.mrf.mxu0  ;;  %v5512_v36 = vmax.f32 %v5448_v11, 0.0 }
 0x484   : > { %v5604_v10 = vand.u32 2147483647, %v5572_v39  ;;  %v5541_v4 = vmax.f32 %v5477_v5, 0.0  ;;  %v5407_v46 = vadd.f32 %v5328_v22, %v4937_v25  ;;  %v9156_v39 = vld [vmem:[#allocation22_spill] sm:$0xff]  ;;  %v5513_v5 = vmax.f32 %v5449_v24, 0.0 }
 0x485   : > { %v4941_v13 = vpop.f32.mrf.mxu1  ;;  %v5330_v21 = vpop.f32.mrf.mxu0 }
 0x486   : > { %v5660_v28 = vsel %vm3974_vm11, %v5604_v10, 0.0  ;;  %v5573_v3 = vsub.f32 %v5509_v20, %v5541_v4  ;;  %v4942_v45 = vadd.f32 %v4941_v13, %v9153_v1  ;;  %v5478_v6 = vadd.f32 %v8777_v29, %v5407_v46 }
 0x487   : > { %v4943_v52 = vpop.f32.mrf.mxu1  ;;  %v5661_v59 = vadd.f32 %v5660_v28, %v5659_v15  ;;  %v5333_v53 = vpop.f32.mrf.mxu0  ;;  %v5514_v28 = vmax.f32 %v5450_v19, 0.0 }
 0x488   : > { %v5605_v14 = vand.u32 2147483647, %v5573_v3  ;;  %v5542_v58 = vmax.f32 %v5478_v6, 0.0  ;;  %v5408_v12 = vadd.f32 %v5333_v53, %v4942_v45 }
 0x489   : > { %v4944_v18 = vpop.f32.mrf.mxu1  ;;  %v5335_v0 = vpop.f32.mrf.mxu0 }
 0x48a   : > { %v5662_v47 = vsel %vm3974_vm11, %v5605_v14, 0.0  ;;  %v5574_v26 = vsub.f32 %v5510_v23, %v5542_v58  ;;  %v4945_v17 = vadd.f32 %v4944_v18, %v9154_v40  ;;  %v5479_v9 = vadd.f32 %v8777_v29, %v5408_v12 }
 0x48b   : > { %v4946_v49 = vpop.f32.mrf.mxu1  ;;  %v5663_v54 = vadd.f32 %v5662_v47, %v5661_v59  ;;  %v5336_v38 = vpop.f32.mrf.mxu0 }
 0x48c   : > { %v5606_v31 = vand.u32 2147483647, %v5574_v26  ;;  %v5543_v48 = vmax.f32 %v5479_v9, 0.0  ;;  %v5409_v30 = vadd.f32 %v5336_v38, %v4945_v17 }
 0x48d   : > { %v4949_v2 = vpop.f32.mrf.mxu1  ;;  %v5338_v37 = vpop.f32.mrf.mxu0 }
 0x48e   : > { %v5664_v44 = vsel %vm3974_vm11, %v5606_v31, 0.0  ;;  %v5575_v41 = vsub.f32 %v5511_v34, %v5543_v48  ;;  %v4950_v50 = vadd.f32 %v4949_v2, %v9155_v61  ;;  %v5480_v16 = vadd.f32 %v8777_v29, %v5409_v30 }
 0x48f   : > { %v4951_v62 = vpop.f32.mrf.mxu1  ;;  %v5665_v63 = vadd.f32 %v5664_v44, %v5663_v54  ;;  %v5341_v60 = vpop.f32.mrf.mxu0 }
 0x490   : > { %v5607_v42 = vand.u32 2147483647, %v5575_v41  ;;  %v5544_v57 = vmax.f32 %v5480_v16, 0.0  ;;  %v5410_v51 = vadd.f32 %v5341_v60, %v4950_v50 }
 0x491   : > { %v4952_v33 = vpop.f32.mrf.mxu1  ;;  %v5343_v8 = vpop.f32.mrf.mxu0 }
 0x492   : > { %v5666_v43 = vsel %vm3974_vm11, %v5607_v42, 0.0  ;;  %v5576_v7 = vsub.f32 %v5512_v36, %v5544_v57  ;;  %v4953_v35 = vadd.f32 %v4952_v33, %v9156_v39  ;;  %v5481_v25 = vadd.f32 %v8777_v29, %v5410_v51 }
 0x493   : > { %v4954_v32 = vpop.f32.mrf.mxu1  ;;  %v5344_v20 = vpop.f32.mrf.mxu0  ;;  %v5667_v15 = vadd.f32 %v5666_v43, %v5665_v63 }
 0x494   : > { %v5608_v13 = vand.u32 2147483647, %v5576_v7  ;;  %v5545_v22 = vmax.f32 %v5481_v25, 0.0  ;;  %v5411_v27 = vadd.f32 %v5344_v20, %v4953_v35 }
 0x495   : > { %v5346_v10 = vpop.f32.mrf.mxu0 }
 0x496   : > { %v5577_v4 = vsub.f32 %v5513_v5, %v5545_v22  ;;  %v5482_v46 = vadd.f32 %v8777_v29, %v5411_v27  ;;  %v5668_v52 = vsel %vm3974_vm11, %v5608_v13, 0.0 }
 0x497   : > { %v5669_v21 = vadd.f32 %v5668_v52, %v5667_v15 }
 0x498   : > { %v5609_v3 = vand.u32 2147483647, %v5577_v4  ;;  %v5546_v1 = vmax.f32 %v5482_v46, 0.0 }
 0x49a   : > { %v5578_v45 = vsub.f32 %v5514_v28, %v5546_v1  ;;  %v5670_v6 = vsel %vm3974_vm11, %v5609_v3, 0.0 }
 0x49b   : > { %v5671_v56 = vadd.f32 %v5670_v6, %v5669_v21 }
 0x49c   : > { %v5610_v59 = vand.u32 2147483647, %v5578_v45 }
 0x49e   : > { %v5672_v55 = vsel %vm3974_vm11, %v5610_v59, 0.0 }
 0x49f   : > { %v5673_v18 = vadd.f32 %v5672_v55, %v5671_v56 }
 0x4a1   : > { %5674 = vadd.xlane.f32.xlu0 %v5673_v18 }
 0x52a   : > { %v5675_v53 = vpop.xlane.xlu0 %5674 }
 0x52b   : > { %v5676_v23 = vrot.slane %v5675_v53, 4 }
 0x52d   : > { %v5677_v14 = vadd.f32 %v5676_v23, %v5675_v53 }
 0x52f   : > { %v5678_v29 = vrot.slane %v5677_v14, 2 }
 0x531   : > { %v5679_v58 = vadd.f32 %v5678_v29, %v5677_v14 }
 0x533   : > { %v5680_v12 = vrot.slane %v5679_v58, 1 }
 0x535   : > { %v5681_v49 = vadd.f32 %v5680_v12, %v5679_v58 }
 0x537   : > { %6428 = vpush %v5681_v49 }
 0x568   : > { %s6429_s26 = spop %6428 }
 0x569   : > { %v5683_v0 = vstv %s6429_s26 }
 0x56a   : > { %5684 = vst [vmem:[%s317_s25] sm:$0xff] %v5683_v0 }
 0x56b PF: > { %s16_s23 = sadd.s32 1, %s6659_s23   ;;  %s9157_s21 = smov %s6655_s22 }
 0x56c   : > { %p13_p5 = scmp.ge.s32.totalorder %s16_s23, 4   ;;  %s9158_s22 = smov %s9160_s24 }
 0x56e   :  { %15 = sbr.rel (!%p13_p5) target bundleno = 2 (0x2), region = 80 }

</bundles_post_ra>
